<compile_context>
chip_gen: v7x
topology: tpu7x:2x2x1
jax: 0.10.0
libtpu: 0.0.40
codegen_flags: <defaults>
</compile_context>

<pallas_src>
import jax
import jax.numpy as jnp
from jax.experimental import pallas as pl
from jax.experimental.pallas import tpu as pltpu

# ---- model constants (from DeepConvLSTM.py) --------------------------------
NB_SENSOR_CHANNELS = 113
SLIDING_WINDOW_LENGTH = 24
NUM_FILTERS = 64
NUM_UNITS_LSTM = 128
NUM_CLASSES = 18
FILTER_SIZE = 5
BATCH_SIZE = 8          # small batch for the example (plays the role of 100)
COL_STRIDE = 128        # lane-aligned stride for the im2col packing


# ---- Pallas kernels ---------------------------------------------------------

def conv_stack_kernel(x_ref, w1, b1, w2, b2, w3, b3, w4, b4, o_ref, cols_ref):
    """All 4 conv1d+ReLU layers fused.  x: (B, L, C) channel-last.

    Each layer builds an im2col buffer in VMEM scratch with 128-lane-aligned
    taps (cols[:, t, k*128 + c] = x[:, t+k, c]) and does a single MXU matmul
    with contraction depth K*128 against zero-padded, pre-packed weights.
    """
    K = FILTER_SIZE
    cols_ref[...] = jnp.zeros_like(cols_ref)          # zero the pad lanes once
    x = x_ref[...]                                    # (B, 24, 113)
    for w_ref, b_ref in ((w1, b1), (w2, b2), (w3, b3), (w4, b4)):
        L_out = x.shape[1] - (K - 1)
        C_in = x.shape[2]
        for k in range(K):                            # static, lane-aligned stores
            cols_ref[:, :L_out, k * COL_STRIDE:k * COL_STRIDE + C_in] = \
                x[:, k:k + L_out, :]
        y = jax.lax.dot_general(
            cols_ref[:, :L_out, :], w_ref[...],
            dimension_numbers=(((2,), (0,)), ((), ())),
            preferred_element_type=jnp.float32)       # (B, L_out, 64)
        x = jnp.maximum(y + b_ref[...], 0.0)
    o_ref[...] = x                                    # (B, 8, 64)


def lstm_head_kernel(x2d_ref, h0_ref, c0_ref,
                     wih1, whh1, b1, wih2, whh2, b2, wout, bout,
                     out_ref, hn_ref, cn_ref, y1_ref, sel_ref):
    """LSTM1 + LSTM2 + final linear, fully unrolled over T inside one call.

    x2d: (T*B, I) time-major flattened input.  Input projections are hoisted
    out of the recurrence (one big matmul per layer); the per-step work is
    only h @ W_hh plus the gate nonlinearities.
    """
    B, H = h0_ref.shape
    T = x2d_ref.shape[0] // B

    def cell(xp_t, h, c, whh_v, b_v):
        gates = xp_t + jnp.dot(h, whh_v, preferred_element_type=jnp.float32) + b_v
        i = jax.nn.sigmoid(gates[:, 0 * H:1 * H])     # PyTorch gate order i,f,g,o
        f = jax.nn.sigmoid(gates[:, 1 * H:2 * H])
        g = jnp.tanh(gates[:, 2 * H:3 * H])
        o = jax.nn.sigmoid(gates[:, 3 * H:4 * H])
        c_new = f * c + i * g
        h_new = o * jnp.tanh(c_new)
        return h_new, c_new

    # ---- LSTM layer 1: hoisted input projection, unrolled recurrence -------
    xp1 = jnp.dot(x2d_ref[...], wih1[...], preferred_element_type=jnp.float32)
    whh1_v, b1_v = whh1[...], b1[...]
    h, c = h0_ref[...], c0_ref[...]
    for t in range(T):
        h, c = cell(xp1[t * B:(t + 1) * B, :], h, c, whh1_v, b1_v)
        y1_ref[t * B:(t + 1) * B, :] = h

    # ---- LSTM layer 2 (initial state = layer-1 final state, as in PyTorch) -
    xp2 = jnp.dot(y1_ref[...], wih2[...], preferred_element_type=jnp.float32)
    whh2_v, b2_v = whh2[...], b2[...]
    for t in range(T):
        h, c = cell(xp2[t * B:(t + 1) * B, :], h, c, whh2_v, b2_v)
        sel_ref[t:t + 1, :] = h[B - 1:B, :]           # only rows the head needs

    hn_ref[...] = h
    cn_ref[...] = c
    # Final linear only on the T selected rows (matches `[:, -1, :]` for the
    # toy batch where BATCH_SIZE == T == 8).
    out_ref[...] = (jnp.dot(sel_ref[...], wout[...],
                            preferred_element_type=jnp.float32) + bout[...])


# ---- wrappers ---------------------------------------------------------------

def conv_stack(x_cl, pk):
    B = x_cl.shape[0]
    L_out1 = SLIDING_WINDOW_LENGTH - (FILTER_SIZE - 1)            # 20
    return pl.pallas_call(
        conv_stack_kernel,
        out_shape=jax.ShapeDtypeStruct((B, 8, NUM_FILTERS), jnp.float32),
        scratch_shapes=[pltpu.VMEM((B, L_out1, FILTER_SIZE * COL_STRIDE),
                                   jnp.float32)],
    )(x_cl,
      pk["conv1_wp"], pk["conv1_b"], pk["conv2_wp"], pk["conv2_b"],
      pk["conv3_wp"], pk["conv3_b"], pk["conv4_wp"], pk["conv4_b"])


def lstm_head(x2d, h0, c0, pk):
    B, H = h0.shape
    T = x2d.shape[0] // B
    out, hn, cn = pl.pallas_call(
        lstm_head_kernel,
        out_shape=[
            jax.ShapeDtypeStruct((T, NUM_CLASSES), jnp.float32),
            jax.ShapeDtypeStruct((B, H), jnp.float32),
            jax.ShapeDtypeStruct((B, H), jnp.float32),
        ],
        scratch_shapes=[pltpu.VMEM((T * B, H), jnp.float32),
                        pltpu.VMEM((T, H), jnp.float32)],
    )(x2d, h0, c0,
      pk["lstm1_wih"], pk["lstm1_whh"], pk["lstm1_b"],
      pk["lstm2_wih"], pk["lstm2_whh"], pk["lstm2_b"],
      pk["out_w"], pk["out_b"])
    return out, hn, cn


# ---- parameters (deterministic, PyTorch-like uniform init) ------------------

def init_params(key):
    keys = jax.random.split(key, 16)

    def u(k, shape, fan_in):
        bound = 1.0 / jnp.sqrt(jnp.float32(fan_in))
        return jax.random.uniform(k, shape, jnp.float32, -bound, bound)

    p = {}
    c_ins = [NB_SENSOR_CHANNELS, NUM_FILTERS, NUM_FILTERS, NUM_FILTERS]
    for i, cin in enumerate(c_ins):
        p[f"conv{i+1}_w"] = u(keys[2 * i], (NUM_FILTERS, cin, FILTER_SIZE),
                              cin * FILTER_SIZE)
        p[f"conv{i+1}_b"] = u(keys[2 * i + 1], (NUM_FILTERS,), cin * FILTER_SIZE)
    H = NUM_UNITS_LSTM
    for name, isz, k0 in (("lstm1", NUM_FILTERS, 8), ("lstm2", H, 11)):
        p[f"{name}_wih"] = u(keys[k0], (4 * H, isz), H)
        p[f"{name}_whh"] = u(keys[k0 + 1], (4 * H, H), H)
        p[f"{name}_b"] = u(keys[k0 + 2], (8 * H,), H)   # [b_ih ; b_hh]
    p["out_w"] = u(keys[14], (NUM_CLASSES, H), H)
    p["out_b"] = u(keys[15], (NUM_CLASSES,), H)
    return p


def prepack_params(p):
    """One-time weight packing done OUTSIDE the jitted forward."""
    H = NUM_UNITS_LSTM
    pk = {}
    for i in range(1, 5):
        w = p[f"conv{i}_w"]                                # (C_out, C_in, K)
        kio = jnp.transpose(w, (2, 1, 0))                  # (K, C_in, C_out)
        kio = jnp.pad(kio, ((0, 0), (0, COL_STRIDE - kio.shape[1]), (0, 0)))
        pk[f"conv{i}_wp"] = kio.reshape(FILTER_SIZE * COL_STRIDE, NUM_FILTERS)
        pk[f"conv{i}_b"] = p[f"conv{i}_b"].reshape(1, 1, NUM_FILTERS)
    for name in ("lstm1", "lstm2"):
        pk[f"{name}_wih"] = jnp.transpose(p[f"{name}_wih"])   # (I, 4H)
        pk[f"{name}_whh"] = jnp.transpose(p[f"{name}_whh"])   # (H, 4H)
        pk[f"{name}_b"] = (p[f"{name}_b"][:4 * H]
                           + p[f"{name}_b"][4 * H:]).reshape(1, 4 * H)
    pk["out_w"] = jnp.transpose(p["out_w"])                   # (H, classes)
    pk["out_b"] = p["out_b"].reshape(1, -1)
    return pk


# ---- forward pass (mirrors Net.forward) -------------------------------------

def net_forward(pk, x, hidden):
    h0, c0 = hidden                                      # each (1, B, H)

    # x = x.view(-1, NB_SENSOR_CHANNELS, SLIDING_WINDOW_LENGTH)  -- NCW
    x = x.reshape(-1, NB_SENSOR_CHANNELS, SLIDING_WINDOW_LENGTH)
    x_cl = jnp.transpose(x, (0, 2, 1))                   # channel-last (B, L, C)

    conv_out = conv_stack(x_cl, pk)                      # (B, 8, 64) channel-last

    # Reproduce torch's raw memory reshape x.view(8, -1, n_filters) on NCW
    # data.  NOTE: this factorization (and the `[:, -1, :]` selection fused
    # into the LSTM kernel) matches the PyTorch semantics for the toy
    # BATCH_SIZE == 8 used here (same caveat as the original script).
    x_ncw = jnp.transpose(conv_out, (0, 2, 1))           # (B, 64, 8) contiguous
    x_seq = x_ncw.reshape(8, -1, NUM_FILTERS)            # (T=8, B, 64)
    x2d = x_seq.reshape(-1, NUM_FILTERS)                 # (T*B, 64)

    # TODO(synk): nn.Dropout(p=0.5) has no deterministic hot-path; inference
    # (identity) behaviour is used here.
    out, hn, cn = lstm_head(x2d, h0[0], c0[0], pk)
    return out, (hn[None], cn[None])


# ---- pure-JAX reference (for correctness check) -----------------------------

def reference_forward(params, x, hidden):
    h0, c0 = hidden
    H = NUM_UNITS_LSTM
    x = x.reshape(-1, NB_SENSOR_CHANNELS, SLIDING_WINDOW_LENGTH)

    def conv1d(xn, w, b):
        K = w.shape[2]
        L_out = xn.shape[2] - K + 1
        cols = [jnp.einsum('bck,ock->bo', xn[:, :, t:t + K], w)
                for t in range(L_out)]
        return jnp.stack(cols, axis=-1) + b[None, :, None]

    for i in range(1, 5):
        x = jax.nn.relu(conv1d(x, params[f"conv{i}_w"], params[f"conv{i}_b"]))
    x = x.reshape(8, -1, NUM_FILTERS)

    def lstm_ref(name, xin, h, c):
        w_ih, w_hh = params[f"{name}_wih"], params[f"{name}_whh"]
        b = params[f"{name}_b"][:4 * H] + params[f"{name}_b"][4 * H:]

        def step(carry, xt):
            h, c = carry
            g = xt @ w_ih.T + h @ w_hh.T + b
            i_, f_, g_, o_ = jnp.split(g, 4, axis=-1)
            c = jax.nn.sigmoid(f_) * c + jax.nn.sigmoid(i_) * jnp.tanh(g_)
            h = jax.nn.sigmoid(o_) * jnp.tanh(c)
            return (h, c), h

        (h, c), ys = jax.lax.scan(step, (h, c), xin)
        return ys, h, c

    y1, h1, c1 = lstm_ref("lstm1", x, h0[0], c0[0])
    y2, h2, c2 = lstm_ref("lstm2", y1, h1, c1)
    logits = y2.reshape(-1, H) @ params["out_w"].T + params["out_b"]
    out = logits.reshape(BATCH_SIZE, -1, NUM_CLASSES)[:, -1, :]
    return out, (h2[None], c2[None])


# ---- main -------------------------------------------------------------------

if __name__ == "__main__":
    key = jax.random.PRNGKey(0)
    pkey, xkey = jax.random.split(key)
    params = init_params(pkey)
    packed = prepack_params(params)
    x = jax.random.normal(
        xkey, (BATCH_SIZE, NB_SENSOR_CHANNELS, SLIDING_WINDOW_LENGTH), jnp.float32)
    hidden = (jnp.zeros((1, BATCH_SIZE, NUM_UNITS_LSTM), jnp.float32),
              jnp.zeros((1, BATCH_SIZE, NUM_UNITS_LSTM), jnp.float32))

    out, (hn, cn) = jax.jit(net_forward)(packed, x, hidden)
    out = jax.block_until_ready(out)

    ref_out, _ = reference_forward(params, x, hidden)
    assert out.shape == (BATCH_SIZE, NUM_CLASSES)
    assert hn.shape == (1, BATCH_SIZE, NUM_UNITS_LSTM)
    assert bool(jnp.all(jnp.isfinite(out)))
    assert bool(jnp.allclose(out, ref_out, rtol=2e-2, atol=2e-2))
    print("KERNEL_OK")
</pallas_src>

<mosaic_0001>
module attributes {stable_mosaic.version = 11 : i64} {
  func.func @conv_stack_kernel(%arg0: memref<8x24x113xf32, #tpu.memory_space<vmem>>, %arg1: memref<640x64xf32, #tpu.memory_space<vmem>>, %arg2: memref<1x1x64xf32, #tpu.memory_space<vmem>>, %arg3: memref<640x64xf32, #tpu.memory_space<vmem>>, %arg4: memref<1x1x64xf32, #tpu.memory_space<vmem>>, %arg5: memref<640x64xf32, #tpu.memory_space<vmem>>, %arg6: memref<1x1x64xf32, #tpu.memory_space<vmem>>, %arg7: memref<640x64xf32, #tpu.memory_space<vmem>>, %arg8: memref<1x1x64xf32, #tpu.memory_space<vmem>>, %arg9: memref<8x8x64xf32, #tpu.memory_space<vmem>>, %arg10: memref<8x20x640xf32, #tpu.memory_space<vmem>>) attributes {dimension_semantics = [], scalar_prefetch = 0 : i64, scratch_operands = 1 : i64, tpu.core_type = #tpu.core_type<tc>} {
    %cst = arith.constant 0.000000e+00 : f32
    %0 = vector.broadcast %cst : f32 to vector<8x20x640xf32>
    %c0 = arith.constant 0 : index
    %c0_0 = arith.constant 0 : index
    %c0_1 = arith.constant 0 : index
    %1 = vector.load %arg10[%c0, %c0_0, %c0_1] : memref<8x20x640xf32, #tpu.memory_space<vmem>>, vector<8x20x640xf32>
    tpu.vector_store %arg10[%c0, %c0_0, %c0_1], %0 {strides = array<i32>} : memref<8x20x640xf32, #tpu.memory_space<vmem>>, vector<8x20x640xf32>,
    %c0_2 = arith.constant 0 : index
    %c0_3 = arith.constant 0 : index
    %c0_4 = arith.constant 0 : index
    %2 = vector.load %arg0[%c0_2, %c0_3, %c0_4] : memref<8x24x113xf32, #tpu.memory_space<vmem>>, vector<8x24x113xf32>
    %3 = vector.extract_strided_slice %2 {offsets = [0, 0, 0], sizes = [8, 20, 113], strides = [1, 1, 1]} : vector<8x24x113xf32> to vector<8x20x113xf32>
    %c0_5 = arith.constant 0 : index
    %c0_6 = arith.constant 0 : index
    %c0_7 = arith.constant 0 : index
    %4 = vector.load %arg10[%c0_5, %c0_6, %c0_7] : memref<8x20x640xf32, #tpu.memory_space<vmem>>, vector<8x20x113xf32>
    tpu.vector_store %arg10[%c0_5, %c0_6, %c0_7], %3 {strides = array<i32>} : memref<8x20x640xf32, #tpu.memory_space<vmem>>, vector<8x20x113xf32>,
    %5 = vector.extract_strided_slice %2 {offsets = [0, 1, 0], sizes = [8, 20, 113], strides = [1, 1, 1]} : vector<8x24x113xf32> to vector<8x20x113xf32>
    %c0_8 = arith.constant 0 : index
    %c0_9 = arith.constant 0 : index
    %c128 = arith.constant 128 : index
    %6 = vector.load %arg10[%c0_8, %c0_9, %c128] : memref<8x20x640xf32, #tpu.memory_space<vmem>>, vector<8x20x113xf32>
    tpu.vector_store %arg10[%c0_8, %c0_9, %c128], %5 {strides = array<i32>} : memref<8x20x640xf32, #tpu.memory_space<vmem>>, vector<8x20x113xf32>,
    %7 = vector.extract_strided_slice %2 {offsets = [0, 2, 0], sizes = [8, 20, 113], strides = [1, 1, 1]} : vector<8x24x113xf32> to vector<8x20x113xf32>
    %c0_10 = arith.constant 0 : index
    %c0_11 = arith.constant 0 : index
    %c256 = arith.constant 256 : index
    %8 = vector.load %arg10[%c0_10, %c0_11, %c256] : memref<8x20x640xf32, #tpu.memory_space<vmem>>, vector<8x20x113xf32>
    tpu.vector_store %arg10[%c0_10, %c0_11, %c256], %7 {strides = array<i32>} : memref<8x20x640xf32, #tpu.memory_space<vmem>>, vector<8x20x113xf32>,
    %9 = vector.extract_strided_slice %2 {offsets = [0, 3, 0], sizes = [8, 20, 113], strides = [1, 1, 1]} : vector<8x24x113xf32> to vector<8x20x113xf32>
    %c0_12 = arith.constant 0 : index
    %c0_13 = arith.constant 0 : index
    %c384 = arith.constant 384 : index
    %10 = vector.load %arg10[%c0_12, %c0_13, %c384] : memref<8x20x640xf32, #tpu.memory_space<vmem>>, vector<8x20x113xf32>
    tpu.vector_store %arg10[%c0_12, %c0_13, %c384], %9 {strides = array<i32>} : memref<8x20x640xf32, #tpu.memory_space<vmem>>, vector<8x20x113xf32>,
    %11 = vector.extract_strided_slice %2 {offsets = [0, 4, 0], sizes = [8, 20, 113], strides = [1, 1, 1]} : vector<8x24x113xf32> to vector<8x20x113xf32>
    %c0_14 = arith.constant 0 : index
    %c0_15 = arith.constant 0 : index
    %c512 = arith.constant 512 : index
    %12 = vector.load %arg10[%c0_14, %c0_15, %c512] : memref<8x20x640xf32, #tpu.memory_space<vmem>>, vector<8x20x113xf32>
    tpu.vector_store %arg10[%c0_14, %c0_15, %c512], %11 {strides = array<i32>} : memref<8x20x640xf32, #tpu.memory_space<vmem>>, vector<8x20x113xf32>,
    %c0_16 = arith.constant 0 : index
    %c0_17 = arith.constant 0 : index
    %c0_18 = arith.constant 0 : index
    %13 = vector.load %arg10[%c0_16, %c0_17, %c0_18] : memref<8x20x640xf32, #tpu.memory_space<vmem>>, vector<8x20x640xf32>
    %c0_19 = arith.constant 0 : index
    %c0_20 = arith.constant 0 : index
    %14 = vector.load %arg1[%c0_19, %c0_20] : memref<640x64xf32, #tpu.memory_space<vmem>>, vector<640x64xf32>
    %cst_21 = arith.constant dense<0.000000e+00> : vector<8x20x64xf32>
    %15 = tpu.matmul %13, %14, %cst_21 {dimension_numbers = #tpu.dot_dimension_numbers<[2], [0], [0, 1], [1], [0, 0, 0, 1, 1, 1], [], []>} : vector<8x20x640xf32>, vector<640x64xf32>, vector<8x20x64xf32> -> vector<8x20x64xf32>
    %c0_22 = arith.constant 0 : index
    %c0_23 = arith.constant 0 : index
    %c0_24 = arith.constant 0 : index
    %16 = vector.load %arg2[%c0_22, %c0_23, %c0_24] : memref<1x1x64xf32, #tpu.memory_space<vmem>>, vector<1x1x64xf32>
    %17 = vector.broadcast %16 : vector<1x1x64xf32> to vector<8x20x64xf32>
    %18 = arith.addf %15, %17 : vector<8x20x64xf32>
    %cst_25 = arith.constant 0.000000e+00 : f32
    %19 = vector.broadcast %cst_25 : f32 to vector<8x20x64xf32>
    %20 = arith.maximumf %18, %19 : vector<8x20x64xf32>
    %21 = vector.extract_strided_slice %20 {offsets = [0, 0, 0], sizes = [8, 16, 64], strides = [1, 1, 1]} : vector<8x20x64xf32> to vector<8x16x64xf32>
    %c0_26 = arith.constant 0 : index
    %c0_27 = arith.constant 0 : index
    %c0_28 = arith.constant 0 : index
    %22 = vector.load %arg10[%c0_26, %c0_27, %c0_28] : memref<8x20x640xf32, #tpu.memory_space<vmem>>, vector<8x16x64xf32>
    tpu.vector_store %arg10[%c0_26, %c0_27, %c0_28], %21 {strides = array<i32>} : memref<8x20x640xf32, #tpu.memory_space<vmem>>, vector<8x16x64xf32>,
    %23 = vector.extract_strided_slice %20 {offsets = [0, 1, 0], sizes = [8, 16, 64], strides = [1, 1, 1]} : vector<8x20x64xf32> to vector<8x16x64xf32>
    %c0_29 = arith.constant 0 : index
    %c0_30 = arith.constant 0 : index
    %c128_31 = arith.constant 128 : index
    %24 = vector.load %arg10[%c0_29, %c0_30, %c128_31] : memref<8x20x640xf32, #tpu.memory_space<vmem>>, vector<8x16x64xf32>
    tpu.vector_store %arg10[%c0_29, %c0_30, %c128_31], %23 {strides = array<i32>} : memref<8x20x640xf32, #tpu.memory_space<vmem>>, vector<8x16x64xf32>,
    %25 = vector.extract_strided_slice %20 {offsets = [0, 2, 0], sizes = [8, 16, 64], strides = [1, 1, 1]} : vector<8x20x64xf32> to vector<8x16x64xf32>
    %c0_32 = arith.constant 0 : index
    %c0_33 = arith.constant 0 : index
    %c256_34 = arith.constant 256 : index
    %26 = vector.load %arg10[%c0_32, %c0_33, %c256_34] : memref<8x20x640xf32, #tpu.memory_space<vmem>>, vector<8x16x64xf32>
    tpu.vector_store %arg10[%c0_32, %c0_33, %c256_34], %25 {strides = array<i32>} : memref<8x20x640xf32, #tpu.memory_space<vmem>>, vector<8x16x64xf32>,
    %27 = vector.extract_strided_slice %20 {offsets = [0, 3, 0], sizes = [8, 16, 64], strides = [1, 1, 1]} : vector<8x20x64xf32> to vector<8x16x64xf32>
    %c0_35 = arith.constant 0 : index
    %c0_36 = arith.constant 0 : index
    %c384_37 = arith.constant 384 : index
    %28 = vector.load %arg10[%c0_35, %c0_36, %c384_37] : memref<8x20x640xf32, #tpu.memory_space<vmem>>, vector<8x16x64xf32>
    tpu.vector_store %arg10[%c0_35, %c0_36, %c384_37], %27 {strides = array<i32>} : memref<8x20x640xf32, #tpu.memory_space<vmem>>, vector<8x16x64xf32>,
    %29 = vector.extract_strided_slice %20 {offsets = [0, 4, 0], sizes = [8, 16, 64], strides = [1, 1, 1]} : vector<8x20x64xf32> to vector<8x16x64xf32>
    %c0_38 = arith.constant 0 : index
    %c0_39 = arith.constant 0 : index
    %c512_40 = arith.constant 512 : index
    %30 = vector.load %arg10[%c0_38, %c0_39, %c512_40] : memref<8x20x640xf32, #tpu.memory_space<vmem>>, vector<8x16x64xf32>
    tpu.vector_store %arg10[%c0_38, %c0_39, %c512_40], %29 {strides = array<i32>} : memref<8x20x640xf32, #tpu.memory_space<vmem>>, vector<8x16x64xf32>,
    %c0_41 = arith.constant 0 : index
    %c0_42 = arith.constant 0 : index
    %c0_43 = arith.constant 0 : index
    %31 = vector.load %arg10[%c0_41, %c0_42, %c0_43] : memref<8x20x640xf32, #tpu.memory_space<vmem>>, vector<8x16x640xf32>
    %c0_44 = arith.constant 0 : index
    %c0_45 = arith.constant 0 : index
    %32 = vector.load %arg3[%c0_44, %c0_45] : memref<640x64xf32, #tpu.memory_space<vmem>>, vector<640x64xf32>
    %cst_46 = arith.constant dense<0.000000e+00> : vector<8x16x64xf32>
    %33 = tpu.matmul %31, %32, %cst_46 {dimension_numbers = #tpu.dot_dimension_numbers<[2], [0], [0, 1], [1], [0, 0, 0, 1, 1, 1], [], []>} : vector<8x16x640xf32>, vector<640x64xf32>, vector<8x16x64xf32> -> vector<8x16x64xf32>
    %c0_47 = arith.constant 0 : index
    %c0_48 = arith.constant 0 : index
    %c0_49 = arith.constant 0 : index
    %34 = vector.load %arg4[%c0_47, %c0_48, %c0_49] : memref<1x1x64xf32, #tpu.memory_space<vmem>>, vector<1x1x64xf32>
    %35 = vector.broadcast %34 : vector<1x1x64xf32> to vector<8x16x64xf32>
    %36 = arith.addf %33, %35 : vector<8x16x64xf32>
    %cst_50 = arith.constant 0.000000e+00 : f32
    %37 = vector.broadcast %cst_50 : f32 to vector<8x16x64xf32>
    %38 = arith.maximumf %36, %37 : vector<8x16x64xf32>
    %39 = vector.extract_strided_slice %38 {offsets = [0, 0, 0], sizes = [8, 12, 64], strides = [1, 1, 1]} : vector<8x16x64xf32> to vector<8x12x64xf32>
    %c0_51 = arith.constant 0 : index
    %c0_52 = arith.constant 0 : index
    %c0_53 = arith.constant 0 : index
    %40 = vector.load %arg10[%c0_51, %c0_52, %c0_53] : memref<8x20x640xf32, #tpu.memory_space<vmem>>, vector<8x12x64xf32>
    tpu.vector_store %arg10[%c0_51, %c0_52, %c0_53], %39 {strides = array<i32>} : memref<8x20x640xf32, #tpu.memory_space<vmem>>, vector<8x12x64xf32>,
    %41 = vector.extract_strided_slice %38 {offsets = [0, 1, 0], sizes = [8, 12, 64], strides = [1, 1, 1]} : vector<8x16x64xf32> to vector<8x12x64xf32>
    %c0_54 = arith.constant 0 : index
    %c0_55 = arith.constant 0 : index
    %c128_56 = arith.constant 128 : index
    %42 = vector.load %arg10[%c0_54, %c0_55, %c128_56] : memref<8x20x640xf32, #tpu.memory_space<vmem>>, vector<8x12x64xf32>
    tpu.vector_store %arg10[%c0_54, %c0_55, %c128_56], %41 {strides = array<i32>} : memref<8x20x640xf32, #tpu.memory_space<vmem>>, vector<8x12x64xf32>,
    %43 = vector.extract_strided_slice %38 {offsets = [0, 2, 0], sizes = [8, 12, 64], strides = [1, 1, 1]} : vector<8x16x64xf32> to vector<8x12x64xf32>
    %c0_57 = arith.constant 0 : index
    %c0_58 = arith.constant 0 : index
    %c256_59 = arith.constant 256 : index
    %44 = vector.load %arg10[%c0_57, %c0_58, %c256_59] : memref<8x20x640xf32, #tpu.memory_space<vmem>>, vector<8x12x64xf32>
    tpu.vector_store %arg10[%c0_57, %c0_58, %c256_59], %43 {strides = array<i32>} : memref<8x20x640xf32, #tpu.memory_space<vmem>>, vector<8x12x64xf32>,
    %45 = vector.extract_strided_slice %38 {offsets = [0, 3, 0], sizes = [8, 12, 64], strides = [1, 1, 1]} : vector<8x16x64xf32> to vector<8x12x64xf32>
    %c0_60 = arith.constant 0 : index
    %c0_61 = arith.constant 0 : index
    %c384_62 = arith.constant 384 : index
    %46 = vector.load %arg10[%c0_60, %c0_61, %c384_62] : memref<8x20x640xf32, #tpu.memory_space<vmem>>, vector<8x12x64xf32>
    tpu.vector_store %arg10[%c0_60, %c0_61, %c384_62], %45 {strides = array<i32>} : memref<8x20x640xf32, #tpu.memory_space<vmem>>, vector<8x12x64xf32>,
    %47 = vector.extract_strided_slice %38 {offsets = [0, 4, 0], sizes = [8, 12, 64], strides = [1, 1, 1]} : vector<8x16x64xf32> to vector<8x12x64xf32>
    %c0_63 = arith.constant 0 : index
    %c0_64 = arith.constant 0 : index
    %c512_65 = arith.constant 512 : index
    %48 = vector.load %arg10[%c0_63, %c0_64, %c512_65] : memref<8x20x640xf32, #tpu.memory_space<vmem>>, vector<8x12x64xf32>
    tpu.vector_store %arg10[%c0_63, %c0_64, %c512_65], %47 {strides = array<i32>} : memref<8x20x640xf32, #tpu.memory_space<vmem>>, vector<8x12x64xf32>,
    %c0_66 = arith.constant 0 : index
    %c0_67 = arith.constant 0 : index
    %c0_68 = arith.constant 0 : index
    %49 = vector.load %arg10[%c0_66, %c0_67, %c0_68] : memref<8x20x640xf32, #tpu.memory_space<vmem>>, vector<8x12x640xf32>
    %c0_69 = arith.constant 0 : index
    %c0_70 = arith.constant 0 : index
    %50 = vector.load %arg5[%c0_69, %c0_70] : memref<640x64xf32, #tpu.memory_space<vmem>>, vector<640x64xf32>
    %cst_71 = arith.constant dense<0.000000e+00> : vector<8x12x64xf32>
    %51 = tpu.matmul %49, %50, %cst_71 {dimension_numbers = #tpu.dot_dimension_numbers<[2], [0], [0, 1], [1], [0, 0, 0, 1, 1, 1], [], []>} : vector<8x12x640xf32>, vector<640x64xf32>, vector<8x12x64xf32> -> vector<8x12x64xf32>
    %c0_72 = arith.constant 0 : index
    %c0_73 = arith.constant 0 : index
    %c0_74 = arith.constant 0 : index
    %52 = vector.load %arg6[%c0_72, %c0_73, %c0_74] : memref<1x1x64xf32, #tpu.memory_space<vmem>>, vector<1x1x64xf32>
    %53 = vector.broadcast %52 : vector<1x1x64xf32> to vector<8x12x64xf32>
    %54 = arith.addf %51, %53 : vector<8x12x64xf32>
    %cst_75 = arith.constant 0.000000e+00 : f32
    %55 = vector.broadcast %cst_75 : f32 to vector<8x12x64xf32>
    %56 = arith.maximumf %54, %55 : vector<8x12x64xf32>
    %57 = vector.extract_strided_slice %56 {offsets = [0, 0, 0], sizes = [8, 8, 64], strides = [1, 1, 1]} : vector<8x12x64xf32> to vector<8x8x64xf32>
    %c0_76 = arith.constant 0 : index
    %c0_77 = arith.constant 0 : index
    %c0_78 = arith.constant 0 : index
    %58 = vector.load %arg10[%c0_76, %c0_77, %c0_78] : memref<8x20x640xf32, #tpu.memory_space<vmem>>, vector<8x8x64xf32>
    tpu.vector_store %arg10[%c0_76, %c0_77, %c0_78], %57 {strides = array<i32>} : memref<8x20x640xf32, #tpu.memory_space<vmem>>, vector<8x8x64xf32>,
    %59 = vector.extract_strided_slice %56 {offsets = [0, 1, 0], sizes = [8, 8, 64], strides = [1, 1, 1]} : vector<8x12x64xf32> to vector<8x8x64xf32>
    %c0_79 = arith.constant 0 : index
    %c0_80 = arith.constant 0 : index
    %c128_81 = arith.constant 128 : index
    %60 = vector.load %arg10[%c0_79, %c0_80, %c128_81] : memref<8x20x640xf32, #tpu.memory_space<vmem>>, vector<8x8x64xf32>
    tpu.vector_store %arg10[%c0_79, %c0_80, %c128_81], %59 {strides = array<i32>} : memref<8x20x640xf32, #tpu.memory_space<vmem>>, vector<8x8x64xf32>,
    %61 = vector.extract_strided_slice %56 {offsets = [0, 2, 0], sizes = [8, 8, 64], strides = [1, 1, 1]} : vector<8x12x64xf32> to vector<8x8x64xf32>
    %c0_82 = arith.constant 0 : index
    %c0_83 = arith.constant 0 : index
    %c256_84 = arith.constant 256 : index
    %62 = vector.load %arg10[%c0_82, %c0_83, %c256_84] : memref<8x20x640xf32, #tpu.memory_space<vmem>>, vector<8x8x64xf32>
    tpu.vector_store %arg10[%c0_82, %c0_83, %c256_84], %61 {strides = array<i32>} : memref<8x20x640xf32, #tpu.memory_space<vmem>>, vector<8x8x64xf32>,
    %63 = vector.extract_strided_slice %56 {offsets = [0, 3, 0], sizes = [8, 8, 64], strides = [1, 1, 1]} : vector<8x12x64xf32> to vector<8x8x64xf32>
    %c0_85 = arith.constant 0 : index
    %c0_86 = arith.constant 0 : index
    %c384_87 = arith.constant 384 : index
    %64 = vector.load %arg10[%c0_85, %c0_86, %c384_87] : memref<8x20x640xf32, #tpu.memory_space<vmem>>, vector<8x8x64xf32>
    tpu.vector_store %arg10[%c0_85, %c0_86, %c384_87], %63 {strides = array<i32>} : memref<8x20x640xf32, #tpu.memory_space<vmem>>, vector<8x8x64xf32>,
    %65 = vector.extract_strided_slice %56 {offsets = [0, 4, 0], sizes = [8, 8, 64], strides = [1, 1, 1]} : vector<8x12x64xf32> to vector<8x8x64xf32>
    %c0_88 = arith.constant 0 : index
    %c0_89 = arith.constant 0 : index
    %c512_90 = arith.constant 512 : index
    %66 = vector.load %arg10[%c0_88, %c0_89, %c512_90] : memref<8x20x640xf32, #tpu.memory_space<vmem>>, vector<8x8x64xf32>
    tpu.vector_store %arg10[%c0_88, %c0_89, %c512_90], %65 {strides = array<i32>} : memref<8x20x640xf32, #tpu.memory_space<vmem>>, vector<8x8x64xf32>,
    %c0_91 = arith.constant 0 : index
    %c0_92 = arith.constant 0 : index
    %c0_93 = arith.constant 0 : index
    %67 = vector.load %arg10[%c0_91, %c0_92, %c0_93] : memref<8x20x640xf32, #tpu.memory_space<vmem>>, vector<8x8x640xf32>
    %c0_94 = arith.constant 0 : index
    %c0_95 = arith.constant 0 : index
    %68 = vector.load %arg7[%c0_94, %c0_95] : memref<640x64xf32, #tpu.memory_space<vmem>>, vector<640x64xf32>
    %cst_96 = arith.constant dense<0.000000e+00> : vector<8x8x64xf32>
    %69 = tpu.matmul %67, %68, %cst_96 {dimension_numbers = #tpu.dot_dimension_numbers<[2], [0], [0, 1], [1], [0, 0, 0, 1, 1, 1], [], []>} : vector<8x8x640xf32>, vector<640x64xf32>, vector<8x8x64xf32> -> vector<8x8x64xf32>
    %c0_97 = arith.constant 0 : index
    %c0_98 = arith.constant 0 : index
    %c0_99 = arith.constant 0 : index
    %70 = vector.load %arg8[%c0_97, %c0_98, %c0_99] : memref<1x1x64xf32, #tpu.memory_space<vmem>>, vector<1x1x64xf32>
    %71 = vector.broadcast %70 : vector<1x1x64xf32> to vector<8x8x64xf32>
    %72 = arith.addf %69, %71 : vector<8x8x64xf32>
    %cst_100 = arith.constant 0.000000e+00 : f32
    %73 = vector.broadcast %cst_100 : f32 to vector<8x8x64xf32>
    %74 = arith.maximumf %72, %73 : vector<8x8x64xf32>
    %c0_101 = arith.constant 0 : index
    %c0_102 = arith.constant 0 : index
    %c0_103 = arith.constant 0 : index
    %75 = vector.load %arg9[%c0_101, %c0_102, %c0_103] : memref<8x8x64xf32, #tpu.memory_space<vmem>>, vector<8x8x64xf32>
    tpu.vector_store %arg9[%c0_101, %c0_102, %c0_103], %74 {strides = array<i32>} : memref<8x8x64xf32, #tpu.memory_space<vmem>>, vector<8x8x64xf32>,
    return
  }
}

module attributes {stable_mosaic.version = 11 : i64} {
  func.func @lstm_head_kernel(%arg0: memref<64x64xf32, #tpu.memory_space<vmem>>, %arg1: memref<8x128xf32, #tpu.memory_space<vmem>>, %arg2: memref<8x128xf32, #tpu.memory_space<vmem>>, %arg3: memref<64x512xf32, #tpu.memory_space<vmem>>, %arg4: memref<128x512xf32, #tpu.memory_space<vmem>>, %arg5: memref<1x512xf32, #tpu.memory_space<vmem>>, %arg6: memref<128x512xf32, #tpu.memory_space<vmem>>, %arg7: memref<128x512xf32, #tpu.memory_space<vmem>>, %arg8: memref<1x512xf32, #tpu.memory_space<vmem>>, %arg9: memref<128x18xf32, #tpu.memory_space<vmem>>, %arg10: memref<1x18xf32, #tpu.memory_space<vmem>>, %arg11: memref<8x18xf32, #tpu.memory_space<vmem>>, %arg12: memref<8x128xf32, #tpu.memory_space<vmem>>, %arg13: memref<8x128xf32, #tpu.memory_space<vmem>>, %arg14: memref<64x128xf32, #tpu.memory_space<vmem>>, %arg15: memref<8x128xf32, #tpu.memory_space<vmem>>) attributes {dimension_semantics = [], scalar_prefetch = 0 : i64, scratch_operands = 2 : i64, tpu.core_type = #tpu.core_type<tc>} {
    %c0 = arith.constant 0 : index
    %c0_0 = arith.constant 0 : index
    %0 = vector.load %arg0[%c0, %c0_0] : memref<64x64xf32, #tpu.memory_space<vmem>>, vector<64x64xf32>
    %c0_1 = arith.constant 0 : index
    %c0_2 = arith.constant 0 : index
    %1 = vector.load %arg3[%c0_1, %c0_2] : memref<64x512xf32, #tpu.memory_space<vmem>>, vector<64x512xf32>
    %cst = arith.constant dense<0.000000e+00> : vector<64x512xf32>
    %2 = tpu.matmul %0, %1, %cst {dimension_numbers = #tpu.dot_dimension_numbers<[1], [0], [0], [1], [0, 0, 1, 1], [], []>} : vector<64x64xf32>, vector<64x512xf32>, vector<64x512xf32> -> vector<64x512xf32>
    %c0_3 = arith.constant 0 : index
    %c0_4 = arith.constant 0 : index
    %3 = vector.load %arg4[%c0_3, %c0_4] : memref<128x512xf32, #tpu.memory_space<vmem>>, vector<128x512xf32>
    %c0_5 = arith.constant 0 : index
    %c0_6 = arith.constant 0 : index
    %4 = vector.load %arg5[%c0_5, %c0_6] : memref<1x512xf32, #tpu.memory_space<vmem>>, vector<1x512xf32>
    %c0_7 = arith.constant 0 : index
    %c0_8 = arith.constant 0 : index
    %5 = vector.load %arg1[%c0_7, %c0_8] : memref<8x128xf32, #tpu.memory_space<vmem>>, vector<8x128xf32>
    %c0_9 = arith.constant 0 : index
    %c0_10 = arith.constant 0 : index
    %6 = vector.load %arg2[%c0_9, %c0_10] : memref<8x128xf32, #tpu.memory_space<vmem>>, vector<8x128xf32>
    %7 = vector.extract_strided_slice %2 {offsets = [0, 0], sizes = [8, 512], strides = [1, 1]} : vector<64x512xf32> to vector<8x512xf32>
    %cst_11 = arith.constant dense<0.000000e+00> : vector<8x512xf32>
    %8 = tpu.matmul %5, %3, %cst_11 {dimension_numbers = #tpu.dot_dimension_numbers<[1], [0], [0], [1], [0, 0, 1, 1], [], []>} : vector<8x128xf32>, vector<128x512xf32>, vector<8x512xf32> -> vector<8x512xf32>
    %9 = arith.addf %7, %8 : vector<8x512xf32>
    %10 = vector.broadcast %4 : vector<1x512xf32> to vector<8x512xf32>
    %11 = arith.addf %9, %10 : vector<8x512xf32>
    %12 = vector.extract_strided_slice %11 {offsets = [0, 0], sizes = [8, 128], strides = [1, 1]} : vector<8x512xf32> to vector<8x128xf32>
    %13 = arith.negf %12 : vector<8x128xf32>
    %14 = math.exp %13 : vector<8x128xf32>
    %cst_12 = arith.constant 1.000000e+00 : f32
    %15 = vector.broadcast %cst_12 : f32 to vector<8x128xf32>
    %16 = arith.addf %15, %14 : vector<8x128xf32>
    %17 = arith.divf %15, %16 : vector<8x128xf32>
    %18 = vector.extract_strided_slice %11 {offsets = [0, 128], sizes = [8, 128], strides = [1, 1]} : vector<8x512xf32> to vector<8x128xf32>
    %19 = arith.negf %18 : vector<8x128xf32>
    %20 = math.exp %19 : vector<8x128xf32>
    %cst_13 = arith.constant 1.000000e+00 : f32
    %21 = vector.broadcast %cst_13 : f32 to vector<8x128xf32>
    %22 = arith.addf %21, %20 : vector<8x128xf32>
    %23 = arith.divf %21, %22 : vector<8x128xf32>
    %24 = vector.extract_strided_slice %11 {offsets = [0, 256], sizes = [8, 128], strides = [1, 1]} : vector<8x512xf32> to vector<8x128xf32>
    %25 = math.tanh %24 : vector<8x128xf32>
    %26 = vector.extract_strided_slice %11 {offsets = [0, 384], sizes = [8, 128], strides = [1, 1]} : vector<8x512xf32> to vector<8x128xf32>
    %27 = arith.negf %26 : vector<8x128xf32>
    %28 = math.exp %27 : vector<8x128xf32>
    %cst_14 = arith.constant 1.000000e+00 : f32
    %29 = vector.broadcast %cst_14 : f32 to vector<8x128xf32>
    %30 = arith.addf %29, %28 : vector<8x128xf32>
    %31 = arith.divf %29, %30 : vector<8x128xf32>
    %32 = arith.mulf %23, %6 : vector<8x128xf32>
    %33 = arith.mulf %17, %25 : vector<8x128xf32>
    %34 = arith.addf %32, %33 : vector<8x128xf32>
    %35 = math.tanh %34 : vector<8x128xf32>
    %36 = arith.mulf %31, %35 : vector<8x128xf32>
    %c0_15 = arith.constant 0 : index
    %c0_16 = arith.constant 0 : index
    %37 = vector.load %arg14[%c0_15, %c0_16] : memref<64x128xf32, #tpu.memory_space<vmem>>, vector<8x128xf32>
    tpu.vector_store %arg14[%c0_15, %c0_16], %36 {strides = array<i32>} : memref<64x128xf32, #tpu.memory_space<vmem>>, vector<8x128xf32>,
    %38 = vector.extract_strided_slice %2 {offsets = [8, 0], sizes = [8, 512], strides = [1, 1]} : vector<64x512xf32> to vector<8x512xf32>
    %cst_17 = arith.constant dense<0.000000e+00> : vector<8x512xf32>
    %39 = tpu.matmul %36, %3, %cst_17 {dimension_numbers = #tpu.dot_dimension_numbers<[1], [0], [0], [1], [0, 0, 1, 1], [], []>} : vector<8x128xf32>, vector<128x512xf32>, vector<8x512xf32> -> vector<8x512xf32>
    %40 = arith.addf %38, %39 : vector<8x512xf32>
    %41 = vector.broadcast %4 : vector<1x512xf32> to vector<8x512xf32>
    %42 = arith.addf %40, %41 : vector<8x512xf32>
    %43 = vector.extract_strided_slice %42 {offsets = [0, 0], sizes = [8, 128], strides = [1, 1]} : vector<8x512xf32> to vector<8x128xf32>
    %44 = arith.negf %43 : vector<8x128xf32>
    %45 = math.exp %44 : vector<8x128xf32>
    %cst_18 = arith.constant 1.000000e+00 : f32
    %46 = vector.broadcast %cst_18 : f32 to vector<8x128xf32>
    %47 = arith.addf %46, %45 : vector<8x128xf32>
    %48 = arith.divf %46, %47 : vector<8x128xf32>
    %49 = vector.extract_strided_slice %42 {offsets = [0, 128], sizes = [8, 128], strides = [1, 1]} : vector<8x512xf32> to vector<8x128xf32>
    %50 = arith.negf %49 : vector<8x128xf32>
    %51 = math.exp %50 : vector<8x128xf32>
    %cst_19 = arith.constant 1.000000e+00 : f32
    %52 = vector.broadcast %cst_19 : f32 to vector<8x128xf32>
    %53 = arith.addf %52, %51 : vector<8x128xf32>
    %54 = arith.divf %52, %53 : vector<8x128xf32>
    %55 = vector.extract_strided_slice %42 {offsets = [0, 256], sizes = [8, 128], strides = [1, 1]} : vector<8x512xf32> to vector<8x128xf32>
    %56 = math.tanh %55 : vector<8x128xf32>
    %57 = vector.extract_strided_slice %42 {offsets = [0, 384], sizes = [8, 128], strides = [1, 1]} : vector<8x512xf32> to vector<8x128xf32>
    %58 = arith.negf %57 : vector<8x128xf32>
    %59 = math.exp %58 : vector<8x128xf32>
    %cst_20 = arith.constant 1.000000e+00 : f32
    %60 = vector.broadcast %cst_20 : f32 to vector<8x128xf32>
    %61 = arith.addf %60, %59 : vector<8x128xf32>
    %62 = arith.divf %60, %61 : vector<8x128xf32>
    %63 = arith.mulf %54, %34 : vector<8x128xf32>
    %64 = arith.mulf %48, %56 : vector<8x128xf32>
    %65 = arith.addf %63, %64 : vector<8x128xf32>
    %66 = math.tanh %65 : vector<8x128xf32>
    %67 = arith.mulf %62, %66 : vector<8x128xf32>
    %c8 = arith.constant 8 : index
    %c0_21 = arith.constant 0 : index
    %68 = vector.load %arg14[%c8, %c0_21] : memref<64x128xf32, #tpu.memory_space<vmem>>, vector<8x128xf32>
    tpu.vector_store %arg14[%c8, %c0_21], %67 {strides = array<i32>} : memref<64x128xf32, #tpu.memory_space<vmem>>, vector<8x128xf32>,
    %69 = vector.extract_strided_slice %2 {offsets = [16, 0], sizes = [8, 512], strides = [1, 1]} : vector<64x512xf32> to vector<8x512xf32>
    %cst_22 = arith.constant dense<0.000000e+00> : vector<8x512xf32>
    %70 = tpu.matmul %67, %3, %cst_22 {dimension_numbers = #tpu.dot_dimension_numbers<[1], [0], [0], [1], [0, 0, 1, 1], [], []>} : vector<8x128xf32>, vector<128x512xf32>, vector<8x512xf32> -> vector<8x512xf32>
    %71 = arith.addf %69, %70 : vector<8x512xf32>
    %72 = vector.broadcast %4 : vector<1x512xf32> to vector<8x512xf32>
    %73 = arith.addf %71, %72 : vector<8x512xf32>
    %74 = vector.extract_strided_slice %73 {offsets = [0, 0], sizes = [8, 128], strides = [1, 1]} : vector<8x512xf32> to vector<8x128xf32>
    %75 = arith.negf %74 : vector<8x128xf32>
    %76 = math.exp %75 : vector<8x128xf32>
    %cst_23 = arith.constant 1.000000e+00 : f32
    %77 = vector.broadcast %cst_23 : f32 to vector<8x128xf32>
    %78 = arith.addf %77, %76 : vector<8x128xf32>
    %79 = arith.divf %77, %78 : vector<8x128xf32>
    %80 = vector.extract_strided_slice %73 {offsets = [0, 128], sizes = [8, 128], strides = [1, 1]} : vector<8x512xf32> to vector<8x128xf32>
    %81 = arith.negf %80 : vector<8x128xf32>
    %82 = math.exp %81 : vector<8x128xf32>
    %cst_24 = arith.constant 1.000000e+00 : f32
    %83 = vector.broadcast %cst_24 : f32 to vector<8x128xf32>
    %84 = arith.addf %83, %82 : vector<8x128xf32>
    %85 = arith.divf %83, %84 : vector<8x128xf32>
    %86 = vector.extract_strided_slice %73 {offsets = [0, 256], sizes = [8, 128], strides = [1, 1]} : vector<8x512xf32> to vector<8x128xf32>
    %87 = math.tanh %86 : vector<8x128xf32>
    %88 = vector.extract_strided_slice %73 {offsets = [0, 384], sizes = [8, 128], strides = [1, 1]} : vector<8x512xf32> to vector<8x128xf32>
    %89 = arith.negf %88 : vector<8x128xf32>
    %90 = math.exp %89 : vector<8x128xf32>
    %cst_25 = arith.constant 1.000000e+00 : f32
    %91 = vector.broadcast %cst_25 : f32 to vector<8x128xf32>
    %92 = arith.addf %91, %90 : vector<8x128xf32>
    %93 = arith.divf %91, %92 : vector<8x128xf32>
    %94 = arith.mulf %85, %65 : vector<8x128xf32>
    %95 = arith.mulf %79, %87 : vector<8x128xf32>
    %96 = arith.addf %94, %95 : vector<8x128xf32>
    %97 = math.tanh %96 : vector<8x128xf32>
    %98 = arith.mulf %93, %97 : vector<8x128xf32>
    %c16 = arith.constant 16 : index
    %c0_26 = arith.constant 0 : index
    %99 = vector.load %arg14[%c16, %c0_26] : memref<64x128xf32, #tpu.memory_space<vmem>>, vector<8x128xf32>
    tpu.vector_store %arg14[%c16, %c0_26], %98 {strides = array<i32>} : memref<64x128xf32, #tpu.memory_space<vmem>>, vector<8x128xf32>,
    %100 = vector.extract_strided_slice %2 {offsets = [24, 0], sizes = [8, 512], strides = [1, 1]} : vector<64x512xf32> to vector<8x512xf32>
    %cst_27 = arith.constant dense<0.000000e+00> : vector<8x512xf32>
    %101 = tpu.matmul %98, %3, %cst_27 {dimension_numbers = #tpu.dot_dimension_numbers<[1], [0], [0], [1], [0, 0, 1, 1], [], []>} : vector<8x128xf32>, vector<128x512xf32>, vector<8x512xf32> -> vector<8x512xf32>
    %102 = arith.addf %100, %101 : vector<8x512xf32>
    %103 = vector.broadcast %4 : vector<1x512xf32> to vector<8x512xf32>
    %104 = arith.addf %102, %103 : vector<8x512xf32>
    %105 = vector.extract_strided_slice %104 {offsets = [0, 0], sizes = [8, 128], strides = [1, 1]} : vector<8x512xf32> to vector<8x128xf32>
    %106 = arith.negf %105 : vector<8x128xf32>
    %107 = math.exp %106 : vector<8x128xf32>
    %cst_28 = arith.constant 1.000000e+00 : f32
    %108 = vector.broadcast %cst_28 : f32 to vector<8x128xf32>
    %109 = arith.addf %108, %107 : vector<8x128xf32>
    %110 = arith.divf %108, %109 : vector<8x128xf32>
    %111 = vector.extract_strided_slice %104 {offsets = [0, 128], sizes = [8, 128], strides = [1, 1]} : vector<8x512xf32> to vector<8x128xf32>
    %112 = arith.negf %111 : vector<8x128xf32>
    %113 = math.exp %112 : vector<8x128xf32>
    %cst_29 = arith.constant 1.000000e+00 : f32
    %114 = vector.broadcast %cst_29 : f32 to vector<8x128xf32>
    %115 = arith.addf %114, %113 : vector<8x128xf32>
    %116 = arith.divf %114, %115 : vector<8x128xf32>
    %117 = vector.extract_strided_slice %104 {offsets = [0, 256], sizes = [8, 128], strides = [1, 1]} : vector<8x512xf32> to vector<8x128xf32>
    %118 = math.tanh %117 : vector<8x128xf32>
    %119 = vector.extract_strided_slice %104 {offsets = [0, 384], sizes = [8, 128], strides = [1, 1]} : vector<8x512xf32> to vector<8x128xf32>
    %120 = arith.negf %119 : vector<8x128xf32>
    %121 = math.exp %120 : vector<8x128xf32>
    %cst_30 = arith.constant 1.000000e+00 : f32
    %122 = vector.broadcast %cst_30 : f32 to vector<8x128xf32>
    %123 = arith.addf %122, %121 : vector<8x128xf32>
    %124 = arith.divf %122, %123 : vector<8x128xf32>
    %125 = arith.mulf %116, %96 : vector<8x128xf32>
    %126 = arith.mulf %110, %118 : vector<8x128xf32>
    %127 = arith.addf %125, %126 : vector<8x128xf32>
    %128 = math.tanh %127 : vector<8x128xf32>
    %129 = arith.mulf %124, %128 : vector<8x128xf32>
    %c24 = arith.constant 24 : index
    %c0_31 = arith.constant 0 : index
    %130 = vector.load %arg14[%c24, %c0_31] : memref<64x128xf32, #tpu.memory_space<vmem>>, vector<8x128xf32>
    tpu.vector_store %arg14[%c24, %c0_31], %129 {strides = array<i32>} : memref<64x128xf32, #tpu.memory_space<vmem>>, vector<8x128xf32>,
    %131 = vector.extract_strided_slice %2 {offsets = [32, 0], sizes = [8, 512], strides = [1, 1]} : vector<64x512xf32> to vector<8x512xf32>
    %cst_32 = arith.constant dense<0.000000e+00> : vector<8x512xf32>
    %132 = tpu.matmul %129, %3, %cst_32 {dimension_numbers = #tpu.dot_dimension_numbers<[1], [0], [0], [1], [0, 0, 1, 1], [], []>} : vector<8x128xf32>, vector<128x512xf32>, vector<8x512xf32> -> vector<8x512xf32>
    %133 = arith.addf %131, %132 : vector<8x512xf32>
    %134 = vector.broadcast %4 : vector<1x512xf32> to vector<8x512xf32>
    %135 = arith.addf %133, %134 : vector<8x512xf32>
    %136 = vector.extract_strided_slice %135 {offsets = [0, 0], sizes = [8, 128], strides = [1, 1]} : vector<8x512xf32> to vector<8x128xf32>
    %137 = arith.negf %136 : vector<8x128xf32>
    %138 = math.exp %137 : vector<8x128xf32>
    %cst_33 = arith.constant 1.000000e+00 : f32
    %139 = vector.broadcast %cst_33 : f32 to vector<8x128xf32>
    %140 = arith.addf %139, %138 : vector<8x128xf32>
    %141 = arith.divf %139, %140 : vector<8x128xf32>
    %142 = vector.extract_strided_slice %135 {offsets = [0, 128], sizes = [8, 128], strides = [1, 1]} : vector<8x512xf32> to vector<8x128xf32>
    %143 = arith.negf %142 : vector<8x128xf32>
    %144 = math.exp %143 : vector<8x128xf32>
    %cst_34 = arith.constant 1.000000e+00 : f32
    %145 = vector.broadcast %cst_34 : f32 to vector<8x128xf32>
    %146 = arith.addf %145, %144 : vector<8x128xf32>
    %147 = arith.divf %145, %146 : vector<8x128xf32>
    %148 = vector.extract_strided_slice %135 {offsets = [0, 256], sizes = [8, 128], strides = [1, 1]} : vector<8x512xf32> to vector<8x128xf32>
    %149 = math.tanh %148 : vector<8x128xf32>
    %150 = vector.extract_strided_slice %135 {offsets = [0, 384], sizes = [8, 128], strides = [1, 1]} : vector<8x512xf32> to vector<8x128xf32>
    %151 = arith.negf %150 : vector<8x128xf32>
    %152 = math.exp %151 : vector<8x128xf32>
    %cst_35 = arith.constant 1.000000e+00 : f32
    %153 = vector.broadcast %cst_35 : f32 to vector<8x128xf32>
    %154 = arith.addf %153, %152 : vector<8x128xf32>
    %155 = arith.divf %153, %154 : vector<8x128xf32>
    %156 = arith.mulf %147, %127 : vector<8x128xf32>
    %157 = arith.mulf %141, %149 : vector<8x128xf32>
    %158 = arith.addf %156, %157 : vector<8x128xf32>
    %159 = math.tanh %158 : vector<8x128xf32>
    %160 = arith.mulf %155, %159 : vector<8x128xf32>
    %c32 = arith.constant 32 : index
    %c0_36 = arith.constant 0 : index
    %161 = vector.load %arg14[%c32, %c0_36] : memref<64x128xf32, #tpu.memory_space<vmem>>, vector<8x128xf32>
    tpu.vector_store %arg14[%c32, %c0_36], %160 {strides = array<i32>} : memref<64x128xf32, #tpu.memory_space<vmem>>, vector<8x128xf32>,
    %162 = vector.extract_strided_slice %2 {offsets = [40, 0], sizes = [8, 512], strides = [1, 1]} : vector<64x512xf32> to vector<8x512xf32>
    %cst_37 = arith.constant dense<0.000000e+00> : vector<8x512xf32>
    %163 = tpu.matmul %160, %3, %cst_37 {dimension_numbers = #tpu.dot_dimension_numbers<[1], [0], [0], [1], [0, 0, 1, 1], [], []>} : vector<8x128xf32>, vector<128x512xf32>, vector<8x512xf32> -> vector<8x512xf32>
    %164 = arith.addf %162, %163 : vector<8x512xf32>
    %165 = vector.broadcast %4 : vector<1x512xf32> to vector<8x512xf32>
    %166 = arith.addf %164, %165 : vector<8x512xf32>
    %167 = vector.extract_strided_slice %166 {offsets = [0, 0], sizes = [8, 128], strides = [1, 1]} : vector<8x512xf32> to vector<8x128xf32>
    %168 = arith.negf %167 : vector<8x128xf32>
    %169 = math.exp %168 : vector<8x128xf32>
    %cst_38 = arith.constant 1.000000e+00 : f32
    %170 = vector.broadcast %cst_38 : f32 to vector<8x128xf32>
    %171 = arith.addf %170, %169 : vector<8x128xf32>
    %172 = arith.divf %170, %171 : vector<8x128xf32>
    %173 = vector.extract_strided_slice %166 {offsets = [0, 128], sizes = [8, 128], strides = [1, 1]} : vector<8x512xf32> to vector<8x128xf32>
    %174 = arith.negf %173 : vector<8x128xf32>
    %175 = math.exp %174 : vector<8x128xf32>
    %cst_39 = arith.constant 1.000000e+00 : f32
    %176 = vector.broadcast %cst_39 : f32 to vector<8x128xf32>
    %177 = arith.addf %176, %175 : vector<8x128xf32>
    %178 = arith.divf %176, %177 : vector<8x128xf32>
    %179 = vector.extract_strided_slice %166 {offsets = [0, 256], sizes = [8, 128], strides = [1, 1]} : vector<8x512xf32> to vector<8x128xf32>
    %180 = math.tanh %179 : vector<8x128xf32>
    %181 = vector.extract_strided_slice %166 {offsets = [0, 384], sizes = [8, 128], strides = [1, 1]} : vector<8x512xf32> to vector<8x128xf32>
    %182 = arith.negf %181 : vector<8x128xf32>
    %183 = math.exp %182 : vector<8x128xf32>
    %cst_40 = arith.constant 1.000000e+00 : f32
    %184 = vector.broadcast %cst_40 : f32 to vector<8x128xf32>
    %185 = arith.addf %184, %183 : vector<8x128xf32>
    %186 = arith.divf %184, %185 : vector<8x128xf32>
    %187 = arith.mulf %178, %158 : vector<8x128xf32>
    %188 = arith.mulf %172, %180 : vector<8x128xf32>
    %189 = arith.addf %187, %188 : vector<8x128xf32>
    %190 = math.tanh %189 : vector<8x128xf32>
    %191 = arith.mulf %186, %190 : vector<8x128xf32>
    %c40 = arith.constant 40 : index
    %c0_41 = arith.constant 0 : index
    %192 = vector.load %arg14[%c40, %c0_41] : memref<64x128xf32, #tpu.memory_space<vmem>>, vector<8x128xf32>
    tpu.vector_store %arg14[%c40, %c0_41], %191 {strides = array<i32>} : memref<64x128xf32, #tpu.memory_space<vmem>>, vector<8x128xf32>,
    %193 = vector.extract_strided_slice %2 {offsets = [48, 0], sizes = [8, 512], strides = [1, 1]} : vector<64x512xf32> to vector<8x512xf32>
    %cst_42 = arith.constant dense<0.000000e+00> : vector<8x512xf32>
    %194 = tpu.matmul %191, %3, %cst_42 {dimension_numbers = #tpu.dot_dimension_numbers<[1], [0], [0], [1], [0, 0, 1, 1], [], []>} : vector<8x128xf32>, vector<128x512xf32>, vector<8x512xf32> -> vector<8x512xf32>
    %195 = arith.addf %193, %194 : vector<8x512xf32>
    %196 = vector.broadcast %4 : vector<1x512xf32> to vector<8x512xf32>
    %197 = arith.addf %195, %196 : vector<8x512xf32>
    %198 = vector.extract_strided_slice %197 {offsets = [0, 0], sizes = [8, 128], strides = [1, 1]} : vector<8x512xf32> to vector<8x128xf32>
    %199 = arith.negf %198 : vector<8x128xf32>
    %200 = math.exp %199 : vector<8x128xf32>
    %cst_43 = arith.constant 1.000000e+00 : f32
    %201 = vector.broadcast %cst_43 : f32 to vector<8x128xf32>
    %202 = arith.addf %201, %200 : vector<8x128xf32>
    %203 = arith.divf %201, %202 : vector<8x128xf32>
    %204 = vector.extract_strided_slice %197 {offsets = [0, 128], sizes = [8, 128], strides = [1, 1]} : vector<8x512xf32> to vector<8x128xf32>
    %205 = arith.negf %204 : vector<8x128xf32>
    %206 = math.exp %205 : vector<8x128xf32>
    %cst_44 = arith.constant 1.000000e+00 : f32
    %207 = vector.broadcast %cst_44 : f32 to vector<8x128xf32>
    %208 = arith.addf %207, %206 : vector<8x128xf32>
    %209 = arith.divf %207, %208 : vector<8x128xf32>
    %210 = vector.extract_strided_slice %197 {offsets = [0, 256], sizes = [8, 128], strides = [1, 1]} : vector<8x512xf32> to vector<8x128xf32>
    %211 = math.tanh %210 : vector<8x128xf32>
    %212 = vector.extract_strided_slice %197 {offsets = [0, 384], sizes = [8, 128], strides = [1, 1]} : vector<8x512xf32> to vector<8x128xf32>
    %213 = arith.negf %212 : vector<8x128xf32>
    %214 = math.exp %213 : vector<8x128xf32>
    %cst_45 = arith.constant 1.000000e+00 : f32
    %215 = vector.broadcast %cst_45 : f32 to vector<8x128xf32>
    %216 = arith.addf %215, %214 : vector<8x128xf32>
    %217 = arith.divf %215, %216 : vector<8x128xf32>
    %218 = arith.mulf %209, %189 : vector<8x128xf32>
    %219 = arith.mulf %203, %211 : vector<8x128xf32>
    %220 = arith.addf %218, %219 : vector<8x128xf32>
    %221 = math.tanh %220 : vector<8x128xf32>
    %222 = arith.mulf %217, %221 : vector<8x128xf32>
    %c48 = arith.constant 48 : index
    %c0_46 = arith.constant 0 : index
    %223 = vector.load %arg14[%c48, %c0_46] : memref<64x128xf32, #tpu.memory_space<vmem>>, vector<8x128xf32>
    tpu.vector_store %arg14[%c48, %c0_46], %222 {strides = array<i32>} : memref<64x128xf32, #tpu.memory_space<vmem>>, vector<8x128xf32>,
    %224 = vector.extract_strided_slice %2 {offsets = [56, 0], sizes = [8, 512], strides = [1, 1]} : vector<64x512xf32> to vector<8x512xf32>
    %cst_47 = arith.constant dense<0.000000e+00> : vector<8x512xf32>
    %225 = tpu.matmul %222, %3, %cst_47 {dimension_numbers = #tpu.dot_dimension_numbers<[1], [0], [0], [1], [0, 0, 1, 1], [], []>} : vector<8x128xf32>, vector<128x512xf32>, vector<8x512xf32> -> vector<8x512xf32>
    %226 = arith.addf %224, %225 : vector<8x512xf32>
    %227 = vector.broadcast %4 : vector<1x512xf32> to vector<8x512xf32>
    %228 = arith.addf %226, %227 : vector<8x512xf32>
    %229 = vector.extract_strided_slice %228 {offsets = [0, 0], sizes = [8, 128], strides = [1, 1]} : vector<8x512xf32> to vector<8x128xf32>
    %230 = arith.negf %229 : vector<8x128xf32>
    %231 = math.exp %230 : vector<8x128xf32>
    %cst_48 = arith.constant 1.000000e+00 : f32
    %232 = vector.broadcast %cst_48 : f32 to vector<8x128xf32>
    %233 = arith.addf %232, %231 : vector<8x128xf32>
    %234 = arith.divf %232, %233 : vector<8x128xf32>
    %235 = vector.extract_strided_slice %228 {offsets = [0, 128], sizes = [8, 128], strides = [1, 1]} : vector<8x512xf32> to vector<8x128xf32>
    %236 = arith.negf %235 : vector<8x128xf32>
    %237 = math.exp %236 : vector<8x128xf32>
    %cst_49 = arith.constant 1.000000e+00 : f32
    %238 = vector.broadcast %cst_49 : f32 to vector<8x128xf32>
    %239 = arith.addf %238, %237 : vector<8x128xf32>
    %240 = arith.divf %238, %239 : vector<8x128xf32>
    %241 = vector.extract_strided_slice %228 {offsets = [0, 256], sizes = [8, 128], strides = [1, 1]} : vector<8x512xf32> to vector<8x128xf32>
    %242 = math.tanh %241 : vector<8x128xf32>
    %243 = vector.extract_strided_slice %228 {offsets = [0, 384], sizes = [8, 128], strides = [1, 1]} : vector<8x512xf32> to vector<8x128xf32>
    %244 = arith.negf %243 : vector<8x128xf32>
    %245 = math.exp %244 : vector<8x128xf32>
    %cst_50 = arith.constant 1.000000e+00 : f32
    %246 = vector.broadcast %cst_50 : f32 to vector<8x128xf32>
    %247 = arith.addf %246, %245 : vector<8x128xf32>
    %248 = arith.divf %246, %247 : vector<8x128xf32>
    %249 = arith.mulf %240, %220 : vector<8x128xf32>
    %250 = arith.mulf %234, %242 : vector<8x128xf32>
    %251 = arith.addf %249, %250 : vector<8x128xf32>
    %252 = math.tanh %251 : vector<8x128xf32>
    %253 = arith.mulf %248, %252 : vector<8x128xf32>
    %c56 = arith.constant 56 : index
    %c0_51 = arith.constant 0 : index
    %254 = vector.load %arg14[%c56, %c0_51] : memref<64x128xf32, #tpu.memory_space<vmem>>, vector<8x128xf32>
    tpu.vector_store %arg14[%c56, %c0_51], %253 {strides = array<i32>} : memref<64x128xf32, #tpu.memory_space<vmem>>, vector<8x128xf32>,
    %c0_52 = arith.constant 0 : index
    %c0_53 = arith.constant 0 : index
    %255 = vector.load %arg14[%c0_52, %c0_53] : memref<64x128xf32, #tpu.memory_space<vmem>>, vector<64x128xf32>
    %c0_54 = arith.constant 0 : index
    %c0_55 = arith.constant 0 : index
    %256 = vector.load %arg6[%c0_54, %c0_55] : memref<128x512xf32, #tpu.memory_space<vmem>>, vector<128x512xf32>
    %cst_56 = arith.constant dense<0.000000e+00> : vector<64x512xf32>
    %257 = tpu.matmul %255, %256, %cst_56 {dimension_numbers = #tpu.dot_dimension_numbers<[1], [0], [0], [1], [0, 0, 1, 1], [], []>} : vector<64x128xf32>, vector<128x512xf32>, vector<64x512xf32> -> vector<64x512xf32>
    %c0_57 = arith.constant 0 : index
    %c0_58 = arith.constant 0 : index
    %258 = vector.load %arg7[%c0_57, %c0_58] : memref<128x512xf32, #tpu.memory_space<vmem>>, vector<128x512xf32>
    %c0_59 = arith.constant 0 : index
    %c0_60 = arith.constant 0 : index
    %259 = vector.load %arg8[%c0_59, %c0_60] : memref<1x512xf32, #tpu.memory_space<vmem>>, vector<1x512xf32>
    %260 = vector.extract_strided_slice %257 {offsets = [0, 0], sizes = [8, 512], strides = [1, 1]} : vector<64x512xf32> to vector<8x512xf32>
    %cst_61 = arith.constant dense<0.000000e+00> : vector<8x512xf32>
    %261 = tpu.matmul %253, %258, %cst_61 {dimension_numbers = #tpu.dot_dimension_numbers<[1], [0], [0], [1], [0, 0, 1, 1], [], []>} : vector<8x128xf32>, vector<128x512xf32>, vector<8x512xf32> -> vector<8x512xf32>
    %262 = arith.addf %260, %261 : vector<8x512xf32>
    %263 = vector.broadcast %259 : vector<1x512xf32> to vector<8x512xf32>
    %264 = arith.addf %262, %263 : vector<8x512xf32>
    %265 = vector.extract_strided_slice %264 {offsets = [0, 0], sizes = [8, 128], strides = [1, 1]} : vector<8x512xf32> to vector<8x128xf32>
    %266 = arith.negf %265 : vector<8x128xf32>
    %267 = math.exp %266 : vector<8x128xf32>
    %cst_62 = arith.constant 1.000000e+00 : f32
    %268 = vector.broadcast %cst_62 : f32 to vector<8x128xf32>
    %269 = arith.addf %268, %267 : vector<8x128xf32>
    %270 = arith.divf %268, %269 : vector<8x128xf32>
    %271 = vector.extract_strided_slice %264 {offsets = [0, 128], sizes = [8, 128], strides = [1, 1]} : vector<8x512xf32> to vector<8x128xf32>
    %272 = arith.negf %271 : vector<8x128xf32>
    %273 = math.exp %272 : vector<8x128xf32>
    %cst_63 = arith.constant 1.000000e+00 : f32
    %274 = vector.broadcast %cst_63 : f32 to vector<8x128xf32>
    %275 = arith.addf %274, %273 : vector<8x128xf32>
    %276 = arith.divf %274, %275 : vector<8x128xf32>
    %277 = vector.extract_strided_slice %264 {offsets = [0, 256], sizes = [8, 128], strides = [1, 1]} : vector<8x512xf32> to vector<8x128xf32>
    %278 = math.tanh %277 : vector<8x128xf32>
    %279 = vector.extract_strided_slice %264 {offsets = [0, 384], sizes = [8, 128], strides = [1, 1]} : vector<8x512xf32> to vector<8x128xf32>
    %280 = arith.negf %279 : vector<8x128xf32>
    %281 = math.exp %280 : vector<8x128xf32>
    %cst_64 = arith.constant 1.000000e+00 : f32
    %282 = vector.broadcast %cst_64 : f32 to vector<8x128xf32>
    %283 = arith.addf %282, %281 : vector<8x128xf32>
    %284 = arith.divf %282, %283 : vector<8x128xf32>
    %285 = arith.mulf %276, %251 : vector<8x128xf32>
    %286 = arith.mulf %270, %278 : vector<8x128xf32>
    %287 = arith.addf %285, %286 : vector<8x128xf32>
    %288 = math.tanh %287 : vector<8x128xf32>
    %289 = arith.mulf %284, %288 : vector<8x128xf32>
    %290 = vector.extract_strided_slice %289 {offsets = [7, 0], sizes = [1, 128], strides = [1, 1]} : vector<8x128xf32> to vector<1x128xf32>
    %c0_65 = arith.constant 0 : index
    %c0_66 = arith.constant 0 : index
    %291 = vector.load %arg15[%c0_65, %c0_66] : memref<8x128xf32, #tpu.memory_space<vmem>>, vector<1x128xf32>
    tpu.vector_store %arg15[%c0_65, %c0_66], %290 {strides = array<i32>} : memref<8x128xf32, #tpu.memory_space<vmem>>, vector<1x128xf32>,
    %292 = vector.extract_strided_slice %257 {offsets = [8, 0], sizes = [8, 512], strides = [1, 1]} : vector<64x512xf32> to vector<8x512xf32>
    %cst_67 = arith.constant dense<0.000000e+00> : vector<8x512xf32>
    %293 = tpu.matmul %289, %258, %cst_67 {dimension_numbers = #tpu.dot_dimension_numbers<[1], [0], [0], [1], [0, 0, 1, 1], [], []>} : vector<8x128xf32>, vector<128x512xf32>, vector<8x512xf32> -> vector<8x512xf32>
    %294 = arith.addf %292, %293 : vector<8x512xf32>
    %295 = vector.broadcast %259 : vector<1x512xf32> to vector<8x512xf32>
    %296 = arith.addf %294, %295 : vector<8x512xf32>
    %297 = vector.extract_strided_slice %296 {offsets = [0, 0], sizes = [8, 128], strides = [1, 1]} : vector<8x512xf32> to vector<8x128xf32>
    %298 = arith.negf %297 : vector<8x128xf32>
    %299 = math.exp %298 : vector<8x128xf32>
    %cst_68 = arith.constant 1.000000e+00 : f32
    %300 = vector.broadcast %cst_68 : f32 to vector<8x128xf32>
    %301 = arith.addf %300, %299 : vector<8x128xf32>
    %302 = arith.divf %300, %301 : vector<8x128xf32>
    %303 = vector.extract_strided_slice %296 {offsets = [0, 128], sizes = [8, 128], strides = [1, 1]} : vector<8x512xf32> to vector<8x128xf32>
    %304 = arith.negf %303 : vector<8x128xf32>
    %305 = math.exp %304 : vector<8x128xf32>
    %cst_69 = arith.constant 1.000000e+00 : f32
    %306 = vector.broadcast %cst_69 : f32 to vector<8x128xf32>
    %307 = arith.addf %306, %305 : vector<8x128xf32>
    %308 = arith.divf %306, %307 : vector<8x128xf32>
    %309 = vector.extract_strided_slice %296 {offsets = [0, 256], sizes = [8, 128], strides = [1, 1]} : vector<8x512xf32> to vector<8x128xf32>
    %310 = math.tanh %309 : vector<8x128xf32>
    %311 = vector.extract_strided_slice %296 {offsets = [0, 384], sizes = [8, 128], strides = [1, 1]} : vector<8x512xf32> to vector<8x128xf32>
    %312 = arith.negf %311 : vector<8x128xf32>
    %313 = math.exp %312 : vector<8x128xf32>
    %cst_70 = arith.constant 1.000000e+00 : f32
    %314 = vector.broadcast %cst_70 : f32 to vector<8x128xf32>
    %315 = arith.addf %314, %313 : vector<8x128xf32>
    %316 = arith.divf %314, %315 : vector<8x128xf32>
    %317 = arith.mulf %308, %287 : vector<8x128xf32>
    %318 = arith.mulf %302, %310 : vector<8x128xf32>
    %319 = arith.addf %317, %318 : vector<8x128xf32>
    %320 = math.tanh %319 : vector<8x128xf32>
    %321 = arith.mulf %316, %320 : vector<8x128xf32>
    %322 = vector.extract_strided_slice %321 {offsets = [7, 0], sizes = [1, 128], strides = [1, 1]} : vector<8x128xf32> to vector<1x128xf32>
    %c1 = arith.constant 1 : index
    %c0_71 = arith.constant 0 : index
    %323 = vector.load %arg15[%c1, %c0_71] : memref<8x128xf32, #tpu.memory_space<vmem>>, vector<1x128xf32>
    tpu.vector_store %arg15[%c1, %c0_71], %322 {strides = array<i32>} : memref<8x128xf32, #tpu.memory_space<vmem>>, vector<1x128xf32>,
    %324 = vector.extract_strided_slice %257 {offsets = [16, 0], sizes = [8, 512], strides = [1, 1]} : vector<64x512xf32> to vector<8x512xf32>
    %cst_72 = arith.constant dense<0.000000e+00> : vector<8x512xf32>
    %325 = tpu.matmul %321, %258, %cst_72 {dimension_numbers = #tpu.dot_dimension_numbers<[1], [0], [0], [1], [0, 0, 1, 1], [], []>} : vector<8x128xf32>, vector<128x512xf32>, vector<8x512xf32> -> vector<8x512xf32>
    %326 = arith.addf %324, %325 : vector<8x512xf32>
    %327 = vector.broadcast %259 : vector<1x512xf32> to vector<8x512xf32>
    %328 = arith.addf %326, %327 : vector<8x512xf32>
    %329 = vector.extract_strided_slice %328 {offsets = [0, 0], sizes = [8, 128], strides = [1, 1]} : vector<8x512xf32> to vector<8x128xf32>
    %330 = arith.negf %329 : vector<8x128xf32>
    %331 = math.exp %330 : vector<8x128xf32>
    %cst_73 = arith.constant 1.000000e+00 : f32
    %332 = vector.broadcast %cst_73 : f32 to vector<8x128xf32>
    %333 = arith.addf %332, %331 : vector<8x128xf32>
    %334 = arith.divf %332, %333 : vector<8x128xf32>
    %335 = vector.extract_strided_slice %328 {offsets = [0, 128], sizes = [8, 128], strides = [1, 1]} : vector<8x512xf32> to vector<8x128xf32>
    %336 = arith.negf %335 : vector<8x128xf32>
    %337 = math.exp %336 : vector<8x128xf32>
    %cst_74 = arith.constant 1.000000e+00 : f32
    %338 = vector.broadcast %cst_74 : f32 to vector<8x128xf32>
    %339 = arith.addf %338, %337 : vector<8x128xf32>
    %340 = arith.divf %338, %339 : vector<8x128xf32>
    %341 = vector.extract_strided_slice %328 {offsets = [0, 256], sizes = [8, 128], strides = [1, 1]} : vector<8x512xf32> to vector<8x128xf32>
    %342 = math.tanh %341 : vector<8x128xf32>
    %343 = vector.extract_strided_slice %328 {offsets = [0, 384], sizes = [8, 128], strides = [1, 1]} : vector<8x512xf32> to vector<8x128xf32>
    %344 = arith.negf %343 : vector<8x128xf32>
    %345 = math.exp %344 : vector<8x128xf32>
    %cst_75 = arith.constant 1.000000e+00 : f32
    %346 = vector.broadcast %cst_75 : f32 to vector<8x128xf32>
    %347 = arith.addf %346, %345 : vector<8x128xf32>
    %348 = arith.divf %346, %347 : vector<8x128xf32>
    %349 = arith.mulf %340, %319 : vector<8x128xf32>
    %350 = arith.mulf %334, %342 : vector<8x128xf32>
    %351 = arith.addf %349, %350 : vector<8x128xf32>
    %352 = math.tanh %351 : vector<8x128xf32>
    %353 = arith.mulf %348, %352 : vector<8x128xf32>
    %354 = vector.extract_strided_slice %353 {offsets = [7, 0], sizes = [1, 128], strides = [1, 1]} : vector<8x128xf32> to vector<1x128xf32>
    %c2 = arith.constant 2 : index
    %c0_76 = arith.constant 0 : index
    %355 = vector.load %arg15[%c2, %c0_76] : memref<8x128xf32, #tpu.memory_space<vmem>>, vector<1x128xf32>
    tpu.vector_store %arg15[%c2, %c0_76], %354 {strides = array<i32>} : memref<8x128xf32, #tpu.memory_space<vmem>>, vector<1x128xf32>,
    %356 = vector.extract_strided_slice %257 {offsets = [24, 0], sizes = [8, 512], strides = [1, 1]} : vector<64x512xf32> to vector<8x512xf32>
    %cst_77 = arith.constant dense<0.000000e+00> : vector<8x512xf32>
    %357 = tpu.matmul %353, %258, %cst_77 {dimension_numbers = #tpu.dot_dimension_numbers<[1], [0], [0], [1], [0, 0, 1, 1], [], []>} : vector<8x128xf32>, vector<128x512xf32>, vector<8x512xf32> -> vector<8x512xf32>
    %358 = arith.addf %356, %357 : vector<8x512xf32>
    %359 = vector.broadcast %259 : vector<1x512xf32> to vector<8x512xf32>
    %360 = arith.addf %358, %359 : vector<8x512xf32>
    %361 = vector.extract_strided_slice %360 {offsets = [0, 0], sizes = [8, 128], strides = [1, 1]} : vector<8x512xf32> to vector<8x128xf32>
    %362 = arith.negf %361 : vector<8x128xf32>
    %363 = math.exp %362 : vector<8x128xf32>
    %cst_78 = arith.constant 1.000000e+00 : f32
    %364 = vector.broadcast %cst_78 : f32 to vector<8x128xf32>
    %365 = arith.addf %364, %363 : vector<8x128xf32>
    %366 = arith.divf %364, %365 : vector<8x128xf32>
    %367 = vector.extract_strided_slice %360 {offsets = [0, 128], sizes = [8, 128], strides = [1, 1]} : vector<8x512xf32> to vector<8x128xf32>
    %368 = arith.negf %367 : vector<8x128xf32>
    %369 = math.exp %368 : vector<8x128xf32>
    %cst_79 = arith.constant 1.000000e+00 : f32
    %370 = vector.broadcast %cst_79 : f32 to vector<8x128xf32>
    %371 = arith.addf %370, %369 : vector<8x128xf32>
    %372 = arith.divf %370, %371 : vector<8x128xf32>
    %373 = vector.extract_strided_slice %360 {offsets = [0, 256], sizes = [8, 128], strides = [1, 1]} : vector<8x512xf32> to vector<8x128xf32>
    %374 = math.tanh %373 : vector<8x128xf32>
    %375 = vector.extract_strided_slice %360 {offsets = [0, 384], sizes = [8, 128], strides = [1, 1]} : vector<8x512xf32> to vector<8x128xf32>
    %376 = arith.negf %375 : vector<8x128xf32>
    %377 = math.exp %376 : vector<8x128xf32>
    %cst_80 = arith.constant 1.000000e+00 : f32
    %378 = vector.broadcast %cst_80 : f32 to vector<8x128xf32>
    %379 = arith.addf %378, %377 : vector<8x128xf32>
    %380 = arith.divf %378, %379 : vector<8x128xf32>
    %381 = arith.mulf %372, %351 : vector<8x128xf32>
    %382 = arith.mulf %366, %374 : vector<8x128xf32>
    %383 = arith.addf %381, %382 : vector<8x128xf32>
    %384 = math.tanh %383 : vector<8x128xf32>
    %385 = arith.mulf %380, %384 : vector<8x128xf32>
    %386 = vector.extract_strided_slice %385 {offsets = [7, 0], sizes = [1, 128], strides = [1, 1]} : vector<8x128xf32> to vector<1x128xf32>
    %c3 = arith.constant 3 : index
    %c0_81 = arith.constant 0 : index
    %387 = vector.load %arg15[%c3, %c0_81] : memref<8x128xf32, #tpu.memory_space<vmem>>, vector<1x128xf32>
    tpu.vector_store %arg15[%c3, %c0_81], %386 {strides = array<i32>} : memref<8x128xf32, #tpu.memory_space<vmem>>, vector<1x128xf32>,
    %388 = vector.extract_strided_slice %257 {offsets = [32, 0], sizes = [8, 512], strides = [1, 1]} : vector<64x512xf32> to vector<8x512xf32>
    %cst_82 = arith.constant dense<0.000000e+00> : vector<8x512xf32>
    %389 = tpu.matmul %385, %258, %cst_82 {dimension_numbers = #tpu.dot_dimension_numbers<[1], [0], [0], [1], [0, 0, 1, 1], [], []>} : vector<8x128xf32>, vector<128x512xf32>, vector<8x512xf32> -> vector<8x512xf32>
    %390 = arith.addf %388, %389 : vector<8x512xf32>
    %391 = vector.broadcast %259 : vector<1x512xf32> to vector<8x512xf32>
    %392 = arith.addf %390, %391 : vector<8x512xf32>
    %393 = vector.extract_strided_slice %392 {offsets = [0, 0], sizes = [8, 128], strides = [1, 1]} : vector<8x512xf32> to vector<8x128xf32>
    %394 = arith.negf %393 : vector<8x128xf32>
    %395 = math.exp %394 : vector<8x128xf32>
    %cst_83 = arith.constant 1.000000e+00 : f32
    %396 = vector.broadcast %cst_83 : f32 to vector<8x128xf32>
    %397 = arith.addf %396, %395 : vector<8x128xf32>
    %398 = arith.divf %396, %397 : vector<8x128xf32>
    %399 = vector.extract_strided_slice %392 {offsets = [0, 128], sizes = [8, 128], strides = [1, 1]} : vector<8x512xf32> to vector<8x128xf32>
    %400 = arith.negf %399 : vector<8x128xf32>
    %401 = math.exp %400 : vector<8x128xf32>
    %cst_84 = arith.constant 1.000000e+00 : f32
    %402 = vector.broadcast %cst_84 : f32 to vector<8x128xf32>
    %403 = arith.addf %402, %401 : vector<8x128xf32>
    %404 = arith.divf %402, %403 : vector<8x128xf32>
    %405 = vector.extract_strided_slice %392 {offsets = [0, 256], sizes = [8, 128], strides = [1, 1]} : vector<8x512xf32> to vector<8x128xf32>
    %406 = math.tanh %405 : vector<8x128xf32>
    %407 = vector.extract_strided_slice %392 {offsets = [0, 384], sizes = [8, 128], strides = [1, 1]} : vector<8x512xf32> to vector<8x128xf32>
    %408 = arith.negf %407 : vector<8x128xf32>
    %409 = math.exp %408 : vector<8x128xf32>
    %cst_85 = arith.constant 1.000000e+00 : f32
    %410 = vector.broadcast %cst_85 : f32 to vector<8x128xf32>
    %411 = arith.addf %410, %409 : vector<8x128xf32>
    %412 = arith.divf %410, %411 : vector<8x128xf32>
    %413 = arith.mulf %404, %383 : vector<8x128xf32>
    %414 = arith.mulf %398, %406 : vector<8x128xf32>
    %415 = arith.addf %413, %414 : vector<8x128xf32>
    %416 = math.tanh %415 : vector<8x128xf32>
    %417 = arith.mulf %412, %416 : vector<8x128xf32>
    %418 = vector.extract_strided_slice %417 {offsets = [7, 0], sizes = [1, 128], strides = [1, 1]} : vector<8x128xf32> to vector<1x128xf32>
    %c4 = arith.constant 4 : index
    %c0_86 = arith.constant 0 : index
    %419 = vector.load %arg15[%c4, %c0_86] : memref<8x128xf32, #tpu.memory_space<vmem>>, vector<1x128xf32>
    tpu.vector_store %arg15[%c4, %c0_86], %418 {strides = array<i32>} : memref<8x128xf32, #tpu.memory_space<vmem>>, vector<1x128xf32>,
    %420 = vector.extract_strided_slice %257 {offsets = [40, 0], sizes = [8, 512], strides = [1, 1]} : vector<64x512xf32> to vector<8x512xf32>
    %cst_87 = arith.constant dense<0.000000e+00> : vector<8x512xf32>
    %421 = tpu.matmul %417, %258, %cst_87 {dimension_numbers = #tpu.dot_dimension_numbers<[1], [0], [0], [1], [0, 0, 1, 1], [], []>} : vector<8x128xf32>, vector<128x512xf32>, vector<8x512xf32> -> vector<8x512xf32>
    %422 = arith.addf %420, %421 : vector<8x512xf32>
    %423 = vector.broadcast %259 : vector<1x512xf32> to vector<8x512xf32>
    %424 = arith.addf %422, %423 : vector<8x512xf32>
    %425 = vector.extract_strided_slice %424 {offsets = [0, 0], sizes = [8, 128], strides = [1, 1]} : vector<8x512xf32> to vector<8x128xf32>
    %426 = arith.negf %425 : vector<8x128xf32>
    %427 = math.exp %426 : vector<8x128xf32>
    %cst_88 = arith.constant 1.000000e+00 : f32
    %428 = vector.broadcast %cst_88 : f32 to vector<8x128xf32>
    %429 = arith.addf %428, %427 : vector<8x128xf32>
    %430 = arith.divf %428, %429 : vector<8x128xf32>
    %431 = vector.extract_strided_slice %424 {offsets = [0, 128], sizes = [8, 128], strides = [1, 1]} : vector<8x512xf32> to vector<8x128xf32>
    %432 = arith.negf %431 : vector<8x128xf32>
    %433 = math.exp %432 : vector<8x128xf32>
    %cst_89 = arith.constant 1.000000e+00 : f32
    %434 = vector.broadcast %cst_89 : f32 to vector<8x128xf32>
    %435 = arith.addf %434, %433 : vector<8x128xf32>
    %436 = arith.divf %434, %435 : vector<8x128xf32>
    %437 = vector.extract_strided_slice %424 {offsets = [0, 256], sizes = [8, 128], strides = [1, 1]} : vector<8x512xf32> to vector<8x128xf32>
    %438 = math.tanh %437 : vector<8x128xf32>
    %439 = vector.extract_strided_slice %424 {offsets = [0, 384], sizes = [8, 128], strides = [1, 1]} : vector<8x512xf32> to vector<8x128xf32>
    %440 = arith.negf %439 : vector<8x128xf32>
    %441 = math.exp %440 : vector<8x128xf32>
    %cst_90 = arith.constant 1.000000e+00 : f32
    %442 = vector.broadcast %cst_90 : f32 to vector<8x128xf32>
    %443 = arith.addf %442, %441 : vector<8x128xf32>
    %444 = arith.divf %442, %443 : vector<8x128xf32>
    %445 = arith.mulf %436, %415 : vector<8x128xf32>
    %446 = arith.mulf %430, %438 : vector<8x128xf32>
    %447 = arith.addf %445, %446 : vector<8x128xf32>
    %448 = math.tanh %447 : vector<8x128xf32>
    %449 = arith.mulf %444, %448 : vector<8x128xf32>
    %450 = vector.extract_strided_slice %449 {offsets = [7, 0], sizes = [1, 128], strides = [1, 1]} : vector<8x128xf32> to vector<1x128xf32>
    %c5 = arith.constant 5 : index
    %c0_91 = arith.constant 0 : index
    %451 = vector.load %arg15[%c5, %c0_91] : memref<8x128xf32, #tpu.memory_space<vmem>>, vector<1x128xf32>
    tpu.vector_store %arg15[%c5, %c0_91], %450 {strides = array<i32>} : memref<8x128xf32, #tpu.memory_space<vmem>>, vector<1x128xf32>,
    %452 = vector.extract_strided_slice %257 {offsets = [48, 0], sizes = [8, 512], strides = [1, 1]} : vector<64x512xf32> to vector<8x512xf32>
    %cst_92 = arith.constant dense<0.000000e+00> : vector<8x512xf32>
    %453 = tpu.matmul %449, %258, %cst_92 {dimension_numbers = #tpu.dot_dimension_numbers<[1], [0], [0], [1], [0, 0, 1, 1], [], []>} : vector<8x128xf32>, vector<128x512xf32>, vector<8x512xf32> -> vector<8x512xf32>
    %454 = arith.addf %452, %453 : vector<8x512xf32>
    %455 = vector.broadcast %259 : vector<1x512xf32> to vector<8x512xf32>
    %456 = arith.addf %454, %455 : vector<8x512xf32>
    %457 = vector.extract_strided_slice %456 {offsets = [0, 0], sizes = [8, 128], strides = [1, 1]} : vector<8x512xf32> to vector<8x128xf32>
    %458 = arith.negf %457 : vector<8x128xf32>
    %459 = math.exp %458 : vector<8x128xf32>
    %cst_93 = arith.constant 1.000000e+00 : f32
    %460 = vector.broadcast %cst_93 : f32 to vector<8x128xf32>
    %461 = arith.addf %460, %459 : vector<8x128xf32>
    %462 = arith.divf %460, %461 : vector<8x128xf32>
    %463 = vector.extract_strided_slice %456 {offsets = [0, 128], sizes = [8, 128], strides = [1, 1]} : vector<8x512xf32> to vector<8x128xf32>
    %464 = arith.negf %463 : vector<8x128xf32>
    %465 = math.exp %464 : vector<8x128xf32>
    %cst_94 = arith.constant 1.000000e+00 : f32
    %466 = vector.broadcast %cst_94 : f32 to vector<8x128xf32>
    %467 = arith.addf %466, %465 : vector<8x128xf32>
    %468 = arith.divf %466, %467 : vector<8x128xf32>
    %469 = vector.extract_strided_slice %456 {offsets = [0, 256], sizes = [8, 128], strides = [1, 1]} : vector<8x512xf32> to vector<8x128xf32>
    %470 = math.tanh %469 : vector<8x128xf32>
    %471 = vector.extract_strided_slice %456 {offsets = [0, 384], sizes = [8, 128], strides = [1, 1]} : vector<8x512xf32> to vector<8x128xf32>
    %472 = arith.negf %471 : vector<8x128xf32>
    %473 = math.exp %472 : vector<8x128xf32>
    %cst_95 = arith.constant 1.000000e+00 : f32
    %474 = vector.broadcast %cst_95 : f32 to vector<8x128xf32>
    %475 = arith.addf %474, %473 : vector<8x128xf32>
    %476 = arith.divf %474, %475 : vector<8x128xf32>
    %477 = arith.mulf %468, %447 : vector<8x128xf32>
    %478 = arith.mulf %462, %470 : vector<8x128xf32>
    %479 = arith.addf %477, %478 : vector<8x128xf32>
    %480 = math.tanh %479 : vector<8x128xf32>
    %481 = arith.mulf %476, %480 : vector<8x128xf32>
    %482 = vector.extract_strided_slice %481 {offsets = [7, 0], sizes = [1, 128], strides = [1, 1]} : vector<8x128xf32> to vector<1x128xf32>
    %c6 = arith.constant 6 : index
    %c0_96 = arith.constant 0 : index
    %483 = vector.load %arg15[%c6, %c0_96] : memref<8x128xf32, #tpu.memory_space<vmem>>, vector<1x128xf32>
    tpu.vector_store %arg15[%c6, %c0_96], %482 {strides = array<i32>} : memref<8x128xf32, #tpu.memory_space<vmem>>, vector<1x128xf32>,
    %484 = vector.extract_strided_slice %257 {offsets = [56, 0], sizes = [8, 512], strides = [1, 1]} : vector<64x512xf32> to vector<8x512xf32>
    %cst_97 = arith.constant dense<0.000000e+00> : vector<8x512xf32>
    %485 = tpu.matmul %481, %258, %cst_97 {dimension_numbers = #tpu.dot_dimension_numbers<[1], [0], [0], [1], [0, 0, 1, 1], [], []>} : vector<8x128xf32>, vector<128x512xf32>, vector<8x512xf32> -> vector<8x512xf32>
    %486 = arith.addf %484, %485 : vector<8x512xf32>
    %487 = vector.broadcast %259 : vector<1x512xf32> to vector<8x512xf32>
    %488 = arith.addf %486, %487 : vector<8x512xf32>
    %489 = vector.extract_strided_slice %488 {offsets = [0, 0], sizes = [8, 128], strides = [1, 1]} : vector<8x512xf32> to vector<8x128xf32>
    %490 = arith.negf %489 : vector<8x128xf32>
    %491 = math.exp %490 : vector<8x128xf32>
    %cst_98 = arith.constant 1.000000e+00 : f32
    %492 = vector.broadcast %cst_98 : f32 to vector<8x128xf32>
    %493 = arith.addf %492, %491 : vector<8x128xf32>
    %494 = arith.divf %492, %493 : vector<8x128xf32>
    %495 = vector.extract_strided_slice %488 {offsets = [0, 128], sizes = [8, 128], strides = [1, 1]} : vector<8x512xf32> to vector<8x128xf32>
    %496 = arith.negf %495 : vector<8x128xf32>
    %497 = math.exp %496 : vector<8x128xf32>
    %cst_99 = arith.constant 1.000000e+00 : f32
    %498 = vector.broadcast %cst_99 : f32 to vector<8x128xf32>
    %499 = arith.addf %498, %497 : vector<8x128xf32>
    %500 = arith.divf %498, %499 : vector<8x128xf32>
    %501 = vector.extract_strided_slice %488 {offsets = [0, 256], sizes = [8, 128], strides = [1, 1]} : vector<8x512xf32> to vector<8x128xf32>
    %502 = math.tanh %501 : vector<8x128xf32>
    %503 = vector.extract_strided_slice %488 {offsets = [0, 384], sizes = [8, 128], strides = [1, 1]} : vector<8x512xf32> to vector<8x128xf32>
    %504 = arith.negf %503 : vector<8x128xf32>
    %505 = math.exp %504 : vector<8x128xf32>
    %cst_100 = arith.constant 1.000000e+00 : f32
    %506 = vector.broadcast %cst_100 : f32 to vector<8x128xf32>
    %507 = arith.addf %506, %505 : vector<8x128xf32>
    %508 = arith.divf %506, %507 : vector<8x128xf32>
    %509 = arith.mulf %500, %479 : vector<8x128xf32>
    %510 = arith.mulf %494, %502 : vector<8x128xf32>
    %511 = arith.addf %509, %510 : vector<8x128xf32>
    %512 = math.tanh %511 : vector<8x128xf32>
    %513 = arith.mulf %508, %512 : vector<8x128xf32>
    %514 = vector.extract_strided_slice %513 {offsets = [7, 0], sizes = [1, 128], strides = [1, 1]} : vector<8x128xf32> to vector<1x128xf32>
    %c7 = arith.constant 7 : index
    %c0_101 = arith.constant 0 : index
    %515 = vector.load %arg15[%c7, %c0_101] : memref<8x128xf32, #tpu.memory_space<vmem>>, vector<1x128xf32>
    tpu.vector_store %arg15[%c7, %c0_101], %514 {strides = array<i32>} : memref<8x128xf32, #tpu.memory_space<vmem>>, vector<1x128xf32>,
    %c0_102 = arith.constant 0 : index
    %c0_103 = arith.constant 0 : index
    %516 = vector.load %arg12[%c0_102, %c0_103] : memref<8x128xf32, #tpu.memory_space<vmem>>, vector<8x128xf32>
    tpu.vector_store %arg12[%c0_102, %c0_103], %513 {strides = array<i32>} : memref<8x128xf32, #tpu.memory_space<vmem>>, vector<8x128xf32>,
    %c0_104 = arith.constant 0 : index
    %c0_105 = arith.constant 0 : index
    %517 = vector.load %arg13[%c0_104, %c0_105] : memref<8x128xf32, #tpu.memory_space<vmem>>, vector<8x128xf32>
    tpu.vector_store %arg13[%c0_104, %c0_105], %511 {strides = array<i32>} : memref<8x128xf32, #tpu.memory_space<vmem>>, vector<8x128xf32>,
    %c0_106 = arith.constant 0 : index
    %c0_107 = arith.constant 0 : index
    %518 = vector.load %arg15[%c0_106, %c0_107] : memref<8x128xf32, #tpu.memory_space<vmem>>, vector<8x128xf32>
    %c0_108 = arith.constant 0 : index
    %c0_109 = arith.constant 0 : index
    %519 = vector.load %arg9[%c0_108, %c0_109] : memref<128x18xf32, #tpu.memory_space<vmem>>, vector<128x18xf32>
    %cst_110 = arith.constant dense<0.000000e+00> : vector<8x18xf32>
    %520 = tpu.matmul %518, %519, %cst_110 {dimension_numbers = #tpu.dot_dimension_numbers<[1], [0], [0], [1], [0, 0, 1, 1], [], []>} : vector<8x128xf32>, vector<128x18xf32>, vector<8x18xf32> -> vector<8x18xf32>
    %c0_111 = arith.constant 0 : index
    %c0_112 = arith.constant 0 : index
    %521 = vector.load %arg10[%c0_111, %c0_112] : memref<1x18xf32, #tpu.memory_space<vmem>>, vector<1x18xf32>
    %522 = vector.broadcast %521 : vector<1x18xf32> to vector<8x18xf32>
    %523 = arith.addf %520, %522 : vector<8x18xf32>
    %c0_113 = arith.constant 0 : index
    %c0_114 = arith.constant 0 : index
    %524 = vector.load %arg11[%c0_113, %c0_114] : memref<8x18xf32, #tpu.memory_space<vmem>>, vector<8x18xf32>
    tpu.vector_store %arg11[%c0_113, %c0_114], %523 {strides = array<i32>} : memref<8x18xf32, #tpu.memory_space<vmem>>, vector<8x18xf32>,
    return
  }
}

</mosaic_0001>

<bundles_post_ra>
// kernel: net_forward.3
= control target key start
LH: loop header
LB: loop body
LE: loop exit
PB: predicated region body
PF: predicated region fallthrough
CT: control target
= control target key end

     0   :  { %19 = vsyncpa [#allocation5], 0  ;;  %v5402_v7 = vmov 0.0   ;;  %vm83_vm0 = vcmask 523264   ;;  %s7198_s0 = inlined_call_operand.vmem [shape: f32[64,64], index: 0, kind: input, shape index: {}]   ;;  %s7199_s1 = inlined_call_operand.vmem [shape: f32[8,128], index: 1, kind: input, shape index: {}]   ;;  %s7200_s2 = inlined_call_operand.vmem [shape: f32[8,128], index: 2, kind: input, shape index: {}]   ;;  %s7201_s3 = inlined_call_operand.vmem [shape: f32[64,512], index: 3, kind: input, shape index: {}]   ;;  %s7202_s4 = inlined_call_operand.vmem [shape: f32[128,512], index: 4, kind: input, shape index: {}]   ;;  %s7203_s5 = inlined_call_operand.vmem [shape: f32[1,512], index: 5, kind: input, shape index: {}]   ;;  %s7204_s6 = inlined_call_operand.vmem [shape: f32[128,512], index: 6, kind: input, shape index: {}]   ;;  %s7205_s7 = inlined_call_operand.vmem [shape: f32[128,512], index: 7, kind: input, shape index: {}]   ;;  %s7206_s8 = inlined_call_operand.vmem [shape: f32[1,512], index: 8, kind: input, shape index: {}]   ;;  %s7207_s9 = inlined_call_operand.vmem [shape: f32[128,18], index: 9, kind: input, shape index: {}]   ;;  %s7208_s10 = inlined_call_operand.vmem [shape: f32[1,18], index: 10, kind: input, shape index: {}]   ;;  %s7209_s11 = inlined_call_operand.hbm [shape: f32[8,18], index: 11, kind: output, shape index: {0}]   ;;  %s7210_s12 = inlined_call_operand.hbm [shape: f32[8,128], index: 12, kind: output, shape index: {1}]   ;;  %s7211_s13 = inlined_call_operand.hbm [shape: f32[8,128], index: 13, kind: output, shape index: {2}]  }
   0x1   :  { %v52_v0 = vld [vmem:[%s7201_s3 + $0x8] sm:$0xff]  ;;  %v54_v2 = vld [vmem:[%s7201_s3 + $0x18] sm:$0xff]  ;;  %v51_v5 = vld [vmem:[%s7201_s3] sm:$0xff]  ;;  %172 = vmatprep.mubr.f32.mxu0 %v5402_v7  ;;  %285 = vmatprep.mubr.f32.mxu1 %v5402_v7 }
   0x2   :  { %v56_v1 = vld [vmem:[%s7201_s3 + $0x28] sm:$0xff]  ;;  %v58_v4 = vld [vmem:[%s7201_s3 + $0x38] sm:$0xff]  ;;  %v55_v6 = vld [vmem:[%s7201_s3 + $0x20] sm:$0xff] }
   0x3   :  { %v3862_v3 = vpack.c.bf16 %v56_v1, %v52_v0  ;;  %v3878_v8 = vpack.c.bf16 %v58_v4, %v54_v2  ;;  %v3864_v9 = vpack.c.bf16 %v55_v6, %v51_v5  ;;  %v53_v10 = vld [vmem:[%s7201_s3 + $0x10] sm:$0xff]  ;;  %v60_v12 = vld [vmem:[%s7201_s3 + $0x48] sm:$0xff]  ;;  %v62_v15 = vld [vmem:[%s7201_s3 + $0x58] sm:$0xff] }
   0x4   :  { %v57_v11 = vld [vmem:[%s7201_s3 + $0x30] sm:$0xff]  ;;  %v64_v14 = vld [vmem:[%s7201_s3 + $0x68] sm:$0xff]  ;;  %v66_v16 = vld [vmem:[%s7201_s3 + $0x78] sm:$0xff] }
   0x5   :  { %3863 = vmatprep.subr.bf16.mxu0 %v3862_v3  ;;  %v3880_v13 = vpack.c.bf16 %v57_v11, %v53_v10  ;;  %3879 = vmatprep.subr.bf16.mxu1 %v3878_v8  ;;  %v3866_v17 = vpack.c.bf16 %v64_v14, %v60_v12  ;;  %v3882_v18 = vpack.c.bf16 %v66_v16, %v62_v15  ;;  %v59_v19 = vld [vmem:[%s7201_s3 + $0x40] sm:$0xff]  ;;  %v61_v21 = vld [vmem:[%s7201_s3 + $0x50] sm:$0xff]  ;;  %v68_v24 = vld [vmem:[%s7201_s3 + $0x88] sm:$0xff] }
   0x6   :  { %3865 = vmatpush1.bf16.msra.mxu0 %v3864_v9  ;;  %v63_v20 = vld [vmem:[%s7201_s3 + $0x60] sm:$0xff]  ;;  %v65_v23 = vld [vmem:[%s7201_s3 + $0x70] sm:$0xff]  ;;  %v72_v25 = vld [vmem:[%s7201_s3 + $0xa8] sm:$0xff] }
   0x7   :  { %3881 = vmatpush1.bf16.msra.mxu1 %v3880_v13  ;;  %v3868_v22 = vpack.c.bf16 %v63_v20, %v59_v19  ;;  %3867 = vmatprep.subr.bf16.mxu0 %v3866_v17  ;;  %v3884_v26 = vpack.c.bf16 %v65_v23, %v61_v21  ;;  %v3870_v27 = vpack.c.bf16 %v72_v25, %v68_v24  ;;  %v70_v28 = vld [vmem:[%s7201_s3 + $0x98] sm:$0xff]  ;;  %v67_v30 = vld [vmem:[%s7201_s3 + $0x80] sm:$0xff]  ;;  %v69_v33 = vld [vmem:[%s7201_s3 + $0x90] sm:$0xff] }
   0x8   :  { %3883 = vmatprep.subr.bf16.mxu1 %v3882_v18  ;;  %v74_v29 = vld [vmem:[%s7201_s3 + $0xb8] sm:$0xff]  ;;  %v71_v32 = vld [vmem:[%s7201_s3 + $0xa0] sm:$0xff]  ;;  %v73_v34 = vld [vmem:[%s7201_s3 + $0xb0] sm:$0xff] }
   0x9   :  { %v3886_v31 = vpack.c.bf16 %v74_v29, %v70_v28  ;;  %v3872_v35 = vpack.c.bf16 %v71_v32, %v67_v30  ;;  %v76_v36 = vld [vmem:[%s7201_s3 + $0xc8] sm:$0xff]  ;;  %v78_v38 = vld [vmem:[%s7201_s3 + $0xd8] sm:$0xff]  ;;  %v3888_v39 = vpack.c.bf16 %v73_v34, %v69_v33  ;;  %v75_v42 = vld [vmem:[%s7201_s3 + $0xc0] sm:$0xff] }
   0xa   :  { %3869 = vmatpush1.bf16.msra.mxu0 %v3868_v22  ;;  %v80_v37 = vld [vmem:[%s7201_s3 + $0xe8] sm:$0xff]  ;;  %v82_v41 = vld [vmem:[%s7201_s3 + $0xf8] sm:$0xff]  ;;  %v79_v43 = vld [vmem:[%s7201_s3 + $0xe0] sm:$0xff] }
   0xb   :  { %3885 = vmatpush1.bf16.msra.mxu1 %v3884_v26  ;;  %3871 = vmatprep.subr.bf16.mxu0 %v3870_v27  ;;  %v3874_v40 = vpack.c.bf16 %v80_v37, %v76_v36  ;;  %v3890_v44 = vpack.c.bf16 %v82_v41, %v78_v38  ;;  %v77_v45 = vld [vmem:[%s7201_s3 + $0xd0] sm:$0xff]  ;;  %v335_v47 = vld [vmem:[%s7202_s4 + $0x8] sm:$0xff]  ;;  %v337_v49 = vld [vmem:[%s7202_s4 + $0x18] sm:$0xff]  ;;  %v3876_v50 = vpack.c.bf16 %v79_v43, %v75_v42 }
   0xc   :  { %3887 = vmatprep.subr.bf16.mxu1 %v3886_v31  ;;  %v81_v46 = vld [vmem:[%s7201_s3 + $0xf0] sm:$0xff]  ;;  %v339_v48 = vld [vmem:[%s7202_s4 + $0x28] sm:$0xff]  ;;  %v341_v51 = vld [vmem:[%s7202_s4 + $0x38] sm:$0xff] }
   0xd   :  { %v3892_v52 = vpack.c.bf16 %v81_v46, %v77_v45  ;;  %v5588_v53 = vpack.c.bf16 %v339_v48, %v335_v47  ;;  %v334_v54 = vld [vmem:[%s7202_s4] sm:$0xff]  ;;  %v5596_v56 = vpack.c.bf16 %v341_v51, %v337_v49  ;;  %v336_v57 = vld [vmem:[%s7202_s4 + $0x10] sm:$0xff]  ;;  %v343_v59 = vld [vmem:[%s7202_s4 + $0x48] sm:$0xff] }
   0xe   :  { %3873 = vmatpush1.bf16.msra.mxu0 %v3872_v35  ;;  %v338_v55 = vld [vmem:[%s7202_s4 + $0x20] sm:$0xff]  ;;  %v340_v58 = vld [vmem:[%s7202_s4 + $0x30] sm:$0xff]  ;;  %v347_v60 = vld [vmem:[%s7202_s4 + $0x68] sm:$0xff] }
   0xf   :  { %3889 = vmatpush1.bf16.msra.mxu1 %v3888_v39  ;;  %3875 = vmatprep.subr.bf16.mxu0 %v3874_v40  ;;  %v43_v61 = vld [vmem:[%s7198_s0] sm:$0xff]  ;;  %v5613_v62 = vpack.c.bf16 %v338_v55, %v334_v54  ;;  %v345_v63 = vld [vmem:[%s7202_s4 + $0x58] sm:$0xff]  ;;  %v5622_v1 = vpack.c.bf16 %v340_v58, %v336_v57  ;;  %v5631_v4 = vpack.c.bf16 %v347_v60, %v343_v59  ;;  %v344_v5 = vld [vmem:[%s7202_s4 + $0x50] sm:$0xff] }
  0x10   :  { %3891 = vmatprep.subr.bf16.mxu1 %v3890_v44  ;;  %v349_v0 = vld [vmem:[%s7202_s4 + $0x78] sm:$0xff]  ;;  %v342_v2 = vld [vmem:[%s7202_s4 + $0x40] sm:$0xff]  ;;  %v348_v6 = vld [vmem:[%s7202_s4 + $0x70] sm:$0xff] }
  0x11   :  { %v346_v3 = vld [vmem:[%s7202_s4 + $0x60] sm:$0xff]  ;;  %v5640_v8 = vpack.c.bf16 %v349_v0, %v345_v63  ;;  %v351_v9 = vld [vmem:[%s7202_s4 + $0x88] sm:$0xff]  ;;  %v353_v13 = vld [vmem:[%s7202_s4 + $0x98] sm:$0xff]  ;;  %v5663_v15 = vpack.c.bf16 %v348_v6, %v344_v5 }
  0x12   :  { %3877 = vmatpush1.bf16.msra.mxu0 %v3876_v50  ;;  %v355_v10 = vld [vmem:[%s7202_s4 + $0xa8] sm:$0xff]  ;;  %v5653_v12 = vpack.c.bf16 %v346_v3, %v342_v2  ;;  %v357_v14 = vld [vmem:[%s7202_s4 + $0xb8] sm:$0xff]  ;;  %v350_v16 = vld [vmem:[%s7202_s4 + $0x80] sm:$0xff] }
  0x13   :  { %3893 = vmatpush1.bf16.msra.mxu1 %v3892_v52  ;;  %3895 = vmatprep.subr.bf16.mxu0 %v5588_v53  ;;  %v44_v11 = vld [vmem:[%s7198_s0 + $0x8] sm:$0xff]  ;;  %v354_v17 = vld [vmem:[%s7202_s4 + $0xa0] sm:$0xff]  ;;  %v5673_v18 = vpack.c.bf16 %v355_v10, %v351_v9  ;;  %v352_v19 = vld [vmem:[%s7202_s4 + $0x90] sm:$0xff]  ;;  %v5683_v21 = vpack.c.bf16 %v357_v14, %v353_v13 }
  0x14   :  { %3927 = vmatprep.subr.bf16.mxu1 %v5596_v56  ;;  %v356_v20 = vld [vmem:[%s7202_s4 + $0xb0] sm:$0xff]  ;;  %v359_v22 = vld [vmem:[%s7202_s4 + $0xc8] sm:$0xff]  ;;  %v5696_v25 = vpack.c.bf16 %v354_v17, %v350_v16  ;;  %v361_v26 = vld [vmem:[%s7202_s4 + $0xd8] sm:$0xff] }
  0x15   :  { %3745 = vmatmul.mubr.msk.f32.vlgmr.msra.gmra.mrb[0].mxu0 %vm83_vm0, %v43_v61  ;;  %v363_v23 = vld [vmem:[%s7202_s4 + $0xe8] sm:$0xff]  ;;  %v45_v24 = vld [vmem:[%s7198_s0 + $0x10] sm:$0xff]  ;;  %v365_v27 = vld [vmem:[%s7202_s4 + $0xf8] sm:$0xff]  ;;  %v5706_v28 = vpack.c.bf16 %v356_v20, %v352_v19 }
  0x16   :  { %3753 = vmatmul.mubr.msk.f32.vlgmr.msra.gmra.mrb[0].mxu1 %vm83_vm0, %v43_v61  ;;  %3897 = vmatpush1.bf16.msra.mxu0 %v5613_v62  ;;  %v358_v29 = vld [vmem:[%s7202_s4 + $0xc0] sm:$0xff]  ;;  %v5716_v31 = vpack.c.bf16 %v363_v23, %v359_v22  ;;  %v360_v32 = vld [vmem:[%s7202_s4 + $0xd0] sm:$0xff]  ;;  %v5726_v34 = vpack.c.bf16 %v365_v27, %v361_v26  ;;  %v367_v35 = vld [vmem:[%s7202_s4 + $0x108] sm:$0xff] }
  0x17   :  { %3929 = vmatpush1.bf16.msra.mxu1 %v5622_v1  ;;  %178 = vmatprep.mubr.f32.mxu0 %v5402_v7  ;;  %v362_v30 = vld [vmem:[%s7202_s4 + $0xe0] sm:$0xff]  ;;  %v364_v33 = vld [vmem:[%s7202_s4 + $0xf0] sm:$0xff]  ;;  %v371_v36 = vld [vmem:[%s7202_s4 + $0x128] sm:$0xff] }
  0x18   :  { %291 = vmatprep.mubr.f32.mxu1 %v5402_v7  ;;  %3899 = vmatprep.subr.bf16.mxu0 %v5631_v4  ;;  %v46_v37 = vld [vmem:[%s7198_s0 + $0x18] sm:$0xff]  ;;  %v5739_v38 = vpack.c.bf16 %v362_v30, %v358_v29  ;;  %v5749_v41 = vpack.c.bf16 %v364_v33, %v360_v32  ;;  %v366_v42 = vld [vmem:[%s7202_s4 + $0x100] sm:$0xff]  ;;  %v5759_v44 = vpack.c.bf16 %v371_v36, %v367_v35  ;;  %v368_v45 = vld [vmem:[%s7202_s4 + $0x110] sm:$0xff] }
  0x19   :  { %3746 = vmatmul.mubr.msk.f32.gmra.mrb[2].mxu0 %vm83_vm0, %v44_v11  ;;  %3931 = vmatprep.subr.bf16.mxu1 %v5640_v8  ;;  %v369_v39 = vld [vmem:[%s7202_s4 + $0x118] sm:$0xff]  ;;  %v370_v43 = vld [vmem:[%s7202_s4 + $0x120] sm:$0xff]  ;;  %v372_v46 = vld [vmem:[%s7202_s4 + $0x130] sm:$0xff] }
  0x1a   :  { %3754 = vmatmul.mubr.msk.f32.gmra.mrb[2].mxu1 %vm83_vm0, %v44_v11  ;;  %3901 = vmatpush1.bf16.msra.mxu0 %v5653_v12  ;;  %v373_v40 = vld [vmem:[%s7202_s4 + $0x138] sm:$0xff]  ;;  %v375_v48 = vld [vmem:[%s7202_s4 + $0x148] sm:$0xff]  ;;  %v47_v50 = vld [vmem:[%s7198_s0 + $0x20] sm:$0xff]  ;;  %v5782_v51 = vpack.c.bf16 %v370_v43, %v366_v42  ;;  %v5792_v55 = vpack.c.bf16 %v372_v46, %v368_v45 }
  0x1b   :  { %3933 = vmatpush1.bf16.msra.mxu1 %v5663_v15  ;;  %184 = vmatprep.mubr.f32.mxu0 %v5402_v7  ;;  %v5769_v47 = vpack.c.bf16 %v373_v40, %v369_v39  ;;  %v379_v49 = vld [vmem:[%s7202_s4 + $0x168] sm:$0xff]  ;;  %v377_v52 = vld [vmem:[%s7202_s4 + $0x158] sm:$0xff]  ;;  %v374_v57 = vld [vmem:[%s7202_s4 + $0x140] sm:$0xff] }
  0x1c   :  { %297 = vmatprep.mubr.f32.mxu1 %v5402_v7  ;;  %3903 = vmatprep.subr.bf16.mxu0 %v5673_v18  ;;  %v381_v54 = vld [vmem:[%s7202_s4 + $0x178] sm:$0xff]  ;;  %v378_v58 = vld [vmem:[%s7202_s4 + $0x160] sm:$0xff]  ;;  %v5802_v59 = vpack.c.bf16 %v379_v49, %v375_v48  ;;  %v376_v60 = vld [vmem:[%s7202_s4 + $0x150] sm:$0xff] }
  0x1d   :  { %3747 = vmatmul.mubr.msk.f32.gmra.mrb[4].mxu0 %vm83_vm0, %v45_v24  ;;  %3935 = vmatprep.subr.bf16.mxu1 %v5683_v21  ;;  %v380_v61 = vld [vmem:[%s7202_s4 + $0x170] sm:$0xff]  ;;  %v5812_v63 = vpack.c.bf16 %v381_v54, %v377_v52  ;;  %v383_v0 = vld [vmem:[%s7202_s4 + $0x188] sm:$0xff] }
  0x1e   :  { %3755 = vmatmul.mubr.msk.f32.gmra.mrb[4].mxu1 %vm83_vm0, %v45_v24  ;;  %3905 = vmatpush1.bf16.msra.mxu0 %v5696_v25  ;;  %v387_v2 = vld [vmem:[%s7202_s4 + $0x1a8] sm:$0xff] }
  0x1f   :  { %3937 = vmatpush1.bf16.msra.mxu1 %v5706_v28  ;;  %190 = vmatprep.mubr.f32.mxu0 %v5402_v7 }
  0x20   :  { %303 = vmatprep.mubr.f32.mxu1 %v5402_v7  ;;  %3907 = vmatprep.subr.bf16.mxu0 %v5716_v31 }
  0x21   :  { %3748 = vmatmul.mubr.msk.f32.gmra.mrb[6].mxu0 %vm83_vm0, %v46_v37  ;;  %3939 = vmatprep.subr.bf16.mxu1 %v5726_v34 }
  0x22   :  { %3756 = vmatmul.mubr.msk.f32.gmra.mrb[6].mxu1 %vm83_vm0, %v46_v37  ;;  %3909 = vmatpush1.bf16.msra.mxu0 %v5739_v38 }
  0x23   :  { %3941 = vmatpush1.bf16.msra.mxu1 %v5749_v41  ;;  %196 = vmatprep.mubr.f32.mxu0 %v5402_v7 }
  0x24   :  { %309 = vmatprep.mubr.f32.mxu1 %v5402_v7  ;;  %3911 = vmatprep.subr.bf16.mxu0 %v5759_v44 }
  0x25   :  { %3749 = vmatmul.mubr.msk.f32.gmra.mrb[8].mxu0 %vm83_vm0, %v47_v50  ;;  %3943 = vmatprep.subr.bf16.mxu1 %v5769_v47 }
  0x26   :  { %20 = vsyncpa [#allocation7], 0  ;;  %3757 = vmatmul.mubr.msk.f32.gmra.mrb[8].mxu1 %vm83_vm0, %v47_v50  ;;  %3913 = vmatpush1.bf16.msra.mxu0 %v5782_v51  ;;  %v48_v3 = vld [vmem:[%s7198_s0 + $0x28] sm:$0xff]  ;;  %v5825_v5 = vpack.c.bf16 %v378_v58, %v374_v57  ;;  %v385_v6 = vld [vmem:[%s7202_s4 + $0x198] sm:$0xff]  ;;  %v5835_v10 = vpack.c.bf16 %v380_v61, %v376_v60  ;;  %v5845_v14 = vpack.c.bf16 %v387_v2, %v383_v0  ;;  %v548_v45 = vlaneseq }
  0x27   :  { %v389_v9 = vld [vmem:[%s7202_s4 + $0x1b8] sm:$0xff]  ;;  %3945 = vmatpush1.bf16.msra.mxu1 %v5792_v55  ;;  %202 = vmatprep.mubr.f32.mxu0 %v5402_v7  ;;  %v382_v11 = vld [vmem:[%s7202_s4 + $0x180] sm:$0xff]  ;;  %v384_v16 = vld [vmem:[%s7202_s4 + $0x190] sm:$0xff]  ;;  %vm5404_vm1 = vmmov 0  }
  0x28   :  { %v386_v13 = vld [vmem:[%s7202_s4 + $0x1a0] sm:$0xff]  ;;  %315 = vmatprep.mubr.f32.mxu1 %v5402_v7  ;;  %3915 = vmatprep.subr.bf16.mxu0 %v5802_v59  ;;  %v388_v17 = vld [vmem:[%s7202_s4 + $0x1b0] sm:$0xff]  ;;  %v5855_v19 = vpack.c.bf16 %v389_v9, %v385_v6  ;;  %v391_v20 = vld [vmem:[%s7202_s4 + $0x1c8] sm:$0xff]  ;;  %v5959_v46 = vshrl.u32 %v548_v45, 7 }
  0x29   :  { %3750 = vmatmul.mubr.msk.f32.gmra.mrb[10].mxu0 %vm83_vm0, %v48_v3  ;;  %3947 = vmatprep.subr.bf16.mxu1 %v5812_v63  ;;  %v395_v22 = vld [vmem:[%s7202_s4 + $0x1e8] sm:$0xff]  ;;  %v49_v23 = vld [vmem:[%s7198_s0 + $0x30] sm:$0xff]  ;;  %v5868_v24 = vpack.c.bf16 %v386_v13, %v382_v11  ;;  %v393_v26 = vld [vmem:[%s7202_s4 + $0x1d8] sm:$0xff]  ;;  %v5878_v29 = vpack.c.bf16 %v388_v17, %v384_v16 }
  0x2a   :  { %3758 = vmatmul.mubr.msk.f32.gmra.mrb[10].mxu1 %vm83_vm0, %v48_v3  ;;  %3917 = vmatpush1.bf16.msra.mxu0 %v5825_v5  ;;  %v397_v27 = vld [vmem:[%s7202_s4 + $0x1f8] sm:$0xff]  ;;  %v390_v30 = vld [vmem:[%s7202_s4 + $0x1c0] sm:$0xff]  ;;  %v5888_v33 = vpack.c.bf16 %v395_v22, %v391_v20  ;;  %v392_v35 = vld [vmem:[%s7202_s4 + $0x1d0] sm:$0xff]  ;;  %v550_v48 = vsub.s32 0, %v5959_v46  ;;  %v554_v50 = vsub.s32 1, %v5959_v46  ;;  %v562_v58 = vsub.s32 3, %v5959_v46 }
  0x2b   :  { %3949 = vmatpush1.bf16.msra.mxu1 %v5835_v10  ;;  %208 = vmatprep.mubr.f32.mxu0 %v5402_v7  ;;  %v394_v32 = vld [vmem:[%s7202_s4 + $0x1e0] sm:$0xff]  ;;  %v396_v36 = vld [vmem:[%s7202_s4 + $0x1f0] sm:$0xff]  ;;  %v5898_v37 = vpack.c.bf16 %v397_v27, %v393_v26  ;;  %v50_v39 = vld [vmem:[%s7198_s0 + $0x38] sm:$0xff]  ;;  %v558_v13 = vsub.s32 2, %v5959_v46 }
  0x2c   :  { %321 = vmatprep.mubr.f32.mxu1 %v5402_v7  ;;  %3919 = vmatprep.subr.bf16.mxu0 %v5845_v14  ;;  %v5905_v40 = vpack.c.bf16 %v394_v32, %v390_v30  ;;  %v5909_v42 = vpack.c.bf16 %v396_v36, %v392_v35  ;;  %v399_v43 = vld [vmem:[%s7199_s1] sm:$0xff] }
  0x2d   :  { %3751 = vmatmul.mubr.msk.f32.gmra.mrb[12].mxu0 %vm83_vm0, %v49_v23  ;;  %3951 = vmatprep.subr.bf16.mxu1 %v5855_v19  ;;  %v398_v49 = vld [vmem:[%s7203_s5] sm:$0xf] }
  0x2e   :  { %3759 = vmatmul.mubr.msk.f32.gmra.mrb[12].mxu1 %vm83_vm0, %v49_v23  ;;  %3921 = vmatpush1.bf16.msra.mxu0 %v5868_v24  ;;  %v5968_v52 = vrot.slane %v398_v49, %v550_v48  ;;  %v5972_v54 = vrot.slane %v398_v49, %v554_v50  ;;  %v5979_v11 = vrot.slane %v398_v49, %v562_v58  ;;  %v400_v36 = vld [vmem:[%s7200_s2] sm:$0xff] }
  0x2f   :  { %3953 = vmatpush1.bf16.msra.mxu1 %v5878_v29  ;;  %214 = vmatprep.mubr.f32.mxu0 %v5402_v7  ;;  %v5985_v17 = vrot.slane %v398_v49, %v558_v13 }
  0x30   :  { %327 = vmatprep.mubr.f32.mxu1 %v5402_v7  ;;  %3923 = vmatprep.subr.bf16.mxu0 %v5888_v33 }
  0x31   :  { %3752 = vmatmul.mubr.msk.f32.gmra.mrb[14].mxu0 %vm83_vm0, %v50_v39  ;;  %3955 = vmatprep.subr.bf16.mxu1 %v5898_v37 }
  0x32   :  { %3760 = vmatmul.mubr.msk.f32.gmra.mrb[14].mxu1 %vm83_vm0, %v50_v39  ;;  %3925 = vmatpush1.bf16.msra.mxu0 %v5905_v40 }
  0x33   :  { %3957 = vmatpush1.bf16.msra.mxu1 %v5909_v42  ;;  %465 = vmatprep.mubr.f32.mxu0 %v5402_v7 }
  0x34   :  { %536 = vmatprep.mubr.f32.mxu1 %v5402_v7  ;;  %3959 = vmatprep.subr.bf16.mxu0 %v5588_v53 }
  0x35   :  { %466 = vmatmul.mubr.f32.vlgmr.msra.gmra.mrb[0].mxu0 %v399_v43  ;;  %3991 = vmatprep.subr.bf16.mxu1 %v5596_v56 }
  0x36   :  { %537 = vmatmul.mubr.f32.vlgmr.msra.gmra.mrb[0].mxu1 %v399_v43  ;;  %3961 = vmatpush1.bf16.msra.mxu0 %v5613_v62 }
  0x37   :  { %3993 = vmatpush1.bf16.msra.mxu1 %v5622_v1  ;;  %3963 = vmatprep.subr.bf16.mxu0 %v5631_v4 }
  0x38   :  { %3995 = vmatprep.subr.bf16.mxu1 %v5640_v8  ;;  %661 = vmatprep.mubr.f32.mxu0 %v5402_v7 }
  0x39   :  { %732 = vmatprep.mubr.f32.mxu1 %v5402_v7 }
  0x3a   :  { %3965 = vmatpush1.bf16.msra.mxu0 %v5653_v12 }
  0x3b   :  { %3997 = vmatpush1.bf16.msra.mxu1 %v5663_v15  ;;  %3967 = vmatprep.subr.bf16.mxu0 %v5673_v18 }
  0x3c   :  { %3999 = vmatprep.subr.bf16.mxu1 %v5683_v21 }
  0x3e   :  { %3969 = vmatpush1.bf16.msra.mxu0 %v5696_v25 }
  0x3f   :  { %4001 = vmatpush1.bf16.msra.mxu1 %v5706_v28  ;;  %3971 = vmatprep.subr.bf16.mxu0 %v5716_v31 }
  0x40   :  { %4003 = vmatprep.subr.bf16.mxu1 %v5726_v34 }
  0x42   :  { %3973 = vmatpush1.bf16.msra.mxu0 %v5739_v38 }
  0x43   :  { %4005 = vmatpush1.bf16.msra.mxu1 %v5749_v41  ;;  %3975 = vmatprep.subr.bf16.mxu0 %v5759_v44 }
  0x44   :  { %4007 = vmatprep.subr.bf16.mxu1 %v5769_v47 }
  0x46   :  { %3977 = vmatpush1.bf16.msra.mxu0 %v5782_v51 }
  0x47   :  { %4009 = vmatpush1.bf16.msra.mxu1 %v5792_v55  ;;  %3979 = vmatprep.subr.bf16.mxu0 %v5802_v59 }
  0x48   :  { %4011 = vmatprep.subr.bf16.mxu1 %v5812_v63 }
  0x4a   :  { %3981 = vmatpush1.bf16.msra.mxu0 %v5825_v5 }
  0x4b   :  { %4013 = vmatpush1.bf16.msra.mxu1 %v5835_v10  ;;  %3983 = vmatprep.subr.bf16.mxu0 %v5845_v14 }
  0x4c   :  { %4015 = vmatprep.subr.bf16.mxu1 %v5855_v19 }
  0x4e   :  { %3985 = vmatpush1.bf16.msra.mxu0 %v5868_v24 }
  0x4f   :  { %4017 = vmatpush1.bf16.msra.mxu1 %v5878_v29  ;;  %3987 = vmatprep.subr.bf16.mxu0 %v5888_v33 }
  0x50   :  { %4019 = vmatprep.subr.bf16.mxu1 %v5898_v37 }
  0x52   :  { %3989 = vmatpush1.bf16.msra.mxu0 %v5905_v40 }
  0x53   :  { %4021 = vmatpush1.bf16.msra.mxu1 %v5909_v42  ;;  %4023 = vmatprep.subr.bf16.mxu0 %v5588_v53 }
  0x54   :  { %4055 = vmatprep.subr.bf16.mxu1 %v5596_v56 }
 0x108   :  { %v467_v57 = vpop.f32.mrb[0].mxu0 }
 0x109   :  { %v568_v60 = vadd.f32 %v5968_v52, %v467_v57  ;;  %v538_v61 = vpop.f32.mrb[0].mxu1  ;;  %v469_v0 = vpop.f32.mrb[1].mxu0 }
 0x10a   :  { %v569_v2 = vadd.f32 %v5972_v54, %v469_v0  ;;  %v540_v3 = vpop.f32.mrb[1].mxu1  ;;  %v570_v22 = vadd.f32 %v5985_v17, %v538_v61 }
 0x10b   :  { %v3761_v6 = vmul.f32 -1.442695, %v568_v60  ;;  %v571_v16 = vadd.f32 %v5979_v11, %v540_v3 }
 0x10c   :  { %v3762_v9 = vmul.f32 -1.442695, %v569_v2 }
 0x10d   :  { %5076 = vpow2.f32 %v3761_v6  ;;  %v3763_v20 = vmul.f32 -1.442695, %v571_v16 }
 0x10e   :  { %5078 = vpow2.f32 %v3762_v9 }
 0x10f   :  { %5080 = vpow2.f32 %v3763_v20 }
 0x110   :  { %5082 = vtanh.f32 %v570_v22 }
 0x117   :  { %v5077_v23 = vpop.eup %5076 }
 0x118   :  { %v5079_v26 = vpop.eup %5078  ;;  %v575_v27 = vadd.f32 1.0, %v5077_v23 }
 0x119   :  { %v581_v30 = vadd.f32 1.0, %v5079_v26  ;;  %v5081_v32 = vpop.eup %5080 }
 0x11a   :  { %5084 = vrcp.f32 %v575_v27  ;;  %v5083_v35 = vpop.eup %5082  ;;  %v588_v49 = vadd.f32 1.0, %v5081_v32 }
 0x11b   :  { %5086 = vrcp.f32 %v581_v30 }
 0x11c   :  { %5088 = vrcp.f32 %v588_v49 }
 0x124   :  { %v5085_v39 = vpop.eup %5084 }
 0x125   :  { %v5087_v43 = vpop.eup %5086  ;;  %v592_v45 = vmul.f32 %v5085_v39, %v5083_v35 }
 0x126   :  { %v591_v57 = vmul.f32 %v5087_v43, %v400_v36  ;;  %v5089_v61 = vpop.eup %5088 }
 0x128   :  { %v5991_v60 = vadd.f32 %v592_v45, %v591_v57 }
 0x12a   :  { %5090 = vtanh.f32 %v5991_v60 }
 0x134   :  { %v5091_v0 = vpop.eup %5090 }
 0x135   :  { %v5994_v2 = vmul.f32 %v5091_v0, %v5089_v61 }
 0x137   :  { %662 = vmatmul.mubr.f32.vlgmr.msra.gmra.mrb[2].mxu0 %v5994_v2  ;;  %733 = vmatmul.mubr.f32.vlgmr.msra.gmra.mrb[2].mxu1 %v5994_v2 }
 0x138   :  { %4025 = vmatpush1.bf16.msra.mxu0 %v5613_v62  ;;  %4057 = vmatpush1.bf16.msra.mxu1 %v5622_v1 }
 0x139   :  { %4027 = vmatprep.subr.bf16.mxu0 %v5631_v4  ;;  %4059 = vmatprep.subr.bf16.mxu1 %v5640_v8 }
 0x13a   :  { %836 = vmatprep.mubr.f32.mxu0 %v5402_v7  ;;  %907 = vmatprep.mubr.f32.mxu1 %v5402_v7 }
 0x13c   :  { %4029 = vmatpush1.bf16.msra.mxu0 %v5653_v12  ;;  %4061 = vmatpush1.bf16.msra.mxu1 %v5663_v15 }
 0x13d   :  { %4031 = vmatprep.subr.bf16.mxu0 %v5673_v18  ;;  %4063 = vmatprep.subr.bf16.mxu1 %v5683_v21 }
 0x140   :  { %4033 = vmatpush1.bf16.msra.mxu0 %v5696_v25  ;;  %4065 = vmatpush1.bf16.msra.mxu1 %v5706_v28 }
 0x141   :  { %4035 = vmatprep.subr.bf16.mxu0 %v5716_v31  ;;  %4067 = vmatprep.subr.bf16.mxu1 %v5726_v34 }
 0x144   :  { %4037 = vmatpush1.bf16.msra.mxu0 %v5739_v38  ;;  %4069 = vmatpush1.bf16.msra.mxu1 %v5749_v41 }
 0x145   :  { %4039 = vmatprep.subr.bf16.mxu0 %v5759_v44  ;;  %4071 = vmatprep.subr.bf16.mxu1 %v5769_v47 }
 0x148   :  { %4041 = vmatpush1.bf16.msra.mxu0 %v5782_v51  ;;  %4073 = vmatpush1.bf16.msra.mxu1 %v5792_v55 }
 0x149   :  { %4043 = vmatprep.subr.bf16.mxu0 %v5802_v59  ;;  %4075 = vmatprep.subr.bf16.mxu1 %v5812_v63 }
 0x14c   :  { %4045 = vmatpush1.bf16.msra.mxu0 %v5825_v5  ;;  %4077 = vmatpush1.bf16.msra.mxu1 %v5835_v10 }
 0x14d   :  { %4047 = vmatprep.subr.bf16.mxu0 %v5845_v14  ;;  %4079 = vmatprep.subr.bf16.mxu1 %v5855_v19 }
 0x150   :  { %4049 = vmatpush1.bf16.msra.mxu0 %v5868_v24  ;;  %4081 = vmatpush1.bf16.msra.mxu1 %v5878_v29 }
 0x151   :  { %4051 = vmatprep.subr.bf16.mxu0 %v5888_v33  ;;  %4083 = vmatprep.subr.bf16.mxu1 %v5898_v37 }
 0x154   :  { %4053 = vmatpush1.bf16.msra.mxu0 %v5905_v40  ;;  %4085 = vmatpush1.bf16.msra.mxu1 %v5909_v42 }
 0x155   :  { %4087 = vmatprep.subr.bf16.mxu0 %v5588_v53  ;;  %4119 = vmatprep.subr.bf16.mxu1 %v5596_v56 }
 0x20a   :  { %v663_v3 = vpop.f32.mrb[2].mxu0  ;;  %v734_v6 = vpop.f32.mrb[2].mxu1 }
 0x20b   :  { %v743_v9 = vadd.f32 %v663_v3, %v5968_v52  ;;  %v665_v16 = vpop.f32.mrb[3].mxu0  ;;  %v736_v20 = vpop.f32.mrb[3].mxu1  ;;  %v745_v32 = vadd.f32 %v734_v6, %v5985_v17 }
 0x20c   :  { %v744_v22 = vadd.f32 %v665_v16, %v5972_v54  ;;  %v746_v27 = vadd.f32 %v736_v20, %v5979_v11 }
 0x20d   :  { %v3764_v23 = vmul.f32 -1.442695, %v743_v9 }
 0x20e   :  { %v3765_v26 = vmul.f32 -1.442695, %v744_v22  ;;  %v3766_v30 = vmul.f32 -1.442695, %v746_v27 }
 0x20f   :  { %5092 = vpow2.f32 %v3764_v23 }
 0x210   :  { %5094 = vpow2.f32 %v3765_v26 }
 0x211   :  { %5096 = vpow2.f32 %v3766_v30 }
 0x212   :  { %5098 = vtanh.f32 %v745_v32 }
 0x219   :  { %v5093_v35 = vpop.eup %5092 }
 0x21a   :  { %v5095_v36 = vpop.eup %5094  ;;  %v750_v39 = vadd.f32 1.0, %v5093_v35 }
 0x21b   :  { %v756_v43 = vadd.f32 1.0, %v5095_v36  ;;  %v5097_v45 = vpop.eup %5096 }
 0x21c   :  { %5100 = vrcp.f32 %v750_v39  ;;  %v5099_v49 = vpop.eup %5098  ;;  %v763_v3 = vadd.f32 1.0, %v5097_v45 }
 0x21d   :  { %5102 = vrcp.f32 %v756_v43 }
 0x21e   :  { %5104 = vrcp.f32 %v763_v3 }
 0x226   :  { %v5101_v57 = vpop.eup %5100 }
 0x227   :  { %v5103_v61 = vpop.eup %5102  ;;  %v767_v0 = vmul.f32 %v5101_v57, %v5099_v49 }
 0x228   :  { %v766_v9 = vmul.f32 %v5103_v61, %v5991_v60  ;;  %v5105_v6 = vpop.eup %5104 }
 0x22a   :  { %v6037_v16 = vadd.f32 %v767_v0, %v766_v9 }
 0x22c   :  { %5106 = vtanh.f32 %v6037_v16 }
 0x236   :  { %v5107_v20 = vpop.eup %5106 }
 0x237   :  { %v6040_v22 = vmul.f32 %v5107_v20, %v5105_v6 }
 0x239   :  { %837 = vmatmul.mubr.f32.vlgmr.msra.gmra.mrb[4].mxu0 %v6040_v22  ;;  %908 = vmatmul.mubr.f32.vlgmr.msra.gmra.mrb[4].mxu1 %v6040_v22 }
 0x23a   :  { %4089 = vmatpush1.bf16.msra.mxu0 %v5613_v62  ;;  %4121 = vmatpush1.bf16.msra.mxu1 %v5622_v1 }
 0x23b   :  { %4091 = vmatprep.subr.bf16.mxu0 %v5631_v4  ;;  %4123 = vmatprep.subr.bf16.mxu1 %v5640_v8 }
 0x23c   :  { %1011 = vmatprep.mubr.f32.mxu0 %v5402_v7  ;;  %1082 = vmatprep.mubr.f32.mxu1 %v5402_v7 }
 0x23e   :  { %4093 = vmatpush1.bf16.msra.mxu0 %v5653_v12  ;;  %4125 = vmatpush1.bf16.msra.mxu1 %v5663_v15 }
 0x23f   :  { %4095 = vmatprep.subr.bf16.mxu0 %v5673_v18  ;;  %4127 = vmatprep.subr.bf16.mxu1 %v5683_v21 }
 0x242   :  { %4097 = vmatpush1.bf16.msra.mxu0 %v5696_v25  ;;  %4129 = vmatpush1.bf16.msra.mxu1 %v5706_v28 }
 0x243   :  { %4099 = vmatprep.subr.bf16.mxu0 %v5716_v31  ;;  %4131 = vmatprep.subr.bf16.mxu1 %v5726_v34 }
 0x246   :  { %4101 = vmatpush1.bf16.msra.mxu0 %v5739_v38  ;;  %4133 = vmatpush1.bf16.msra.mxu1 %v5749_v41 }
 0x247   :  { %4103 = vmatprep.subr.bf16.mxu0 %v5759_v44  ;;  %4135 = vmatprep.subr.bf16.mxu1 %v5769_v47 }
 0x24a   :  { %4105 = vmatpush1.bf16.msra.mxu0 %v5782_v51  ;;  %4137 = vmatpush1.bf16.msra.mxu1 %v5792_v55 }
 0x24b   :  { %4107 = vmatprep.subr.bf16.mxu0 %v5802_v59  ;;  %4139 = vmatprep.subr.bf16.mxu1 %v5812_v63 }
 0x24e   :  { %4109 = vmatpush1.bf16.msra.mxu0 %v5825_v5  ;;  %4141 = vmatpush1.bf16.msra.mxu1 %v5835_v10 }
 0x24f   :  { %4111 = vmatprep.subr.bf16.mxu0 %v5845_v14  ;;  %4143 = vmatprep.subr.bf16.mxu1 %v5855_v19 }
 0x252   :  { %4113 = vmatpush1.bf16.msra.mxu0 %v5868_v24  ;;  %4145 = vmatpush1.bf16.msra.mxu1 %v5878_v29 }
 0x253   :  { %4115 = vmatprep.subr.bf16.mxu0 %v5888_v33  ;;  %4147 = vmatprep.subr.bf16.mxu1 %v5898_v37 }
 0x256   :  { %4117 = vmatpush1.bf16.msra.mxu0 %v5905_v40  ;;  %4149 = vmatpush1.bf16.msra.mxu1 %v5909_v42 }
 0x257   :  { %4151 = vmatprep.subr.bf16.mxu0 %v5588_v53  ;;  %4183 = vmatprep.subr.bf16.mxu1 %v5596_v56 }
 0x30c   :  { %v838_v60 = vpop.f32.mrb[4].mxu0  ;;  %v909_v23 = vpop.f32.mrb[4].mxu1 }
 0x30d   :  { %v918_v26 = vadd.f32 %v838_v60, %v5968_v52  ;;  %v840_v27 = vpop.f32.mrb[5].mxu0  ;;  %v911_v30 = vpop.f32.mrb[5].mxu1  ;;  %v920_v45 = vadd.f32 %v909_v23, %v5985_v17 }
 0x30e   :  { %v919_v32 = vadd.f32 %v840_v27, %v5972_v54  ;;  %v921_v39 = vadd.f32 %v911_v30, %v5979_v11 }
 0x30f   :  { %v3767_v35 = vmul.f32 -1.442695, %v918_v26 }
 0x310   :  { %v3768_v36 = vmul.f32 -1.442695, %v919_v32  ;;  %v3769_v43 = vmul.f32 -1.442695, %v921_v39 }
 0x311   :  { %5108 = vpow2.f32 %v3767_v35 }
 0x312   :  { %5110 = vpow2.f32 %v3768_v36 }
 0x313   :  { %5112 = vpow2.f32 %v3769_v43 }
 0x314   :  { %5114 = vtanh.f32 %v920_v45 }
 0x31b   :  { %v5109_v49 = vpop.eup %5108 }
 0x31c   :  { %v5111_v57 = vpop.eup %5110  ;;  %v925_v61 = vadd.f32 1.0, %v5109_v49 }
 0x31d   :  { %v931_v0 = vadd.f32 1.0, %v5111_v57  ;;  %v5113_v3 = vpop.eup %5112 }
 0x31e   :  { %5116 = vrcp.f32 %v925_v61  ;;  %v5115_v9 = vpop.eup %5114  ;;  %v938_v26 = vadd.f32 1.0, %v5113_v3 }
 0x31f   :  { %5118 = vrcp.f32 %v931_v0 }
 0x320   :  { %5120 = vrcp.f32 %v938_v26 }
 0x328   :  { %v5117_v6 = vpop.eup %5116 }
 0x329   :  { %v5119_v20 = vpop.eup %5118  ;;  %v942_v60 = vmul.f32 %v5117_v6, %v5115_v9 }
 0x32a   :  { %v941_v27 = vmul.f32 %v5119_v20, %v6037_v16  ;;  %v5121_v23 = vpop.eup %5120 }
 0x32c   :  { %v6083_v30 = vadd.f32 %v942_v60, %v941_v27 }
 0x32e   :  { %5122 = vtanh.f32 %v6083_v30 }
 0x338   :  { %v5123_v32 = vpop.eup %5122 }
 0x339   :  { %v6086_v35 = vmul.f32 %v5123_v32, %v5121_v23 }
 0x33b   :  { %1012 = vmatmul.mubr.f32.vlgmr.msra.gmra.mrb[6].mxu0 %v6086_v35  ;;  %1083 = vmatmul.mubr.f32.vlgmr.msra.gmra.mrb[6].mxu1 %v6086_v35 }
 0x33c   :  { %4153 = vmatpush1.bf16.msra.mxu0 %v5613_v62  ;;  %4185 = vmatpush1.bf16.msra.mxu1 %v5622_v1 }
 0x33d   :  { %4155 = vmatprep.subr.bf16.mxu0 %v5631_v4  ;;  %4187 = vmatprep.subr.bf16.mxu1 %v5640_v8 }
 0x33e   :  { %1186 = vmatprep.mubr.f32.mxu0 %v5402_v7  ;;  %1257 = vmatprep.mubr.f32.mxu1 %v5402_v7 }
 0x340   :  { %4157 = vmatpush1.bf16.msra.mxu0 %v5653_v12  ;;  %4189 = vmatpush1.bf16.msra.mxu1 %v5663_v15 }
 0x341   :  { %4159 = vmatprep.subr.bf16.mxu0 %v5673_v18  ;;  %4191 = vmatprep.subr.bf16.mxu1 %v5683_v21 }
 0x344   :  { %4161 = vmatpush1.bf16.msra.mxu0 %v5696_v25  ;;  %4193 = vmatpush1.bf16.msra.mxu1 %v5706_v28 }
 0x345   :  { %4163 = vmatprep.subr.bf16.mxu0 %v5716_v31  ;;  %4195 = vmatprep.subr.bf16.mxu1 %v5726_v34 }
 0x348   :  { %4165 = vmatpush1.bf16.msra.mxu0 %v5739_v38  ;;  %4197 = vmatpush1.bf16.msra.mxu1 %v5749_v41 }
 0x349   :  { %4167 = vmatprep.subr.bf16.mxu0 %v5759_v44  ;;  %4199 = vmatprep.subr.bf16.mxu1 %v5769_v47 }
 0x34c   :  { %4169 = vmatpush1.bf16.msra.mxu0 %v5782_v51  ;;  %4201 = vmatpush1.bf16.msra.mxu1 %v5792_v55 }
 0x34d   :  { %4171 = vmatprep.subr.bf16.mxu0 %v5802_v59  ;;  %4203 = vmatprep.subr.bf16.mxu1 %v5812_v63 }
 0x350   :  { %4173 = vmatpush1.bf16.msra.mxu0 %v5825_v5  ;;  %4205 = vmatpush1.bf16.msra.mxu1 %v5835_v10 }
 0x351   :  { %4175 = vmatprep.subr.bf16.mxu0 %v5845_v14  ;;  %4207 = vmatprep.subr.bf16.mxu1 %v5855_v19 }
 0x354   :  { %4177 = vmatpush1.bf16.msra.mxu0 %v5868_v24  ;;  %4209 = vmatpush1.bf16.msra.mxu1 %v5878_v29 }
 0x355   :  { %4179 = vmatprep.subr.bf16.mxu0 %v5888_v33  ;;  %4211 = vmatprep.subr.bf16.mxu1 %v5898_v37 }
 0x358   :  { %4181 = vmatpush1.bf16.msra.mxu0 %v5905_v40  ;;  %4213 = vmatpush1.bf16.msra.mxu1 %v5909_v42 }
 0x359   :  { %4215 = vmatprep.subr.bf16.mxu0 %v5588_v53  ;;  %4247 = vmatprep.subr.bf16.mxu1 %v5596_v56 }
 0x40e   :  { %v1013_v16 = vpop.f32.mrb[6].mxu0  ;;  %v1084_v36 = vpop.f32.mrb[6].mxu1 }
 0x40f   :  { %v1093_v39 = vadd.f32 %v1013_v16, %v5968_v52  ;;  %v1015_v43 = vpop.f32.mrb[7].mxu0  ;;  %v1086_v45 = vpop.f32.mrb[7].mxu1  ;;  %v1095_v9 = vadd.f32 %v1084_v36, %v5985_v17 }
 0x410   :  { %v1094_v49 = vadd.f32 %v1015_v43, %v5972_v54  ;;  %v1096_v0 = vadd.f32 %v1086_v45, %v5979_v11 }
 0x411   :  { %v3770_v57 = vmul.f32 -1.442695, %v1093_v39 }
 0x412   :  { %v3771_v61 = vmul.f32 -1.442695, %v1094_v49  ;;  %v3772_v3 = vmul.f32 -1.442695, %v1096_v0 }
 0x413   :  { %5124 = vpow2.f32 %v3770_v57 }
 0x414   :  { %5126 = vpow2.f32 %v3771_v61 }
 0x415   :  { %5128 = vpow2.f32 %v3772_v3 }
 0x416   :  { %5130 = vtanh.f32 %v1095_v9 }
 0x41d   :  { %v5125_v6 = vpop.eup %5124 }
 0x41e   :  { %v5127_v20 = vpop.eup %5126  ;;  %v1100_v60 = vadd.f32 1.0, %v5125_v6 }
 0x41f   :  { %v1106_v26 = vadd.f32 1.0, %v5127_v20  ;;  %v5129_v27 = vpop.eup %5128 }
 0x420   :  { %5132 = vrcp.f32 %v1100_v60  ;;  %v5131_v23 = vpop.eup %5130  ;;  %v1113_v43 = vadd.f32 1.0, %v5129_v27 }
 0x421   :  { %5134 = vrcp.f32 %v1106_v26 }
 0x422   :  { %5136 = vrcp.f32 %v1113_v43 }
 0x42a   :  { %v5133_v32 = vpop.eup %5132 }
 0x42b   :  { %v5135_v16 = vpop.eup %5134  ;;  %v1117_v39 = vmul.f32 %v5133_v32, %v5131_v23 }
 0x42c   :  { %v1116_v49 = vmul.f32 %v5135_v16, %v6083_v30  ;;  %v5137_v36 = vpop.eup %5136 }
 0x42e   :  { %v6129_v45 = vadd.f32 %v1117_v39, %v1116_v49 }
 0x430   :  { %5138 = vtanh.f32 %v6129_v45 }
 0x43a   :  { %v5139_v57 = vpop.eup %5138 }
 0x43b   :  { %v6132_v61 = vmul.f32 %v5139_v57, %v5137_v36 }
 0x43d   :  { %1187 = vmatmul.mubr.f32.vlgmr.msra.gmra.mrb[8].mxu0 %v6132_v61  ;;  %1258 = vmatmul.mubr.f32.vlgmr.msra.gmra.mrb[8].mxu1 %v6132_v61 }
 0x43e   :  { %4217 = vmatpush1.bf16.msra.mxu0 %v5613_v62  ;;  %4249 = vmatpush1.bf16.msra.mxu1 %v5622_v1 }
 0x43f   :  { %4219 = vmatprep.subr.bf16.mxu0 %v5631_v4  ;;  %4251 = vmatprep.subr.bf16.mxu1 %v5640_v8 }
 0x440   :  { %1361 = vmatprep.mubr.f32.mxu0 %v5402_v7  ;;  %1432 = vmatprep.mubr.f32.mxu1 %v5402_v7 }
 0x442   :  { %4221 = vmatpush1.bf16.msra.mxu0 %v5653_v12  ;;  %4253 = vmatpush1.bf16.msra.mxu1 %v5663_v15 }
 0x443   :  { %4223 = vmatprep.subr.bf16.mxu0 %v5673_v18  ;;  %4255 = vmatprep.subr.bf16.mxu1 %v5683_v21 }
 0x446   :  { %4225 = vmatpush1.bf16.msra.mxu0 %v5696_v25  ;;  %4257 = vmatpush1.bf16.msra.mxu1 %v5706_v28 }
 0x447   :  { %4227 = vmatprep.subr.bf16.mxu0 %v5716_v31  ;;  %4259 = vmatprep.subr.bf16.mxu1 %v5726_v34 }
 0x44a   :  { %4229 = vmatpush1.bf16.msra.mxu0 %v5739_v38  ;;  %4261 = vmatpush1.bf16.msra.mxu1 %v5749_v41 }
 0x44b   :  { %4231 = vmatprep.subr.bf16.mxu0 %v5759_v44  ;;  %4263 = vmatprep.subr.bf16.mxu1 %v5769_v47 }
 0x44e   :  { %4233 = vmatpush1.bf16.msra.mxu0 %v5782_v51  ;;  %4265 = vmatpush1.bf16.msra.mxu1 %v5792_v55 }
 0x44f   :  { %4235 = vmatprep.subr.bf16.mxu0 %v5802_v59  ;;  %4267 = vmatprep.subr.bf16.mxu1 %v5812_v63 }
 0x452   :  { %4237 = vmatpush1.bf16.msra.mxu0 %v5825_v5  ;;  %4269 = vmatpush1.bf16.msra.mxu1 %v5835_v10 }
 0x453   :  { %4239 = vmatprep.subr.bf16.mxu0 %v5845_v14  ;;  %4271 = vmatprep.subr.bf16.mxu1 %v5855_v19 }
 0x456   :  { %4241 = vmatpush1.bf16.msra.mxu0 %v5868_v24  ;;  %4273 = vmatpush1.bf16.msra.mxu1 %v5878_v29 }
 0x457   :  { %4243 = vmatprep.subr.bf16.mxu0 %v5888_v33  ;;  %4275 = vmatprep.subr.bf16.mxu1 %v5898_v37 }
 0x45a   :  { %4245 = vmatpush1.bf16.msra.mxu0 %v5905_v40  ;;  %4277 = vmatpush1.bf16.msra.mxu1 %v5909_v42 }
 0x45b   :  { %4279 = vmatprep.subr.bf16.mxu0 %v5588_v53  ;;  %4311 = vmatprep.subr.bf16.mxu1 %v5596_v56 }
 0x510   :  { %v1188_v30 = vpop.f32.mrb[8].mxu0  ;;  %v1259_v0 = vpop.f32.mrb[8].mxu1 }
 0x511   :  { %v1268_v3 = vadd.f32 %v1188_v30, %v5968_v52  ;;  %v1190_v9 = vpop.f32.mrb[9].mxu0  ;;  %v1261_v6 = vpop.f32.mrb[9].mxu1  ;;  %v1270_v32 = vadd.f32 %v1259_v0, %v5985_v17 }
 0x512   :  { %v1269_v20 = vadd.f32 %v1190_v9, %v5972_v54  ;;  %v1271_v27 = vadd.f32 %v1261_v6, %v5979_v11 }
 0x513   :  { %v3773_v60 = vmul.f32 -1.442695, %v1268_v3 }
 0x514   :  { %v3774_v26 = vmul.f32 -1.442695, %v1269_v20  ;;  %v3775_v23 = vmul.f32 -1.442695, %v1271_v27 }
 0x515   :  { %5140 = vpow2.f32 %v3773_v60 }
 0x516   :  { %5142 = vpow2.f32 %v3774_v26 }
 0x517   :  { %5144 = vpow2.f32 %v3775_v23 }
 0x518   :  { %5146 = vtanh.f32 %v1270_v32 }
 0x51f   :  { %v5141_v16 = vpop.eup %5140 }
 0x520   :  { %v5143_v39 = vpop.eup %5142  ;;  %v1275_v43 = vadd.f32 1.0, %v5141_v16 }
 0x521   :  { %v1281_v49 = vadd.f32 1.0, %v5143_v39  ;;  %v5145_v36 = vpop.eup %5144 }
 0x522   :  { %5148 = vrcp.f32 %v1275_v43  ;;  %v5147_v57 = vpop.eup %5146  ;;  %v1288_v20 = vadd.f32 1.0, %v5145_v36 }
 0x523   :  { %5150 = vrcp.f32 %v1281_v49 }
 0x524   :  { %5152 = vrcp.f32 %v1288_v20 }
 0x52c   :  { %v5149_v30 = vpop.eup %5148 }
 0x52d   :  { %v5151_v3 = vpop.eup %5150  ;;  %v1292_v9 = vmul.f32 %v5149_v30, %v5147_v57 }
 0x52e   :  { %v1291_v60 = vmul.f32 %v5151_v3, %v6129_v45  ;;  %v5153_v0 = vpop.eup %5152 }
 0x530   :  { %v6175_v6 = vadd.f32 %v1292_v9, %v1291_v60 }
 0x532   :  { %5154 = vtanh.f32 %v6175_v6 }
 0x53c   :  { %v5155_v26 = vpop.eup %5154 }
 0x53d   :  { %v6178_v27 = vmul.f32 %v5155_v26, %v5153_v0 }
 0x53f   :  { %1362 = vmatmul.mubr.f32.vlgmr.msra.gmra.mrb[10].mxu0 %v6178_v27  ;;  %1433 = vmatmul.mubr.f32.vlgmr.msra.gmra.mrb[10].mxu1 %v6178_v27 }
 0x540   :  { %4281 = vmatpush1.bf16.msra.mxu0 %v5613_v62  ;;  %4313 = vmatpush1.bf16.msra.mxu1 %v5622_v1 }
 0x541   :  { %4283 = vmatprep.subr.bf16.mxu0 %v5631_v4  ;;  %4315 = vmatprep.subr.bf16.mxu1 %v5640_v8 }
 0x542   :  { %1536 = vmatprep.mubr.f32.mxu0 %v5402_v7  ;;  %1607 = vmatprep.mubr.f32.mxu1 %v5402_v7 }
 0x544   :  { %4285 = vmatpush1.bf16.msra.mxu0 %v5653_v12  ;;  %4317 = vmatpush1.bf16.msra.mxu1 %v5663_v15 }
 0x545   :  { %4287 = vmatprep.subr.bf16.mxu0 %v5673_v18  ;;  %4319 = vmatprep.subr.bf16.mxu1 %v5683_v21 }
 0x548   :  { %4289 = vmatpush1.bf16.msra.mxu0 %v5696_v25  ;;  %4321 = vmatpush1.bf16.msra.mxu1 %v5706_v28 }
 0x549   :  { %4291 = vmatprep.subr.bf16.mxu0 %v5716_v31  ;;  %4323 = vmatprep.subr.bf16.mxu1 %v5726_v34 }
 0x54c   :  { %4293 = vmatpush1.bf16.msra.mxu0 %v5739_v38  ;;  %4325 = vmatpush1.bf16.msra.mxu1 %v5749_v41 }
 0x54d   :  { %4295 = vmatprep.subr.bf16.mxu0 %v5759_v44  ;;  %4327 = vmatprep.subr.bf16.mxu1 %v5769_v47 }
 0x550   :  { %4297 = vmatpush1.bf16.msra.mxu0 %v5782_v51  ;;  %4329 = vmatpush1.bf16.msra.mxu1 %v5792_v55 }
 0x551   :  { %4299 = vmatprep.subr.bf16.mxu0 %v5802_v59  ;;  %4331 = vmatprep.subr.bf16.mxu1 %v5812_v63 }
 0x554   :  { %4301 = vmatpush1.bf16.msra.mxu0 %v5825_v5  ;;  %4333 = vmatpush1.bf16.msra.mxu1 %v5835_v10 }
 0x555   :  { %4303 = vmatprep.subr.bf16.mxu0 %v5845_v14  ;;  %4335 = vmatprep.subr.bf16.mxu1 %v5855_v19 }
 0x558   :  { %4305 = vmatpush1.bf16.msra.mxu0 %v5868_v24  ;;  %4337 = vmatpush1.bf16.msra.mxu1 %v5878_v29 }
 0x559   :  { %4307 = vmatprep.subr.bf16.mxu0 %v5888_v33  ;;  %4339 = vmatprep.subr.bf16.mxu1 %v5898_v37 }
 0x55c   :  { %4309 = vmatpush1.bf16.msra.mxu0 %v5905_v40  ;;  %4341 = vmatpush1.bf16.msra.mxu1 %v5909_v42 }
 0x55d   :  { %4343 = vmatprep.subr.bf16.mxu0 %v5588_v53  ;;  %4375 = vmatprep.subr.bf16.mxu1 %v5596_v56 }
 0x612   :  { %v1363_v45 = vpop.f32.mrb[10].mxu0  ;;  %v1434_v23 = vpop.f32.mrb[10].mxu1 }
 0x613   :  { %v1443_v32 = vadd.f32 %v1363_v45, %v5968_v52  ;;  %v1365_v16 = vpop.f32.mrb[11].mxu0  ;;  %v1436_v39 = vpop.f32.mrb[11].mxu1  ;;  %v1445_v3 = vadd.f32 %v1434_v23, %v5985_v17 }
 0x614   :  { %v1444_v43 = vadd.f32 %v1365_v16, %v5972_v54  ;;  %v1446_v57 = vadd.f32 %v1436_v39, %v5979_v11 }
 0x615   :  { %v3776_v49 = vmul.f32 -1.442695, %v1443_v32 }
 0x616   :  { %v3777_v36 = vmul.f32 -1.442695, %v1444_v43  ;;  %v3778_v30 = vmul.f32 -1.442695, %v1446_v57  ;;  %v1832_v57 = vld [vmem:[%s7204_s6 + $0x10] sm:$0xff] }
 0x617   :  { %5156 = vpow2.f32 %v3776_v49 }
 0x618   :  { %5158 = vpow2.f32 %v3777_v36 }
 0x619   :  { %5160 = vpow2.f32 %v3778_v30  ;;  %v1836_v30 = vld [vmem:[%s7204_s6 + $0x30] sm:$0xff] }
 0x61a   :  { %5162 = vtanh.f32 %v1445_v3  ;;  %v1839_v3 = vld [vmem:[%s7204_s6 + $0x48] sm:$0xff] }
 0x621   :  { %v5157_v53 = vpop.eup %5156 }
 0x622   :  { %v5159_v9 = vpop.eup %5158  ;;  %v1450_v56 = vadd.f32 1.0, %v5157_v53  ;;  %v1843_v53 = vld [vmem:[%s7204_s6 + $0x68] sm:$0xff] }
 0x623   :  { %v1456_v20 = vadd.f32 1.0, %v5159_v9  ;;  %v5161_v60 = vpop.eup %5160  ;;  %v1841_v9 = vld [vmem:[%s7204_s6 + $0x58] sm:$0xff] }
 0x624   :  { %5164 = vrcp.f32 %v1450_v56  ;;  %v5163_v0 = vpop.eup %5162  ;;  %v1463_v16 = vadd.f32 1.0, %v5161_v60  ;;  %v1845_v56 = vld [vmem:[%s7204_s6 + $0x78] sm:$0xff] }
 0x625   :  { %5166 = vrcp.f32 %v1456_v20 }
 0x626   :  { %5168 = vrcp.f32 %v1463_v16 }
 0x62e   :  { %v5165_v26 = vpop.eup %5164 }
 0x62f   :  { %v5167_v45 = vpop.eup %5166  ;;  %v1467_v32 = vmul.f32 %v5165_v26, %v5163_v0  ;;  %v4440_v26 = vpack.c.bf16 %v1836_v30, %v1832_v57  ;;  %v1862_v57 = vld [vmem:[%s7204_s6 + $0x100] sm:$0xff] }
 0x630   :  { %v1466_v43 = vmul.f32 %v5167_v45, %v6175_v6  ;;  %v5169_v23 = vpop.eup %5168  ;;  %v1834_v6 = vld [vmem:[%s7204_s6 + $0x20] sm:$0xff] }
 0x631   :  { %v1838_v45 = vld [vmem:[%s7204_s6 + $0x40] sm:$0xff] }
 0x632   :  { %v6221_v39 = vadd.f32 %v1467_v32, %v1466_v43  ;;  %v1842_v32 = vld [vmem:[%s7204_s6 + $0x60] sm:$0xff]  ;;  %v4410_v43 = vpack.c.bf16 %v1843_v53, %v1839_v3 }
 0x633   :  { %v1866_v30 = vld [vmem:[%s7204_s6 + $0x120] sm:$0xff] }
 0x634   :  { %5170 = vtanh.f32 %v6221_v39 }
 0x63e   :  { %v5171_v49 = vpop.eup %5170 }
 0x63f   :  { %v6224_v36 = vmul.f32 %v5171_v49, %v5169_v23  ;;  %v1840_v23 = vld [vmem:[%s7204_s6 + $0x50] sm:$0xff] }
 0x640   :  { %v1844_v49 = vld [vmem:[%s7204_s6 + $0x70] sm:$0xff] }
 0x641   :  { %1537 = vmatmul.mubr.f32.vlgmr.msra.gmra.mrb[12].mxu0 %v6224_v36  ;;  %1608 = vmatmul.mubr.f32.vlgmr.msra.gmra.mrb[12].mxu1 %v6224_v36 }
 0x642   :  { %4345 = vmatpush1.bf16.msra.mxu0 %v5613_v62  ;;  %4377 = vmatpush1.bf16.msra.mxu1 %v5622_v1  ;;  %v1831_v62 = vld [vmem:[%s7204_s6 + $0x8] sm:$0xff] }
 0x643   :  { %4347 = vmatprep.subr.bf16.mxu0 %v5631_v4  ;;  %4379 = vmatprep.subr.bf16.mxu1 %v5640_v8  ;;  %v1835_v1 = vld [vmem:[%s7204_s6 + $0x28] sm:$0xff]  ;;  %v1833_v4 = vld [vmem:[%s7204_s6 + $0x18] sm:$0xff] }
 0x644   :  { %1711 = vmatprep.mubr.f32.mxu0 %v5402_v7  ;;  %1782 = vmatprep.mubr.f32.mxu1 %v5402_v7  ;;  %v4406_v8 = vpack.c.bf16 %v1835_v1, %v1831_v62  ;;  %v1847_v62 = vld [vmem:[%s7204_s6 + $0x88] sm:$0xff] }
 0x645   :  { %v1851_v1 = vld [vmem:[%s7204_s6 + $0xa8] sm:$0xff] }
 0x646   :  { %4349 = vmatpush1.bf16.msra.mxu0 %v5653_v12  ;;  %4381 = vmatpush1.bf16.msra.mxu1 %v5663_v15  ;;  %v1837_v12 = vld [vmem:[%s7204_s6 + $0x38] sm:$0xff] }
 0x647   :  { %4351 = vmatprep.subr.bf16.mxu0 %v5673_v18  ;;  %4383 = vmatprep.subr.bf16.mxu1 %v5683_v21  ;;  %v4438_v15 = vpack.c.bf16 %v1837_v12, %v1833_v4  ;;  %v1849_v4 = vld [vmem:[%s7204_s6 + $0x98] sm:$0xff]  ;;  %v4412_v12 = vpack.c.bf16 %v1842_v32, %v1838_v45  ;;  %v4424_v45 = vpack.c.bf16 %v1866_v30, %v1862_v57  ;;  %v2122_v57 = vld [vmem:[%s7205_s7 + $0x10] sm:$0xff] }
 0x648   :  { %v2126_v30 = vld [vmem:[%s7205_s7 + $0x30] sm:$0xff] }
 0x64a   :  { %4353 = vmatpush1.bf16.msra.mxu0 %v5696_v25  ;;  %4385 = vmatpush1.bf16.msra.mxu1 %v5706_v28 }
 0x64b   :  { %4355 = vmatprep.subr.bf16.mxu0 %v5716_v31  ;;  %4387 = vmatprep.subr.bf16.mxu1 %v5726_v34 }
 0x64e   :  { %4357 = vmatpush1.bf16.msra.mxu0 %v5739_v38  ;;  %4389 = vmatpush1.bf16.msra.mxu1 %v5749_v41 }
 0x64f   :  { %4359 = vmatprep.subr.bf16.mxu0 %v5759_v44  ;;  %4391 = vmatprep.subr.bf16.mxu1 %v5769_v47 }
 0x652   :  { %4361 = vmatpush1.bf16.msra.mxu0 %v5782_v51  ;;  %4393 = vmatpush1.bf16.msra.mxu1 %v5792_v55 }
 0x653   :  { %4363 = vmatprep.subr.bf16.mxu0 %v5802_v59  ;;  %4395 = vmatprep.subr.bf16.mxu1 %v5812_v63 }
 0x656   :  { %4365 = vmatpush1.bf16.msra.mxu0 %v5825_v5  ;;  %4397 = vmatpush1.bf16.msra.mxu1 %v5835_v10 }
 0x657   :  { %4367 = vmatprep.subr.bf16.mxu0 %v5845_v14  ;;  %4399 = vmatprep.subr.bf16.mxu1 %v5855_v19 }
 0x65a   :  { %4369 = vmatpush1.bf16.msra.mxu0 %v5868_v24  ;;  %4401 = vmatpush1.bf16.msra.mxu1 %v5878_v29 }
 0x65b   :  { %4371 = vmatprep.subr.bf16.mxu0 %v5888_v33  ;;  %4403 = vmatprep.subr.bf16.mxu1 %v5898_v37 }
 0x65e   :  { %4373 = vmatpush1.bf16.msra.mxu0 %v5905_v40  ;;  %4405 = vmatpush1.bf16.msra.mxu1 %v5909_v42  ;;  %v1830_v42 = vld [vmem:[%s7204_s6] sm:$0xff] }
 0x65f   :  { %4407 = vmatprep.subr.bf16.mxu0 %v4406_v8  ;;  %4439 = vmatprep.subr.bf16.mxu1 %v4438_v15  ;;  %v4408_v0 = vpack.c.bf16 %v1834_v6, %v1830_v42  ;;  %v1853_v8 = vld [vmem:[%s7204_s6 + $0xb8] sm:$0xff]  ;;  %v4444_v15 = vpack.c.bf16 %v1844_v49, %v1840_v23 }
 0x714   :  { %v1538_v18 = vpop.f32.mrb[12].mxu0  ;;  %v1609_v21 = vpop.f32.mrb[12].mxu1 }
 0x715   :  { %v1618_v25 = vadd.f32 %v1538_v18, %v5968_v52  ;;  %v1540_v28 = vpop.f32.mrb[13].mxu0  ;;  %v1611_v31 = vpop.f32.mrb[13].mxu1  ;;  %v1620_v51 = vadd.f32 %v1609_v21, %v5985_v17  ;;  %v1846_v18 = vld [vmem:[%s7204_s6 + $0x80] sm:$0xff] }
 0x716   :  { %v1619_v34 = vadd.f32 %v1540_v28, %v5972_v54  ;;  %v1621_v44 = vadd.f32 %v1611_v31, %v5979_v11  ;;  %v1850_v21 = vld [vmem:[%s7204_s6 + $0xa0] sm:$0xff]  ;;  %v4446_v28 = vpack.c.bf16 %v1853_v8, %v1849_v4  ;;  %v1848_v31 = vld [vmem:[%s7204_s6 + $0x90] sm:$0xff]  ;;  %v1879_v4 = vld [vmem:[%s7204_s6 + $0x188] sm:$0xff] }
 0x717   :  { %v3779_v38 = vmul.f32 -1.442695, %v1618_v25  ;;  %v4414_v25 = vpack.c.bf16 %v1851_v1, %v1847_v62  ;;  %v1872_v62 = vld [vmem:[%s7204_s6 + $0x150] sm:$0xff]  ;;  %v1883_v8 = vld [vmem:[%s7204_s6 + $0x1a8] sm:$0xff] }
 0x718   :  { %v3780_v41 = vmul.f32 -1.442695, %v1619_v34  ;;  %v3781_v47 = vmul.f32 -1.442695, %v1621_v44  ;;  %v1852_v34 = vld [vmem:[%s7204_s6 + $0xb0] sm:$0xff]  ;;  %v1857_v44 = vld [vmem:[%s7204_s6 + $0xd8] sm:$0xff] }
 0x719   :  { %5172 = vpow2.f32 %v3779_v38  ;;  %v1855_v38 = vld [vmem:[%s7204_s6 + $0xc8] sm:$0xff]  ;;  %v1876_v1 = vld [vmem:[%s7204_s6 + $0x170] sm:$0xff] }
 0x71a   :  { %5174 = vpow2.f32 %v3780_v41  ;;  %v1859_v41 = vld [vmem:[%s7204_s6 + $0xe8] sm:$0xff] }
 0x71b   :  { %5176 = vpow2.f32 %v3781_v47  ;;  %v1861_v47 = vld [vmem:[%s7204_s6 + $0xf8] sm:$0xff] }
 0x71c   :  { %5178 = vtanh.f32 %v1620_v51  ;;  %v4416_v51 = vpack.c.bf16 %v1850_v21, %v1846_v18  ;;  %v4460_v21 = vpack.c.bf16 %v1876_v1, %v1872_v62  ;;  %v2141_v62 = vld [vmem:[%s7205_s7 + $0xa8] sm:$0xff]  ;;  %v2139_v1 = vld [vmem:[%s7205_s7 + $0x98] sm:$0xff] }
 0x723   :  { %v5173_v55 = vpop.eup %5172 }
 0x724   :  { %v5175_v59 = vpop.eup %5174  ;;  %v1625_v63 = vadd.f32 1.0, %v5173_v55  ;;  %v4448_v55 = vpack.c.bf16 %v1852_v34, %v1848_v31  ;;  %v4430_v31 = vpack.c.bf16 %v1883_v8, %v1879_v4  ;;  %v2143_v8 = vld [vmem:[%s7205_s7 + $0xb8] sm:$0xff] }
 0x725   :  { %v1631_v5 = vadd.f32 1.0, %v5175_v59  ;;  %v5177_v10 = vpop.eup %5176  ;;  %v1854_v59 = vld [vmem:[%s7204_s6 + $0xc0] sm:$0xff] }
 0x726   :  { %5180 = vrcp.f32 %v1625_v63  ;;  %v5179_v14 = vpop.eup %5178  ;;  %v1638_v33 = vadd.f32 1.0, %v5177_v10  ;;  %v1858_v63 = vld [vmem:[%s7204_s6 + $0xe0] sm:$0xff]  ;;  %v4450_v10 = vpack.c.bf16 %v1861_v47, %v1857_v44  ;;  %v1887_v44 = vld [vmem:[%s7204_s6 + $0x1c8] sm:$0xff] }
 0x727   :  { %5182 = vrcp.f32 %v1631_v5  ;;  %v4418_v5 = vpack.c.bf16 %v1859_v41, %v1855_v38  ;;  %v4420_v42 = vpack.c.bf16 %v1858_v63, %v1854_v59  ;;  %v1880_v38 = vld [vmem:[%s7204_s6 + $0x190] sm:$0xff]  ;;  %v1891_v47 = vld [vmem:[%s7204_s6 + $0x1e8] sm:$0xff] }
 0x728   :  { %5184 = vrcp.f32 %v1638_v33  ;;  %v1865_v33 = vld [vmem:[%s7204_s6 + $0x118] sm:$0xff]  ;;  %v1884_v41 = vld [vmem:[%s7204_s6 + $0x1b0] sm:$0xff] }
 0x729   :  { %v4464_v63 = vpack.c.bf16 %v1884_v41, %v1880_v38  ;;  %v2149_v38 = vld [vmem:[%s7205_s7 + $0xe8] sm:$0xff]  ;;  %v2147_v41 = vld [vmem:[%s7205_s7 + $0xd8] sm:$0xff] }
 0x730   :  { %v5181_v19 = vpop.eup %5180 }
 0x731   :  { %v5183_v24 = vpop.eup %5182  ;;  %v1642_v29 = vmul.f32 %v5181_v19, %v5179_v14  ;;  %v1856_v14 = vld [vmem:[%s7204_s6 + $0xd0] sm:$0xff] }
 0x732   :  { %v1641_v37 = vmul.f32 %v5183_v24, %v6221_v39  ;;  %v5185_v20 = vpop.eup %5184  ;;  %v4442_v39 = vpack.c.bf16 %v1845_v56, %v1841_v9  ;;  %v1860_v19 = vld [vmem:[%s7204_s6 + $0xf0] sm:$0xff]  ;;  %v1863_v24 = vld [vmem:[%s7204_s6 + $0x108] sm:$0xff] }
 0x733   :  { %v4452_v6 = vpack.c.bf16 %v1860_v19, %v1856_v14  ;;  %v1864_v9 = vld [vmem:[%s7204_s6 + $0x110] sm:$0xff]  ;;  %v1890_v19 = vld [vmem:[%s7204_s6 + $0x1e0] sm:$0xff] }
 0x734   :  { %v6277_v40 = vadd.f32 %v1642_v29, %v1641_v37  ;;  %v1867_v29 = vld [vmem:[%s7204_s6 + $0x128] sm:$0xff]  ;;  %v1869_v37 = vld [vmem:[%s7204_s6 + $0x138] sm:$0xff]  ;;  %v1868_v56 = vld [vmem:[%s7204_s6 + $0x130] sm:$0xff] }
 0x735   :  { %v4422_v3 = vpack.c.bf16 %v1867_v29, %v1863_v24  ;;  %v4454_v53 = vpack.c.bf16 %v1869_v37, %v1865_v33  ;;  %v4456_v32 = vpack.c.bf16 %v1868_v56, %v1864_v9  ;;  %v1888_v24 = vld [vmem:[%s7204_s6 + $0x1d0] sm:$0xff]  ;;  %v2133_v9 = vld [vmem:[%s7205_s7 + $0x68] sm:$0xff]  ;;  %v2131_v56 = vld [vmem:[%s7205_s7 + $0x58] sm:$0xff] }
 0x736   :  { %5186 = vtanh.f32 %v6277_v40  ;;  %v1892_v29 = vld [vmem:[%s7204_s6 + $0x1f0] sm:$0xff] }
 0x737   :  { %v4468_v37 = vpack.c.bf16 %v1892_v29, %v1888_v24  ;;  %v2157_v24 = vld [vmem:[%s7205_s7 + $0x128] sm:$0xff]  ;;  %v2155_v29 = vld [vmem:[%s7205_s7 + $0x118] sm:$0xff] }
 0x740   :  { %v5187_v60 = vpop.eup %5186 }
 0x741   :  { %v6310_v16 = vmul.f32 %v5187_v60, %v5185_v20  ;;  %v1871_v20 = vld [vmem:[%s7204_s6 + $0x148] sm:$0xff] }
 0x742   :  { %v1875_v60 = vld [vmem:[%s7204_s6 + $0x168] sm:$0xff] }
 0x743   :  { %1712 = vmatmul.mubr.f32.vlgmr.msra.gmra.mrb[14].mxu0 %v6310_v16  ;;  %1783 = vmatmul.mubr.f32.vlgmr.msra.gmra.mrb[14].mxu1 %v6310_v16  ;;  %v4426_v23 = vpack.c.bf16 %v1875_v60, %v1871_v20  ;;  %v2135_v60 = vld [vmem:[%s7205_s7 + $0x78] sm:$0xff] }
 0x744   :  { %4409 = vmatpush1.bf16.msra.mxu0 %v4408_v0  ;;  %4441 = vmatpush1.bf16.msra.mxu1 %v4440_v26  ;;  %v1873_v0 = vld [vmem:[%s7204_s6 + $0x158] sm:$0xff] }
 0x745   :  { %4411 = vmatprep.subr.bf16.mxu0 %v4410_v43  ;;  %4443 = vmatprep.subr.bf16.mxu1 %v4442_v39  ;;  %v1877_v26 = vld [vmem:[%s7204_s6 + $0x178] sm:$0xff]  ;;  %v1870_v43 = vld [vmem:[%s7204_s6 + $0x140] sm:$0xff] }
 0x746   :  { %1958 = vmatprep.mubr.f32.mxu0 %v5402_v7  ;;  %2071 = vmatprep.mubr.f32.mxu1 %v5402_v7  ;;  %v1874_v39 = vld [vmem:[%s7204_s6 + $0x160] sm:$0xff]  ;;  %v4458_v49 = vpack.c.bf16 %v1877_v26, %v1873_v0 }
 0x747   :  { %v4428_v18 = vpack.c.bf16 %v1874_v39, %v1870_v43  ;;  %v2128_v0 = vld [vmem:[%s7205_s7 + $0x40] sm:$0xff]  ;;  %v2130_v43 = vld [vmem:[%s7205_s7 + $0x50] sm:$0xff] }
 0x748   :  { %4413 = vmatpush1.bf16.msra.mxu0 %v4412_v12  ;;  %4445 = vmatpush1.bf16.msra.mxu1 %v4444_v15  ;;  %v1881_v12 = vld [vmem:[%s7204_s6 + $0x198] sm:$0xff]  ;;  %v2132_v26 = vld [vmem:[%s7205_s7 + $0x60] sm:$0xff]  ;;  %v2134_v39 = vld [vmem:[%s7205_s7 + $0x70] sm:$0xff] }
 0x749   :  { %4415 = vmatprep.subr.bf16.mxu0 %v4414_v25  ;;  %4447 = vmatprep.subr.bf16.mxu1 %v4446_v28  ;;  %v1885_v15 = vld [vmem:[%s7204_s6 + $0x1b8] sm:$0xff]  ;;  %v1878_v25 = vld [vmem:[%s7204_s6 + $0x180] sm:$0xff] }
 0x74a   :  { %v1882_v28 = vld [vmem:[%s7204_s6 + $0x1a0] sm:$0xff]  ;;  %v4462_v34 = vpack.c.bf16 %v1885_v15, %v1881_v12 }
 0x74b   :  { %v4432_v59 = vpack.c.bf16 %v1882_v28, %v1878_v25  ;;  %v2136_v12 = vld [vmem:[%s7205_s7 + $0x80] sm:$0xff]  ;;  %v2138_v25 = vld [vmem:[%s7205_s7 + $0x90] sm:$0xff] }
 0x74c   :  { %4417 = vmatpush1.bf16.msra.mxu0 %v4416_v51  ;;  %4449 = vmatpush1.bf16.msra.mxu1 %v4448_v55  ;;  %v1889_v51 = vld [vmem:[%s7204_s6 + $0x1d8] sm:$0xff]  ;;  %v2140_v15 = vld [vmem:[%s7205_s7 + $0xa0] sm:$0xff]  ;;  %v2142_v28 = vld [vmem:[%s7205_s7 + $0xb0] sm:$0xff] }
 0x74d   :  { %4419 = vmatprep.subr.bf16.mxu0 %v4418_v5  ;;  %4451 = vmatprep.subr.bf16.mxu1 %v4450_v10  ;;  %v1893_v55 = vld [vmem:[%s7204_s6 + $0x1f8] sm:$0xff]  ;;  %v1886_v5 = vld [vmem:[%s7204_s6 + $0x1c0] sm:$0xff]  ;;  %v4434_v10 = vpack.c.bf16 %v1891_v47, %v1887_v44 }
 0x74e   :  { %v4466_v14 = vpack.c.bf16 %v1893_v55, %v1889_v51  ;;  %v4436_v33 = vpack.c.bf16 %v1890_v19, %v1886_v5  ;;  %v2151_v47 = vld [vmem:[%s7205_s7 + $0xf8] sm:$0xff]  ;;  %v2144_v51 = vld [vmem:[%s7205_s7 + $0xc0] sm:$0xff]  ;;  %v2146_v5 = vld [vmem:[%s7205_s7 + $0xd0] sm:$0xff] }
 0x74f   :  { %v2148_v55 = vld [vmem:[%s7205_s7 + $0xe0] sm:$0xff]  ;;  %v2153_v19 = vld [vmem:[%s7205_s7 + $0x108] sm:$0xff] }
 0x750   :  { %4421 = vmatpush1.bf16.msra.mxu0 %v4420_v42  ;;  %4453 = vmatpush1.bf16.msra.mxu1 %v4452_v6 }
 0x751   :  { %4423 = vmatprep.subr.bf16.mxu0 %v4422_v3  ;;  %4455 = vmatprep.subr.bf16.mxu1 %v4454_v53  ;;  %v6525_v3 = vpack.c.bf16 %v2126_v30, %v2122_v57  ;;  %v2129_v53 = vld [vmem:[%s7205_s7 + $0x48] sm:$0xff] }
 0x752   :  { %v6539_v20 = vpack.c.bf16 %v2133_v9, %v2129_v53  ;;  %v2161_v57 = vld [vmem:[%s7205_s7 + $0x148] sm:$0xff]  ;;  %v2163_v9 = vld [vmem:[%s7205_s7 + $0x158] sm:$0xff] }
 0x753   :  { %v2165_v53 = vld [vmem:[%s7205_s7 + $0x168] sm:$0xff] }
 0x754   :  { %4425 = vmatpush1.bf16.msra.mxu0 %v4424_v45  ;;  %4457 = vmatpush1.bf16.msra.mxu1 %v4456_v32  ;;  %v6550_v45 = vpack.c.bf16 %v2135_v60, %v2131_v56  ;;  %v6552_v32 = vpack.c.bf16 %v2132_v26, %v2128_v0  ;;  %v2167_v56 = vld [vmem:[%s7205_s7 + $0x178] sm:$0xff]  ;;  %v6684_v60 = vpack.c.bf16 %v2165_v53, %v2161_v57  ;;  %v2160_v26 = vld [vmem:[%s7205_s7 + $0x140] sm:$0xff]  ;;  %v2178_v57 = vld [vmem:[%s7205_s7 + $0x1d0] sm:$0xff] }
 0x755   :  { %4427 = vmatprep.subr.bf16.mxu0 %v4426_v23  ;;  %4459 = vmatprep.subr.bf16.mxu1 %v4458_v49  ;;  %v6561_v23 = vpack.c.bf16 %v2134_v39, %v2130_v43  ;;  %v2137_v49 = vld [vmem:[%s7205_s7 + $0x88] sm:$0xff]  ;;  %v6686_v0 = vpack.c.bf16 %v2167_v56, %v2163_v9  ;;  %v2164_v43 = vld [vmem:[%s7205_s7 + $0x160] sm:$0xff]  ;;  %v2162_v39 = vld [vmem:[%s7205_s7 + $0x150] sm:$0xff] }
 0x756   :  { %v6575_v4 = vpack.c.bf16 %v2141_v62, %v2137_v49  ;;  %v6698_v49 = vpack.c.bf16 %v2164_v43, %v2160_v26  ;;  %v2166_v62 = vld [vmem:[%s7205_s7 + $0x170] sm:$0xff] }
 0x757   :  { %v2182_v53 = vld [vmem:[%s7205_s7 + $0x1f0] sm:$0xff] }
 0x758   :  { %4429 = vmatpush1.bf16.msra.mxu0 %v4428_v18  ;;  %4461 = vmatpush1.bf16.msra.mxu1 %v4460_v21  ;;  %v6586_v18 = vpack.c.bf16 %v2143_v8, %v2139_v1  ;;  %v6588_v21 = vpack.c.bf16 %v2140_v15, %v2136_v12  ;;  %v2169_v1 = vld [vmem:[%s7205_s7 + $0x188] sm:$0xff]  ;;  %v6711_v12 = vpack.c.bf16 %v2166_v62, %v2162_v39 }
 0x759   :  { %4431 = vmatprep.subr.bf16.mxu0 %v4430_v31  ;;  %4463 = vmatprep.subr.bf16.mxu1 %v4462_v34  ;;  %v6597_v31 = vpack.c.bf16 %v2142_v28, %v2138_v25  ;;  %v2145_v34 = vld [vmem:[%s7205_s7 + $0xc8] sm:$0xff]  ;;  %v2171_v25 = vld [vmem:[%s7205_s7 + $0x198] sm:$0xff]  ;;  %v6777_v9 = vpack.c.bf16 %v2182_v53, %v2178_v57 }
 0x75a   :  { %v6611_v44 = vpack.c.bf16 %v2149_v38, %v2145_v34  ;;  %v2173_v8 = vld [vmem:[%s7205_s7 + $0x1a8] sm:$0xff]  ;;  %v2175_v28 = vld [vmem:[%s7205_s7 + $0x1b8] sm:$0xff]  ;;  %v2168_v34 = vld [vmem:[%s7205_s7 + $0x180] sm:$0xff] }
 0x75b   :  { %v6713_v15 = vpack.c.bf16 %v2173_v8, %v2169_v1  ;;  %v6725_v38 = vpack.c.bf16 %v2175_v28, %v2171_v25 }
 0x75c   :  { %4433 = vmatpush1.bf16.msra.mxu0 %v4432_v59  ;;  %4465 = vmatpush1.bf16.msra.mxu1 %v4464_v63  ;;  %v6622_v59 = vpack.c.bf16 %v2151_v47, %v2147_v41  ;;  %v6624_v63 = vpack.c.bf16 %v2148_v55, %v2144_v51  ;;  %v2172_v41 = vld [vmem:[%s7205_s7 + $0x1a0] sm:$0xff]  ;;  %v2170_v47 = vld [vmem:[%s7205_s7 + $0x190] sm:$0xff] }
 0x75d   :  { %4435 = vmatprep.subr.bf16.mxu0 %v4434_v10  ;;  %4467 = vmatprep.subr.bf16.mxu1 %v4466_v14  ;;  %v2150_v10 = vld [vmem:[%s7205_s7 + $0xf0] sm:$0xff]  ;;  %v6737_v55 = vpack.c.bf16 %v2172_v41, %v2168_v34 }
 0x75e   :  { %v6633_v14 = vpack.c.bf16 %v2150_v10, %v2146_v5  ;;  %v2174_v51 = vld [vmem:[%s7205_s7 + $0x1b0] sm:$0xff]  ;;  %v2177_v10 = vld [vmem:[%s7205_s7 + $0x1c8] sm:$0xff] }
 0x75f   :  { %v6741_v5 = vpack.c.bf16 %v2174_v51, %v2170_v47 }
 0x760   :  { %4437 = vmatpush1.bf16.msra.mxu0 %v4436_v33  ;;  %4469 = vmatpush1.bf16.msra.mxu1 %v4468_v37  ;;  %v6646_v33 = vpack.c.bf16 %v2157_v24, %v2153_v19  ;;  %v2159_v37 = vld [vmem:[%s7205_s7 + $0x138] sm:$0xff]  ;;  %v2181_v19 = vld [vmem:[%s7205_s7 + $0x1e8] sm:$0xff] }
 0x761   :  { %v2179_v24 = vld [vmem:[%s7205_s7 + $0x1d8] sm:$0xff] }
 0x763   :  { %1959 = vmatmul.mubr.f32.vlgmr.msra.gmra.mrb[16].mxu0 %v5994_v2  ;;  %2072 = vmatmul.mubr.f32.vlgmr.msra.gmra.mrb[16].mxu1 %v5994_v2  ;;  %v2121_v2 = vld [vmem:[%s7205_s7 + $0x8] sm:$0xff] }
 0x764   :  { %1964 = vmatprep.mubr.f32.mxu0 %v5402_v7  ;;  %2077 = vmatprep.mubr.f32.mxu1 %v5402_v7 }
 0x767   :  { %1965 = vmatmul.mubr.f32.gmra.mrb[18].mxu0 %v6040_v22  ;;  %2078 = vmatmul.mubr.f32.gmra.mrb[18].mxu1 %v6040_v22  ;;  %v2125_v22 = vld [vmem:[%s7205_s7 + $0x28] sm:$0xff] }
 0x768   :  { %1970 = vmatprep.mubr.f32.mxu0 %v5402_v7  ;;  %2083 = vmatprep.mubr.f32.mxu1 %v5402_v7 }
 0x76b   :  { %1971 = vmatmul.mubr.f32.gmra.mrb[20].mxu0 %v6086_v35  ;;  %2084 = vmatmul.mubr.f32.gmra.mrb[20].mxu1 %v6086_v35  ;;  %v2123_v35 = vld [vmem:[%s7205_s7 + $0x18] sm:$0xff] }
 0x76c   :  { %1976 = vmatprep.mubr.f32.mxu0 %v5402_v7  ;;  %2089 = vmatprep.mubr.f32.mxu1 %v5402_v7 }
 0x76f   :  { %1977 = vmatmul.mubr.f32.gmra.mrb[22].mxu0 %v6132_v61  ;;  %2090 = vmatmul.mubr.f32.gmra.mrb[22].mxu1 %v6132_v61  ;;  %v6503_v61 = vpack.c.bf16 %v2125_v22, %v2121_v2  ;;  %v2152_v2 = vld [vmem:[%s7205_s7 + $0x100] sm:$0xff] }
 0x770   :  { %1982 = vmatprep.mubr.f32.mxu0 %v5402_v7  ;;  %2095 = vmatprep.mubr.f32.mxu1 %v5402_v7  ;;  %v2156_v22 = vld [vmem:[%s7205_s7 + $0x120] sm:$0xff] }
 0x771   :  { %4471 = vmatprep.subr.bf16.mxu0 %v6503_v61 }
 0x773   :  { %1983 = vmatmul.mubr.f32.gmra.mrb[24].mxu0 %v6178_v27  ;;  %2096 = vmatmul.mubr.f32.gmra.mrb[24].mxu1 %v6178_v27  ;;  %v2127_v27 = vld [vmem:[%s7205_s7 + $0x38] sm:$0xff] }
 0x774   :  { %1988 = vmatprep.mubr.f32.mxu0 %v5402_v7  ;;  %2101 = vmatprep.mubr.f32.mxu1 %v5402_v7  ;;  %v6514_v42 = vpack.c.bf16 %v2127_v27, %v2123_v35  ;;  %v6658_v35 = vpack.c.bf16 %v2159_v37, %v2155_v29  ;;  %v6660_v27 = vpack.c.bf16 %v2156_v22, %v2152_v2  ;;  %v2183_v37 = vld [vmem:[%s7205_s7 + $0x1f8] sm:$0xff]  ;;  %v2176_v2 = vld [vmem:[%s7205_s7 + $0x1c0] sm:$0xff] }
 0x775   :  { %v6755_v29 = vpack.c.bf16 %v2181_v19, %v2177_v10  ;;  %v2180_v22 = vld [vmem:[%s7205_s7 + $0x1e0] sm:$0xff] }
 0x776   :  { %4503 = vmatprep.subr.bf16.mxu1 %v6514_v42 }
 0x777   :  { %1989 = vmatmul.mubr.f32.gmra.mrb[26].mxu0 %v6224_v36  ;;  %2102 = vmatmul.mubr.f32.gmra.mrb[26].mxu1 %v6224_v36  ;;  %v2120_v36 = vld [vmem:[%s7205_s7] sm:$0xff] }
 0x778   :  { %1994 = vmatprep.mubr.f32.mxu0 %v5402_v7  ;;  %2107 = vmatprep.mubr.f32.mxu1 %v5402_v7 }
 0x779   :  { %4505 = vmatpush1.bf16.msra.mxu1 %v6525_v3 }
 0x77a   :  { %4507 = vmatprep.subr.bf16.mxu1 %v6550_v45 }
 0x77b   :  { %1995 = vmatmul.mubr.f32.gmra.mrb[28].mxu0 %v6310_v16  ;;  %2108 = vmatmul.mubr.f32.gmra.mrb[28].mxu1 %v6310_v16  ;;  %v2124_v16 = vld [vmem:[%s7205_s7 + $0x20] sm:$0xff] }
 0x77c   :  { %2000 = vmatprep.mubr.f32.mxu0 %v5402_v7  ;;  %2113 = vmatprep.mubr.f32.mxu1 %v5402_v7  ;;  %v6516_v6 = vpack.c.bf16 %v2124_v16, %v2120_v36  ;;  %v2154_v36 = vld [vmem:[%s7205_s7 + $0x110] sm:$0xff] }
 0x77d   :  { %4509 = vmatpush1.bf16.msra.mxu1 %v6561_v23  ;;  %v2158_v16 = vld [vmem:[%s7205_s7 + $0x130] sm:$0xff] }
 0x77e   :  { %4473 = vmatpush1.bf16.msra.mxu0 %v6516_v6  ;;  %4511 = vmatprep.subr.bf16.mxu1 %v6586_v18  ;;  %v6672_v30 = vpack.c.bf16 %v2158_v16, %v2154_v36  ;;  %v6766_v36 = vpack.c.bf16 %v2183_v37, %v2179_v24  ;;  %v6768_v16 = vpack.c.bf16 %v2180_v22, %v2176_v2 }
 0x77f   :  { %4475 = vmatprep.subr.bf16.mxu0 %v6539_v20 }
 0x781   :  { %4513 = vmatpush1.bf16.msra.mxu1 %v6597_v31 }
 0x782   :  { %4477 = vmatpush1.bf16.msra.mxu0 %v6552_v32  ;;  %4515 = vmatprep.subr.bf16.mxu1 %v6622_v59 }
 0x783   :  { %4479 = vmatprep.subr.bf16.mxu0 %v6575_v4 }
 0x785   :  { %4517 = vmatpush1.bf16.msra.mxu1 %v6633_v14 }
 0x786   :  { %4481 = vmatpush1.bf16.msra.mxu0 %v6588_v21  ;;  %4519 = vmatprep.subr.bf16.mxu1 %v6658_v35 }
 0x787   :  { %4483 = vmatprep.subr.bf16.mxu0 %v6611_v44 }
 0x789   :  { %4521 = vmatpush1.bf16.msra.mxu1 %v6672_v30 }
 0x78a   :  { %4485 = vmatpush1.bf16.msra.mxu0 %v6624_v63  ;;  %4523 = vmatprep.subr.bf16.mxu1 %v6686_v0 }
 0x78b   :  { %4487 = vmatprep.subr.bf16.mxu0 %v6646_v33 }
 0x78d   :  { %4525 = vmatpush1.bf16.msra.mxu1 %v6711_v12 }
 0x78e   :  { %4489 = vmatpush1.bf16.msra.mxu0 %v6660_v27  ;;  %4527 = vmatprep.subr.bf16.mxu1 %v6725_v38 }
 0x78f   :  { %4491 = vmatprep.subr.bf16.mxu0 %v6684_v60 }
 0x791   :  { %4529 = vmatpush1.bf16.msra.mxu1 %v6741_v5 }
 0x792   :  { %4493 = vmatpush1.bf16.msra.mxu0 %v6698_v49  ;;  %4531 = vmatprep.subr.bf16.mxu1 %v6766_v36 }
 0x793   :  { %4495 = vmatprep.subr.bf16.mxu0 %v6713_v15 }
 0x795   :  { %4533 = vmatpush1.bf16.msra.mxu1 %v6777_v9 }
 0x796   :  { %4497 = vmatpush1.bf16.msra.mxu0 %v6737_v55  ;;  %4567 = vmatprep.subr.bf16.mxu1 %v6514_v42 }
 0x797   :  { %4499 = vmatprep.subr.bf16.mxu0 %v6755_v29 }
 0x79a   :  { %4501 = vmatpush1.bf16.msra.mxu0 %v6768_v16 }
 0x79b   :  { %4535 = vmatprep.subr.bf16.mxu0 %v6503_v61 }
 0x816   :  { %v1713_v56 = vpop.f32.mrb[14].mxu0  ;;  %v1784_v26 = vpop.f32.mrb[14].mxu1 }
 0x817   :  { %v1793_v43 = vadd.f32 %v1713_v56, %v5968_v52  ;;  %v1715_v39 = vpop.f32.mrb[15].mxu0  ;;  %v1786_v62 = vpop.f32.mrb[15].mxu1  ;;  %v1795_v41 = vadd.f32 %v1784_v26, %v5985_v17 }
 0x818   :  { %v1794_v1 = vadd.f32 %v1715_v39, %v5972_v54  ;;  %v1796_v28 = vadd.f32 %v1786_v62, %v5979_v11 }
 0x819   :  { %v3782_v8 = vmul.f32 -1.442695, %v1793_v43 }
 0x81a   :  { %v3783_v25 = vmul.f32 -1.442695, %v1794_v1  ;;  %v3784_v34 = vmul.f32 -1.442695, %v1796_v28 }
 0x81b   :  { %5188 = vpow2.f32 %v3782_v8 }
 0x81c   :  { %5190 = vpow2.f32 %v3783_v25 }
 0x81d   :  { %5192 = vpow2.f32 %v3784_v34 }
 0x81e   :  { %5194 = vtanh.f32 %v1795_v41 }
 0x825   :  { %v5189_v47 = vpop.eup %5188 }
 0x826   :  { %v5191_v51 = vpop.eup %5190  ;;  %v1800_v10 = vadd.f32 1.0, %v5189_v47 }
 0x827   :  { %v1806_v19 = vadd.f32 1.0, %v5191_v51  ;;  %v5193_v52 = vpop.eup %5192 }
 0x828   :  { %5196 = vrcp.f32 %v1800_v10  ;;  %v5195_v24 = vpop.eup %5194  ;;  %v1813_v22 = vadd.f32 1.0, %v5193_v52 }
 0x829   :  { %5198 = vrcp.f32 %v1806_v19 }
 0x82a   :  { %5200 = vrcp.f32 %v1813_v22 }
 0x832   :  { %v5197_v54 = vpop.eup %5196 }
 0x833   :  { %v5199_v37 = vpop.eup %5198  ;;  %v1817_v2 = vmul.f32 %v5197_v54, %v5195_v24 }
 0x834   :  { %v1816_v57 = vmul.f32 %v5199_v37, %v6277_v40  ;;  %v5201_v17 = vpop.eup %5200  ;;  %v2184_v40 = vld [vmem:[%s7206_s8] sm:$0xf] }
 0x835   :  { %v6833_v26 = vrot.slane %v2184_v40, %v550_v48  ;;  %v6837_v43 = vrot.slane %v2184_v40, %v554_v50  ;;  %v6843_v47 = vrot.slane %v2184_v40, %v562_v58  ;;  %v6848_v50 = vrot.slane %v2184_v40, %v558_v13 }
 0x836   :  { %v6789_v11 = vadd.f32 %v1817_v2, %v1816_v57 }
 0x838   :  { %5202 = vtanh.f32 %v6789_v11 }
 0x842   :  { %v5203_v53 = vpop.eup %5202 }
 0x843   :  { %v1820_v56 = vmul.f32 %v5203_v53, %v5201_v17 }
 0x845   :  { %2001 = vmatmul.mubr.f32.gmra.mrb[30].mxu0 %v1820_v56  ;;  %2114 = vmatmul.mubr.f32.gmra.mrb[30].mxu1 %v1820_v56 }
 0x846   :  { %2249 = vmatprep.mubr.f32.mxu0 %v5402_v7  ;;  %2320 = vmatprep.mubr.f32.mxu1 %v5402_v7 }
 0x849   :  { %2250 = vmatmul.mubr.f32.vlgmr.msra.gmra.mrb[16].mxu0 %v1820_v56  ;;  %2321 = vmatmul.mubr.f32.vlgmr.msra.gmra.mrb[16].mxu1 %v1820_v56 }
 0x84a   :  { %4537 = vmatpush1.bf16.msra.mxu0 %v6516_v6  ;;  %4569 = vmatpush1.bf16.msra.mxu1 %v6525_v3 }
 0x84b   :  { %4539 = vmatprep.subr.bf16.mxu0 %v6539_v20  ;;  %4571 = vmatprep.subr.bf16.mxu1 %v6550_v45 }
 0x84c   :  { %2445 = vmatprep.mubr.f32.mxu0 %v5402_v7  ;;  %2516 = vmatprep.mubr.f32.mxu1 %v5402_v7 }
 0x84e   :  { %4541 = vmatpush1.bf16.msra.mxu0 %v6552_v32  ;;  %4573 = vmatpush1.bf16.msra.mxu1 %v6561_v23 }
 0x84f   :  { %4543 = vmatprep.subr.bf16.mxu0 %v6575_v4  ;;  %4575 = vmatprep.subr.bf16.mxu1 %v6586_v18 }
 0x852   :  { %4545 = vmatpush1.bf16.msra.mxu0 %v6588_v21  ;;  %4577 = vmatpush1.bf16.msra.mxu1 %v6597_v31 }
 0x853   :  { %4547 = vmatprep.subr.bf16.mxu0 %v6611_v44  ;;  %4579 = vmatprep.subr.bf16.mxu1 %v6622_v59 }
 0x856   :  { %4549 = vmatpush1.bf16.msra.mxu0 %v6624_v63  ;;  %4581 = vmatpush1.bf16.msra.mxu1 %v6633_v14 }
 0x857   :  { %4551 = vmatprep.subr.bf16.mxu0 %v6646_v33  ;;  %4583 = vmatprep.subr.bf16.mxu1 %v6658_v35 }
 0x85a   :  { %4553 = vmatpush1.bf16.msra.mxu0 %v6660_v27  ;;  %4585 = vmatpush1.bf16.msra.mxu1 %v6672_v30 }
 0x85b   :  { %4555 = vmatprep.subr.bf16.mxu0 %v6684_v60  ;;  %4587 = vmatprep.subr.bf16.mxu1 %v6686_v0 }
 0x85e   :  { %4557 = vmatpush1.bf16.msra.mxu0 %v6698_v49  ;;  %4589 = vmatpush1.bf16.msra.mxu1 %v6711_v12 }
 0x85f   :  { %4559 = vmatprep.subr.bf16.mxu0 %v6713_v15  ;;  %4591 = vmatprep.subr.bf16.mxu1 %v6725_v38 }
 0x862   :  { %4561 = vmatpush1.bf16.msra.mxu0 %v6737_v55  ;;  %4593 = vmatpush1.bf16.msra.mxu1 %v6741_v5 }
 0x863   :  { %4563 = vmatprep.subr.bf16.mxu0 %v6755_v29  ;;  %4595 = vmatprep.subr.bf16.mxu1 %v6766_v36 }
 0x866   :  { %4565 = vmatpush1.bf16.msra.mxu0 %v6768_v16  ;;  %4597 = vmatpush1.bf16.msra.mxu1 %v6777_v9 }
 0x867   :  { %4599 = vmatprep.subr.bf16.mxu0 %v6503_v61  ;;  %4631 = vmatprep.subr.bf16.mxu1 %v6514_v42 }
 0x91c   :  { %v2251_v39 = vpop.f32.mrb[16].mxu0  ;;  %v2322_v62 = vpop.f32.mrb[16].mxu1 }
 0x91d   :  { %v2352_v1 = vadd.f32 %v6833_v26, %v2251_v39  ;;  %v2253_v8 = vpop.f32.mrb[17].mxu0  ;;  %v2324_v25 = vpop.f32.mrb[17].mxu1  ;;  %v2354_v10 = vadd.f32 %v6848_v50, %v2322_v62 }
 0x91e   :  { %v2353_v28 = vadd.f32 %v6837_v43, %v2253_v8  ;;  %v2355_v48 = vadd.f32 %v6843_v47, %v2324_v25 }
 0x91f   :  { %v3785_v34 = vmul.f32 -1.442695, %v2352_v1 }
 0x920   :  { %v3786_v41 = vmul.f32 -1.442695, %v2353_v28  ;;  %v3787_v51 = vmul.f32 -1.442695, %v2355_v48 }
 0x921   :  { %5204 = vpow2.f32 %v3785_v34 }
 0x922   :  { %5206 = vpow2.f32 %v3786_v41 }
 0x923   :  { %5208 = vpow2.f32 %v3787_v51 }
 0x924   :  { %5210 = vtanh.f32 %v2354_v10 }
 0x92b   :  { %v5205_v19 = vpop.eup %5204 }
 0x92c   :  { %v5207_v52 = vpop.eup %5206  ;;  %v2359_v24 = vadd.f32 1.0, %v5205_v19 }
 0x92d   :  { %v2365_v54 = vadd.f32 1.0, %v5207_v52  ;;  %v5209_v58 = vpop.eup %5208 }
 0x92e   :  { %5212 = vrcp.f32 %v2359_v24  ;;  %v5211_v37 = vpop.eup %5210  ;;  %v2372_v17 = vadd.f32 1.0, %v5209_v58 }
 0x92f   :  { %5214 = vrcp.f32 %v2365_v54 }
 0x930   :  { %5216 = vrcp.f32 %v2372_v17 }
 0x938   :  { %v5213_v2 = vpop.eup %5212 }
 0x939   :  { %v5215_v22 = vpop.eup %5214  ;;  %v2376_v57 = vmul.f32 %v5213_v2, %v5211_v37 }
 0x93a   :  { %v2375_v46 = vmul.f32 %v5215_v22, %v6789_v11  ;;  %v5217_v53 = vpop.eup %5216 }
 0x93c   :  { %v6852_v13 = vadd.f32 %v2376_v57, %v2375_v46 }
 0x93e   :  { %5218 = vtanh.f32 %v6852_v13 }
 0x948   :  { %v5219_v56 = vpop.eup %5218 }
 0x949   :  { %v2379_v40 = vmul.f32 %v5219_v56, %v5217_v53 }
 0x94b   :  { %2380 = vst [vmem:[#allocation3 - $0x7] sm:$0x80] %v2379_v40  ;;  %2446 = vmatmul.mubr.f32.vlgmr.msra.gmra.mrb[18].mxu0 %v2379_v40  ;;  %2517 = vmatmul.mubr.f32.vlgmr.msra.gmra.mrb[18].mxu1 %v2379_v40 }
 0x94c   :  { %4601 = vmatpush1.bf16.msra.mxu0 %v6516_v6  ;;  %4633 = vmatpush1.bf16.msra.mxu1 %v6525_v3 }
 0x94d   :  { %4603 = vmatprep.subr.bf16.mxu0 %v6539_v20  ;;  %4635 = vmatprep.subr.bf16.mxu1 %v6550_v45 }
 0x94e   :  { %2620 = vmatprep.mubr.f32.mxu0 %v5402_v7  ;;  %2691 = vmatprep.mubr.f32.mxu1 %v5402_v7 }
 0x950   :  { %4605 = vmatpush1.bf16.msra.mxu0 %v6552_v32  ;;  %4637 = vmatpush1.bf16.msra.mxu1 %v6561_v23 }
 0x951   :  { %4607 = vmatprep.subr.bf16.mxu0 %v6575_v4  ;;  %4639 = vmatprep.subr.bf16.mxu1 %v6586_v18 }
 0x954   :  { %4609 = vmatpush1.bf16.msra.mxu0 %v6588_v21  ;;  %4641 = vmatpush1.bf16.msra.mxu1 %v6597_v31 }
 0x955   :  { %4611 = vmatprep.subr.bf16.mxu0 %v6611_v44  ;;  %4643 = vmatprep.subr.bf16.mxu1 %v6622_v59 }
 0x958   :  { %4613 = vmatpush1.bf16.msra.mxu0 %v6624_v63  ;;  %4645 = vmatpush1.bf16.msra.mxu1 %v6633_v14 }
 0x959   :  { %4615 = vmatprep.subr.bf16.mxu0 %v6646_v33  ;;  %4647 = vmatprep.subr.bf16.mxu1 %v6658_v35 }
 0x95c   :  { %4617 = vmatpush1.bf16.msra.mxu0 %v6660_v27  ;;  %4649 = vmatpush1.bf16.msra.mxu1 %v6672_v30 }
 0x95d   :  { %4619 = vmatprep.subr.bf16.mxu0 %v6684_v60  ;;  %4651 = vmatprep.subr.bf16.mxu1 %v6686_v0 }
 0x960   :  { %4621 = vmatpush1.bf16.msra.mxu0 %v6698_v49  ;;  %4653 = vmatpush1.bf16.msra.mxu1 %v6711_v12 }
 0x961   :  { %4623 = vmatprep.subr.bf16.mxu0 %v6713_v15  ;;  %4655 = vmatprep.subr.bf16.mxu1 %v6725_v38 }
 0x964   :  { %4625 = vmatpush1.bf16.msra.mxu0 %v6737_v55  ;;  %4657 = vmatpush1.bf16.msra.mxu1 %v6741_v5 }
 0x965   :  { %4627 = vmatprep.subr.bf16.mxu0 %v6755_v29  ;;  %4659 = vmatprep.subr.bf16.mxu1 %v6766_v36 }
 0x968   :  { %4629 = vmatpush1.bf16.msra.mxu0 %v6768_v16  ;;  %4661 = vmatpush1.bf16.msra.mxu1 %v6777_v9 }
 0x969   :  { %4663 = vmatprep.subr.bf16.mxu0 %v6503_v61  ;;  %4695 = vmatprep.subr.bf16.mxu1 %v6514_v42 }
 0xa1e   :  { %v2447_v11 = vpop.f32.mrb[18].mxu0  ;;  %v2518_v39 = vpop.f32.mrb[18].mxu1 }
 0xa1f   :  { %v2527_v62 = vadd.f32 %v2447_v11, %v6833_v26  ;;  %v2449_v1 = vpop.f32.mrb[19].mxu0  ;;  %v2520_v8 = vpop.f32.mrb[19].mxu1  ;;  %v2529_v51 = vadd.f32 %v2518_v39, %v6848_v50 }
 0xa20   :  { %v2528_v25 = vadd.f32 %v2449_v1, %v6837_v43  ;;  %v2530_v41 = vadd.f32 %v2520_v8, %v6843_v47 }
 0xa21   :  { %v3788_v28 = vmul.f32 -1.442695, %v2527_v62 }
 0xa22   :  { %v3789_v34 = vmul.f32 -1.442695, %v2528_v25  ;;  %v3790_v48 = vmul.f32 -1.442695, %v2530_v41 }
 0xa23   :  { %5220 = vpow2.f32 %v3788_v28 }
 0xa24   :  { %5222 = vpow2.f32 %v3789_v34 }
 0xa25   :  { %5224 = vpow2.f32 %v3790_v48 }
 0xa26   :  { %5226 = vtanh.f32 %v2529_v51 }
 0xa2d   :  { %v5221_v10 = vpop.eup %5220 }
 0xa2e   :  { %v5223_v19 = vpop.eup %5222  ;;  %v2534_v52 = vadd.f32 1.0, %v5221_v10 }
 0xa2f   :  { %v2540_v24 = vadd.f32 1.0, %v5223_v19  ;;  %v5225_v54 = vpop.eup %5224 }
 0xa30   :  { %5228 = vrcp.f32 %v2534_v52  ;;  %v5227_v58 = vpop.eup %5226  ;;  %v2547_v57 = vadd.f32 1.0, %v5225_v54 }
 0xa31   :  { %5230 = vrcp.f32 %v2540_v24 }
 0xa32   :  { %5232 = vrcp.f32 %v2547_v57 }
 0xa3a   :  { %v5229_v37 = vpop.eup %5228 }
 0xa3b   :  { %v5231_v2 = vpop.eup %5230  ;;  %v2551_v22 = vmul.f32 %v5229_v37, %v5227_v58 }
 0xa3c   :  { %v2550_v17 = vmul.f32 %v5231_v2, %v6852_v13  ;;  %v5233_v53 = vpop.eup %5232 }
 0xa3e   :  { %v6894_v46 = vadd.f32 %v2551_v22, %v2550_v17 }
 0xa40   :  { %5234 = vtanh.f32 %v6894_v46 }
 0xa4a   :  { %v5235_v56 = vpop.eup %5234 }
 0xa4b   :  { %v2554_v40 = vmul.f32 %v5235_v56, %v5233_v53 }
 0xa4d   :  { %2555 = vst [vmem:[#allocation3 - $0x6] sm:$0x80] %v2554_v40  ;;  %2621 = vmatmul.mubr.f32.vlgmr.msra.gmra.mrb[20].mxu0 %v2554_v40  ;;  %2692 = vmatmul.mubr.f32.vlgmr.msra.gmra.mrb[20].mxu1 %v2554_v40 }
 0xa4e   :  { %4665 = vmatpush1.bf16.msra.mxu0 %v6516_v6  ;;  %4697 = vmatpush1.bf16.msra.mxu1 %v6525_v3 }
 0xa4f   :  { %4667 = vmatprep.subr.bf16.mxu0 %v6539_v20  ;;  %4699 = vmatprep.subr.bf16.mxu1 %v6550_v45 }
 0xa50   :  { %2795 = vmatprep.mubr.f32.mxu0 %v5402_v7  ;;  %2866 = vmatprep.mubr.f32.mxu1 %v5402_v7 }
 0xa52   :  { %4669 = vmatpush1.bf16.msra.mxu0 %v6552_v32  ;;  %4701 = vmatpush1.bf16.msra.mxu1 %v6561_v23 }
 0xa53   :  { %4671 = vmatprep.subr.bf16.mxu0 %v6575_v4  ;;  %4703 = vmatprep.subr.bf16.mxu1 %v6586_v18 }
 0xa56   :  { %4673 = vmatpush1.bf16.msra.mxu0 %v6588_v21  ;;  %4705 = vmatpush1.bf16.msra.mxu1 %v6597_v31 }
 0xa57   :  { %4675 = vmatprep.subr.bf16.mxu0 %v6611_v44  ;;  %4707 = vmatprep.subr.bf16.mxu1 %v6622_v59 }
 0xa5a   :  { %4677 = vmatpush1.bf16.msra.mxu0 %v6624_v63  ;;  %4709 = vmatpush1.bf16.msra.mxu1 %v6633_v14 }
 0xa5b   :  { %4679 = vmatprep.subr.bf16.mxu0 %v6646_v33  ;;  %4711 = vmatprep.subr.bf16.mxu1 %v6658_v35 }
 0xa5e   :  { %4681 = vmatpush1.bf16.msra.mxu0 %v6660_v27  ;;  %4713 = vmatpush1.bf16.msra.mxu1 %v6672_v30 }
 0xa5f   :  { %4683 = vmatprep.subr.bf16.mxu0 %v6684_v60  ;;  %4715 = vmatprep.subr.bf16.mxu1 %v6686_v0 }
 0xa62   :  { %4685 = vmatpush1.bf16.msra.mxu0 %v6698_v49  ;;  %4717 = vmatpush1.bf16.msra.mxu1 %v6711_v12 }
 0xa63   :  { %4687 = vmatprep.subr.bf16.mxu0 %v6713_v15  ;;  %4719 = vmatprep.subr.bf16.mxu1 %v6725_v38 }
 0xa66   :  { %4689 = vmatpush1.bf16.msra.mxu0 %v6737_v55  ;;  %4721 = vmatpush1.bf16.msra.mxu1 %v6741_v5 }
 0xa67   :  { %4691 = vmatprep.subr.bf16.mxu0 %v6755_v29  ;;  %4723 = vmatprep.subr.bf16.mxu1 %v6766_v36 }
 0xa6a   :  { %4693 = vmatpush1.bf16.msra.mxu0 %v6768_v16  ;;  %4725 = vmatpush1.bf16.msra.mxu1 %v6777_v9 }
 0xa6b   :  { %4727 = vmatprep.subr.bf16.mxu0 %v6503_v61  ;;  %4759 = vmatprep.subr.bf16.mxu1 %v6514_v42 }
 0xb20   :  { %v2622_v13 = vpop.f32.mrb[20].mxu0  ;;  %v2693_v11 = vpop.f32.mrb[20].mxu1 }
 0xb21   :  { %v2702_v39 = vadd.f32 %v2622_v13, %v6833_v26  ;;  %v2624_v62 = vpop.f32.mrb[21].mxu0  ;;  %v2695_v1 = vpop.f32.mrb[21].mxu1  ;;  %v2704_v48 = vadd.f32 %v2693_v11, %v6848_v50 }
 0xb22   :  { %v2703_v8 = vadd.f32 %v2624_v62, %v6837_v43  ;;  %v2705_v34 = vadd.f32 %v2695_v1, %v6843_v47 }
 0xb23   :  { %v3791_v25 = vmul.f32 -1.442695, %v2702_v39 }
 0xb24   :  { %v3792_v28 = vmul.f32 -1.442695, %v2703_v8  ;;  %v3793_v41 = vmul.f32 -1.442695, %v2705_v34 }
 0xb25   :  { %5236 = vpow2.f32 %v3791_v25 }
 0xb26   :  { %5238 = vpow2.f32 %v3792_v28 }
 0xb27   :  { %5240 = vpow2.f32 %v3793_v41 }
 0xb28   :  { %5242 = vtanh.f32 %v2704_v48 }
 0xb2f   :  { %v5237_v51 = vpop.eup %5236 }
 0xb30   :  { %v5239_v10 = vpop.eup %5238  ;;  %v2709_v19 = vadd.f32 1.0, %v5237_v51 }
 0xb31   :  { %v2715_v52 = vadd.f32 1.0, %v5239_v10  ;;  %v5241_v24 = vpop.eup %5240 }
 0xb32   :  { %5244 = vrcp.f32 %v2709_v19  ;;  %v5243_v54 = vpop.eup %5242  ;;  %v2722_v22 = vadd.f32 1.0, %v5241_v24 }
 0xb33   :  { %5246 = vrcp.f32 %v2715_v52 }
 0xb34   :  { %5248 = vrcp.f32 %v2722_v22 }
 0xb3c   :  { %v5245_v58 = vpop.eup %5244 }
 0xb3d   :  { %v5247_v37 = vpop.eup %5246  ;;  %v2726_v2 = vmul.f32 %v5245_v58, %v5243_v54 }
 0xb3e   :  { %v2725_v57 = vmul.f32 %v5247_v37, %v6894_v46  ;;  %v5249_v53 = vpop.eup %5248 }
 0xb40   :  { %v6936_v17 = vadd.f32 %v2726_v2, %v2725_v57 }
 0xb42   :  { %5250 = vtanh.f32 %v6936_v17 }
 0xb4c   :  { %v5251_v56 = vpop.eup %5250 }
 0xb4d   :  { %v2729_v40 = vmul.f32 %v5251_v56, %v5249_v53 }
 0xb4f   :  { %2730 = vst [vmem:[#allocation3 - $0x5] sm:$0x80] %v2729_v40  ;;  %2796 = vmatmul.mubr.f32.vlgmr.msra.gmra.mrb[22].mxu0 %v2729_v40  ;;  %2867 = vmatmul.mubr.f32.vlgmr.msra.gmra.mrb[22].mxu1 %v2729_v40 }
 0xb50   :  { %4729 = vmatpush1.bf16.msra.mxu0 %v6516_v6  ;;  %4761 = vmatpush1.bf16.msra.mxu1 %v6525_v3 }
 0xb51   :  { %4731 = vmatprep.subr.bf16.mxu0 %v6539_v20  ;;  %4763 = vmatprep.subr.bf16.mxu1 %v6550_v45 }
 0xb52   :  { %2970 = vmatprep.mubr.f32.mxu0 %v5402_v7  ;;  %3041 = vmatprep.mubr.f32.mxu1 %v5402_v7 }
 0xb54   :  { %4733 = vmatpush1.bf16.msra.mxu0 %v6552_v32  ;;  %4765 = vmatpush1.bf16.msra.mxu1 %v6561_v23 }
 0xb55   :  { %4735 = vmatprep.subr.bf16.mxu0 %v6575_v4  ;;  %4767 = vmatprep.subr.bf16.mxu1 %v6586_v18 }
 0xb58   :  { %4737 = vmatpush1.bf16.msra.mxu0 %v6588_v21  ;;  %4769 = vmatpush1.bf16.msra.mxu1 %v6597_v31 }
 0xb59   :  { %4739 = vmatprep.subr.bf16.mxu0 %v6611_v44  ;;  %4771 = vmatprep.subr.bf16.mxu1 %v6622_v59 }
 0xb5c   :  { %4741 = vmatpush1.bf16.msra.mxu0 %v6624_v63  ;;  %4773 = vmatpush1.bf16.msra.mxu1 %v6633_v14 }
 0xb5d   :  { %4743 = vmatprep.subr.bf16.mxu0 %v6646_v33  ;;  %4775 = vmatprep.subr.bf16.mxu1 %v6658_v35 }
 0xb60   :  { %4745 = vmatpush1.bf16.msra.mxu0 %v6660_v27  ;;  %4777 = vmatpush1.bf16.msra.mxu1 %v6672_v30 }
 0xb61   :  { %4747 = vmatprep.subr.bf16.mxu0 %v6684_v60  ;;  %4779 = vmatprep.subr.bf16.mxu1 %v6686_v0 }
 0xb64   :  { %4749 = vmatpush1.bf16.msra.mxu0 %v6698_v49  ;;  %4781 = vmatpush1.bf16.msra.mxu1 %v6711_v12 }
 0xb65   :  { %4751 = vmatprep.subr.bf16.mxu0 %v6713_v15  ;;  %4783 = vmatprep.subr.bf16.mxu1 %v6725_v38 }
 0xb68   :  { %4753 = vmatpush1.bf16.msra.mxu0 %v6737_v55  ;;  %4785 = vmatpush1.bf16.msra.mxu1 %v6741_v5 }
 0xb69   :  { %4755 = vmatprep.subr.bf16.mxu0 %v6755_v29  ;;  %4787 = vmatprep.subr.bf16.mxu1 %v6766_v36 }
 0xb6c   :  { %4757 = vmatpush1.bf16.msra.mxu0 %v6768_v16  ;;  %4789 = vmatpush1.bf16.msra.mxu1 %v6777_v9 }
 0xb6d   :  { %4791 = vmatprep.subr.bf16.mxu0 %v6503_v61  ;;  %4823 = vmatprep.subr.bf16.mxu1 %v6514_v42 }
 0xc22   :  { %v2797_v46 = vpop.f32.mrb[22].mxu0  ;;  %v2868_v13 = vpop.f32.mrb[22].mxu1 }
 0xc23   :  { %v2877_v11 = vadd.f32 %v2797_v46, %v6833_v26  ;;  %v2799_v39 = vpop.f32.mrb[23].mxu0  ;;  %v2870_v62 = vpop.f32.mrb[23].mxu1  ;;  %v2879_v41 = vadd.f32 %v2868_v13, %v6848_v50 }
 0xc24   :  { %v2878_v1 = vadd.f32 %v2799_v39, %v6837_v43  ;;  %v2880_v28 = vadd.f32 %v2870_v62, %v6843_v47 }
 0xc25   :  { %v3794_v8 = vmul.f32 -1.442695, %v2877_v11 }
 0xc26   :  { %v3795_v25 = vmul.f32 -1.442695, %v2878_v1  ;;  %v3796_v34 = vmul.f32 -1.442695, %v2880_v28 }
 0xc27   :  { %5252 = vpow2.f32 %v3794_v8 }
 0xc28   :  { %5254 = vpow2.f32 %v3795_v25 }
 0xc29   :  { %5256 = vpow2.f32 %v3796_v34 }
 0xc2a   :  { %5258 = vtanh.f32 %v2879_v41 }
 0xc31   :  { %v5253_v48 = vpop.eup %5252 }
 0xc32   :  { %v5255_v51 = vpop.eup %5254  ;;  %v2884_v10 = vadd.f32 1.0, %v5253_v48 }
 0xc33   :  { %v2890_v19 = vadd.f32 1.0, %v5255_v51  ;;  %v5257_v52 = vpop.eup %5256 }
 0xc34   :  { %5260 = vrcp.f32 %v2884_v10  ;;  %v5259_v24 = vpop.eup %5258  ;;  %v2897_v2 = vadd.f32 1.0, %v5257_v52 }
 0xc35   :  { %5262 = vrcp.f32 %v2890_v19 }
 0xc36   :  { %5264 = vrcp.f32 %v2897_v2 }
 0xc3e   :  { %v5261_v54 = vpop.eup %5260 }
 0xc3f   :  { %v5263_v58 = vpop.eup %5262  ;;  %v2901_v37 = vmul.f32 %v5261_v54, %v5259_v24 }
 0xc40   :  { %v2900_v22 = vmul.f32 %v5263_v58, %v6936_v17  ;;  %v5265_v53 = vpop.eup %5264 }
 0xc42   :  { %v6978_v57 = vadd.f32 %v2901_v37, %v2900_v22 }
 0xc44   :  { %5266 = vtanh.f32 %v6978_v57 }
 0xc4e   :  { %v5267_v56 = vpop.eup %5266 }
 0xc4f   :  { %v2904_v40 = vmul.f32 %v5267_v56, %v5265_v53 }
 0xc51   :  { %2905 = vst [vmem:[#allocation3 - $0x4] sm:$0x80] %v2904_v40  ;;  %2971 = vmatmul.mubr.f32.vlgmr.msra.gmra.mrb[24].mxu0 %v2904_v40  ;;  %3042 = vmatmul.mubr.f32.vlgmr.msra.gmra.mrb[24].mxu1 %v2904_v40 }
 0xc52   :  { %4793 = vmatpush1.bf16.msra.mxu0 %v6516_v6  ;;  %4825 = vmatpush1.bf16.msra.mxu1 %v6525_v3 }
 0xc53   :  { %4795 = vmatprep.subr.bf16.mxu0 %v6539_v20  ;;  %4827 = vmatprep.subr.bf16.mxu1 %v6550_v45 }
 0xc54   :  { %3145 = vmatprep.mubr.f32.mxu0 %v5402_v7  ;;  %3216 = vmatprep.mubr.f32.mxu1 %v5402_v7 }
 0xc56   :  { %4797 = vmatpush1.bf16.msra.mxu0 %v6552_v32  ;;  %4829 = vmatpush1.bf16.msra.mxu1 %v6561_v23 }
 0xc57   :  { %4799 = vmatprep.subr.bf16.mxu0 %v6575_v4  ;;  %4831 = vmatprep.subr.bf16.mxu1 %v6586_v18 }
 0xc5a   :  { %4801 = vmatpush1.bf16.msra.mxu0 %v6588_v21  ;;  %4833 = vmatpush1.bf16.msra.mxu1 %v6597_v31 }
 0xc5b   :  { %4803 = vmatprep.subr.bf16.mxu0 %v6611_v44  ;;  %4835 = vmatprep.subr.bf16.mxu1 %v6622_v59 }
 0xc5e   :  { %4805 = vmatpush1.bf16.msra.mxu0 %v6624_v63  ;;  %4837 = vmatpush1.bf16.msra.mxu1 %v6633_v14 }
 0xc5f   :  { %4807 = vmatprep.subr.bf16.mxu0 %v6646_v33  ;;  %4839 = vmatprep.subr.bf16.mxu1 %v6658_v35 }
 0xc62   :  { %4809 = vmatpush1.bf16.msra.mxu0 %v6660_v27  ;;  %4841 = vmatpush1.bf16.msra.mxu1 %v6672_v30 }
 0xc63   :  { %4811 = vmatprep.subr.bf16.mxu0 %v6684_v60  ;;  %4843 = vmatprep.subr.bf16.mxu1 %v6686_v0 }
 0xc66   :  { %4813 = vmatpush1.bf16.msra.mxu0 %v6698_v49  ;;  %4845 = vmatpush1.bf16.msra.mxu1 %v6711_v12 }
 0xc67   :  { %4815 = vmatprep.subr.bf16.mxu0 %v6713_v15  ;;  %4847 = vmatprep.subr.bf16.mxu1 %v6725_v38 }
 0xc6a   :  { %4817 = vmatpush1.bf16.msra.mxu0 %v6737_v55  ;;  %4849 = vmatpush1.bf16.msra.mxu1 %v6741_v5 }
 0xc6b   :  { %4819 = vmatprep.subr.bf16.mxu0 %v6755_v29  ;;  %4851 = vmatprep.subr.bf16.mxu1 %v6766_v36 }
 0xc6e   :  { %4821 = vmatpush1.bf16.msra.mxu0 %v6768_v16  ;;  %4853 = vmatpush1.bf16.msra.mxu1 %v6777_v9 }
 0xc6f   :  { %4855 = vmatprep.subr.bf16.mxu0 %v6503_v61  ;;  %4887 = vmatprep.subr.bf16.mxu1 %v6514_v42 }
 0xd24   :  { %v2972_v17 = vpop.f32.mrb[24].mxu0  ;;  %v3043_v46 = vpop.f32.mrb[24].mxu1 }
 0xd25   :  { %v3052_v13 = vadd.f32 %v2972_v17, %v6833_v26  ;;  %v2974_v11 = vpop.f32.mrb[25].mxu0  ;;  %v3045_v39 = vpop.f32.mrb[25].mxu1  ;;  %v3054_v34 = vadd.f32 %v3043_v46, %v6848_v50 }
 0xd26   :  { %v3053_v62 = vadd.f32 %v2974_v11, %v6837_v43  ;;  %v3055_v25 = vadd.f32 %v3045_v39, %v6843_v47 }
 0xd27   :  { %v3797_v1 = vmul.f32 -1.442695, %v3052_v13 }
 0xd28   :  { %v3798_v8 = vmul.f32 -1.442695, %v3053_v62  ;;  %v3799_v28 = vmul.f32 -1.442695, %v3055_v25 }
 0xd29   :  { %5268 = vpow2.f32 %v3797_v1 }
 0xd2a   :  { %5270 = vpow2.f32 %v3798_v8 }
 0xd2b   :  { %5272 = vpow2.f32 %v3799_v28 }
 0xd2c   :  { %5274 = vtanh.f32 %v3054_v34 }
 0xd33   :  { %v5269_v41 = vpop.eup %5268 }
 0xd34   :  { %v5271_v48 = vpop.eup %5270  ;;  %v3059_v51 = vadd.f32 1.0, %v5269_v41 }
 0xd35   :  { %v3065_v10 = vadd.f32 1.0, %v5271_v48  ;;  %v5273_v19 = vpop.eup %5272 }
 0xd36   :  { %5276 = vrcp.f32 %v3059_v51  ;;  %v5275_v52 = vpop.eup %5274  ;;  %v3072_v37 = vadd.f32 1.0, %v5273_v19 }
 0xd37   :  { %5278 = vrcp.f32 %v3065_v10 }
 0xd38   :  { %5280 = vrcp.f32 %v3072_v37 }
 0xd40   :  { %v5277_v24 = vpop.eup %5276 }
 0xd41   :  { %v5279_v54 = vpop.eup %5278  ;;  %v3076_v58 = vmul.f32 %v5277_v24, %v5275_v52 }
 0xd42   :  { %v3075_v2 = vmul.f32 %v5279_v54, %v6978_v57  ;;  %v5281_v53 = vpop.eup %5280 }
 0xd44   :  { %v7020_v22 = vadd.f32 %v3076_v58, %v3075_v2 }
 0xd46   :  { %5282 = vtanh.f32 %v7020_v22 }
 0xd50   :  { %v5283_v56 = vpop.eup %5282 }
 0xd51   :  { %v3079_v40 = vmul.f32 %v5283_v56, %v5281_v53  ;;  %v3612_v56 = vld [vmem:[%s7207_s9 + $0x18] sm:$0xff] }
 0xd53   :  { %3080 = vst [vmem:[#allocation3 - $0x3] sm:$0x80] %v3079_v40  ;;  %3146 = vmatmul.mubr.f32.vlgmr.msra.gmra.mrb[26].mxu0 %v3079_v40  ;;  %3217 = vmatmul.mubr.f32.vlgmr.msra.gmra.mrb[26].mxu1 %v3079_v40 }
 0xd54   :  { %4857 = vmatpush1.bf16.msra.mxu0 %v6516_v6  ;;  %4889 = vmatpush1.bf16.msra.mxu1 %v6525_v3 }
 0xd55   :  { %4859 = vmatprep.subr.bf16.mxu0 %v6539_v20  ;;  %4891 = vmatprep.subr.bf16.mxu1 %v6550_v45 }
 0xd56   :  { %3320 = vmatprep.mubr.f32.mxu0 %v5402_v7  ;;  %3391 = vmatprep.mubr.f32.mxu1 %v5402_v7 }
 0xd58   :  { %4861 = vmatpush1.bf16.msra.mxu0 %v6552_v32  ;;  %4893 = vmatpush1.bf16.msra.mxu1 %v6561_v23 }
 0xd59   :  { %4863 = vmatprep.subr.bf16.mxu0 %v6575_v4  ;;  %4895 = vmatprep.subr.bf16.mxu1 %v6586_v18 }
 0xd5c   :  { %4865 = vmatpush1.bf16.msra.mxu0 %v6588_v21  ;;  %4897 = vmatpush1.bf16.msra.mxu1 %v6597_v31 }
 0xd5d   :  { %4867 = vmatprep.subr.bf16.mxu0 %v6611_v44  ;;  %4899 = vmatprep.subr.bf16.mxu1 %v6622_v59 }
 0xd60   :  { %4869 = vmatpush1.bf16.msra.mxu0 %v6624_v63  ;;  %4901 = vmatpush1.bf16.msra.mxu1 %v6633_v14 }
 0xd61   :  { %4871 = vmatprep.subr.bf16.mxu0 %v6646_v33  ;;  %4903 = vmatprep.subr.bf16.mxu1 %v6658_v35 }
 0xd64   :  { %4873 = vmatpush1.bf16.msra.mxu0 %v6660_v27  ;;  %4905 = vmatpush1.bf16.msra.mxu1 %v6672_v30 }
 0xd65   :  { %4875 = vmatprep.subr.bf16.mxu0 %v6684_v60  ;;  %4907 = vmatprep.subr.bf16.mxu1 %v6686_v0 }
 0xd68   :  { %4877 = vmatpush1.bf16.msra.mxu0 %v6698_v49  ;;  %4909 = vmatpush1.bf16.msra.mxu1 %v6711_v12 }
 0xd69   :  { %4879 = vmatprep.subr.bf16.mxu0 %v6713_v15  ;;  %4911 = vmatprep.subr.bf16.mxu1 %v6725_v38 }
 0xd6c   :  { %4881 = vmatpush1.bf16.msra.mxu0 %v6737_v55  ;;  %4913 = vmatpush1.bf16.msra.mxu1 %v6741_v5 }
 0xd6d   :  { %4883 = vmatprep.subr.bf16.mxu0 %v6755_v29  ;;  %4915 = vmatprep.subr.bf16.mxu1 %v6766_v36 }
 0xd70   :  { %4885 = vmatpush1.bf16.msra.mxu0 %v6768_v16  ;;  %4917 = vmatpush1.bf16.msra.mxu1 %v6777_v9 }
 0xd71   :  { %4919 = vmatprep.subr.bf16.mxu0 %v6503_v61  ;;  %4951 = vmatprep.subr.bf16.mxu1 %v6514_v42 }
 0xe26   :  { %v3147_v57 = vpop.f32.mrb[26].mxu0  ;;  %v3218_v17 = vpop.f32.mrb[26].mxu1 }
 0xe27   :  { %v3227_v46 = vadd.f32 %v3147_v57, %v6833_v26  ;;  %v3149_v13 = vpop.f32.mrb[27].mxu0  ;;  %v3220_v11 = vpop.f32.mrb[27].mxu1  ;;  %v3229_v28 = vadd.f32 %v3218_v17, %v6848_v50  ;;  %v3613_v57 = vld [vmem:[%s7207_s9 + $0x20] sm:$0xff]  ;;  %v3614_v17 = vld [vmem:[%s7207_s9 + $0x28] sm:$0xff] }
 0xe28   :  { %v3228_v39 = vadd.f32 %v3149_v13, %v6837_v43  ;;  %v3230_v8 = vadd.f32 %v3220_v11, %v6843_v47  ;;  %v3615_v13 = vld [vmem:[%s7207_s9 + $0x30] sm:$0xff]  ;;  %v3616_v11 = vld [vmem:[%s7207_s9 + $0x38] sm:$0xff] }
 0xe29   :  { %v3800_v62 = vmul.f32 -1.442695, %v3227_v46  ;;  %v4989_v46 = vpack.c.bf16 %v3614_v17, %v3613_v57 }
 0xe2a   :  { %v3801_v1 = vmul.f32 -1.442695, %v3228_v39  ;;  %v3802_v25 = vmul.f32 -1.442695, %v3230_v8  ;;  %v4992_v39 = vpack.c.bf16 %v3616_v11, %v3615_v13 }
 0xe2b   :  { %5284 = vpow2.f32 %v3800_v62  ;;  %v3617_v62 = vld [vmem:[%s7207_s9 + $0x40] sm:$0xff] }
 0xe2c   :  { %5286 = vpow2.f32 %v3801_v1  ;;  %v3618_v1 = vld [vmem:[%s7207_s9 + $0x48] sm:$0xff] }
 0xe2d   :  { %5288 = vpow2.f32 %v3802_v25  ;;  %v4995_v8 = vpack.c.bf16 %v3618_v1, %v3617_v62  ;;  %v3619_v25 = vld [vmem:[%s7207_s9 + $0x50] sm:$0xff] }
 0xe2e   :  { %5290 = vtanh.f32 %v3229_v28  ;;  %v3620_v28 = vld [vmem:[%s7207_s9 + $0x58] sm:$0xff] }
 0xe35   :  { %v5285_v61 = vpop.eup %5284 }
 0xe36   :  { %v5287_v34 = vpop.eup %5286  ;;  %v3234_v42 = vadd.f32 1.0, %v5285_v61  ;;  %v4998_v61 = vpack.c.bf16 %v3620_v28, %v3619_v25 }
 0xe37   :  { %v3240_v41 = vadd.f32 1.0, %v5287_v34  ;;  %v5289_v48 = vpop.eup %5288  ;;  %v3621_v34 = vld [vmem:[%s7207_s9 + $0x60] sm:$0xff] }
 0xe38   :  { %5292 = vrcp.f32 %v3234_v42  ;;  %v5291_v51 = vpop.eup %5290  ;;  %v3247_v24 = vadd.f32 1.0, %v5289_v48  ;;  %v3622_v42 = vld [vmem:[%s7207_s9 + $0x68] sm:$0xff]  ;;  %v3623_v48 = vld [vmem:[%s7207_s9 + $0x70] sm:$0xff] }
 0xe39   :  { %5294 = vrcp.f32 %v3240_v41  ;;  %v5001_v41 = vpack.c.bf16 %v3622_v42, %v3621_v34 }
 0xe3a   :  { %5296 = vrcp.f32 %v3247_v24 }
 0xe42   :  { %v5293_v10 = vpop.eup %5292 }
 0xe43   :  { %v5295_v19 = vpop.eup %5294  ;;  %v3251_v52 = vmul.f32 %v5293_v10, %v5291_v51  ;;  %v3624_v51 = vld [vmem:[%s7207_s9 + $0x78] sm:$0xff] }
 0xe44   :  { %v3250_v54 = vmul.f32 %v5295_v19, %v7020_v22  ;;  %v5297_v37 = vpop.eup %5296  ;;  %v3611_v22 = vld [vmem:[%s7207_s9 + $0x10] sm:$0xff]  ;;  %v5004_v10 = vpack.c.bf16 %v3624_v51, %v3623_v48 }
 0xe45   :  { %v4986_v40 = vpack.c.bf16 %v3612_v56, %v3611_v22 }
 0xe46   :  { %v7062_v58 = vadd.f32 %v3251_v52, %v3250_v54 }
 0xe48   :  { %5298 = vtanh.f32 %v7062_v58 }
 0xe52   :  { %v5299_v2 = vpop.eup %5298 }
 0xe53   :  { %v3254_v53 = vmul.f32 %v5299_v2, %v5297_v37 }
 0xe55   :  { %3255 = vst [vmem:[#allocation3 - $0x2] sm:$0x80] %v3254_v53  ;;  %3321 = vmatmul.mubr.f32.vlgmr.msra.gmra.mrb[28].mxu0 %v3254_v53  ;;  %3392 = vmatmul.mubr.f32.vlgmr.msra.gmra.mrb[28].mxu1 %v3254_v53 }
 0xe56   :  { %4921 = vmatpush1.bf16.msra.mxu0 %v6516_v6  ;;  %4953 = vmatpush1.bf16.msra.mxu1 %v6525_v3 }
 0xe57   :  { %4923 = vmatprep.subr.bf16.mxu0 %v6539_v20  ;;  %4955 = vmatprep.subr.bf16.mxu1 %v6550_v45 }
 0xe58   :  { %3495 = vmatprep.mubr.f32.mxu0 %v5402_v7  ;;  %3566 = vmatprep.mubr.f32.mxu1 %v5402_v7 }
 0xe5a   :  { %4925 = vmatpush1.bf16.msra.mxu0 %v6552_v32  ;;  %4957 = vmatpush1.bf16.msra.mxu1 %v6561_v23 }
 0xe5b   :  { %4927 = vmatprep.subr.bf16.mxu0 %v6575_v4  ;;  %4959 = vmatprep.subr.bf16.mxu1 %v6586_v18 }
 0xe5e   :  { %4929 = vmatpush1.bf16.msra.mxu0 %v6588_v21  ;;  %4961 = vmatpush1.bf16.msra.mxu1 %v6597_v31 }
 0xe5f   :  { %4931 = vmatprep.subr.bf16.mxu0 %v6611_v44  ;;  %4963 = vmatprep.subr.bf16.mxu1 %v6622_v59 }
 0xe62   :  { %4933 = vmatpush1.bf16.msra.mxu0 %v6624_v63  ;;  %4965 = vmatpush1.bf16.msra.mxu1 %v6633_v14 }
 0xe63   :  { %4935 = vmatprep.subr.bf16.mxu0 %v6646_v33  ;;  %4967 = vmatprep.subr.bf16.mxu1 %v6658_v35 }
 0xe66   :  { %4937 = vmatpush1.bf16.msra.mxu0 %v6660_v27  ;;  %4969 = vmatpush1.bf16.msra.mxu1 %v6672_v30 }
 0xe67   :  { %4939 = vmatprep.subr.bf16.mxu0 %v6684_v60  ;;  %4971 = vmatprep.subr.bf16.mxu1 %v6686_v0 }
 0xe6a   :  { %4941 = vmatpush1.bf16.msra.mxu0 %v6698_v49  ;;  %4973 = vmatpush1.bf16.msra.mxu1 %v6711_v12 }
 0xe6b   :  { %4943 = vmatprep.subr.bf16.mxu0 %v6713_v15  ;;  %4975 = vmatprep.subr.bf16.mxu1 %v6725_v38 }
 0xe6e   :  { %4945 = vmatpush1.bf16.msra.mxu0 %v6737_v55  ;;  %4977 = vmatpush1.bf16.msra.mxu1 %v6741_v5 }
 0xe6f   :  { %4947 = vmatprep.subr.bf16.mxu0 %v6755_v29  ;;  %4979 = vmatprep.subr.bf16.mxu1 %v6766_v36  ;;  %v3609_v29 = vld [vmem:[%s7207_s9] sm:$0xff]  ;;  %v3610_v36 = vld [vmem:[%s7207_s9 + $0x8] sm:$0xff]  ;;  %s5405_s9 = smov [#allocation6]  }
 0xe70   :  { %s3720_s25 = sshll.u32 %s5405_s9, 4  ;;  %s3721_s25 = int_to_ptr.vmem [resolvable:$true] %s3720_s25 }
 0xe71   :  { %s5332_s26 = scalar_lea.vmem %s3721_s25, 128  ;;  %p5337_p1 = scmp.lt.s32.totalorder %s3721_s25, %s3721_s25 }
 0xe72   :  { %4949 = vmatpush1.bf16.msra.mxu0 %v6768_v16  ;;  %4981 = vmatpush1.bf16.msra.mxu1 %v6777_v9  ;;  %v4983_v16 = vpack.c.bf16 %v3610_v36, %v3609_v29  ;;  %v5403_v9 = vmov 0.0|0.0   ;;  %p5333_p0 = scmp.ne.s32.totalorder %s3721_s25, %s5332_s26  ;;  %p5338_p2 = scmp.lt.s32.totalorder %s5332_s26, %s5332_s26 }
 0xe73   :  { %4982 = vmatprep.subr.bf16.mxu0 %v5403_v9 }
 0xe74   :  { %p5339_p3 = por %p5338_p2, %p5337_p1 }
 0xe76   :  { %p5340_p4 = pnand %p5339_p3, %p5333_p0 }
 0xf28   :  { %v3322_v6 = vpop.f32.mrb[28].mxu0  ;;  %v3393_v3 = vpop.f32.mrb[28].mxu1 }
 0xf29   :  { %v3402_v20 = vadd.f32 %v3322_v6, %v6833_v26  ;;  %v3324_v45 = vpop.f32.mrb[29].mxu0  ;;  %v3395_v32 = vpop.f32.mrb[29].mxu1  ;;  %v3404_v44 = vadd.f32 %v3393_v3, %v6848_v50 }
 0xf2a   :  { %v3403_v23 = vadd.f32 %v3324_v45, %v6837_v43  ;;  %v3405_v21 = vadd.f32 %v3395_v32, %v6843_v47 }
 0xf2b   :  { %v3803_v4 = vmul.f32 -1.442695, %v3402_v20 }
 0xf2c   :  { %v3804_v18 = vmul.f32 -1.442695, %v3403_v23  ;;  %v3805_v31 = vmul.f32 -1.442695, %v3405_v21 }
 0xf2d   :  { %5300 = vpow2.f32 %v3803_v4 }
 0xf2e   :  { %5302 = vpow2.f32 %v3804_v18 }
 0xf2f   :  { %5304 = vpow2.f32 %v3805_v31 }
 0xf30   :  { %5306 = vtanh.f32 %v3404_v44 }
 0xf37   :  { %v5301_v59 = vpop.eup %5300 }
 0xf38   :  { %v5303_v63 = vpop.eup %5302  ;;  %v3409_v14 = vadd.f32 1.0, %v5301_v59 }
 0xf39   :  { %v3415_v33 = vadd.f32 1.0, %v5303_v63  ;;  %v5305_v35 = vpop.eup %5304 }
 0xf3a   :  { %5308 = vrcp.f32 %v3409_v14  ;;  %v5307_v27 = vpop.eup %5306  ;;  %v3422_v49 = vadd.f32 1.0, %v5305_v35 }
 0xf3b   :  { %5310 = vrcp.f32 %v3415_v33 }
 0xf3c   :  { %5312 = vrcp.f32 %v3422_v49 }
 0xf44   :  { %v5309_v30 = vpop.eup %5308 }
 0xf45   :  { %v5311_v60 = vpop.eup %5310  ;;  %v3426_v0 = vmul.f32 %v5309_v30, %v5307_v27 }
 0xf46   :  { %v3425_v12 = vmul.f32 %v5311_v60, %v7062_v58  ;;  %v5313_v38 = vpop.eup %5312 }
 0xf48   :  { %v7102_v15 = vadd.f32 %v3426_v0, %v3425_v12 }
 0xf4a   :  { %5314 = vtanh.f32 %v7102_v15 }
 0xf54   :  { %v5315_v55 = vpop.eup %5314 }
 0xf55   :  { %v3429_v5 = vmul.f32 %v5315_v55, %v5313_v38 }
 0xf57   :  { %3430 = vst [vmem:[#allocation3 - $0x1] sm:$0x80] %v3429_v5  ;;  %3496 = vmatmul.mubr.f32.vlgmr.msra.gmra.mrb[30].mxu0 %v3429_v5  ;;  %3567 = vmatmul.mubr.f32.vlgmr.msra.gmra.mrb[30].mxu1 %v3429_v5 }
 0xf58   :  { %4984 = vmatpush3.bf16.msra.mxu0 %v4983_v16  ;;  %3859 = vmatprep.mubr.msk.f32.mxu0 %vm5404_vm1, %v5402_v7 }
 0xf59   :  { %4985 = vmatprep.subr.bf16.mxu0 %v5403_v9 }
 0xf5c   :  { %4987 = vmatpush3.bf16.msra.mxu0 %v4986_v40 }
 0xf5d   :  { %4988 = vmatprep.subr.bf16.mxu0 %v5403_v9 }
 0xf60   :  { %4990 = vmatpush3.bf16.msra.mxu0 %v4989_v46 }
 0xf61   :  { %4991 = vmatprep.subr.bf16.mxu0 %v5403_v9 }
 0xf64   :  { %4993 = vmatpush3.bf16.msra.mxu0 %v4992_v39 }
 0xf65   :  { %4994 = vmatprep.subr.bf16.mxu0 %v5403_v9 }
 0xf68   :  { %4996 = vmatpush3.bf16.msra.mxu0 %v4995_v8 }
 0xf69   :  { %4997 = vmatprep.subr.bf16.mxu0 %v5403_v9 }
 0xf6c   :  { %4999 = vmatpush3.bf16.msra.mxu0 %v4998_v61 }
 0xf6d   :  { %5000 = vmatprep.subr.bf16.mxu0 %v5403_v9 }
 0xf70   :  { %5002 = vmatpush3.bf16.msra.mxu0 %v5001_v41 }
 0xf71   :  { %5003 = vmatprep.subr.bf16.mxu0 %v5403_v9 }
 0xf74   :  { %5005 = vmatpush3.bf16.msra.mxu0 %v5004_v10 }
0x102a   :  { %v3497_v19 = vpop.f32.mrb[30].mxu0  ;;  %v3568_v52 = vpop.f32.mrb[30].mxu1 }
0x102b   :  { %v3577_v24 = vadd.f32 %v3497_v19, %v6833_v26  ;;  %v3499_v54 = vpop.f32.mrb[31].mxu0  ;;  %v3570_v58 = vpop.f32.mrb[31].mxu1  ;;  %v3579_v7 = vadd.f32 %v3568_v52, %v6848_v50 }
0x102c   :  { %v3578_v37 = vadd.f32 %v3499_v54, %v6837_v43  ;;  %v3580_v6 = vadd.f32 %v3570_v58, %v6843_v47 }
0x102d   :  { %v3806_v2 = vmul.f32 -1.442695, %v3577_v24 }
0x102e   :  { %v3807_v53 = vmul.f32 -1.442695, %v3578_v37  ;;  %v3808_v3 = vmul.f32 -1.442695, %v3580_v6 }
0x102f   :  { %5316 = vpow2.f32 %v3806_v2 }
0x1030   :  { %5318 = vpow2.f32 %v3807_v53 }
0x1031   :  { %5320 = vpow2.f32 %v3808_v3 }
0x1032   :  { %5322 = vtanh.f32 %v3579_v7 }
0x1039   :  { %v5317_v20 = vpop.eup %5316 }
0x103a   :  { %v5319_v45 = vpop.eup %5318  ;;  %v3584_v32 = vadd.f32 1.0, %v5317_v20 }
0x103b   :  { %v3590_v23 = vadd.f32 1.0, %v5319_v45  ;;  %v5321_v26 = vpop.eup %5320 }
0x103c   :  { %5324 = vrcp.f32 %v3584_v32  ;;  %v5323_v4 = vpop.eup %5322  ;;  %v3597_v31 = vadd.f32 1.0, %v5321_v26 }
0x103d   :  { %5326 = vrcp.f32 %v3590_v23 }
0x103e   :  { %5328 = vrcp.f32 %v3597_v31 }
0x1046   :  { %v5325_v43 = vpop.eup %5324 }
0x1047   :  { %v5327_v18 = vpop.eup %5326  ;;  %v3601_v21 = vmul.f32 %v5325_v43, %v5323_v4 }
0x1048   :  { %v3600_v44 = vmul.f32 %v5327_v18, %v7102_v15  ;;  %v5329_v50 = vpop.eup %5328 }
0x104a   :  { %v3602_v47 = vadd.f32 %v3601_v21, %v3600_v44 }
0x104c   :  { %5330 = vtanh.f32 %v3602_v47  ;;  %3607 = vst [vmem:[#allocation8] sm:$0xff] %v3602_v47 }
0x1056   :  { %v5331_v59 = vpop.eup %5330 }
0x1057   :  { %v3604_v63 = vmul.f32 %v5331_v59, %v5329_v50 }
0x1059   :  { %3605 = vst [vmem:[#allocation3] sm:$0x80] %v3604_v63  ;;  %3606 = vst [vmem:[#allocation6] sm:$0xff] %v3604_v63 }
0x1060   :  { %v3608_v14 = vld [vmem:[#allocation3] sm:$0xff] }
0x1061   :  { %3860 = vmatmul.mubr.f32.vlgmr.msra.gmra.mrb[32].mxu0 %v3608_v14 }
0x1062   :  { %5343 = shalt.err (!%p5340_p4)
}
0x1063   :  { %s5344_s3 = scalar_lea.hbm %s7210_s12, 128 }
0x1064   :  { %p5345_p5 = scmp.ne.s32.totalorder %s7210_s12, %s5344_s3  ;;  %p5348_p6 = scmp.lt.u32.totalorder %s5344_s3, %s7210_s12 }
0x1066   :  { %p5350_p7 = pnand %p5348_p6, %p5345_p5 }
0x1068   :  { %5353 = shalt.err (!%p5350_p7)
}
0x1069   :  { %3723 = dma.vmem_to_hbm [thread:$0]  %s3721_s25, 128, %s7210_s12, [#allocation7]  }
0x106a   :  { %s5406_s17 = smov [#allocation8]  }
0x106b   :  { %s3730_s18 = sshll.u32 %s5406_s17, 4  ;;  %s3731_s18 = int_to_ptr.vmem [resolvable:$true] %s3730_s18 }
0x106c   :  { %s5354_s19 = scalar_lea.vmem %s3731_s18, 128  ;;  %p5359_p9 = scmp.lt.s32.totalorder %s3731_s18, %s3731_s18 }
0x106d   :  { %p5355_p8 = scmp.ne.s32.totalorder %s3731_s18, %s5354_s19  ;;  %p5360_p10 = scmp.lt.s32.totalorder %s5354_s19, %s5354_s19 }
0x106f   :  { %p5361_p11 = por %p5360_p10, %p5359_p9 }
0x1071   :  { %p5362_p12 = pnand %p5361_p11, %p5355_p8 }
0x1073   :  { %5365 = shalt.err (!%p5362_p12)
}
0x1074   :  { %s5366_s4 = scalar_lea.hbm %s7211_s13, 128 }
0x1075   :  { %p5367_p13 = scmp.ne.s32.totalorder %s7211_s13, %s5366_s4  ;;  %p5370_p0 = scmp.lt.u32.totalorder %s5366_s4, %s7211_s13 }
0x1077   :  { %p5372_p1 = pnand %p5370_p0, %p5367_p13 }
0x1079   :  { %5375 = shalt.err (!%p5372_p1)
}
0x107a   :  { %3733 = dma.vmem_to_hbm [thread:$0]  %s3731_s18, 128, %s7211_s13, [#allocation7]   ;;  %v3809_v33 = vld [vmem:[%s7208_s10] ss:$0 sm:$0xff]  ;;  %vm3702_vm2 = vcmask 146432  }
0x107b   :  { %s5407_s23 = smov [#allocation4]  }
0x107c   :  { %s3710_s24 = sshll.u32 %s5407_s23, 4  ;;  %s3711_s24 = int_to_ptr.vmem [resolvable:$true] %s3710_s24 }
0x107d   :  { %s5376_s9 = scalar_lea.vmem %s3711_s24, 128  ;;  %p5381_p3 = scmp.lt.s32.totalorder %s3711_s24, %s3711_s24 }
0x107e   :  { %p5377_p2 = scmp.ne.s32.totalorder %s3711_s24, %s5376_s9  ;;  %p5382_p4 = scmp.lt.s32.totalorder %s5376_s9, %s5376_s9 }
0x1080   :  { %p5383_p5 = por %p5382_p4, %p5381_p3 }
0x1082   :  { %p5384_p6 = pnand %p5383_p5, %p5377_p2 }
0x1134   :  { %v3698_v35 = vpop.f32.mrb[32].mxu0 }
0x1135   :  { %v3699_v27 = vadd.f32 %v3809_v33, %v3698_v35  ;;  %v3861_v30 = vpop.f32.mrb[33].mxu0 }
0x1137   :  { %3703 = vst.msk [vmem:[#allocation4] sm:$0xff] %vm3702_vm2, %v3699_v27 }
0x1138   :  { %5387 = shalt.err (!%p5384_p6)
}
0x1139   :  { %s5388_s26 = scalar_lea.hbm %s7209_s11, 128 }
0x113a   :  { %p5389_p7 = scmp.ne.s32.totalorder %s7209_s11, %s5388_s26  ;;  %p5392_p8 = scmp.lt.u32.totalorder %s5388_s26, %s7209_s11 }
0x113c   :  { %p5394_p9 = pnand %p5392_p8, %p5389_p7 }
0x113e   :  { %5397 = shalt.err (!%p5394_p9)
}
0x113f   :  { %3713 = dma.vmem_to_hbm [thread:$0]  %s3711_s24, 128, %s7209_s11, [#allocation5]  }
0x1140   :  { %5398 = dma.done.wait [#allocation5], 128  }
0x1141   :  { %5399 = vsyncadd [#allocation5], 4294967168 }
0x1142   :  { %5400 = dma.done.wait [#allocation7], 256  }
0x1143   :  { %5401 = vsyncadd [#allocation7], 4294967040 }
0x1144   :  { %3743 = vsyncpa [#allocation5], 1 }
0x1145   :  { %3744 = vsyncpa [#allocation7], 1 }

// kernel: net_forward.2
= control target key start
LH: loop header
LB: loop body
LE: loop exit
PB: predicated region body
PF: predicated region fallthrough
CT: control target
= control target key end

     0   :  { %v5940_v0 = vmov 0.0|0.0   ;;  %v5941_v4 = vmov 0.0   ;;  %vm176_vm0 = vcmask 924672   ;;  %vm226_vm1 = vcmask 1046528   ;;  %s8487_s1 = inlined_call_operand.vmem [shape: f32[640,64], index: 1, kind: input, shape index: {}]   ;;  %s8488_s0 = inlined_call_operand.vmem [shape: f32[8,24,113], index: 0, kind: input, shape index: {}]   ;;  %s8489_s3 = inlined_call_operand.vmem [shape: f32[640,64], index: 3, kind: input, shape index: {}]   ;;  %s8490_s2 = inlined_call_operand.vmem [shape: f32[1,1,64], index: 2, kind: input, shape index: {}]   ;;  %s8491_s5 = inlined_call_operand.vmem [shape: f32[640,64], index: 5, kind: input, shape index: {}]   ;;  %s8492_s4 = inlined_call_operand.vmem [shape: f32[1,1,64], index: 4, kind: input, shape index: {}]   ;;  %s8493_s7 = inlined_call_operand.vmem [shape: f32[640,64], index: 7, kind: input, shape index: {}]   ;;  %s8494_s6 = inlined_call_operand.vmem [shape: f32[1,1,64], index: 6, kind: input, shape index: {}]   ;;  %s8495_s8 = inlined_call_operand.vmem [shape: f32[1,1,64], index: 8, kind: input, shape index: {}]   ;;  %s8496_s9 = inlined_call_operand.vmem [shape: f32[8,8,64], index: 9, kind: output, shape index: {}]  }
   0x1   :  { %5376 = vmatprep.subr.bf16.mxu0 %v5940_v0  ;;  %v5996_v1 = vld [vmem:[%s8487_s1] sm:$0xff]  ;;  %v6001_v2 = vld [vmem:[%s8487_s1 + $0x8] sm:$0xff]  ;;  %v6006_v3 = vld [vmem:[%s8487_s1 + $0x10] sm:$0xff]  ;;  %33 = vst [vmem:[#allocation2 + $0x8] sm:$0xff] %v5941_v4  ;;  %vm179_vm2 = vcmask 920576   ;;  %vm493_vm3 = vcmask 1043456  }
   0x2   :  { %32 = vst [vmem:[#allocation2] sm:$0xff] %v5941_v4  ;;  %34 = vst [vmem:[#allocation2 + $0x10] sm:$0xff] %v5941_v4  ;;  %v5377_v5 = vpack.c.bf16 %v6001_v2, %v5996_v1  ;;  %v705_v6 = vld [vmem:[%s8487_s1 + $0x18] sm:$0xff]  ;;  %v706_v8 = vld [vmem:[%s8487_s1 + $0x20] sm:$0xff]  ;;  %vm404_vm4 = vcmask 1044480   ;;  %vm315_vm5 = vcmask 1045504  }
   0x3   :  { %35 = vst [vmem:[#allocation2 + $0x18] sm:$0xff] %v5941_v4  ;;  %36 = vst [vmem:[#allocation2 + $0x20] sm:$0xff] %v5941_v4  ;;  %v5380_v7 = vpack.c.bf16 %v705_v6, %v6006_v3  ;;  %v707_v9 = vld [vmem:[%s8487_s1 + $0x28] sm:$0xff]  ;;  %v708_v11 = vld [vmem:[%s8487_s1 + $0x30] sm:$0xff]  ;;  %vm1870_vm6 = vcmask 523264   ;;  %vm2778_vm7 = vcmask 519168  }
   0x4   :  { %37 = vst [vmem:[#allocation2 + $0x28] sm:$0xff] %v5941_v4  ;;  %38 = vst [vmem:[#allocation2 + $0x30] sm:$0xff] %v5941_v4  ;;  %5378 = vmatpush1.bf16.msra.mxu0 %v5377_v5  ;;  %v5383_v10 = vpack.c.bf16 %v707_v9, %v706_v8  ;;  %v709_v12 = vld [vmem:[%s8487_s1 + $0x38] sm:$0xff]  ;;  %v6151_v14 = vld [vmem:[%s8488_s0] sm:$0xff] }
   0x5   :  { %39 = vst [vmem:[#allocation2 + $0x38] sm:$0xff] %v5941_v4  ;;  %40 = vst [vmem:[#allocation2 + $0x40] sm:$0xff] %v5941_v4  ;;  %5379 = vmatprep.subr.bf16.mxu0 %v5940_v0  ;;  %v5386_v13 = vpack.c.bf16 %v709_v12, %v708_v11  ;;  %v6156_v15 = vld [vmem:[%s8487_s1 + $0x40] sm:$0xff]  ;;  %v6161_v16 = vld [vmem:[%s8488_s0 + $0x8] sm:$0xff]  ;;  %v227_v17 = vrot.slane %v6151_v14, 1  ;;  %v405_v18 = vrot.slane %v6151_v14, 3 }
   0x6   :  { %41 = vst [vmem:[#allocation2 + $0x48] sm:$0xff] %v5941_v4  ;;  %42 = vst [vmem:[#allocation2 + $0x50] sm:$0xf] %v5941_v4  ;;  %v316_v19 = vrot.slane %v6151_v14, 2  ;;  %v711_v20 = vld [vmem:[%s8487_s1 + $0x48] sm:$0xff]  ;;  %v228_v21 = vrot.slane %v6161_v16, 1 }
   0x7   :  { %43 = vst [vmem:[#allocation2 + $0x58] sm:$0xf] %v5941_v4  ;;  %44 = vst [vmem:[#allocation2 + $0x60] sm:$0xf] %v5941_v4  ;;  %v6178_v22 = vld [vmem:[%s8488_s0 + $0x10] sm:$0xff]  ;;  %v406_v23 = vrot.slane %v6161_v16, 3  ;;  %v5389_v36 = vpack.c.bf16 %v711_v20, %v6156_v15 }
   0x8   :  { %45 = vst [vmem:[#allocation2 + $0x68] sm:$0xf] %v5941_v4  ;;  %46 = vst [vmem:[#allocation2 + $0x70] sm:$0xf] %v5941_v4  ;;  %5381 = vmatpush1.bf16.msra.mxu0 %v5380_v7  ;;  %v317_v24 = vrot.slane %v6161_v16, 2  ;;  %v230_v25 = vrot.slane %v6178_v22, 1  ;;  %v229_v32 = vsel %vm226_vm1, %v227_v17, %v228_v21 }
   0x9   :  { %47 = vst [vmem:[#allocation2 + $0x78] sm:$0xff] %v5941_v4  ;;  %48 = vst [vmem:[#allocation2 + $0x80] sm:$0xff] %v5941_v4  ;;  %5382 = vmatprep.subr.bf16.mxu0 %v5940_v0  ;;  %v6186_v26 = vld [vmem:[%s8488_s0 + $0x18] sm:$0xff]  ;;  %v6191_v27 = vld [vmem:[%s8488_s0 + $0x20] sm:$0xff]  ;;  %v494_v29 = vrot.slane %v6151_v14, 4  ;;  %v495_v30 = vrot.slane %v6161_v16, 4  ;;  %v407_v41 = vsel %vm404_vm4, %v405_v18, %v406_v23 }
   0xa   :  { %49 = vst [vmem:[#allocation2 + $0x88] sm:$0xff] %v5941_v4  ;;  %50 = vst [vmem:[#allocation2 + $0x90] sm:$0xff] %v5941_v4  ;;  %v6198_v28 = vld [vmem:[%s8488_s0 + $0x28] sm:$0xff]  ;;  %v6205_v31 = vld [vmem:[%s8487_s1 + $0x50] sm:$0xff]  ;;  %v232_v33 = vrot.slane %v6186_v26, 1  ;;  %v233_v34 = vrot.slane %v6191_v27, 1  ;;  %v231_v38 = vsel %vm226_vm1, %v228_v21, %v230_v25  ;;  %v318_v42 = vsel %vm315_vm5, %v316_v19, %v317_v24 }
   0xb   :  { %51 = vst [vmem:[#allocation2 + $0x98] sm:$0xff] %v5941_v4  ;;  %52 = vst [vmem:[#allocation2 + $0xa0] sm:$0xff] %v5941_v4  ;;  %v235_v35 = vrot.slane %v6198_v28, 1  ;;  %v6221_v37 = vld [vmem:[%s8487_s1 + $0x58] sm:$0xff]  ;;  %v6229_v39 = vld [vmem:[%s8488_s0 + $0x30] sm:$0xff]  ;;  %v496_v50 = vsel %vm493_vm3, %v494_v29, %v495_v30  ;;  %v497_v55 = vrot.slane %v6178_v22, 4 }
   0xc   :  { %53 = vst [vmem:[#allocation2 + $0xa8] sm:$0xff] %v5941_v4  ;;  %54 = vst [vmem:[#allocation2 + $0xb0] sm:$0xff] %v5941_v4  ;;  %5384 = vmatpush1.bf16.msra.mxu0 %v5383_v10  ;;  %v6234_v40 = vld [vmem:[%s8488_s0 + $0x38] sm:$0xff]  ;;  %v234_v43 = vsel %vm226_vm1, %v232_v33, %v233_v34  ;;  %v237_v45 = vrot.slane %v6229_v39, 1  ;;  %v6255_v46 = vld [vmem:[%s8488_s0 + $0x40] sm:$0xff]  ;;  %v5392_v51 = vpack.c.bf16 %v6221_v37, %v6205_v31  ;;  %v408_v56 = vrot.slane %v6178_v22, 3 }
   0xd   :  { %55 = vst [vmem:[#allocation2 + $0xb8] sm:$0xff] %v5941_v4  ;;  %56 = vst [vmem:[#allocation2 + $0xc0] sm:$0xff] %v5941_v4  ;;  %5385 = vmatprep.subr.bf16.mxu0 %v5940_v0  ;;  %v236_v44 = vsel %vm226_vm1, %v233_v34, %v235_v35  ;;  %v238_v47 = vrot.slane %v6234_v40, 1  ;;  %v240_v48 = vrot.slane %v6255_v46, 1  ;;  %v6268_v49 = vld [vmem:[%s8488_s0 + $0x48] sm:$0xff]  ;;  %v6276_v52 = vld [vmem:[%s8488_s0 + $0x50] sm:$0xff]  ;;  %v498_v63 = vsel %vm493_vm3, %v495_v30, %v497_v55 }
   0xe   :  { %57 = vst [vmem:[#allocation2 + $0xc8] sm:$0xf] %v5941_v4  ;;  %58 = vst [vmem:[#allocation2 + $0xd0] sm:$0xf] %v5941_v4  ;;  %v242_v53 = vrot.slane %v6268_v49, 1  ;;  %v6284_v54 = vld [vmem:[%s8488_s0 + $0x58] sm:$0xff]  ;;  %v409_v1 = vsel %vm404_vm4, %v406_v23, %v408_v56 }
   0xf   :  { %59 = vst [vmem:[#allocation2 + $0xd8] sm:$0xf] %v5941_v4  ;;  %60 = vst [vmem:[#allocation2 + $0xe0] sm:$0xf] %v5941_v4  ;;  %v239_v57 = vsel %vm226_vm1, %v237_v45, %v238_v47  ;;  %v241_v58 = vsel %vm226_vm1, %v238_v47, %v240_v48  ;;  %v243_v59 = vrot.slane %v6276_v52, 1  ;;  %v245_v60 = vrot.slane %v6284_v54, 1 }
  0x10   :  { %61 = vst [vmem:[#allocation2 + $0xe8] sm:$0xf] %v5941_v4  ;;  %62 = vst [vmem:[#allocation2 + $0xf0] sm:$0xff] %v5941_v4  ;;  %5387 = vmatpush1.bf16.msra.mxu0 %v5386_v13  ;;  %v714_v61 = vld [vmem:[%s8487_s1 + $0x60] sm:$0xff]  ;;  %v715_v62 = vld [vmem:[%s8487_s1 + $0x68] sm:$0xff]  ;;  %v319_v2 = vrot.slane %v6178_v22, 2 }
  0x11   :  { %63 = vst [vmem:[#allocation2 + $0xf8] sm:$0xff] %v5941_v4  ;;  %64 = vst [vmem:[#allocation2 + $0x100] sm:$0xff] %v5941_v4  ;;  %5388 = vmatprep.subr.bf16.mxu0 %v5940_v0  ;;  %v244_v3 = vsel %vm226_vm1, %v242_v53, %v243_v59  ;;  %v410_v5 = vrot.slane %v6186_v26, 3  ;;  %v6325_v7 = vld [vmem:[%s8488_s0 + $0x60] sm:$0xff]  ;;  %v411_v9 = vrot.slane %v6191_v27, 3  ;;  %v321_v10 = vrot.slane %v6186_v26, 2 }
  0x12   :  { %65 = vst [vmem:[#allocation2 + $0x108] sm:$0xff] %v5941_v4  ;;  %66 = vst [vmem:[#allocation2 + $0x110] sm:$0xff] %v5941_v4  ;;  %v320_v8 = vsel %vm315_vm5, %v317_v24, %v319_v2  ;;  %v5395_v11 = vpack.c.bf16 %v715_v62, %v714_v61  ;;  %v322_v12 = vrot.slane %v6191_v27, 2  ;;  %v716_v13 = vld [vmem:[%s8487_s1 + $0x70] sm:$0xff]  ;;  %v247_v15 = vrot.slane %v6325_v7, 1  ;;  %v6353_v19 = vld [vmem:[%s8488_s0 + $0x68] sm:$0xff] }
  0x13   :  { %67 = vst [vmem:[#allocation2 + $0x118] sm:$0xff] %v5941_v4  ;;  %68 = vst [vmem:[#allocation2 + $0x120] sm:$0xff] %v5941_v4  ;;  %v499_v17 = vrot.slane %v6186_v26, 4  ;;  %v500_v18 = vrot.slane %v6191_v27, 4  ;;  %v248_v20 = vrot.slane %v6353_v19, 1  ;;  %v718_v24 = vld [vmem:[%s8487_s1 + $0x80] sm:$0xff] }
  0x14   :  { %69 = vst [vmem:[#allocation2 + $0x128] sm:$0xff] %v5941_v4  ;;  %70 = vst [vmem:[#allocation2 + $0x130] sm:$0xff] %v5941_v4  ;;  %5390 = vmatpush1.bf16.msra.mxu0 %v5389_v36  ;;  %v323_v21 = vsel %vm315_vm5, %v321_v10, %v322_v12  ;;  %v6373_v29 = vld [vmem:[%s8488_s0 + $0x70] sm:$0xff]  ;;  %v502_v30 = vrot.slane %v6198_v28, 4  ;;  %v324_v31 = vrot.slane %v6198_v28, 2  ;;  %v413_v33 = vrot.slane %v6198_v28, 3 }
  0x15   :  { %71 = vst [vmem:[#allocation2 + $0x138] sm:$0xff] %v5941_v4  ;;  %72 = vst [vmem:[#allocation2 + $0x140] sm:$0xf] %v5941_v4  ;;  %5391 = vmatprep.subr.bf16.mxu0 %v5940_v0  ;;  %v501_v23 = vsel %vm493_vm3, %v499_v17, %v500_v18  ;;  %v6386_v34 = vld [vmem:[%s8488_s0 + $0x78] sm:$0xff]  ;;  %v6395_v37 = vld [vmem:[%s8488_s0 + $0x80] sm:$0xff]  ;;  %v415_v10 = vrot.slane %v6229_v39, 3 }
  0x16   :  { %73 = vst [vmem:[#allocation2 + $0x148] sm:$0xf] %v5941_v4  ;;  %74 = vst [vmem:[#allocation2 + $0x150] sm:$0xf] %v5941_v4  ;;  %v6421_v45 = vld [vmem:[%s8488_s0 + $0x88] sm:$0xff]  ;;  %v503_v53 = vsel %vm493_vm3, %v500_v18, %v502_v30  ;;  %v327_v17 = vrot.slane %v6234_v40, 2 }
  0x17   :  { %75 = vst [vmem:[#allocation2 + $0x158] sm:$0xf] %v5941_v4  ;;  %76 = vst [vmem:[#allocation2 + $0x160] sm:$0xf] %v5941_v4  ;;  %v771_v62 = vld [vmem:[%s8487_s1 + $0x228] sm:$0xff] }
  0x18   :  { %77 = vst [vmem:[#allocation2 + $0x168] sm:$0xff] %v5941_v4  ;;  %78 = vst [vmem:[#allocation2 + $0x170] sm:$0xff] %v5941_v4  ;;  %5393 = vmatpush1.bf16.msra.mxu0 %v5392_v51  ;;  %v769_v51 = vld [vmem:[%s8487_s1 + $0x218] sm:$0xff] }
  0x19   :  { %79 = vst [vmem:[#allocation2 + $0x178] sm:$0xff] %v5941_v4  ;;  %80 = vst [vmem:[#allocation2 + $0x180] sm:$0xff] %v5941_v4  ;;  %5394 = vmatprep.subr.bf16.mxu0 %v5940_v0 }
  0x1a   :  { %81 = vst [vmem:[#allocation2 + $0x188] sm:$0xff] %v5941_v4  ;;  %82 = vst [vmem:[#allocation2 + $0x190] sm:$0xff] %v5941_v4 }
  0x1b   :  { %83 = vst [vmem:[#allocation2 + $0x198] sm:$0xff] %v5941_v4  ;;  %84 = vst [vmem:[#allocation2 + $0x1a0] sm:$0xff] %v5941_v4 }
  0x1c   :  { %85 = vst [vmem:[#allocation2 + $0x1a8] sm:$0xff] %v5941_v4  ;;  %86 = vst [vmem:[#allocation2 + $0x1b0] sm:$0xff] %v5941_v4  ;;  %5396 = vmatpush1.bf16.msra.mxu0 %v5395_v11  ;;  %v416_v11 = vrot.slane %v6234_v40, 3 }
  0x1d   :  { %87 = vst [vmem:[#allocation2 + $0x1b8] sm:$0xf] %v5941_v4  ;;  %88 = vst [vmem:[#allocation2 + $0x1c0] sm:$0xf] %v5941_v4  ;;  %5397 = vmatprep.subr.bf16.mxu0 %v5940_v0 }
  0x1e   :  { %89 = vst [vmem:[#allocation2 + $0x1c8] sm:$0xf] %v5941_v4  ;;  %90 = vst [vmem:[#allocation2 + $0x1d0] sm:$0xf] %v5941_v4 }
  0x1f   :  { %91 = vst [vmem:[#allocation2 + $0x1d8] sm:$0xf] %v5941_v4  ;;  %92 = vst [vmem:[#allocation2 + $0x1e0] sm:$0xff] %v5941_v4 }
  0x20   :  { %93 = vst [vmem:[#allocation2 + $0x1e8] sm:$0xff] %v5941_v4  ;;  %94 = vst [vmem:[#allocation2 + $0x1f0] sm:$0xff] %v5941_v4 }
  0x21   :  { %95 = vst [vmem:[#allocation2 + $0x1f8] sm:$0xff] %v5941_v4  ;;  %96 = vst [vmem:[#allocation2 + $0x200] sm:$0xff] %v5941_v4 }
  0x22   :  { %97 = vst [vmem:[#allocation2 + $0x208] sm:$0xff] %v5941_v4  ;;  %98 = vst [vmem:[#allocation2 + $0x210] sm:$0xff] %v5941_v4 }
  0x23   :  { %99 = vst [vmem:[#allocation2 + $0x218] sm:$0xff] %v5941_v4  ;;  %100 = vst [vmem:[#allocation2 + $0x220] sm:$0xff] %v5941_v4 }
  0x24   :  { %101 = vst [vmem:[#allocation2 + $0x228] sm:$0xff] %v5941_v4  ;;  %102 = vst [vmem:[#allocation2 + $0x230] sm:$0xf] %v5941_v4 }
  0x25   :  { %103 = vst [vmem:[#allocation2 + $0x238] sm:$0xf] %v5941_v4  ;;  %104 = vst [vmem:[#allocation2 + $0x240] sm:$0xf] %v5941_v4 }
  0x26   :  { %105 = vst [vmem:[#allocation2 + $0x248] sm:$0xf] %v5941_v4  ;;  %106 = vst [vmem:[#allocation2 + $0x250] sm:$0xf] %v5941_v4 }
  0x27   :  { %107 = vst [vmem:[#allocation2 + $0x258] sm:$0xff] %v5941_v4  ;;  %108 = vst [vmem:[#allocation2 + $0x260] sm:$0xff] %v5941_v4 }
  0x28   :  { %109 = vst [vmem:[#allocation2 + $0x268] sm:$0xff] %v5941_v4  ;;  %110 = vst [vmem:[#allocation2 + $0x270] sm:$0xff] %v5941_v4 }
  0x29   :  { %111 = vst [vmem:[#allocation2 + $0x278] sm:$0xff] %v5941_v4  ;;  %112 = vst [vmem:[#allocation2 + $0x280] sm:$0xff] %v5941_v4 }
  0x2a   :  { %113 = vst [vmem:[#allocation2 + $0x288] sm:$0xff] %v5941_v4  ;;  %114 = vst [vmem:[#allocation2 + $0x290] sm:$0xff] %v5941_v4 }
  0x2b   :  { %115 = vst [vmem:[#allocation2 + $0x298] sm:$0xff] %v5941_v4  ;;  %116 = vst [vmem:[#allocation2 + $0x2a0] sm:$0xff] %v5941_v4 }
  0x2c   :  { %117 = vst [vmem:[#allocation2 + $0x2a8] sm:$0xf] %v5941_v4  ;;  %118 = vst [vmem:[#allocation2 + $0x2b0] sm:$0xf] %v5941_v4 }
  0x2d   :  { %119 = vst [vmem:[#allocation2 + $0x2b8] sm:$0xf] %v5941_v4  ;;  %120 = vst [vmem:[#allocation2 + $0x2c0] sm:$0xf] %v5941_v4 }
  0x2e   :  { %121 = vst [vmem:[#allocation2 + $0x2c8] sm:$0xf] %v5941_v4  ;;  %122 = vst [vmem:[#allocation2 + $0x2d0] sm:$0xff] %v5941_v4 }
  0x2f   :  { %123 = vst [vmem:[#allocation2 + $0x2d8] sm:$0xff] %v5941_v4  ;;  %124 = vst [vmem:[#allocation2 + $0x2e0] sm:$0xff] %v5941_v4 }
  0x30   :  { %125 = vst [vmem:[#allocation2 + $0x2e8] sm:$0xff] %v5941_v4  ;;  %126 = vst [vmem:[#allocation2 + $0x2f0] sm:$0xff] %v5941_v4 }
  0x31   :  { %127 = vst [vmem:[#allocation2 + $0x2f8] sm:$0xff] %v5941_v4  ;;  %128 = vst [vmem:[#allocation2 + $0x300] sm:$0xff] %v5941_v4 }
  0x32   :  { %129 = vst [vmem:[#allocation2 + $0x308] sm:$0xff] %v5941_v4  ;;  %130 = vst [vmem:[#allocation2 + $0x310] sm:$0xff] %v5941_v4 }
  0x33   :  { %131 = vst [vmem:[#allocation2 + $0x318] sm:$0xff] %v5941_v4  ;;  %132 = vst [vmem:[#allocation2 + $0x320] sm:$0xf] %v5941_v4 }
  0x34   :  { %133 = vst [vmem:[#allocation2 + $0x328] sm:$0xf] %v5941_v4  ;;  %134 = vst [vmem:[#allocation2 + $0x330] sm:$0xf] %v5941_v4 }
  0x35   :  { %135 = vst [vmem:[#allocation2 + $0x338] sm:$0xf] %v5941_v4  ;;  %136 = vst [vmem:[#allocation2 + $0x340] sm:$0xf] %v5941_v4 }
  0x36   :  { %137 = vst [vmem:[#allocation2 + $0x348] sm:$0xff] %v5941_v4  ;;  %138 = vst [vmem:[#allocation2 + $0x350] sm:$0xff] %v5941_v4 }
  0x37   :  { %139 = vst [vmem:[#allocation2 + $0x358] sm:$0xff] %v5941_v4  ;;  %140 = vst [vmem:[#allocation2 + $0x360] sm:$0xff] %v5941_v4 }
  0x38   :  { %141 = vst [vmem:[#allocation2 + $0x368] sm:$0xff] %v5941_v4  ;;  %142 = vst [vmem:[#allocation2 + $0x370] sm:$0xff] %v5941_v4 }
  0x39   :  { %143 = vst [vmem:[#allocation2 + $0x378] sm:$0xff] %v5941_v4  ;;  %144 = vst [vmem:[#allocation2 + $0x380] sm:$0xff] %v5941_v4 }
  0x3a   :  { %145 = vst [vmem:[#allocation2 + $0x388] sm:$0xff] %v5941_v4  ;;  %146 = vst [vmem:[#allocation2 + $0x390] sm:$0xff] %v5941_v4 }
  0x3b   :  { %147 = vst [vmem:[#allocation2 + $0x398] sm:$0xf] %v5941_v4  ;;  %148 = vst [vmem:[#allocation2 + $0x3a0] sm:$0xf] %v5941_v4 }
  0x3c   :  { %149 = vst [vmem:[#allocation2 + $0x3a8] sm:$0xf] %v5941_v4  ;;  %150 = vst [vmem:[#allocation2 + $0x3b0] sm:$0xf] %v5941_v4 }
  0x3d   :  { %151 = vst [vmem:[#allocation2 + $0x3b8] sm:$0xf] %v5941_v4  ;;  %177 = vst.msk [vmem:[#allocation2] sm:$0xff] %vm176_vm0, %v6151_v14  ;;  %v246_v4 = vsel %vm226_vm1, %v243_v59, %v245_v60  ;;  %v717_v14 = vld [vmem:[%s8487_s1 + $0x78] sm:$0xff]  ;;  %v414_v59 = vsel %vm404_vm4, %v411_v9, %v413_v33 }
  0x3e   :  { %178 = vst.msk [vmem:[#allocation2 + $0x28] sm:$0xff] %vm176_vm0, %v6161_v16  ;;  %181 = vst.msk [vmem:[#allocation2 + $0x78] sm:$0xff] %vm176_vm0, %v6186_v26  ;;  %v412_v16 = vsel %vm404_vm4, %v410_v5, %v411_v9  ;;  %v249_v26 = vsel %vm226_vm1, %v247_v15, %v248_v20  ;;  %v773_v15 = vld [vmem:[%s8487_s1 + $0x238] sm:$0xff] }
  0x3f   :  { %180 = vst.msk [vmem:[#allocation2 + $0x50] sm:$0xf] %vm179_vm2, %v6178_v22  ;;  %183 = vst.msk [vmem:[#allocation2 + $0xc8] sm:$0xf] %vm179_vm2, %v6198_v28  ;;  %v5398_v22 = vpack.c.bf16 %v717_v14, %v716_v13  ;;  %v252_v28 = vrot.slane %v6386_v34, 1  ;;  %v772_v14 = vld [vmem:[%s8487_s1 + $0x230] sm:$0xff] }
  0x40   :  { %182 = vst.msk [vmem:[#allocation2 + $0xa0] sm:$0xff] %vm176_vm0, %v6191_v27  ;;  %291 = vst.msk [vmem:[#allocation2 + $0x8] sm:$0xff] %vm176_vm0, %v229_v32  ;;  %v250_v32 = vrot.slane %v6373_v29, 1  ;;  %v6456_v27 = vld [vmem:[%s8488_s0 + $0x98] sm:$0xff] }
  0x41   :  { %293 = vst.msk [vmem:[#allocation2 + $0x58] sm:$0xf] %vm179_vm2, %v230_v25  ;;  %296 = vst.msk [vmem:[#allocation2 + $0xd0] sm:$0xf] %vm179_vm2, %v235_v35  ;;  %v719_v25 = vld [vmem:[%s8487_s1 + $0x88] sm:$0xff]  ;;  %5399 = vmatpush1.bf16.msra.mxu0 %v5398_v22  ;;  %v724_v22 = vld [vmem:[%s8487_s1 + $0xb0] sm:$0xff] }
  0x42   :  { %292 = vst.msk [vmem:[#allocation2 + $0x30] sm:$0xff] %vm176_vm0, %v231_v38  ;;  %184 = vst.msk [vmem:[#allocation2 + $0xf0] sm:$0xff] %vm176_vm0, %v6229_v39  ;;  %v5401_v35 = vpack.c.bf16 %v719_v25, %v718_v24  ;;  %v251_v36 = vsel %vm226_vm1, %v248_v20, %v250_v32  ;;  %v766_v38 = vld [vmem:[%s8487_s1 + $0x200] sm:$0xff]  ;;  %5400 = vmatprep.subr.bf16.mxu0 %v5940_v0  ;;  %v417_v20 = vsel %vm404_vm4, %v415_v10, %v416_v11 }
  0x43   :  { %185 = vst.msk [vmem:[#allocation2 + $0x118] sm:$0xff] %vm176_vm0, %v6234_v40  ;;  %469 = vst.msk [vmem:[#allocation2 + $0x18] sm:$0xff] %vm176_vm0, %v407_v41  ;;  %v767_v41 = vld [vmem:[%s8487_s1 + $0x208] sm:$0xff]  ;;  %v329_v25 = vrot.slane %v6255_v46, 2  ;;  %v512_v10 = vrot.slane %v6284_v54, 4 }
  0x44   :  { %380 = vst.msk [vmem:[#allocation2 + $0x10] sm:$0xff] %vm176_vm0, %v318_v42  ;;  %294 = vst.msk [vmem:[#allocation2 + $0x80] sm:$0xff] %vm176_vm0, %v234_v43  ;;  %v720_v42 = vld [vmem:[%s8487_s1 + $0x90] sm:$0xff]  ;;  %v721_v43 = vld [vmem:[%s8487_s1 + $0x98] sm:$0xff]  ;;  %v5472_v47 = vpack.c.bf16 %v767_v41, %v766_v38 }
  0x45   :  { %295 = vst.msk [vmem:[#allocation2 + $0xa8] sm:$0xff] %vm176_vm0, %v236_v44  ;;  %187 = vst.msk [vmem:[#allocation2 + $0x168] sm:$0xff] %vm176_vm0, %v6268_v49  ;;  %v253_v44 = vrot.slane %v6395_v37, 1  ;;  %5402 = vmatpush1.bf16.msra.mxu0 %v5401_v35  ;;  %v774_v35 = vld [vmem:[%s8487_s1 + $0x240] sm:$0xff]  ;;  %v330_v41 = vsel %vm315_vm5, %v327_v17, %v329_v25 }
  0x46   :  { %186 = vst.msk [vmem:[#allocation2 + $0x140] sm:$0xf] %vm179_vm2, %v6255_v46  ;;  %299 = vst.msk [vmem:[#allocation2 + $0x148] sm:$0xf] %vm179_vm2, %v240_v48  ;;  %v255_v48 = vrot.slane %v6421_v45, 1  ;;  %5473 = vmatprep.subr.bf16.mxu1 %v5472_v47  ;;  %5403 = vmatprep.subr.bf16.mxu0 %v5940_v0 }
  0x47   :  { %558 = vst.msk [vmem:[#allocation2 + $0x20] sm:$0xff] %vm176_vm0, %v496_v50  ;;  %188 = vst.msk [vmem:[#allocation2 + $0x190] sm:$0xff] %vm176_vm0, %v6276_v52  ;;  %v583_v6 = vld [vmem:[#allocation2 + $0x8] sm:$0xff]  ;;  %v768_v50 = vld [vmem:[%s8487_s1 + $0x210] sm:$0xff]  ;;  %5475 = vmatpush3.bf16.msra.mxu1 %v5472_v47 }
  0x48   :  { %189 = vst.msk [vmem:[#allocation2 + $0x1b8] sm:$0xf] %vm179_vm2, %v6284_v54  ;;  %560 = vst.msk [vmem:[#allocation2 + $0x70] sm:$0xf] %vm179_vm2, %v497_v55  ;;  %1275 = vmatprep.mubr.f32.mxu0 %v583_v6  ;;  %v254_v55 = vsel %vm226_vm1, %v252_v28, %v253_v44  ;;  %v256_v61 = vsel %vm226_vm1, %v253_v44, %v255_v48  ;;  %v727_v44 = vld [vmem:[%s8487_s1 + $0xc8] sm:$0xff] }
  0x49   :  { %297 = vst.msk [vmem:[#allocation2 + $0xf8] sm:$0xff] %vm176_vm0, %v239_v57  ;;  %298 = vst.msk [vmem:[#allocation2 + $0x120] sm:$0xff] %vm176_vm0, %v241_v58  ;;  %v770_v57 = vld [vmem:[%s8487_s1 + $0x220] sm:$0xff]  ;;  %v325_v58 = vsel %vm315_vm5, %v322_v12, %v324_v31  ;;  %v326_v12 = vrot.slane %v6229_v39, 2 }
  0x4a   :  { %471 = vst.msk [vmem:[#allocation2 + $0x68] sm:$0xf] %vm179_vm2, %v408_v56  ;;  %302 = vst.msk [vmem:[#allocation2 + $0x1c0] sm:$0xf] %vm179_vm2, %v245_v60  ;;  %v5476_v56 = vpack.c.bf16 %v769_v51, %v768_v50  ;;  %v5404_v60 = vpack.c.bf16 %v721_v43, %v720_v42  ;;  %v5480_v5 = vpack.c.bf16 %v771_v62, %v770_v57  ;;  %v726_v43 = vld [vmem:[%s8487_s1 + $0xc0] sm:$0xff]  ;;  %v6561_v51 = vld [vmem:[%s8488_s0 + $0xb8] sm:$0xff] }
  0x4b   :  { %559 = vst.msk [vmem:[#allocation2 + $0x48] sm:$0xff] %vm176_vm0, %v498_v63  ;;  %470 = vst.msk [vmem:[#allocation2 + $0x40] sm:$0xff] %vm176_vm0, %v409_v1  ;;  %v6451_v63 = vld [vmem:[%s8488_s0 + $0x90] sm:$0xff]  ;;  %v504_v1 = vrot.slane %v6229_v39, 4  ;;  %v328_v24 = vsel %vm315_vm5, %v326_v12, %v327_v17  ;;  %v265_v57 = vrot.slane %v6561_v51, 1  ;;  %v421_v62 = vrot.slane %v6276_v52, 3 }
  0x4c   :  { %300 = vst.msk [vmem:[#allocation2 + $0x170] sm:$0xff] %vm176_vm0, %v244_v3  ;;  %301 = vst.msk [vmem:[#allocation2 + $0x198] sm:$0xff] %vm176_vm0, %v246_v4  ;;  %v722_v3 = vld [vmem:[%s8487_s1 + $0xa0] sm:$0xff]  ;;  %v723_v4 = vld [vmem:[%s8487_s1 + $0xa8] sm:$0xff]  ;;  %v257_v6 = vrot.slane %v6451_v63, 1  ;;  %5477 = vmatprep.subr.bf16.mxu1 %v5476_v56  ;;  %5405 = vmatpush1.bf16.msra.mxu0 %v5404_v60 }
  0x4d   :  { %382 = vst.msk [vmem:[#allocation2 + $0x60] sm:$0xf] %vm179_vm2, %v319_v2  ;;  %192 = vst.msk [vmem:[#allocation2 + $0x230] sm:$0xf] %vm179_vm2, %v6373_v29  ;;  %v505_v2 = vrot.slane %v6234_v40, 4  ;;  %v5407_v39 = vpack.c.bf16 %v723_v4, %v722_v3  ;;  %5406 = vmatprep.subr.bf16.mxu0 %v5940_v0  ;;  %5479 = vmatpush3.bf16.msra.mxu1 %v5476_v56  ;;  %v777_v56 = vld [vmem:[%s8487_s1 + $0x258] sm:$0xff] }
  0x4e   :  { %190 = vst.msk [vmem:[#allocation2 + $0x1e0] sm:$0xff] %vm176_vm0, %v6325_v7  ;;  %381 = vst.msk [vmem:[#allocation2 + $0x38] sm:$0xff] %vm176_vm0, %v320_v8  ;;  %v258_v8 = vrot.slane %v6456_v27, 1  ;;  %5481 = vmatprep.subr.bf16.mxu1 %v5480_v5  ;;  %v331_v4 = vrot.slane %v6268_v49, 2  ;;  %v779_v12 = vld [vmem:[%s8487_s1 + $0x268] sm:$0xff] }
  0x4f   :  { %472 = vst.msk [vmem:[#allocation2 + $0x90] sm:$0xff] %vm176_vm0, %v412_v16  ;;  %191 = vst.msk [vmem:[#allocation2 + $0x208] sm:$0xff] %vm176_vm0, %v6353_v19  ;;  %v506_v9 = vsel %vm493_vm3, %v504_v1, %v505_v2  ;;  %v6492_v16 = vld [vmem:[%s8488_s0 + $0xa0] sm:$0xff]  ;;  %v728_v1 = vld [vmem:[%s8487_s1 + $0xd0] sm:$0xff] }
  0x50   :  { %383 = vst.msk [vmem:[#allocation2 + $0x88] sm:$0xff] %vm176_vm0, %v323_v21  ;;  %561 = vst.msk [vmem:[#allocation2 + $0x98] sm:$0xff] %vm176_vm0, %v501_v23  ;;  %v259_v13 = vsel %vm226_vm1, %v257_v6, %v258_v8  ;;  %v260_v18 = vrot.slane %v6492_v16, 1  ;;  %v418_v21 = vrot.slane %v6255_v46, 3  ;;  %v725_v23 = vld [vmem:[%s8487_s1 + $0xb8] sm:$0xff]  ;;  %5408 = vmatpush1.bf16.msra.mxu0 %v5407_v39  ;;  %v731_v17 = vld [vmem:[%s8487_s1 + $0xe8] sm:$0xff] }
  0x51   :  { %303 = vst.msk [vmem:[#allocation2 + $0x1e8] sm:$0xff] %vm176_vm0, %v249_v26  ;;  %193 = vst.msk [vmem:[#allocation2 + $0x258] sm:$0xff] %vm176_vm0, %v6386_v34  ;;  %v507_v26 = vrot.slane %v6255_v46, 4  ;;  %v5410_v42 = vpack.c.bf16 %v725_v23, %v724_v22  ;;  %5409 = vmatprep.subr.bf16.mxu0 %v5940_v0  ;;  %5483 = vmatpush3.bf16.msra.mxu1 %v5480_v5  ;;  %v332_v5 = vrot.slane %v6276_v52, 2  ;;  %v6626_v22 = vld [vmem:[%s8487_s1 + $0xf8] sm:$0xff]  ;;  %v6631_v23 = vld [vmem:[%s8487_s1 + $0x100] sm:$0xff] }
  0x52   :  { %563 = vst.msk [vmem:[#allocation2 + $0xe8] sm:$0xf] %vm179_vm2, %v502_v30  ;;  %385 = vst.msk [vmem:[#allocation2 + $0xd8] sm:$0xf] %vm179_vm2, %v324_v31  ;;  %v5484_v30 = vpack.c.bf16 %v773_v15, %v772_v14  ;;  %v261_v31 = vsel %vm226_vm1, %v258_v8, %v260_v18  ;;  %v419_v46 = vsel %vm404_vm4, %v416_v11, %v418_v21  ;;  %v334_v8 = vrot.slane %v6284_v54, 2  ;;  %v778_v11 = vld [vmem:[%s8487_s1 + $0x260] sm:$0xff] }
  0x53   :  { %305 = vst.msk [vmem:[#allocation2 + $0x238] sm:$0xf] %vm179_vm2, %v250_v32  ;;  %474 = vst.msk [vmem:[#allocation2 + $0xe0] sm:$0xf] %vm179_vm2, %v413_v33  ;;  %v6518_v32 = vld [vmem:[%s8488_s0 + $0xa8] sm:$0xff]  ;;  %v6523_v33 = vld [vmem:[%s8488_s0 + $0xb0] sm:$0xff]  ;;  %v508_v47 = vsel %vm493_vm3, %v505_v2, %v507_v26 }
  0x54   :  { %304 = vst.msk [vmem:[#allocation2 + $0x210] sm:$0xff] %vm176_vm0, %v251_v36  ;;  %194 = vst.msk [vmem:[#allocation2 + $0x280] sm:$0xff] %vm176_vm0, %v6395_v37  ;;  %v775_v36 = vld [vmem:[%s8487_s1 + $0x248] sm:$0xff]  ;;  %v262_v28 = vrot.slane %v6518_v32, 1  ;;  %v263_v38 = vrot.slane %v6523_v33, 1  ;;  %5485 = vmatprep.subr.bf16.mxu1 %v5484_v30  ;;  %5411 = vmatpush1.bf16.msra.mxu0 %v5410_v42  ;;  %v729_v2 = vld [vmem:[%s8487_s1 + $0xd8] sm:$0xff] }
  0x55   :  { %195 = vst.msk [vmem:[#allocation2 + $0x2a8] sm:$0xf] %vm179_vm2, %v6421_v45  ;;  %308 = vst.msk [vmem:[#allocation2 + $0x2b0] sm:$0xf] %vm179_vm2, %v255_v48  ;;  %v509_v48 = vrot.slane %v6268_v49, 4  ;;  %v5488_v40 = vpack.c.bf16 %v775_v36, %v774_v35  ;;  %5412 = vmatprep.subr.bf16.mxu0 %v5940_v0  ;;  %5487 = vmatpush3.bf16.msra.mxu1 %v5484_v30  ;;  %v426_v14 = vrot.slane %v6353_v19, 3 }
  0x56   :  { %562 = vst.msk [vmem:[#allocation2 + $0xc0] sm:$0xff] %vm176_vm0, %v503_v53  ;;  %306 = vst.msk [vmem:[#allocation2 + $0x260] sm:$0xff] %vm176_vm0, %v254_v55  ;;  %v264_v50 = vsel %vm226_vm1, %v262_v28, %v263_v38  ;;  %v510_v53 = vrot.slane %v6276_v52, 4  ;;  %v776_v55 = vld [vmem:[%s8487_s1 + $0x250] sm:$0xff]  ;;  %v333_v52 = vsel %vm315_vm5, %v331_v4, %v332_v5  ;;  %v5416_v15 = vpack.c.bf16 %v729_v2, %v728_v1  ;;  %v6656_v36 = vld [vmem:[#allocation2 + $0xa0] sm:$0xff] }
  0x57   :  { %384 = vst.msk [vmem:[#allocation2 + $0xb0] sm:$0xff] %vm176_vm0, %v325_v58  ;;  %473 = vst.msk [vmem:[#allocation2 + $0xb8] sm:$0xff] %vm176_vm0, %v414_v59  ;;  %v5413_v58 = vpack.c.bf16 %v727_v44, %v726_v43  ;;  %v266_v59 = vsel %vm226_vm1, %v263_v38, %v265_v57  ;;  %v5492_v3 = vpack.c.bf16 %v777_v56, %v776_v55  ;;  %5489 = vmatprep.subr.bf16.mxu1 %v5488_v40  ;;  %v6647_v30 = vld [vmem:[%s8487_s1 + $0x110] sm:$0xff]  ;;  %v781_v38 = vld [vmem:[%s8487_s1 + $0x278] sm:$0xff] }
  0x58   :  { %307 = vst.msk [vmem:[#allocation2 + $0x288] sm:$0xff] %vm176_vm0, %v256_v61  ;;  %196 = vst.msk [vmem:[#allocation2 + $0x2d0] sm:$0xff] %vm176_vm0, %v6451_v63  ;;  %v511_v60 = vsel %vm493_vm3, %v509_v48, %v510_v53  ;;  %v420_v61 = vrot.slane %v6268_v49, 3  ;;  %v586_v49 = vld [vmem:[#allocation2 + $0x20] sm:$0xff]  ;;  %v780_v28 = vld [vmem:[%s8487_s1 + $0x270] sm:$0xff] }
  0x59   :  { %197 = vst.msk [vmem:[#allocation2 + $0x2f8] sm:$0xff] %vm176_vm0, %v6456_v27  ;;  %564 = vst.msk [vmem:[#allocation2 + $0x110] sm:$0xff] %vm176_vm0, %v506_v9  ;;  %v423_v9 = vrot.slane %v6284_v54, 3  ;;  %5414 = vmatpush1.bf16.msra.mxu0 %v5413_v58  ;;  %v730_v54 = vld [vmem:[%s8487_s1 + $0xe0] sm:$0xff]  ;;  %v912_v39 = vcombine.high %v586_v49, %v586_v49  ;;  %5491 = vmatpush3.bf16.msra.mxu1 %v5488_v40  ;;  %v6664_v42 = vld [vmem:[#allocation2 + $0xa8] sm:$0xff] }
  0x5a   :  { %309 = vst.msk [vmem:[#allocation2 + $0x2d8] sm:$0xff] %vm176_vm0, %v259_v13  ;;  %475 = vst.msk [vmem:[#allocation2 + $0x108] sm:$0xff] %vm176_vm0, %v417_v20  ;;  %v422_v6 = vsel %vm404_vm4, %v420_v61, %v421_v62  ;;  %v425_v13 = vrot.slane %v6325_v7, 3  ;;  %5415 = vmatprep.subr.bf16.mxu0 %v5940_v0  ;;  %5493 = vmatprep.subr.bf16.mxu1 %v5492_v3  ;;  %v6669_v43 = vld [vmem:[%s8487_s1 + $0x120] sm:$0xff]  ;;  %v6674_v44 = vld [vmem:[%s8487_s1 + $0x128] sm:$0xff]  ;;  %v925_v1 = vcombine.low %v6656_v36, %v6664_v42 }
  0x5b   :  { %198 = vst.msk [vmem:[#allocation2 + $0x320] sm:$0xf] %vm179_vm2, %v6492_v16  ;;  %311 = vst.msk [vmem:[#allocation2 + $0x328] sm:$0xf] %vm179_vm2, %v260_v18  ;;  %v335_v18 = vsel %vm315_vm5, %v332_v5, %v334_v8  ;;  %v424_v20 = vsel %vm404_vm4, %v421_v62, %v423_v9  ;;  %v1009_v35 = vcombine.low %v586_v49, %v912_v39  ;;  %v608_v48 = vld [vmem:[#allocation2 + $0xd0] sm:$0xf] }
  0x5c   :  { %386 = vst.msk [vmem:[#allocation2 + $0x100] sm:$0xff] %vm176_vm0, %v328_v24  ;;  %310 = vst.msk [vmem:[#allocation2 + $0x300] sm:$0xff] %vm176_vm0, %v261_v31  ;;  %v513_v24 = vsel %vm493_vm3, %v510_v53, %v512_v10  ;;  %v6652_v31 = vld [vmem:[%s8487_s1 + $0x118] sm:$0xff]  ;;  %v591_v40 = vld [vmem:[#allocation2 + $0x48] sm:$0xff]  ;;  %v5431_v49 = vpack.c.bf16 %v6674_v44, %v6669_v43  ;;  %v440_v43 = vrot.slane %v6518_v32, 3 }
  0x5d   :  { %477 = vst.msk [vmem:[#allocation2 + $0x158] sm:$0xf] %vm179_vm2, %v418_v21  ;;  %388 = vst.msk [vmem:[#allocation2 + $0x150] sm:$0xf] %vm179_vm2, %v329_v25  ;;  %v6621_v21 = vld [vmem:[%s8487_s1 + $0xf0] sm:$0xff]  ;;  %v427_v25 = vsel %vm404_vm4, %v425_v13, %v426_v14  ;;  %5417 = vmatpush1.bf16.msra.mxu0 %v5416_v15  ;;  %5196 = vmatprep.mubr.f32.mxu1 %v1009_v35  ;;  %v6687_v53 = vld [vmem:[%s8487_s1 + $0x138] sm:$0xff]  ;;  %v5428_v61 = vpack.c.bf16 %v6652_v31, %v6647_v30 }
  0x5e   :  { %199 = vst.msk [vmem:[#allocation2 + $0x348] sm:$0xff] %vm176_vm0, %v6518_v32  ;;  %200 = vst.msk [vmem:[#allocation2 + $0x370] sm:$0xff] %vm176_vm0, %v6523_v33  ;;  %5418 = vmatprep.subr.bf16.mxu0 %v5940_v0  ;;  %5495 = vmatpush3.bf16.msra.mxu1 %v5492_v3  ;;  %v5422_v55 = vpack.c.bf16 %v6626_v22, %v6621_v21  ;;  %v6695_v58 = vld [vmem:[#allocation2 + $0x78] sm:$0xff]  ;;  %v6701_v62 = vld [vmem:[#allocation2 + $0x50] sm:$0xf]  ;;  %v515_v15 = vrot.slane %v6353_v19, 4 }
  0x5f   :  { %476 = vst.msk [vmem:[#allocation2 + $0x130] sm:$0xff] %vm176_vm0, %v419_v46  ;;  %387 = vst.msk [vmem:[#allocation2 + $0x128] sm:$0xff] %vm176_vm0, %v330_v41  ;;  %v5496_v46 = vpack.c.bf16 %v779_v12, %v778_v11  ;;  %v5419_v41 = vpack.c.bf16 %v731_v17, %v730_v54  ;;  %v337_v11 = vrot.slane %v6353_v19, 2  ;;  %v514_v12 = vrot.slane %v6325_v7, 4  ;;  %v611_v39 = vld [vmem:[#allocation2 + $0xe8] sm:$0xf] }
  0x60   :  { %566 = vst.msk [vmem:[#allocation2 + $0x160] sm:$0xf] %vm179_vm2, %v507_v26  ;;  %201 = vst.msk [vmem:[#allocation2 + $0x398] sm:$0xf] %vm179_vm2, %v6561_v51  ;;  %v6642_v26 = vld [vmem:[%s8487_s1 + $0x108] sm:$0xff]  ;;  %v616_v4 = vld [vmem:[#allocation2 + $0x110] sm:$0xff]  ;;  %v4553_v54 = vcombine.low %v6701_v62, %v6695_v58 }
  0x61   :  { %565 = vst.msk [vmem:[#allocation2 + $0x138] sm:$0xff] %vm176_vm0, %v508_v47  ;;  %312 = vst.msk [vmem:[#allocation2 + $0x350] sm:$0xff] %vm176_vm0, %v264_v50  ;;  %v6676_v47 = vld [vmem:[#allocation2 + $0xc8] sm:$0xf]  ;;  %v6682_v50 = vld [vmem:[%s8487_s1 + $0x130] sm:$0xff]  ;;  %v5425_v56 = vpack.c.bf16 %v6642_v26, %v6631_v23  ;;  %5497 = vmatprep.subr.bf16.mxu1 %v5496_v46  ;;  %5420 = vmatpush1.bf16.msra.mxu0 %v5419_v41  ;;  %v436_v30 = vrot.slane %v6456_v27, 3 }
  0x62   :  { %314 = vst.msk [vmem:[#allocation2 + $0x3a0] sm:$0xf] %vm179_vm2, %v265_v57  ;;  %391 = vst.msk [vmem:[#allocation2 + $0x1c8] sm:$0xf] %vm179_vm2, %v334_v8  ;;  %v6693_v57 = vld [vmem:[#allocation2 + $0x80] sm:$0xff]  ;;  %v930_v3 = vcombine.low %v6676_v47, %v608_v48  ;;  %v917_v8 = vcombine.high %v591_v40, %v591_v40  ;;  %5421 = vmatprep.subr.bf16.mxu0 %v5940_v0  ;;  %5499 = vmatpush3.bf16.msra.mxu1 %v5496_v46  ;;  %v346_v31 = vrot.slane %v6451_v63, 2 }
  0x63   :  { %313 = vst.msk [vmem:[#allocation2 + $0x378] sm:$0xff] %vm176_vm0, %v266_v59  ;;  %567 = vst.msk [vmem:[#allocation2 + $0x188] sm:$0xff] %vm176_vm0, %v511_v60  ;;  %v5500_v59 = vpack.c.bf16 %v781_v38, %v780_v28  ;;  %v6697_v60 = vld [vmem:[#allocation2 + $0x98] sm:$0xff]  ;;  %v921_v2 = vcombine.high %v6695_v58, %v6693_v57  ;;  %v5434_v17 = vpack.c.bf16 %v6687_v53, %v6682_v50  ;;  %v588_v38 = vld [vmem:[#allocation2 + $0x30] sm:$0xff] }
  0x64   :  { %478 = vst.msk [vmem:[#allocation2 + $0x180] sm:$0xff] %vm176_vm0, %v422_v6  ;;  %389 = vst.msk [vmem:[#allocation2 + $0x178] sm:$0xff] %vm176_vm0, %v333_v52  ;;  %v6708_v6 = vld [vmem:[#allocation2 + $0x58] sm:$0xf]  ;;  %v924_v52 = vcombine.high %v6697_v60, %v6697_v60  ;;  %v6726_v22 = vcombine.high %v6693_v57, %v925_v1  ;;  %v6729_v23 = vcombine.high %v6664_v42, %v930_v3  ;;  %v339_v3 = vrot.slane %v6373_v29, 2  ;;  %v742_v44 = vld [vmem:[%s8487_s1 + $0x140] sm:$0xff] }
  0x65   :  { %480 = vst.msk [vmem:[#allocation2 + $0x1d0] sm:$0xf] %vm179_vm2, %v423_v9  ;;  %569 = vst.msk [vmem:[#allocation2 + $0x1d8] sm:$0xf] %vm179_vm2, %v512_v10  ;;  %v606_v9 = vld [vmem:[#allocation2 + $0xc0] sm:$0xff]  ;;  %v336_v10 = vrot.slane %v6325_v7, 2  ;;  %5501 = vmatprep.subr.bf16.mxu1 %v5500_v59  ;;  %v4554_v21 = vcombine.low %v6708_v6, %v6693_v57  ;;  %5423 = vmatpush1.bf16.msra.mxu0 %v5422_v55  ;;  %v6734_v26 = vcombine.low %v921_v2, %v6656_v36 }
  0x66   :  { %390 = vst.msk [vmem:[#allocation2 + $0x1a0] sm:$0xff] %vm176_vm0, %v335_v18  ;;  %479 = vst.msk [vmem:[#allocation2 + $0x1a8] sm:$0xff] %vm176_vm0, %v424_v20  ;;  %v929_v13 = vcombine.high %v606_v9, %v606_v9  ;;  %v596_v7 = vld [vmem:[#allocation2 + $0x70] sm:$0xf]  ;;  %v936_v18 = vcombine.high %v616_v4, %v616_v4  ;;  %v1014_v46 = vcombine.low %v591_v40, %v917_v8  ;;  %5424 = vmatprep.subr.bf16.mxu0 %v5940_v0  ;;  %v745_v50 = vld [vmem:[%s8487_s1 + $0x158] sm:$0xff] }
  0x67   :  { %568 = vst.msk [vmem:[#allocation2 + $0x1b0] sm:$0xff] %vm176_vm0, %v513_v24  ;;  %481 = vst.msk [vmem:[#allocation2 + $0x1f8] sm:$0xff] %vm176_vm0, %v427_v25  ;;  %v926_v24 = vcombine.high %v6656_v36, %v6664_v42  ;;  %v582_v25 = vld [vmem:[#allocation2] sm:$0xff]  ;;  %v338_v35 = vsel %vm315_vm5, %v336_v10, %v337_v11  ;;  %v516_v28 = vsel %vm493_vm3, %v514_v12, %v515_v15  ;;  %5503 = vmatpush3.bf16.msra.mxu1 %v5500_v59  ;;  %v613_v42 = vld [vmem:[#allocation2 + $0xf8] sm:$0xff] }
  0x68   :  { %v621_v5 = vld [vmem:[#allocation2 + $0x138] sm:$0xff]  ;;  %v1019_v41 = vcombine.low %v596_v7, %v6697_v60  ;;  %v1024_v48 = vcombine.low %v924_v52, %v606_v9  ;;  %v6740_v57 = vcombine.low %v929_v13, %v611_v39  ;;  %392 = vst.msk [vmem:[#allocation2 + $0x1f0] sm:$0xff] %vm176_vm0, %v338_v35  ;;  %570 = vst.msk [vmem:[#allocation2 + $0x200] sm:$0xff] %vm176_vm0, %v516_v28  ;;  %v517_v55 = vrot.slane %v6373_v29, 4 }
  0x69   :  { %v941_v20 = vcombine.high %v621_v5, %v621_v5  ;;  %v6745_v40 = vcombine.low %v616_v4, %v936_v18  ;;  %v428_v2 = vrot.slane %v6373_v29, 3  ;;  %1276 = vmatmul.mubr.f32.vlgmr.msra.gmra.mrb[0].mxu0 %v582_v25  ;;  %v430_v60 = vrot.slane %v6386_v34, 3  ;;  %v587_v4 = vld [vmem:[#allocation2 + $0x28] sm:$0xff]  ;;  %394 = vst.msk [vmem:[#allocation2 + $0x240] sm:$0xf] %vm179_vm2, %v339_v3 }
  0x6a   :  { %v518_v59 = vsel %vm493_vm3, %v515_v15, %v517_v55  ;;  %572 = vst.msk [vmem:[#allocation2 + $0x250] sm:$0xf] %vm179_vm2, %v517_v55  ;;  %v431_v6 = vrot.slane %v6395_v37, 3  ;;  %v341_v8 = vrot.slane %v6386_v34, 2  ;;  %5426 = vmatpush1.bf16.msra.mxu0 %v5425_v56  ;;  %1280 = vmatprep.mubr.f32.mxu0 %v588_v38  ;;  %v342_v9 = vrot.slane %v6395_v37, 2  ;;  %v6789_v18 = vld [vmem:[#allocation2 + $0x188] sm:$0xff] }
  0x6b   :  { %v6747_v1 = vcombine.low %v621_v5, %v941_v20  ;;  %571 = vst.msk [vmem:[#allocation2 + $0x228] sm:$0xff] %vm176_vm0, %v518_v59  ;;  %v429_v29 = vsel %vm404_vm4, %v426_v14, %v428_v2  ;;  %v340_v5 = vsel %vm315_vm5, %v337_v11, %v339_v3  ;;  %v519_v10 = vrot.slane %v6386_v34, 4  ;;  %5427 = vmatprep.subr.bf16.mxu0 %v5940_v0 }
  0x6c   :  { %483 = vst.msk [vmem:[#allocation2 + $0x248] sm:$0xf] %vm179_vm2, %v428_v2  ;;  %5197 = vmatmul.mubr.f32.vlgmr.msra.gmra.mrb[0].mxu1 %v1014_v46  ;;  %v432_v19 = vsel %vm404_vm4, %v430_v60, %v431_v6  ;;  %v520_v14 = vrot.slane %v6395_v37, 4  ;;  %v522_v56 = vrot.slane %v6421_v45, 4  ;;  %v344_v11 = vrot.slane %v6421_v45, 2 }
  0x6d   :  { %482 = vst.msk [vmem:[#allocation2 + $0x220] sm:$0xff] %vm176_vm0, %v429_v29  ;;  %393 = vst.msk [vmem:[#allocation2 + $0x218] sm:$0xff] %vm176_vm0, %v340_v5  ;;  %5199 = vmatprep.mubr.f32.mxu1 %v1019_v41  ;;  %v343_v34 = vsel %vm315_vm5, %v341_v8, %v342_v9  ;;  %v433_v12 = vrot.slane %v6421_v45, 3  ;;  %v524_v52 = vrot.slane %v6451_v63, 4  ;;  %v525_v13 = vrot.slane %v6456_v27, 4  ;;  %1281 = vmatmul.mubr.f32.gmra.mrb[2].mxu0 %v587_v4 }
  0x6e   :  { %484 = vst.msk [vmem:[#allocation2 + $0x270] sm:$0xff] %vm176_vm0, %v432_v19  ;;  %395 = vst.msk [vmem:[#allocation2 + $0x268] sm:$0xff] %vm176_vm0, %v343_v34  ;;  %v521_v37 = vsel %vm493_vm3, %v519_v10, %v520_v14  ;;  %v523_v15 = vsel %vm493_vm3, %v520_v14, %v522_v56  ;;  %v345_v7 = vsel %vm315_vm5, %v342_v9, %v344_v11  ;;  %v435_v39 = vrot.slane %v6451_v63, 3  ;;  %v6787_v45 = vld [vmem:[#allocation2 + $0x160] sm:$0xf]  ;;  %v747_v10 = vld [vmem:[%s8487_s1 + $0x168] sm:$0xff] }
  0x6f   :  { %575 = vst.msk [vmem:[#allocation2 + $0x2c8] sm:$0xf] %vm179_vm2, %v522_v56  ;;  %397 = vst.msk [vmem:[#allocation2 + $0x2b8] sm:$0xf] %vm179_vm2, %v344_v11  ;;  %5429 = vmatpush1.bf16.msra.mxu0 %v5428_v61  ;;  %1285 = vmatprep.mubr.f32.mxu0 %v4554_v21  ;;  %v434_v20 = vsel %vm404_vm4, %v431_v6, %v433_v12  ;;  %v526_v25 = vsel %vm493_vm3, %v524_v52, %v525_v13  ;;  %v6800_v61 = vld [vmem:[#allocation2 + $0x1b0] sm:$0xff]  ;;  %v347_v46 = vrot.slane %v6456_v27, 2 }
  0x70   :  { %573 = vst.msk [vmem:[#allocation2 + $0x278] sm:$0xff] %vm176_vm0, %v521_v37  ;;  %574 = vst.msk [vmem:[#allocation2 + $0x2a0] sm:$0xff] %vm176_vm0, %v523_v15  ;;  %5430 = vmatprep.subr.bf16.mxu0 %v5940_v0  ;;  %5200 = vmatmul.mubr.f32.gmra.mrb[2].mxu1 %v1024_v48  ;;  %v948_v21 = vcombine.high %v6789_v18, %v6789_v18  ;;  %v438_v35 = vrot.slane %v6492_v16, 3  ;;  %v349_v28 = vrot.slane %v6492_v16, 2  ;;  %v527_v38 = vrot.slane %v6492_v16, 4  ;;  %v646_v55 = vld [vmem:[#allocation2 + $0x200] sm:$0xff] }
  0x71   :  { %396 = vst.msk [vmem:[#allocation2 + $0x290] sm:$0xff] %vm176_vm0, %v345_v7  ;;  %485 = vst.msk [vmem:[#allocation2 + $0x298] sm:$0xff] %vm176_vm0, %v434_v20  ;;  %5202 = vmatprep.mubr.f32.mxu1 %v6740_v57  ;;  %v437_v63 = vsel %vm404_vm4, %v435_v39, %v436_v30  ;;  %v529_v41 = vrot.slane %v6518_v32, 4  ;;  %v530_v48 = vrot.slane %v6523_v33, 4  ;;  %1286 = vmatmul.mubr.f32.gmra.mrb[4].mxu0 %v4553_v54  ;;  %v351_v3 = vrot.slane %v6518_v32, 2  ;;  %v618_v11 = vld [vmem:[#allocation2 + $0x120] sm:$0xff] }
  0x72   :  { %486 = vst.msk [vmem:[#allocation2 + $0x2c0] sm:$0xf] %vm179_vm2, %v433_v12  ;;  %v1044_v27 = vcombine.low %v6787_v45, %v6789_v18  ;;  %v348_v57 = vsel %vm315_vm5, %v346_v31, %v347_v46  ;;  %v439_v2 = vsel %vm404_vm4, %v436_v30, %v438_v35  ;;  %489 = vst.msk [vmem:[#allocation2 + $0x338] sm:$0xf] %vm179_vm2, %v438_v35  ;;  %1290 = vmatprep.mubr.f32.mxu0 %v6726_v22  ;;  %v641_v8 = vld [vmem:[#allocation2 + $0x1d8] sm:$0xf] }
  0x73   :  { %576 = vst.msk [vmem:[#allocation2 + $0x2f0] sm:$0xff] %vm176_vm0, %v526_v25  ;;  %487 = vst.msk [vmem:[#allocation2 + $0x2e8] sm:$0xff] %vm176_vm0, %v437_v63  ;;  %v350_v16 = vsel %vm315_vm5, %v347_v46, %v349_v28  ;;  %5432 = vmatpush1.bf16.msra.mxu0 %v5431_v49  ;;  %v953_v58 = vcombine.high %v6800_v61, %v6800_v61  ;;  %v528_v62 = vsel %vm493_vm3, %v525_v13, %v527_v38  ;;  %v743_v49 = vld [vmem:[%s8487_s1 + $0x148] sm:$0xff]  ;;  %v656_v19 = vld [vmem:[#allocation2 + $0x250] sm:$0xf] }
  0x74   :  { %400 = vst.msk [vmem:[#allocation2 + $0x330] sm:$0xf] %vm179_vm2, %v349_v28  ;;  %578 = vst.msk [vmem:[#allocation2 + $0x340] sm:$0xf] %vm179_vm2, %v527_v38  ;;  %v531_v54 = vsel %vm493_vm3, %v529_v41, %v530_v48  ;;  %5433 = vmatprep.subr.bf16.mxu0 %v5940_v0  ;;  %5203 = vmatmul.mubr.f32.gmra.mrb[4].mxu1 %v6745_v40  ;;  %v441_v22 = vrot.slane %v6523_v33, 3  ;;  %v352_v59 = vrot.slane %v6523_v33, 2 }
  0x75   :  { %398 = vst.msk [vmem:[#allocation2 + $0x2e0] sm:$0xff] %vm176_vm0, %v348_v57  ;;  %488 = vst.msk [vmem:[#allocation2 + $0x310] sm:$0xff] %vm176_vm0, %v439_v2  ;;  %v354_v60 = vrot.slane %v6561_v51, 2  ;;  %5205 = vmatprep.mubr.f32.mxu1 %v6747_v1  ;;  %v1049_v6 = vcombine.low %v948_v21, %v6800_v61  ;;  %v960_v4 = vcombine.high %v646_v55, %v646_v55  ;;  %v651_v29 = vld [vmem:[#allocation2 + $0x228] sm:$0xff]  ;;  %v443_v40 = vrot.slane %v6561_v51, 3  ;;  %v6889_v52 = vld [vmem:[#allocation2 + $0x190] sm:$0xff] }
  0x76   :  { %399 = vst.msk [vmem:[#allocation2 + $0x308] sm:$0xff] %vm176_vm0, %v350_v16  ;;  %577 = vst.msk [vmem:[#allocation2 + $0x318] sm:$0xff] %vm176_vm0, %v528_v62  ;;  %1291 = vmatmul.mubr.f32.gmra.mrb[6].mxu0 %v6734_v26  ;;  %v4561_v32 = vcombine.low %v926_v24, %v6676_v47  ;;  %v442_v5 = vsel %vm404_vm4, %v440_v43, %v441_v22  ;;  %v353_v9 = vsel %vm315_vm5, %v351_v3, %v352_v59  ;;  %v744_v47 = vld [vmem:[%s8487_s1 + $0x150] sm:$0xff]  ;;  %v746_v26 = vld [vmem:[%s8487_s1 + $0x160] sm:$0xff] }
  0x77   :  { %579 = vst.msk [vmem:[#allocation2 + $0x368] sm:$0xff] %vm176_vm0, %v531_v54  ;;  %1295 = vmatprep.mubr.f32.mxu0 %v6729_v23  ;;  %5435 = vmatpush1.bf16.msra.mxu0 %v5434_v17  ;;  %v5437_v1 = vpack.c.bf16 %v743_v49, %v742_v44  ;;  %490 = vst.msk [vmem:[#allocation2 + $0x360] sm:$0xff] %vm176_vm0, %v442_v5  ;;  %v532_v36 = vrot.slane %v6561_v51, 4  ;;  %v1054_v53 = vcombine.low %v953_v58, %v641_v8  ;;  %v661_v24 = vld [vmem:[#allocation2 + $0x278] sm:$0xff]  ;;  %v612_v51 = vld [vmem:[#allocation2 + $0xf0] sm:$0xff] }
  0x78   :  { %403 = vst.msk [vmem:[#allocation2 + $0x3a8] sm:$0xf] %vm179_vm2, %v354_v60  ;;  %492 = vst.msk [vmem:[#allocation2 + $0x3b0] sm:$0xf] %vm179_vm2, %v443_v40  ;;  %5436 = vmatprep.subr.bf16.mxu0 %v5940_v0  ;;  %5206 = vmatmul.mubr.f32.gmra.mrb[6].mxu1 %v1044_v27  ;;  %v965_v17 = vcombine.high %v651_v29, %v651_v29  ;;  %v1059_v23 = vcombine.low %v646_v55, %v960_v4  ;;  %v623_v12 = vld [vmem:[#allocation2 + $0x148] sm:$0xf] }
  0x79   :  { %401 = vst.msk [vmem:[#allocation2 + $0x358] sm:$0xff] %vm176_vm0, %v353_v9  ;;  %5208 = vmatprep.mubr.f32.mxu1 %v1049_v6  ;;  %v355_v14 = vsel %vm315_vm5, %v352_v59, %v354_v60  ;;  %v444_v56 = vsel %vm404_vm4, %v441_v22, %v443_v40  ;;  %v5440_v34 = vpack.c.bf16 %v745_v50, %v744_v47  ;;  %v628_v37 = vld [vmem:[#allocation2 + $0x170] sm:$0xff]  ;;  %v6897_v15 = vld [vmem:[#allocation2 + $0x198] sm:$0xff]  ;;  %v666_v39 = vld [vmem:[#allocation2 + $0x2a0] sm:$0xff] }
  0x7a   :  { %581 = vst.msk [vmem:[#allocation2 + $0x3b8] sm:$0xf] %vm179_vm2, %v532_v36  ;;  %1296 = vmatmul.mubr.f32.gmra.mrb[8].mxu0 %v4561_v32  ;;  %v533_v13 = vsel %vm493_vm3, %v530_v48, %v532_v36  ;;  %v1064_v7 = vcombine.low %v651_v29, %v965_v17  ;;  %v972_v45 = vcombine.high %v661_v24, %v661_v24  ;;  %v676_v25 = vld [vmem:[#allocation2 + $0x2f0] sm:$0xff]  ;;  %v671_v30 = vld [vmem:[#allocation2 + $0x2c8] sm:$0xf]  ;;  %v617_v61 = vld [vmem:[#allocation2 + $0x118] sm:$0xff] }
  0x7b   :  { %1300 = vmatprep.mubr.f32.mxu0 %v613_v42  ;;  %5438 = vmatpush1.bf16.msra.mxu0 %v5437_v1  ;;  %402 = vst.msk [vmem:[#allocation2 + $0x380] sm:$0xff] %vm176_vm0, %v355_v14  ;;  %491 = vst.msk [vmem:[#allocation2 + $0x388] sm:$0xff] %vm176_vm0, %v444_v56  ;;  %v1069_v18 = vcombine.low %v656_v19, %v661_v24  ;;  %v977_v20 = vcombine.high %v666_v39, %v666_v39  ;;  %v748_v33 = vld [vmem:[%s8487_s1 + $0x170] sm:$0xff]  ;;  %v622_v46 = vld [vmem:[#allocation2 + $0x140] sm:$0xf] }
  0x7c   :  { %5439 = vmatprep.subr.bf16.mxu0 %v5940_v0  ;;  %5209 = vmatmul.mubr.f32.gmra.mrb[8].mxu1 %v1054_v53  ;;  %580 = vst.msk [vmem:[#allocation2 + $0x390] sm:$0xff] %vm176_vm0, %v533_v13  ;;  %v4566_v21 = vcombine.low %v623_v12, %v628_v37  ;;  %v627_v35 = vld [vmem:[#allocation2 + $0x168] sm:$0xff]  ;;  %v949_v28 = vcombine.low %v6889_v52, %v6897_v15  ;;  %v637_v38 = vld [vmem:[#allocation2 + $0x1b8] sm:$0xf]  ;;  %v638_v41 = vld [vmem:[#allocation2 + $0x1c0] sm:$0xf] }
  0x7d   :  { %5211 = vmatprep.mubr.f32.mxu1 %v1059_v23  ;;  %v681_v31 = vld [vmem:[#allocation2 + $0x318] sm:$0xff]  ;;  %v5443_v63 = vpack.c.bf16 %v747_v10, %v746_v26  ;;  %v1074_v27 = vcombine.low %v972_v45, %v666_v39  ;;  %v984_v55 = vcombine.high %v676_v25, %v676_v25  ;;  %v1079_v57 = vcombine.low %v977_v20, %v671_v30  ;;  %v750_v44 = vld [vmem:[%s8487_s1 + $0x180] sm:$0xff]  ;;  %v751_v49 = vld [vmem:[%s8487_s1 + $0x188] sm:$0xff] }
  0x7e   :  { %1301 = vmatmul.mubr.f32.gmra.mrb[10].mxu0 %v612_v51  ;;  %v749_v48 = vld [vmem:[%s8487_s1 + $0x178] sm:$0xff]  ;;  %v989_v2 = vcombine.high %v681_v31, %v681_v31  ;;  %v4565_v16 = vcombine.low %v622_v46, %v627_v35  ;;  %v945_v58 = vcombine.high %v627_v35, %v628_v37  ;;  %v4570_v62 = vcombine.high %v628_v37, %v949_v28  ;;  %v691_v3 = vld [vmem:[#allocation2 + $0x368] sm:$0xff]  ;;  %v686_v60 = vld [vmem:[#allocation2 + $0x340] sm:$0xf] }
  0x7f   :  { %1305 = vmatprep.mubr.f32.mxu0 %v618_v11  ;;  %5441 = vmatpush1.bf16.msra.mxu0 %v5440_v34  ;;  %v954_v54 = vcombine.low %v637_v38, %v638_v41  ;;  %v5446_v43 = vpack.c.bf16 %v749_v48, %v748_v33  ;;  %v1084_v22 = vcombine.low %v676_v25, %v984_v55  ;;  %v752_v40 = vld [vmem:[%s8487_s1 + $0x190] sm:$0xff]  ;;  %v753_v32 = vld [vmem:[%s8487_s1 + $0x198] sm:$0xff]  ;;  %v2255_v1 = vld [vmem:[%s8489_s3 + $0x80] sm:$0xff] }
  0x80   :  { %5442 = vmatprep.subr.bf16.mxu0 %v5940_v0  ;;  %5212 = vmatmul.mubr.f32.gmra.mrb[10].mxu1 %v1064_v7  ;;  %v1089_v59 = vcombine.low %v681_v31, %v989_v2  ;;  %v996_v8 = vcombine.high %v691_v3, %v691_v3  ;;  %v4569_v4 = vcombine.low %v945_v58, %v6889_v52  ;;  %v2256_v36 = vld [vmem:[%s8489_s3 + $0x88] sm:$0xff]  ;;  %v2239_v42 = vld [vmem:[%s8489_s3] sm:$0xff]  ;;  %v2257_v23 = vld [vmem:[%s8489_s3 + $0x90] sm:$0xff] }
  0x81   :  { %5214 = vmatprep.mubr.f32.mxu1 %v1069_v18  ;;  %v950_v29 = vcombine.high %v6889_v52, %v6897_v15  ;;  %v4574_v5 = vcombine.high %v6897_v15, %v954_v54  ;;  %v5449_v9 = vpack.c.bf16 %v751_v49, %v750_v44  ;;  %v1094_v47 = vcombine.low %v686_v60, %v691_v3  ;;  %v2240_v17 = vld [vmem:[%s8489_s3 + $0x8] sm:$0xff]  ;;  %v2258_v24 = vld [vmem:[%s8489_s3 + $0x98] sm:$0xff]  ;;  %v754_v34 = vld [vmem:[%s8487_s1 + $0x1a0] sm:$0xff] }
  0x82   :  { %1306 = vmatmul.mubr.f32.gmra.mrb[12].mxu0 %v617_v61  ;;  %v5504_v53 = vpack.c.bf16 %v2256_v36, %v2255_v1  ;;  %v701_v26 = vld [vmem:[#allocation2 + $0x3b8] sm:$0xf]  ;;  %v5506_v10 = vpack.c.bf16 %v2240_v17, %v2239_v42  ;;  %v5508_v14 = vpack.c.bf16 %v2258_v24, %v2257_v23  ;;  %v5452_v56 = vpack.c.bf16 %v753_v32, %v752_v40  ;;  %v643_v11 = vld [vmem:[#allocation2 + $0x1e8] sm:$0xff]  ;;  %v642_v13 = vld [vmem:[#allocation2 + $0x1e0] sm:$0xff] }
  0x83   :  { %1310 = vmatprep.mubr.f32.mxu0 %v4566_v21  ;;  %5444 = vmatpush1.bf16.msra.mxu0 %v5443_v63  ;;  %v696_v6 = vld [vmem:[#allocation2 + $0x390] sm:$0xff]  ;;  %v4573_v19 = vcombine.low %v950_v29, %v637_v38  ;;  %v755_v12 = vld [vmem:[%s8487_s1 + $0x1a8] sm:$0xff]  ;;  %v653_v7 = vld [vmem:[#allocation2 + $0x238] sm:$0xf] }
  0x84   :  { %5445 = vmatprep.subr.bf16.mxu0 %v5940_v0  ;;  %5215 = vmatmul.mubr.f32.gmra.mrb[12].mxu1 %v1074_v27  ;;  %v1001_v50 = vcombine.high %v696_v6, %v696_v6  ;;  %v1099_v51 = vcombine.low %v996_v8, %v696_v6  ;;  %v756_v37 = vld [vmem:[%s8487_s1 + $0x1b0] sm:$0xff]  ;;  %v5455_v39 = vpack.c.bf16 %v755_v12, %v754_v34  ;;  %v757_v45 = vld [vmem:[%s8487_s1 + $0x1b8] sm:$0xff]  ;;  %v658_v18 = vld [vmem:[#allocation2 + $0x260] sm:$0xff] }
  0x85   :  { %5217 = vmatprep.mubr.f32.mxu1 %v1079_v57  ;;  %5505 = vmatprep.subr.bf16.mxu1 %v5504_v53  ;;  %v648_v15 = vld [vmem:[#allocation2 + $0x210] sm:$0xff]  ;;  %v662_v20 = vld [vmem:[#allocation2 + $0x280] sm:$0xff]  ;;  %v663_v25 = vld [vmem:[#allocation2 + $0x288] sm:$0xff]  ;;  %v4578_v30 = vcombine.low %v653_v7, %v658_v18  ;;  %v5458_v46 = vpack.c.bf16 %v757_v45, %v756_v37 }
  0x86   :  { %1311 = vmatmul.mubr.f32.gmra.mrb[14].mxu0 %v4565_v16  ;;  %v1104_v52 = vcombine.low %v1001_v50, %v701_v26  ;;  %5507 = vmatpush3.bf16.msra.mxu1 %v5506_v10  ;;  %v647_v33 = vld [vmem:[#allocation2 + $0x208] sm:$0xff]  ;;  %v652_v31 = vld [vmem:[#allocation2 + $0x230] sm:$0xf]  ;;  %v657_v61 = vld [vmem:[#allocation2 + $0x258] sm:$0xff]  ;;  %v973_v21 = vcombine.low %v662_v20, %v663_v25 }
  0x87   :  { %1315 = vmatprep.mubr.f32.mxu0 %v4570_v62  ;;  %5447 = vmatpush1.bf16.msra.mxu0 %v5446_v43  ;;  %v758_v35 = vld [vmem:[%s8487_s1 + $0x1c0] sm:$0xff]  ;;  %v667_v28 = vld [vmem:[#allocation2 + $0x2a8] sm:$0xf]  ;;  %v668_v63 = vld [vmem:[#allocation2 + $0x2b0] sm:$0xf]  ;;  %v4577_v41 = vcombine.low %v652_v31, %v657_v61  ;;  %v969_v48 = vcombine.high %v657_v61, %v658_v18  ;;  %v974_v62 = vcombine.high %v662_v20, %v663_v25 }
  0x88   :  { %5448 = vmatprep.subr.bf16.mxu0 %v5940_v0  ;;  %5218 = vmatmul.mubr.f32.gmra.mrb[14].mxu1 %v1084_v22  ;;  %v759_v38 = vld [vmem:[%s8487_s1 + $0x1c8] sm:$0xff]  ;;  %v4582_v27 = vcombine.high %v658_v18, %v973_v21  ;;  %v978_v55 = vcombine.low %v667_v28, %v668_v63  ;;  %v760_v2 = vld [vmem:[%s8487_s1 + $0x1d0] sm:$0xff]  ;;  %v761_v16 = vld [vmem:[%s8487_s1 + $0x1d8] sm:$0xff] }
  0x89   :  { %5220 = vmatprep.mubr.f32.mxu1 %v1089_v59  ;;  %5509 = vmatprep.subr.bf16.mxu1 %v5508_v14  ;;  %v5461_v57 = vpack.c.bf16 %v759_v38, %v758_v35  ;;  %v4581_v58 = vcombine.low %v969_v48, %v662_v20  ;;  %v5464_v43 = vpack.c.bf16 %v761_v16, %v760_v2  ;;  %v762_v44 = vld [vmem:[%s8487_s1 + $0x1e0] sm:$0xff]  ;;  %v763_v49 = vld [vmem:[%s8487_s1 + $0x1e8] sm:$0xff]  ;;  %v673_v59 = vld [vmem:[#allocation2 + $0x2d8] sm:$0xff] }
  0x8a   :  { %1316 = vmatmul.mubr.f32.gmra.mrb[16].mxu0 %v4569_v4  ;;  %v4586_v54 = vcombine.high %v663_v25, %v978_v55  ;;  %v4585_v22 = vcombine.low %v974_v62, %v667_v28  ;;  %v5467_v3 = vpack.c.bf16 %v763_v49, %v762_v44  ;;  %v764_v60 = vld [vmem:[%s8487_s1 + $0x1f0] sm:$0xff]  ;;  %v765_v6 = vld [vmem:[%s8487_s1 + $0x1f8] sm:$0xff]  ;;  %v678_v4 = vld [vmem:[#allocation2 + $0x300] sm:$0xff] }
  0x8b   :  { %1320 = vmatprep.mubr.f32.mxu0 %v4574_v5  ;;  %5450 = vmatpush1.bf16.msra.mxu0 %v5449_v9  ;;  %v672_v8 = vld [vmem:[#allocation2 + $0x2d0] sm:$0xff]  ;;  %v683_v29 = vld [vmem:[#allocation2 + $0x328] sm:$0xf]  ;;  %v5470_v40 = vpack.c.bf16 %v765_v6, %v764_v60  ;;  %v693_v9 = vld [vmem:[#allocation2 + $0x378] sm:$0xff] }
  0x8c   :  { %5451 = vmatprep.subr.bf16.mxu0 %v5940_v0  ;;  %5221 = vmatmul.mubr.f32.gmra.mrb[16].mxu1 %v1094_v47  ;;  %v688_v32 = vld [vmem:[#allocation2 + $0x350] sm:$0xff]  ;;  %v677_v1 = vld [vmem:[#allocation2 + $0x2f8] sm:$0xff]  ;;  %v682_v42 = vld [vmem:[#allocation2 + $0x320] sm:$0xf] }
  0x8d   :  { %5223 = vmatprep.mubr.f32.mxu1 %v1099_v51  ;;  %v692_v5 = vld [vmem:[#allocation2 + $0x370] sm:$0xff]  ;;  %v4590_v36 = vcombine.low %v683_v29, %v688_v32  ;;  %v687_v47 = vld [vmem:[#allocation2 + $0x348] sm:$0xff]  ;;  %v697_v53 = vld [vmem:[#allocation2 + $0x398] sm:$0xf] }
  0x8e   :  { %1321 = vmatmul.mubr.f32.gmra.mrb[18].mxu0 %v4573_v19  ;;  %v997_v50 = vcombine.low %v692_v5, %v693_v9  ;;  %v698_v17 = vld [vmem:[#allocation2 + $0x3a0] sm:$0xf]  ;;  %v4589_v23 = vcombine.low %v682_v42, %v687_v47  ;;  %v993_v24 = vcombine.high %v687_v47, %v688_v32  ;;  %v998_v19 = vcombine.high %v692_v5, %v693_v9  ;;  %v595_v12 = vld [vmem:[#allocation2 + $0x68] sm:$0xf]  ;;  %v605_v37 = vld [vmem:[#allocation2 + $0xb8] sm:$0xff] }
  0x8f   :  { %1325 = vmatprep.mubr.f32.mxu0 %v643_v11  ;;  %5453 = vmatpush1.bf16.msra.mxu0 %v5452_v56  ;;  %v1002_v26 = vcombine.low %v697_v53, %v698_v17  ;;  %v585_v56 = vld [vmem:[#allocation2 + $0x18] sm:$0xff]  ;;  %v584_v11 = vld [vmem:[#allocation2 + $0x10] sm:$0xff]  ;;  %v590_v34 = vld [vmem:[#allocation2 + $0x40] sm:$0xff] }
  0x90   :  { %5454 = vmatprep.subr.bf16.mxu0 %v5940_v0  ;;  %5224 = vmatmul.mubr.f32.gmra.mrb[18].mxu1 %v1104_v52  ;;  %v4594_v51 = vcombine.high %v688_v32, %v997_v50  ;;  %v4593_v10 = vcombine.low %v993_v24, %v692_v5  ;;  %v4597_v14 = vcombine.low %v998_v19, %v697_v53  ;;  %v600_v52 = vld [vmem:[#allocation2 + $0x90] sm:$0xff]  ;;  %v599_v45 = vld [vmem:[#allocation2 + $0x88] sm:$0xff]  ;;  %v609_v20 = vld [vmem:[#allocation2 + $0xd8] sm:$0xf] }
  0x91   :  { %v4556_v7 = vcombine.low %v595_v12, %v600_v52  ;;  %v610_v25 = vld [vmem:[#allocation2 + $0xe0] sm:$0xf]  ;;  %v615_v63 = vld [vmem:[#allocation2 + $0x108] sm:$0xff]  ;;  %v625_v48 = vld [vmem:[#allocation2 + $0x158] sm:$0xf] }
  0x92   :  { %1326 = vmatmul.mubr.f32.gmra.mrb[20].mxu0 %v642_v13  ;;  %v604_v13 = vld [vmem:[#allocation2 + $0xb0] sm:$0xff]  ;;  %v931_v61 = vcombine.low %v609_v20, %v610_v25  ;;  %v614_v38 = vld [vmem:[#allocation2 + $0x100] sm:$0xff]  ;;  %v619_v2 = vld [vmem:[#allocation2 + $0x128] sm:$0xff] }
  0x93   :  { %1330 = vmatprep.mubr.f32.mxu0 %v648_v15  ;;  %5456 = vmatpush1.bf16.msra.mxu0 %v5455_v39  ;;  %v589_v15 = vld [vmem:[#allocation2 + $0x38] sm:$0xff]  ;;  %v594_v39 = vld [vmem:[#allocation2 + $0x60] sm:$0xf]  ;;  %v927_v18 = vcombine.low %v604_v13, %v605_v37  ;;  %v640_v44 = vld [vmem:[#allocation2 + $0x1d0] sm:$0xf] }
  0x94   :  { %5457 = vmatprep.subr.bf16.mxu0 %v5940_v0  ;;  %v4564_v35 = vcombine.high %v605_v37, %v931_v61  ;;  %v634_v55 = vld [vmem:[#allocation2 + $0x1a0] sm:$0xff]  ;;  %v629_v62 = vld [vmem:[#allocation2 + $0x178] sm:$0xff]  ;;  %v655_v5 = vld [vmem:[#allocation2 + $0x248] sm:$0xf] }
  0x95   :  { %v4560_v31 = vcombine.high %v600_v52, %v927_v18  ;;  %v645_v29 = vld [vmem:[#allocation2 + $0x1f8] sm:$0xff]  ;;  %v650_v32 = vld [vmem:[#allocation2 + $0x220] sm:$0xff]  ;;  %v659_v53 = vld [vmem:[#allocation2 + $0x268] sm:$0xff] }
  0x96   :  { %1331 = vmatmul.mubr.f32.gmra.mrb[22].mxu0 %v647_v33  ;;  %v4555_v33 = vcombine.low %v594_v39, %v599_v45  ;;  %v649_v42 = vld [vmem:[#allocation2 + $0x218] sm:$0xff]  ;;  %v654_v50 = vld [vmem:[#allocation2 + $0x240] sm:$0xf]  ;;  %v679_v39 = vld [vmem:[#allocation2 + $0x308] sm:$0xff] }
  0x97   :  { %1335 = vmatprep.mubr.f32.mxu0 %v4578_v30  ;;  %5459 = vmatpush1.bf16.msra.mxu0 %v5458_v46  ;;  %v923_v30 = vcombine.high %v599_v45, %v600_v52  ;;  %v928_v46 = vcombine.high %v604_v13, %v605_v37  ;;  %v670_v24 = vld [vmem:[#allocation2 + $0x2c0] sm:$0xf]  ;;  %v680_v52 = vld [vmem:[#allocation2 + $0x310] sm:$0xff] }
  0x98   :  { %5460 = vmatprep.subr.bf16.mxu0 %v5940_v0  ;;  %v674_v12 = vld [vmem:[#allocation2 + $0x2e0] sm:$0xff]  ;;  %v684_v18 = vld [vmem:[#allocation2 + $0x330] sm:$0xf] }
  0x99   :  { %v4559_v21 = vcombine.low %v923_v30, %v604_v13  ;;  %v4563_v28 = vcombine.low %v928_v46, %v609_v20  ;;  %v685_v13 = vld [vmem:[#allocation2 + $0x338] sm:$0xf]  ;;  %v690_v37 = vld [vmem:[#allocation2 + $0x360] sm:$0xff]  ;;  %v700_v30 = vld [vmem:[#allocation2 + $0x3b0] sm:$0xf] }
  0x9a   :  { %1336 = vmatmul.mubr.f32.gmra.mrb[24].mxu0 %v4577_v41  ;;  %v620_v41 = vld [vmem:[#allocation2 + $0x130] sm:$0xff]  ;;  %v4592_v45 = vcombine.low %v685_v13, %v690_v37  ;;  %v689_v20 = vld [vmem:[#allocation2 + $0x358] sm:$0xff] }
  0x9b   :  { %1340 = vmatprep.mubr.f32.mxu0 %v4582_v27  ;;  %5462 = vmatpush1.bf16.msra.mxu0 %v5461_v57  ;;  %v630_v27 = vld [vmem:[#allocation2 + $0x180] sm:$0xff]  ;;  %v635_v57 = vld [vmem:[#allocation2 + $0x1a8] sm:$0xff]  ;;  %v995_v61 = vcombine.high %v689_v20, %v690_v37 }
  0x9c   :  { %5463 = vmatprep.subr.bf16.mxu0 %v5940_v0  ;;  %v4568_v16 = vcombine.low %v625_v48, %v630_v27  ;;  %v952_v6 = vcombine.high %v634_v55, %v635_v57  ;;  %v2242_v48 = vld [vmem:[%s8489_s3 + $0x18] sm:$0xff] }
  0x9e   :  { %1341 = vmatmul.mubr.f32.gmra.mrb[26].mxu0 %v4581_v58  ;;  %v624_v58 = vld [vmem:[#allocation2 + $0x150] sm:$0xf] }
  0x9f   :  { %1345 = vmatprep.mubr.f32.mxu0 %v4586_v54  ;;  %5465 = vmatpush1.bf16.msra.mxu0 %v5464_v43  ;;  %v951_v54 = vcombine.low %v634_v55, %v635_v57  ;;  %v639_v43 = vld [vmem:[#allocation2 + $0x1c8] sm:$0xf]  ;;  %v4567_v49 = vcombine.low %v624_v58, %v629_v62 }
  0xa0   :  { %5466 = vmatprep.subr.bf16.mxu0 %v5940_v0  ;;  %v2244_v58 = vld [vmem:[%s8489_s3 + $0x28] sm:$0xff] }
  0xa2   :  { %1346 = vmatmul.mubr.f32.gmra.mrb[28].mxu0 %v4585_v22  ;;  %v947_v22 = vcombine.high %v629_v62, %v630_v27 }
  0xa3   :  { %1350 = vmatprep.mubr.f32.mxu0 %v673_v59  ;;  %5468 = vmatpush1.bf16.msra.mxu0 %v5467_v3  ;;  %v4572_v3 = vcombine.high %v630_v27, %v951_v54  ;;  %v955_v59 = vcombine.low %v639_v43, %v640_v44  ;;  %v2261_v54 = vld [vmem:[%s8489_s3 + $0xb0] sm:$0xff] }
  0xa4   :  { %5469 = vmatprep.subr.bf16.mxu0 %v5940_v0  ;;  %v4598_v0 = vcombine.high %v693_v9, %v1002_v26  ;;  %v4571_v60 = vcombine.low %v947_v22, %v634_v55  ;;  %v660_v9 = vld [vmem:[#allocation2 + $0x270] sm:$0xff]  ;;  %v2259_v55 = vld [vmem:[%s8489_s3 + $0xa0] sm:$0xff]  ;;  %v2246_v22 = vld [vmem:[%s8489_s3 + $0x38] sm:$0xff] }
  0xa5   :  { %v4580_v47 = vcombine.low %v655_v5, %v660_v9  ;;  %v971_v26 = vcombine.high %v659_v53, %v660_v9 }
  0xa6   :  { %1351 = vmatmul.mubr.f32.gmra.mrb[30].mxu0 %v672_v8  ;;  %v4576_v8 = vcombine.high %v635_v57, %v955_v59  ;;  %v2260_v57 = vld [vmem:[%s8489_s3 + $0xa8] sm:$0xff]  ;;  %v2263_v59 = vld [vmem:[%s8489_s3 + $0xc0] sm:$0xff] }
  0xa7   :  { %1355 = vmatprep.mubr.f32.mxu0 %v678_v4  ;;  %5471 = vmatpush1.bf16.msra.mxu0 %v5470_v40  ;;  %v4575_v4 = vcombine.low %v952_v6, %v639_v43  ;;  %v644_v40 = vld [vmem:[#allocation2 + $0x1f0] sm:$0xff]  ;;  %v2262_v43 = vld [vmem:[%s8489_s3 + $0xb8] sm:$0xff] }
  0xa8   :  { %v5516_v44 = vpack.c.bf16 %v2262_v43, %v2261_v54 }
  0xaa   :  { %1356 = vmatmul.mubr.f32.gmra.mrb[32].mxu0 %v677_v1  ;;  %v664_v1 = vld [vmem:[#allocation2 + $0x290] sm:$0xff] }
  0xab   :  { %1360 = vmatprep.mubr.f32.mxu0 %v4590_v36  ;;  %v665_v36 = vld [vmem:[#allocation2 + $0x298] sm:$0xff] }
  0xac   :  { %v975_v17 = vcombine.low %v664_v1, %v665_v36 }
  0xae   :  { %1361 = vmatmul.mubr.f32.gmra.mrb[34].mxu0 %v4589_v23  ;;  %v669_v23 = vld [vmem:[#allocation2 + $0x2b8] sm:$0xf] }
  0xaf   :  { %1365 = vmatprep.mubr.f32.mxu0 %v4594_v51  ;;  %v4579_v51 = vcombine.low %v654_v50, %v659_v53  ;;  %v979_v19 = vcombine.low %v669_v23, %v670_v24  ;;  %v2251_v53 = vld [vmem:[%s8489_s3 + $0x60] sm:$0xff]  ;;  %v2269_v24 = vld [vmem:[%s8489_s3 + $0xf0] sm:$0xff] }
  0xb2   :  { %1366 = vmatmul.mubr.f32.gmra.mrb[36].mxu0 %v4593_v10  ;;  %v4584_v10 = vcombine.high %v660_v9, %v975_v17  ;;  %v2249_v9 = vld [vmem:[%s8489_s3 + $0x50] sm:$0xff]  ;;  %v2252_v17 = vld [vmem:[%s8489_s3 + $0x68] sm:$0xff] }
  0xb3   :  { %1370 = vmatprep.mubr.f32.mxu0 %v4598_v0  ;;  %v4583_v0 = vcombine.low %v971_v26, %v664_v1 }
  0xb6   :  { %1371 = vmatmul.mubr.f32.gmra.mrb[38].mxu0 %v4597_v14  ;;  %v976_v14 = vcombine.high %v664_v1, %v665_v36  ;;  %v2250_v1 = vld [vmem:[%s8489_s3 + $0x58] sm:$0xff] }
  0xb7   :  { %1440 = vmatprep.mubr.f32.mxu0 %v585_v56  ;;  %v4588_v56 = vcombine.high %v665_v36, %v979_v19  ;;  %v5526_v36 = vpack.c.bf16 %v2250_v1, %v2249_v9  ;;  %v2254_v19 = vld [vmem:[%s8489_s3 + $0x78] sm:$0xff] }
  0xba   :  { %1441 = vmatmul.mubr.f32.vlgmr.msra.gmra.mrb[0].mxu0 %v584_v11  ;;  %v4587_v11 = vcombine.low %v976_v14, %v669_v23  ;;  %v5530_v23 = vpack.c.bf16 %v2252_v17, %v2251_v53 }
  0xbb   :  { %1445 = vmatprep.mubr.f32.mxu0 %v590_v34  ;;  %v675_v34 = vld [vmem:[#allocation2 + $0x2e8] sm:$0xff] }
  0xbe   :  { %1446 = vmatmul.mubr.f32.gmra.mrb[2].mxu0 %v589_v15  ;;  %v694_v15 = vld [vmem:[#allocation2 + $0x380] sm:$0xff] }
  0xbf   :  { %1450 = vmatprep.mubr.f32.mxu0 %v4556_v7  ;;  %v695_v7 = vld [vmem:[#allocation2 + $0x388] sm:$0xff] }
  0xc0   :  { %v999_v25 = vcombine.low %v694_v15, %v695_v7 }
  0xc2   :  { %1451 = vmatmul.mubr.f32.gmra.mrb[4].mxu0 %v4555_v33  ;;  %v699_v33 = vld [vmem:[#allocation2 + $0x3a8] sm:$0xf] }
  0xc3   :  { %1455 = vmatprep.mubr.f32.mxu0 %v4560_v31  ;;  %v4591_v31 = vcombine.low %v684_v18, %v689_v20  ;;  %v1003_v46 = vcombine.low %v699_v33, %v700_v30 }
  0xc6   :  { %1456 = vmatmul.mubr.f32.gmra.mrb[6].mxu0 %v4559_v21  ;;  %v4596_v21 = vcombine.high %v690_v37, %v999_v25 }
  0xc7   :  { %1460 = vmatprep.mubr.f32.mxu0 %v4564_v35  ;;  %v4595_v35 = vcombine.low %v995_v61, %v694_v15 }
  0xca   :  { %1461 = vmatmul.mubr.f32.gmra.mrb[8].mxu0 %v4563_v28  ;;  %v1000_v28 = vcombine.high %v694_v15, %v695_v7 }
  0xcb   :  { %1465 = vmatprep.mubr.f32.mxu0 %v615_v63  ;;  %v4600_v63 = vcombine.high %v695_v7, %v1003_v46 }
  0xce   :  { %1466 = vmatmul.mubr.f32.gmra.mrb[10].mxu0 %v614_v38  ;;  %v4599_v38 = vcombine.low %v1000_v28, %v699_v33 }
  0xcf   :  { %1470 = vmatprep.mubr.f32.mxu0 %v620_v41  ;;  %v2241_v41 = vld [vmem:[%s8489_s3 + $0x10] sm:$0xff] }
  0xd0   :  { %v5510_v27 = vpack.c.bf16 %v2242_v48, %v2241_v41 }
  0xd2   :  { %1471 = vmatmul.mubr.f32.gmra.mrb[12].mxu0 %v619_v2  ;;  %5511 = vmatpush3.bf16.msra.mxu1 %v5510_v27  ;;  %v5512_v2 = vpack.c.bf16 %v2260_v57, %v2259_v55 }
  0xd3   :  { %1475 = vmatprep.mubr.f32.mxu0 %v4568_v16  ;;  %v2243_v16 = vld [vmem:[%s8489_s3 + $0x20] sm:$0xff] }
  0xd4   :  { %5513 = vmatprep.subr.bf16.mxu1 %v5512_v2  ;;  %v5514_v62 = vpack.c.bf16 %v2244_v58, %v2243_v16 }
  0xd6   :  { %1476 = vmatmul.mubr.f32.gmra.mrb[14].mxu0 %v4567_v49  ;;  %5515 = vmatpush3.bf16.msra.mxu1 %v5514_v62  ;;  %v2245_v49 = vld [vmem:[%s8489_s3 + $0x30] sm:$0xff] }
  0xd7   :  { %1480 = vmatprep.mubr.f32.mxu0 %v4572_v3  ;;  %v5518_v3 = vpack.c.bf16 %v2246_v22, %v2245_v49  ;;  %5517 = vmatprep.subr.bf16.mxu1 %v5516_v44 }
  0xda   :  { %1481 = vmatmul.mubr.f32.gmra.mrb[16].mxu0 %v4571_v60  ;;  %5519 = vmatpush3.bf16.msra.mxu1 %v5518_v3  ;;  %v2264_v60 = vld [vmem:[%s8489_s3 + $0xc8] sm:$0xff] }
  0xdb   :  { %1485 = vmatprep.mubr.f32.mxu0 %v4576_v8  ;;  %v5520_v6 = vpack.c.bf16 %v2264_v60, %v2263_v59  ;;  %v2247_v8 = vld [vmem:[%s8489_s3 + $0x40] sm:$0xff] }
  0xdd   :  { %5521 = vmatprep.subr.bf16.mxu1 %v5520_v6 }
  0xde   :  { %1486 = vmatmul.mubr.f32.gmra.mrb[18].mxu0 %v4575_v4  ;;  %v2248_v4 = vld [vmem:[%s8489_s3 + $0x48] sm:$0xff] }
  0xdf   :  { %1490 = vmatprep.mubr.f32.mxu0 %v645_v29  ;;  %v5522_v29 = vpack.c.bf16 %v2248_v4, %v2247_v8 }
  0xe1   :  { %5523 = vmatpush3.bf16.msra.mxu1 %v5522_v29 }
  0xe2   :  { %1491 = vmatmul.mubr.f32.gmra.mrb[20].mxu0 %v644_v40  ;;  %v2265_v40 = vld [vmem:[%s8489_s3 + $0xd0] sm:$0xff] }
  0xe3   :  { %1495 = vmatprep.mubr.f32.mxu0 %v650_v32  ;;  %v2266_v32 = vld [vmem:[%s8489_s3 + $0xd8] sm:$0xff] }
  0xe4   :  { %v5524_v5 = vpack.c.bf16 %v2266_v32, %v2265_v40 }
  0xe6   :  { %1496 = vmatmul.mubr.f32.gmra.mrb[22].mxu0 %v649_v42  ;;  %5525 = vmatprep.subr.bf16.mxu1 %v5524_v5  ;;  %v2267_v42 = vld [vmem:[%s8489_s3 + $0xe0] sm:$0xff] }
  0xe7   :  { %1500 = vmatprep.mubr.f32.mxu0 %v4580_v47  ;;  %5527 = vmatpush3.bf16.msra.mxu1 %v5526_v36  ;;  %v2268_v47 = vld [vmem:[%s8489_s3 + $0xe8] sm:$0xff] }
  0xe8   :  { %v5528_v50 = vpack.c.bf16 %v2268_v47, %v2267_v42 }
  0xea   :  { %1501 = vmatmul.mubr.f32.gmra.mrb[24].mxu0 %v4579_v51  ;;  %5529 = vmatprep.subr.bf16.mxu1 %v5528_v50  ;;  %v2270_v51 = vld [vmem:[%s8489_s3 + $0xf8] sm:$0xff] }
  0xeb   :  { %1505 = vmatprep.mubr.f32.mxu0 %v4584_v10  ;;  %5531 = vmatpush3.bf16.msra.mxu1 %v5530_v23  ;;  %v5532_v26 = vpack.c.bf16 %v2270_v51, %v2269_v24  ;;  %v2253_v10 = vld [vmem:[%s8489_s3 + $0x70] sm:$0xff] }
  0xed   :  { %5533 = vmatprep.subr.bf16.mxu1 %v5532_v26 }
  0xee   :  { %1506 = vmatmul.mubr.f32.gmra.mrb[26].mxu0 %v4583_v0  ;;  %v5534_v0 = vpack.c.bf16 %v2254_v19, %v2253_v10 }
  0xef   :  { %1510 = vmatprep.mubr.f32.mxu0 %v4588_v56 }
  0xf0   :  { %5535 = vmatpush3.bf16.msra.mxu1 %v5534_v0 }
  0xf2   :  { %1511 = vmatmul.mubr.f32.gmra.mrb[28].mxu0 %v4587_v11  ;;  %v2287_v11 = vld [vmem:[%s8489_s3 + $0x180] sm:$0xff] }
  0xf3   :  { %1515 = vmatprep.mubr.f32.mxu0 %v675_v34  ;;  %v2288_v34 = vld [vmem:[%s8489_s3 + $0x188] sm:$0xff] }
  0xf6   :  { %1516 = vmatmul.mubr.f32.gmra.mrb[30].mxu0 %v674_v12  ;;  %v5536_v12 = vpack.c.bf16 %v2288_v34, %v2287_v11 }
  0xf7   :  { %1520 = vmatprep.mubr.f32.mxu0 %v680_v52 }
  0xf8   :  { %5537 = vmatprep.subr.bf16.mxu1 %v5536_v12 }
  0xfa   :  { %1521 = vmatmul.mubr.f32.gmra.mrb[32].mxu0 %v679_v39 }
  0xfb   :  { %1525 = vmatprep.mubr.f32.mxu0 %v4592_v45 }
  0xfe   :  { %1526 = vmatmul.mubr.f32.gmra.mrb[34].mxu0 %v4591_v31 }
  0xff   :  { %1530 = vmatprep.mubr.f32.mxu0 %v4596_v21 }
 0x102   :  { %1531 = vmatmul.mubr.f32.gmra.mrb[36].mxu0 %v4595_v35 }
 0x103   :  { %1535 = vmatprep.mubr.f32.mxu0 %v4600_v63  ;;  %v4552_v63 = vld [vmem:[%s8490_s2] ss:$0 sm:$0xff] }
 0x104   :  { %v7111_v54 = vcombine.low %v4552_v63, %v4552_v63 }
 0x106   :  { %1536 = vmatmul.mubr.f32.gmra.mrb[38].mxu0 %v4599_v38  ;;  %v1004_v38 = vcombine.high %v4552_v63, %v4552_v63 }
 0x108   :  { %v7107_v41 = vcombine.low %v4552_v63, %v1004_v38  ;;  %v7113_v3 = vcombine.low %v1004_v38, %v4552_v63 }
 0x13f   :  { %v5198_v14 = vpop.f32.mrb[0].mxu1 }
 0x140   :  { %v1607_v56 = vpop.f32.mrb[1].mxu1 }
 0x143   :  { %v5201_v52 = vpop.f32.mrb[2].mxu1 }
 0x144   :  { %v1617_v13 = vpop.f32.mrb[3].mxu1 }
 0x147   :  { %v7072_v37 = vpop.f32.mrb[4].mxu1 }
 0x148   :  { %v7074_v15 = vpop.f32.mrb[5].mxu1 }
 0x14b   :  { %v7076_v7 = vpop.f32.mrb[6].mxu1 }
 0x14c   :  { %v7078_v39 = vpop.f32.mrb[7].mxu1 }
 0x14f   :  { %v7080_v45 = vpop.f32.mrb[8].mxu1 }
 0x150   :  { %v7082_v18 = vpop.f32.mrb[9].mxu1 }
 0x153   :  { %v7084_v20 = vpop.f32.mrb[10].mxu1 }
 0x154   :  { %v7086_v25 = vpop.f32.mrb[11].mxu1 }
 0x157   :  { %v7088_v33 = vpop.f32.mrb[12].mxu1 }
 0x158   :  { %v7090_v30 = vpop.f32.mrb[13].mxu1 }
 0x15b   :  { %v7092_v31 = vpop.f32.mrb[14].mxu1 }
 0x15c   :  { %v7094_v61 = vpop.f32.mrb[15].mxu1 }
 0x15f   :  { %v7096_v21 = vpop.f32.mrb[16].mxu1 }
 0x160   :  { %v7098_v46 = vpop.f32.mrb[17].mxu1 }
 0x163   :  { %v7100_v35 = vpop.f32.mrb[18].mxu1 }
 0x164   :  { %v7102_v28 = vpop.f32.mrb[19].mxu1 }
 0x18d   :  { %v1442_v48 = vpop.f32.mrb[0].mxu0 }
 0x18e   :  { %v5792_v27 = vadd.f32 %v1442_v48, %v7107_v41  ;;  %v1444_v55 = vpop.f32.mrb[1].mxu0 }
 0x190   :  { %v1608_v57 = vadd.f32 %v5792_v27, %v1607_v56 }
 0x191   :  { %v1447_v2 = vpop.f32.mrb[2].mxu0 }
 0x192   :  { %v1726_v16 = vcombine.high %v1608_v57, %v1608_v57  ;;  %v5793_v58 = vadd.f32 %v1447_v2, %v7107_v41  ;;  %v1449_v62 = vpop.f32.mrb[3].mxu0  ;;  %v1766_v43 = vmax.f32 %v1608_v57, 0.0 }
 0x193   :  { %v2272_v62 = vld [vmem:[%s8489_s3 + $0x108] sm:$0xff] }
 0x194   :  { %v1767_v44 = vmax.f32 %v1726_v16, 0.0  ;;  %v1613_v49 = vadd.f32 %v5793_v58, %v5198_v14  ;;  %v2271_v58 = vld [vmem:[%s8489_s3 + $0x100] sm:$0xff] }
 0x195   :  { %v1452_v22 = vpop.f32.mrb[4].mxu0 }
 0x196   :  { %v1838_v59 = vcombine.low %v1766_v43, %v1767_v44  ;;  %v1727_v60 = vcombine.high %v1613_v49, %v1613_v49  ;;  %v1768_v6 = vmax.f32 %v1613_v49, 0.0  ;;  %v5794_v8 = vadd.f32 %v1452_v22, %v7111_v54  ;;  %v1454_v4 = vpop.f32.mrb[5].mxu0 }
 0x197   :  { %v7163_v4 = vld [vmem:[%s8489_s3 + $0x1a0] sm:$0xff] }
 0x198   :  { %1871 = vst.msk [vmem:[#allocation2] sm:$0xff] %vm1870_vm6, %v1838_v59  ;;  %v1769_v29 = vmax.f32 %v1727_v60, 0.0  ;;  %v2111_v40 = vcombine.low %v1767_v44, %v1768_v6  ;;  %v1618_v32 = vadd.f32 %v5794_v8, %v1617_v13  ;;  %v1895_v9 = vrot.slane %v1838_v59, 1  ;;  %v2290_v60 = vld [vmem:[%s8489_s3 + $0x198] sm:$0xff] }
 0x199   :  { %v1457_v5 = vpop.f32.mrb[6].mxu0  ;;  %v1967_v47 = vrot.slane %v1838_v59, 2  ;;  %v2039_v50 = vrot.slane %v1838_v59, 3  ;;  %v2289_v59 = vld [vmem:[%s8489_s3 + $0x190] sm:$0xff] }
 0x19a   :  { %v1839_v1 = vcombine.low %v1768_v6, %v1769_v29  ;;  %v5795_v36 = vadd.f32 %v1457_v5, %v7113_v3  ;;  %v1459_v42 = vpop.f32.mrb[7].mxu0  ;;  %2143 = vst.msk [vmem:[#allocation2 + $0x20] sm:$0xff] %vm1870_vm6, %v2111_v40  ;;  %v1728_v53 = vcombine.high %v1618_v32, %v1618_v32  ;;  %v1770_v17 = vmax.f32 %v1618_v32, 0.0  ;;  %v7153_v6 = vld [vmem:[%s8489_s3 + $0x110] sm:$0xff] }
 0x19c   :  { %1872 = vst.msk [vmem:[#allocation2 + $0x28] sm:$0xff] %vm1870_vm6, %v1839_v1  ;;  %v1896_v23 = vrot.slane %v1839_v1, 1  ;;  %v1968_v24 = vrot.slane %v1839_v1, 2  ;;  %v2040_v51 = vrot.slane %v1839_v1, 3  ;;  %v1623_v26 = vadd.f32 %v5795_v36, %v5201_v52 }
 0x19d   :  { %v1898_v10 = vrot.slane %v1770_v17, 1  ;;  %v1970_v19 = vrot.slane %v1770_v17, 2  ;;  %v2042_v0 = vrot.slane %v1770_v17, 3  ;;  %v1462_v14 = vpop.f32.mrb[8].mxu0  ;;  %v2112_v12 = vcombine.low %v1769_v29, %v1770_v17  ;;  %v7168_v29 = vld [vmem:[%s8489_s3 + $0x1a8] sm:$0xff] }
 0x19e   :  { %v1897_v56 = vsel %vm226_vm1, %v1895_v9, %v1896_v23  ;;  %v1969_v11 = vsel %vm315_vm5, %v1967_v47, %v1968_v24  ;;  %v2041_v34 = vsel %vm404_vm4, %v2039_v50, %v2040_v51  ;;  %v1464_v13 = vpop.f32.mrb[9].mxu0  ;;  %v1729_v48 = vcombine.high %v1623_v26, %v1623_v26 }
 0x19f   :  { %1951 = vst.msk [vmem:[#allocation2 + $0x8] sm:$0xff] %vm1870_vm6, %v1897_v56  ;;  %2023 = vst.msk [vmem:[#allocation2 + $0x10] sm:$0xff] %vm1870_vm6, %v1969_v11  ;;  %v1899_v52 = vsel %vm226_vm1, %v1896_v23, %v1898_v10  ;;  %v1971_v63 = vsel %vm315_vm5, %v1968_v24, %v1970_v19  ;;  %v2043_v38 = vsel %vm404_vm4, %v2040_v51, %v2042_v0  ;;  %v1771_v27 = vmax.f32 %v1728_v53, 0.0  ;;  %v2159_v10 = vld [vmem:[#allocation2] sm:$0xff] }
 0x1a0   :  { %2095 = vst.msk [vmem:[#allocation2 + $0x18] sm:$0xff] %vm1870_vm6, %v2041_v34  ;;  %1952 = vst.msk [vmem:[#allocation2 + $0x30] sm:$0xff] %vm1870_vm6, %v1899_v52  ;;  %v1772_v55 = vmax.f32 %v1623_v26, 0.0  ;;  %v5796_v57 = vadd.f32 %v1462_v14, %v7113_v3  ;;  %v1773_v2 = vmax.f32 %v1729_v48, 0.0  ;;  %v5538_v1 = vpack.c.bf16 %v2272_v62, %v2271_v58 }
 0x1a1   :  { %2024 = vst.msk [vmem:[#allocation2 + $0x38] sm:$0xff] %vm1870_vm6, %v1971_v63  ;;  %2096 = vst.msk [vmem:[#allocation2 + $0x40] sm:$0xff] %vm1870_vm6, %v2043_v38  ;;  %v1467_v16 = vpop.f32.mrb[10].mxu0  ;;  %v5540_v36 = vpack.c.bf16 %v2290_v60, %v2289_v59  ;;  %v5544_v23 = vpack.c.bf16 %v7168_v29, %v7163_v4 }
 0x1a2   :  { %2144 = vst.msk [vmem:[#allocation2 + $0x48] sm:$0xff] %vm1870_vm6, %v2112_v12  ;;  %v7140_v43 = vcombine.low %v1771_v27, %v1772_v55  ;;  %v1628_v44 = vadd.f32 %v5796_v57, %v7074_v15  ;;  %v5797_v49 = vadd.f32 %v1467_v16, %v7107_v41  ;;  %v1469_v22 = vpop.f32.mrb[11].mxu0  ;;  %v2113_v8 = vcombine.low %v1772_v55, %v1773_v2  ;;  %v7158_v15 = vld [vmem:[%s8489_s3 + $0x118] sm:$0xff]  ;;  %v2276_v16 = vld [vmem:[%s8489_s3 + $0x128] sm:$0xff] }
 0x1a3   :  { %v5542_v17 = vpack.c.bf16 %v7158_v15, %v7153_v6  ;;  %v2294_v22 = vld [vmem:[%s8489_s3 + $0x1b8] sm:$0xff] }
 0x1a4   :  { %1873 = vst.msk [vmem:[#allocation2 + $0x78] sm:$0xff] %vm1870_vm6, %v7140_v43  ;;  %v1730_v40 = vcombine.high %v1628_v44, %v1628_v44  ;;  %2145 = vst.msk [vmem:[#allocation2 + $0x98] sm:$0xff] %vm1870_vm6, %v2113_v8  ;;  %v1774_v32 = vmax.f32 %v1628_v44, 0.0  ;;  %v1633_v5 = vadd.f32 %v5797_v49, %v7072_v37  ;;  %v1900_v24 = vrot.slane %v7140_v43, 1  ;;  %v2164_v44 = vld [vmem:[#allocation2 + $0x28] sm:$0xff]  ;;  %v2293_v49 = vld [vmem:[%s8489_s3 + $0x1b0] sm:$0xff] }
 0x1a5   :  { %v1472_v9 = vpop.f32.mrb[12].mxu0  ;;  %v1972_v51 = vrot.slane %v7140_v43, 2  ;;  %v2044_v38 = vrot.slane %v7140_v43, 3 }
 0x1a6   :  { %v1775_v42 = vmax.f32 %v1730_v40, 0.0  ;;  %v5798_v47 = vadd.f32 %v1472_v9, %v7107_v41  ;;  %v1474_v50 = vpop.f32.mrb[13].mxu0  ;;  %v2160_v53 = vld [vmem:[#allocation2 + $0x8] sm:$0xff]  ;;  %v1841_v26 = vcombine.low %v1773_v2, %v1774_v32  ;;  %v1731_v37 = vcombine.high %v1633_v5, %v1633_v5  ;;  %v2275_v2 = vld [vmem:[%s8489_s3 + $0x120] sm:$0xff] }
 0x1a7   :  { %2390 = vmatprep.mubr.f32.mxu1 %v2160_v53  ;;  %v2165_v11 = vld [vmem:[#allocation2 + $0x30] sm:$0xff]  ;;  %v1776_v48 = vmax.f32 %v1633_v5, 0.0  ;;  %v5546_v40 = vpack.c.bf16 %v2276_v16, %v2275_v2  ;;  %v7219_v5 = vld [vmem:[%s8489_s3 + $0x138] sm:$0xff] }
 0x1a8   :  { %v1903_v19 = vrot.slane %v1775_v42, 1  ;;  %v1975_v0 = vrot.slane %v1775_v42, 2  ;;  %v2047_v14 = vrot.slane %v1775_v42, 3  ;;  %v2114_v56 = vcombine.low %v1774_v32, %v1775_v42  ;;  %2391 = vmatmul.mubr.f32.vlgmr.msra.gmra.mrb[20].mxu1 %v2159_v10  ;;  %1874 = vst.msk [vmem:[#allocation2 + $0xa0] sm:$0xff] %vm1870_vm6, %v1841_v26  ;;  %v7214_v32 = vld [vmem:[%s8489_s3 + $0x130] sm:$0xff] }
 0x1a9   :  { %v1901_v34 = vrot.slane %v1841_v26, 1  ;;  %v1973_v12 = vrot.slane %v1841_v26, 2  ;;  %v2045_v13 = vrot.slane %v1841_v26, 3  ;;  %v1777_v52 = vmax.f32 %v1731_v37, 0.0  ;;  %v1477_v63 = vpop.f32.mrb[14].mxu0  ;;  %2395 = vmatprep.mubr.f32.mxu1 %v2165_v11  ;;  %5539 = vmatpush3.bf16.msra.mxu1 %v5538_v1  ;;  %v2295_v26 = vld [vmem:[%s8489_s3 + $0x1c0] sm:$0xff] }
 0x1aa   :  { %2146 = vst.msk [vmem:[#allocation2 + $0xc0] sm:$0xff] %vm1870_vm6, %v2114_v56  ;;  %v1638_v27 = vadd.f32 %v5798_v47, %v7078_v39  ;;  %v5799_v55 = vadd.f32 %v1477_v63, %v7111_v54  ;;  %v1479_v57 = vpop.f32.mrb[15].mxu0  ;;  %5541 = vmatprep.subr.bf16.mxu1 %v5540_v36  ;;  %v5548_v36 = vpack.c.bf16 %v2294_v22, %v2293_v49 }
 0x1ab   :  { %v1902_v58 = vsel %vm226_vm1, %v1900_v24, %v1901_v34  ;;  %v1904_v62 = vsel %vm226_vm1, %v1901_v34, %v1903_v19  ;;  %v1974_v43 = vsel %vm315_vm5, %v1972_v51, %v1973_v12  ;;  %v1976_v39 = vsel %vm315_vm5, %v1973_v12, %v1975_v0  ;;  %v2280_v57 = vld [vmem:[%s8489_s3 + $0x148] sm:$0xff] }
 0x1ac   :  { %1953 = vst.msk [vmem:[#allocation2 + $0x80] sm:$0xff] %vm1870_vm6, %v1902_v58  ;;  %1954 = vst.msk [vmem:[#allocation2 + $0xa8] sm:$0xff] %vm1870_vm6, %v1904_v62  ;;  %v2046_v59 = vsel %vm404_vm4, %v2044_v38, %v2045_v13  ;;  %v2048_v60 = vsel %vm404_vm4, %v2045_v13, %v2047_v14  ;;  %v1842_v6 = vcombine.low %v1776_v48, %v1777_v52  ;;  %2396 = vmatmul.mubr.f32.gmra.mrb[22].mxu1 %v2164_v44  ;;  %v2169_v62 = vld [vmem:[#allocation2 + $0x78] sm:$0xff] }
 0x1ad   :  { %2025 = vst.msk [vmem:[#allocation2 + $0x88] sm:$0xff] %vm1870_vm6, %v1974_v43  ;;  %2026 = vst.msk [vmem:[#allocation2 + $0xb0] sm:$0xff] %vm1870_vm6, %v1976_v39  ;;  %v1732_v8 = vcombine.high %v1638_v27, %v1638_v27  ;;  %v1778_v15 = vmax.f32 %v1638_v27, 0.0  ;;  %v1643_v4 = vadd.f32 %v5799_v55, %v7076_v7  ;;  %v1482_v29 = vpop.f32.mrb[16].mxu0  ;;  %5543 = vmatpush3.bf16.msra.mxu1 %v5542_v17  ;;  %v2279_v55 = vld [vmem:[%s8489_s3 + $0x140] sm:$0xff]  ;;  %v2297_v43 = vld [vmem:[%s8489_s3 + $0x1d0] sm:$0xff] }
 0x1ae   :  { %2097 = vst.msk [vmem:[#allocation2 + $0x90] sm:$0xff] %vm1870_vm6, %v2046_v59  ;;  %2098 = vst.msk [vmem:[#allocation2 + $0xb8] sm:$0xff] %vm1870_vm6, %v2048_v60  ;;  %v1484_v1 = vpop.f32.mrb[17].mxu0  ;;  %5545 = vmatprep.subr.bf16.mxu1 %v5544_v23  ;;  %v5800_v50 = vadd.f32 %v1482_v29, %v7113_v3  ;;  %v1905_v53 = vrot.slane %v1842_v6, 1  ;;  %v1977_v17 = vrot.slane %v1842_v6, 2  ;;  %v5550_v51 = vpack.c.bf16 %v7219_v5, %v7214_v32  ;;  %v2296_v23 = vld [vmem:[%s8489_s3 + $0x1c8] sm:$0xff] }
 0x1af   :  { %1875 = vst.msk [vmem:[#allocation2 + $0xf0] sm:$0xff] %vm1870_vm6, %v1842_v6  ;;  %v1779_v9 = vmax.f32 %v1732_v8, 0.0  ;;  %v2115_v7 = vcombine.low %v1777_v52, %v1778_v15  ;;  %v1733_v42 = vcombine.high %v1643_v4, %v1643_v4  ;;  %v1780_v47 = vmax.f32 %v1643_v4, 0.0  ;;  %v2298_v39 = vld [vmem:[%s8489_s3 + $0x1d8] sm:$0xff]  ;;  %v7261_v8 = vld [vmem:[%s8489_s3 + $0x150] sm:$0xff]  ;;  %v7275_v5 = vld [vmem:[%s8489_s3 + $0x1e0] sm:$0xff] }
 0x1b0   :  { %v2049_v37 = vrot.slane %v1842_v6, 3  ;;  %v1648_v63 = vadd.f32 %v5800_v50, %v7082_v18  ;;  %v5552_v27 = vpack.c.bf16 %v2296_v23, %v2295_v26  ;;  %v7270_v32 = vld [vmem:[%s8489_s3 + $0x158] sm:$0xff] }
 0x1b1   :  { %v1843_v24 = vcombine.low %v1778_v15, %v1779_v9  ;;  %2147 = vst.msk [vmem:[#allocation2 + $0x110] sm:$0xff] %vm1870_vm6, %v2115_v7  ;;  %v1908_v10 = vrot.slane %v1780_v47, 1  ;;  %v1980_v19 = vrot.slane %v1780_v47, 2  ;;  %v2052_v0 = vrot.slane %v1780_v47, 3  ;;  %v1487_v14 = vpop.f32.mrb[18].mxu0  ;;  %5547 = vmatpush3.bf16.msra.mxu1 %v5546_v40 }
 0x1b2   :  { %v2116_v12 = vcombine.low %v1779_v9, %v1780_v47  ;;  %v1489_v13 = vpop.f32.mrb[19].mxu0  ;;  %5549 = vmatprep.subr.bf16.mxu1 %v5548_v36  ;;  %v1781_v52 = vmax.f32 %v1733_v42, 0.0  ;;  %v5801_v38 = vadd.f32 %v1487_v14, %v7113_v3  ;;  %v1734_v22 = vcombine.high %v1648_v63, %v1648_v63  ;;  %v2174_v47 = vld [vmem:[#allocation2 + $0xa0] sm:$0xff] }
 0x1b3   :  { %1876 = vst.msk [vmem:[#allocation2 + $0x118] sm:$0xff] %vm1870_vm6, %v1843_v24  ;;  %v1906_v56 = vrot.slane %v1843_v24, 1  ;;  %v1978_v11 = vrot.slane %v1843_v24, 2  ;;  %v2050_v34 = vrot.slane %v1843_v24, 3  ;;  %v2170_v48 = vld [vmem:[#allocation2 + $0x80] sm:$0xff]  ;;  %v1782_v59 = vmax.f32 %v1648_v63, 0.0 }
 0x1b4   :  { %2148 = vst.msk [vmem:[#allocation2 + $0x138] sm:$0xff] %vm1870_vm6, %v2116_v12  ;;  %2400 = vmatprep.mubr.f32.mxu1 %v2170_v48  ;;  %v2175_v60 = vld [vmem:[#allocation2 + $0xa8] sm:$0xff]  ;;  %v1653_v15 = vadd.f32 %v5801_v38, %v7080_v45  ;;  %v5554_v40 = vpack.c.bf16 %v2280_v57, %v2279_v55  ;;  %v1783_v9 = vmax.f32 %v1734_v22, 0.0  ;;  %v5556_v36 = vpack.c.bf16 %v2298_v39, %v2297_v43  ;;  %v2283_v63 = vld [vmem:[%s8489_s3 + $0x160] sm:$0xff]  ;;  %v2302_v22 = vld [vmem:[%s8489_s3 + $0x1f8] sm:$0xff] }
 0x1b5   :  { %v1907_v2 = vsel %vm226_vm1, %v1905_v53, %v1906_v56  ;;  %v1979_v16 = vsel %vm315_vm5, %v1977_v17, %v1978_v11  ;;  %v2051_v58 = vsel %vm404_vm4, %v2049_v37, %v2050_v34  ;;  %v1909_v18 = vsel %vm226_vm1, %v1906_v56, %v1908_v10  ;;  %2401 = vmatmul.mubr.f32.gmra.mrb[24].mxu1 %v2169_v62  ;;  %v1492_v6 = vpop.f32.mrb[20].mxu0  ;;  %v7280_v45 = vld [vmem:[%s8489_s3 + $0x1e8] sm:$0xff] }
 0x1b6   :  { %1955 = vst.msk [vmem:[#allocation2 + $0xf8] sm:$0xff] %vm1870_vm6, %v1907_v2  ;;  %2027 = vst.msk [vmem:[#allocation2 + $0x100] sm:$0xff] %vm1870_vm6, %v1979_v16  ;;  %v1981_v44 = vsel %vm315_vm5, %v1978_v11, %v1980_v19  ;;  %v2053_v49 = vsel %vm404_vm4, %v2050_v34, %v2052_v0  ;;  %2405 = vmatprep.mubr.f32.mxu1 %v2175_v60  ;;  %v5802_v4 = vadd.f32 %v1492_v6, %v7107_v41  ;;  %v1494_v29 = vpop.f32.mrb[21].mxu0  ;;  %v2179_v57 = vld [vmem:[#allocation2 + $0xf0] sm:$0xff]  ;;  %v2284_v16 = vld [vmem:[%s8489_s3 + $0x168] sm:$0xff] }
 0x1b7   :  { %2099 = vst.msk [vmem:[#allocation2 + $0x108] sm:$0xff] %vm1870_vm6, %v2051_v58  ;;  %1956 = vst.msk [vmem:[#allocation2 + $0x120] sm:$0xff] %vm1870_vm6, %v1909_v18  ;;  %5551 = vmatpush3.bf16.msra.mxu1 %v5550_v51  ;;  %v1844_v1 = vcombine.low %v1781_v52, %v1782_v59  ;;  %v1735_v7 = vcombine.high %v1653_v15, %v1653_v15  ;;  %v1784_v42 = vmax.f32 %v1653_v15, 0.0  ;;  %v7321_v29 = vld [vmem:[%s8489_s3 + $0x170] sm:$0xff] }
 0x1b8   :  { %2028 = vst.msk [vmem:[#allocation2 + $0x128] sm:$0xff] %vm1870_vm6, %v1981_v44  ;;  %2100 = vst.msk [vmem:[#allocation2 + $0x130] sm:$0xff] %vm1870_vm6, %v2053_v49  ;;  %5553 = vmatprep.subr.bf16.mxu1 %v5552_v27  ;;  %v1658_v50 = vadd.f32 %v5802_v4, %v7086_v25  ;;  %v2117_v53 = vcombine.low %v1782_v59, %v1783_v9  ;;  %v5558_v24 = vpack.c.bf16 %v7270_v32, %v7261_v8  ;;  %v2301_v49 = vld [vmem:[%s8489_s3 + $0x1f0] sm:$0xff] }
 0x1b9   :  { %1877 = vst.msk [vmem:[#allocation2 + $0x168] sm:$0xff] %vm1870_vm6, %v1844_v1  ;;  %2406 = vmatmul.mubr.f32.gmra.mrb[26].mxu1 %v2174_v47  ;;  %v1497_v17 = vpop.f32.mrb[22].mxu0  ;;  %v5560_v51 = vpack.c.bf16 %v7280_v45, %v7275_v5  ;;  %v1910_v26 = vrot.slane %v1844_v1, 1  ;;  %v1785_v23 = vmax.f32 %v1735_v7, 0.0  ;;  %v1845_v37 = vcombine.low %v1783_v9, %v1784_v42  ;;  %v2304_v47 = vld [vmem:[%s8489_s3 + $0x208] sm:$0xff] }
 0x1ba   :  { %v1736_v10 = vcombine.high %v1658_v50, %v1658_v50  ;;  %v1499_v19 = vpop.f32.mrb[23].mxu0  ;;  %v1982_v0 = vrot.slane %v1844_v1, 2  ;;  %v2054_v14 = vrot.slane %v1844_v1, 3  ;;  %2149 = vst.msk [vmem:[#allocation2 + $0x188] sm:$0xff] %vm1870_vm6, %v2117_v53  ;;  %v1786_v25 = vmax.f32 %v1658_v50, 0.0  ;;  %v2184_v32 = vld [vmem:[#allocation2 + $0x118] sm:$0xff] }
 0x1bb   :  { %5555 = vmatpush3.bf16.msra.mxu1 %v5554_v40  ;;  %v5803_v56 = vadd.f32 %v1497_v17, %v7107_v41  ;;  %1878 = vst.msk [vmem:[#allocation2 + $0x190] sm:$0xff] %vm1870_vm6, %v1845_v37  ;;  %v1911_v11 = vrot.slane %v1845_v37, 1  ;;  %v1913_v34 = vrot.slane %v1785_v23, 1  ;;  %v1983_v12 = vrot.slane %v1845_v37, 2  ;;  %v7326_v40 = vld [vmem:[%s8489_s3 + $0x178] sm:$0xff] }
 0x1bc   :  { %5557 = vmatprep.subr.bf16.mxu1 %v5556_v36  ;;  %v1985_v13 = vrot.slane %v1785_v23, 2  ;;  %v2055_v38 = vrot.slane %v1845_v37, 3  ;;  %v2057_v48 = vrot.slane %v1785_v23, 3  ;;  %v2118_v27 = vcombine.low %v1784_v42, %v1785_v23  ;;  %v2303_v42 = vld [vmem:[%s8489_s3 + $0x200] sm:$0xff] }
 0x1bd   :  { %v2180_v52 = vld [vmem:[#allocation2 + $0xf8] sm:$0xff]  ;;  %v1787_v55 = vmax.f32 %v1736_v10, 0.0  ;;  %v1502_v2 = vpop.f32.mrb[24].mxu0  ;;  %v1912_v58 = vsel %vm226_vm1, %v1910_v26, %v1911_v11  ;;  %v1914_v18 = vsel %vm226_vm1, %v1911_v11, %v1913_v34  ;;  %v1984_v62 = vsel %vm315_vm5, %v1982_v0, %v1983_v12 }
 0x1be   :  { %2410 = vmatprep.mubr.f32.mxu1 %v2180_v52  ;;  %v1986_v43 = vsel %vm315_vm5, %v1983_v12, %v1985_v13  ;;  %v2185_v39 = vld [vmem:[#allocation2 + $0x120] sm:$0xff]  ;;  %v1504_v44 = vpop.f32.mrb[25].mxu0  ;;  %1957 = vst.msk [vmem:[#allocation2 + $0x170] sm:$0xff] %vm1870_vm6, %v1912_v58  ;;  %1958 = vst.msk [vmem:[#allocation2 + $0x198] sm:$0xff] %vm1870_vm6, %v1914_v18  ;;  %v2056_v59 = vsel %vm404_vm4, %v2054_v14, %v2055_v38  ;;  %v2058_v60 = vsel %vm404_vm4, %v2055_v38, %v2057_v48 }
 0x1bf   :  { %2411 = vmatmul.mubr.f32.gmra.mrb[28].mxu1 %v2179_v57  ;;  %2029 = vst.msk [vmem:[#allocation2 + $0x178] sm:$0xff] %vm1870_vm6, %v1984_v62  ;;  %2030 = vst.msk [vmem:[#allocation2 + $0x1a0] sm:$0xff] %vm1870_vm6, %v1986_v43  ;;  %v1846_v6 = vcombine.low %v1786_v25, %v1787_v55  ;;  %v1663_v8 = vadd.f32 %v5803_v56, %v7084_v20  ;;  %v5804_v15 = vadd.f32 %v1502_v2, %v7111_v54 }
 0x1c0   :  { %2150 = vst.msk [vmem:[#allocation2 + $0x1b0] sm:$0xff] %vm1870_vm6, %v2118_v27  ;;  %2415 = vmatprep.mubr.f32.mxu1 %v2185_v39  ;;  %2101 = vst.msk [vmem:[#allocation2 + $0x180] sm:$0xff] %vm1870_vm6, %v2056_v59  ;;  %5559 = vmatpush3.bf16.msra.mxu1 %v5558_v24  ;;  %v5562_v4 = vpack.c.bf16 %v2284_v16, %v2283_v63  ;;  %v5564_v45 = vpack.c.bf16 %v2302_v22, %v2301_v49  ;;  %v2189_v63 = vld [vmem:[#allocation2 + $0x168] sm:$0xff] }
 0x1c1   :  { %2102 = vst.msk [vmem:[#allocation2 + $0x1a8] sm:$0xff] %vm1870_vm6, %v2058_v60  ;;  %1879 = vst.msk [vmem:[#allocation2 + $0x1e0] sm:$0xff] %vm1870_vm6, %v1846_v6  ;;  %v1737_v20 = vcombine.high %v1663_v8, %v1663_v8  ;;  %v1507_v5 = vpop.f32.mrb[26].mxu0  ;;  %5561 = vmatprep.subr.bf16.mxu1 %v5560_v51  ;;  %v1788_v9 = vmax.f32 %v1663_v8, 0.0  ;;  %v1668_v1 = vadd.f32 %v5804_v15, %v7090_v30  ;;  %v1915_v26 = vrot.slane %v1846_v6, 1 }
 0x1c2   :  { %v5805_v36 = vadd.f32 %v1507_v5, %v7113_v3  ;;  %v1509_v7 = vpop.f32.mrb[27].mxu0  ;;  %v5566_v53 = vpack.c.bf16 %v7326_v40, %v7321_v29  ;;  %v1987_v23 = vrot.slane %v1846_v6, 2  ;;  %v7340_v19 = vpack.c.bf16 %v2304_v47, %v2303_v42 }
 0x1c3   :  { %2416 = vmatmul.mubr.f32.gmra.mrb[30].mxu1 %v2184_v32  ;;  %v1789_v50 = vmax.f32 %v1737_v20, 0.0  ;;  %v2119_v17 = vcombine.low %v1787_v55, %v1788_v9  ;;  %v1738_v24 = vcombine.high %v1668_v1, %v1668_v1  ;;  %v1790_v51 = vmax.f32 %v1668_v1, 0.0 }
 0x1c4   :  { %v1673_v30 = vadd.f32 %v5805_v36, %v7088_v33  ;;  %5563 = vmatpush3.bf16.msra.mxu1 %v5562_v4  ;;  %v2059_v0 = vrot.slane %v1846_v6, 3  ;;  %v2194_v6 = vld [vmem:[#allocation2 + $0x190] sm:$0xff] }
 0x1c5   :  { %v1847_v37 = vcombine.low %v1788_v9, %v1789_v50  ;;  %v1512_v10 = vpop.f32.mrb[28].mxu0  ;;  %5565 = vmatprep.subr.bf16.mxu1 %v5564_v45  ;;  %2151 = vst.msk [vmem:[#allocation2 + $0x200] sm:$0xff] %vm1870_vm6, %v2119_v17  ;;  %v1918_v14 = vrot.slane %v1790_v51, 1  ;;  %v1990_v25 = vrot.slane %v1790_v51, 2  ;;  %v2062_v56 = vrot.slane %v1790_v51, 3  ;;  %v2190_v11 = vld [vmem:[#allocation2 + $0x170] sm:$0xff] }
 0x1c6   :  { %v1514_v34 = vpop.f32.mrb[29].mxu0  ;;  %v2120_v52 = vcombine.low %v1789_v50, %v1790_v51  ;;  %2420 = vmatprep.mubr.f32.mxu1 %v2190_v11  ;;  %v1791_v38 = vmax.f32 %v1738_v24, 0.0  ;;  %v1739_v48 = vcombine.high %v1673_v30, %v1673_v30  ;;  %v1792_v27 = vmax.f32 %v1673_v30, 0.0  ;;  %v2195_v57 = vld [vmem:[#allocation2 + $0x198] sm:$0xff] }
 0x1c7   :  { %1880 = vst.msk [vmem:[#allocation2 + $0x208] sm:$0xff] %vm1870_vm6, %v1847_v37  ;;  %v1916_v12 = vrot.slane %v1847_v37, 1  ;;  %v1988_v33 = vrot.slane %v1847_v37, 2  ;;  %v2060_v13 = vrot.slane %v1847_v37, 3  ;;  %v5806_v55 = vadd.f32 %v1512_v10, %v7113_v3  ;;  %2421 = vmatmul.mubr.f32.gmra.mrb[32].mxu1 %v2189_v63 }
 0x1c8   :  { %2152 = vst.msk [vmem:[#allocation2 + $0x228] sm:$0xff] %vm1870_vm6, %v2120_v52  ;;  %2425 = vmatprep.mubr.f32.mxu1 %v2195_v57  ;;  %v1793_v44 = vmax.f32 %v1739_v48, 0.0  ;;  %v1848_v49 = vcombine.low %v1791_v38, %v1792_v27  ;;  %5567 = vmatpush3.bf16.msra.mxu1 %v5566_v53 }
 0x1c9   :  { %v1917_v2 = vsel %vm226_vm1, %v1915_v26, %v1916_v12  ;;  %v1989_v16 = vsel %vm315_vm5, %v1987_v23, %v1988_v33  ;;  %v2061_v58 = vsel %vm404_vm4, %v2059_v0, %v2060_v13  ;;  %v1919_v18 = vsel %vm226_vm1, %v1916_v12, %v1918_v14  ;;  %v1517_v62 = vpop.f32.mrb[30].mxu0  ;;  %5569 = vmatprep.subr.bf16.mxu1 %v7340_v19  ;;  %v2199_v23 = vld [vmem:[#allocation2 + $0x1e0] sm:$0xff] }
 0x1ca   :  { %1959 = vst.msk [vmem:[#allocation2 + $0x1e8] sm:$0xff] %vm1870_vm6, %v1917_v2  ;;  %2031 = vst.msk [vmem:[#allocation2 + $0x1f0] sm:$0xff] %vm1870_vm6, %v1989_v16  ;;  %v1991_v43 = vsel %vm315_vm5, %v1988_v33, %v1990_v25  ;;  %v2063_v39 = vsel %vm404_vm4, %v2060_v13, %v2062_v56  ;;  %v1519_v22 = vpop.f32.mrb[31].mxu0  ;;  %v1678_v59 = vadd.f32 %v5806_v55, %v7094_v61  ;;  %v1920_v61 = vrot.slane %v1848_v49, 1 }
 0x1cb   :  { %2103 = vst.msk [vmem:[#allocation2 + $0x1f8] sm:$0xff] %vm1870_vm6, %v2061_v58  ;;  %1960 = vst.msk [vmem:[#allocation2 + $0x210] sm:$0xff] %vm1870_vm6, %v1919_v18  ;;  %v5807_v60 = vadd.f32 %v1517_v62, %v7107_v41  ;;  %v2121_v8 = vcombine.low %v1792_v27, %v1793_v44  ;;  %2426 = vmatmul.mubr.f32.gmra.mrb[34].mxu1 %v2194_v6  ;;  %v1992_v1 = vrot.slane %v1848_v49, 2  ;;  %v2064_v36 = vrot.slane %v1848_v49, 3 }
 0x1cc   :  { %2032 = vst.msk [vmem:[#allocation2 + $0x218] sm:$0xff] %vm1870_vm6, %v1991_v43  ;;  %2104 = vst.msk [vmem:[#allocation2 + $0x220] sm:$0xff] %vm1870_vm6, %v2063_v39  ;;  %v1740_v15 = vcombine.high %v1678_v59, %v1678_v59  ;;  %v1794_v4 = vmax.f32 %v1678_v59, 0.0 }
 0x1cd   :  { %1881 = vst.msk [vmem:[#allocation2 + $0x258] sm:$0xff] %vm1870_vm6, %v1848_v49  ;;  %v1683_v29 = vadd.f32 %v5807_v60, %v7092_v31  ;;  %v1522_v40 = vpop.f32.mrb[32].mxu0  ;;  %2153 = vst.msk [vmem:[#allocation2 + $0x278] sm:$0xff] %vm1870_vm6, %v2121_v8 }
 0x1ce   :  { %v5808_v20 = vadd.f32 %v1522_v40, %v7107_v41  ;;  %v1524_v32 = vpop.f32.mrb[33].mxu0  ;;  %v1795_v5 = vmax.f32 %v1740_v15, 0.0  ;;  %v1849_v45 = vcombine.low %v1793_v44, %v1794_v4  ;;  %v2204_v38 = vld [vmem:[#allocation2 + $0x208] sm:$0xff] }
 0x1cf   :  { %v1741_v9 = vcombine.high %v1683_v29, %v1683_v29  ;;  %v1796_v7 = vmax.f32 %v1683_v29, 0.0 }
 0x1d0   :  { %v1688_v42 = vadd.f32 %v5808_v20, %v7098_v46  ;;  %1882 = vst.msk [vmem:[#allocation2 + $0x280] sm:$0xff] %vm1870_vm6, %v1849_v45  ;;  %v1921_v47 = vrot.slane %v1849_v45, 1  ;;  %v1923_v50 = vrot.slane %v1795_v5, 1  ;;  %v1993_v31 = vrot.slane %v1849_v45, 2 }
 0x1d1   :  { %v1995_v53 = vrot.slane %v1795_v5, 2  ;;  %v2200_v17 = vld [vmem:[#allocation2 + $0x1e8] sm:$0xff]  ;;  %v1527_v24 = vpop.f32.mrb[34].mxu0  ;;  %v2065_v51 = vrot.slane %v1849_v45, 3  ;;  %v2067_v41 = vrot.slane %v1795_v5, 3  ;;  %v2122_v30 = vcombine.low %v1794_v4, %v1795_v5 }
 0x1d2   :  { %v1797_v26 = vmax.f32 %v1741_v9, 0.0  ;;  %2430 = vmatprep.mubr.f32.mxu1 %v2200_v17  ;;  %v1529_v37 = vpop.f32.mrb[35].mxu0  ;;  %v1922_v10 = vsel %vm226_vm1, %v1920_v61, %v1921_v47  ;;  %v1924_v0 = vsel %vm226_vm1, %v1921_v47, %v1923_v50  ;;  %v1994_v46 = vsel %vm315_vm5, %v1992_v1, %v1993_v31  ;;  %v2205_v25 = vld [vmem:[#allocation2 + $0x210] sm:$0xff] }
 0x1d3   :  { %v1996_v14 = vsel %vm315_vm5, %v1993_v31, %v1995_v53  ;;  %2431 = vmatmul.mubr.f32.gmra.mrb[36].mxu1 %v2199_v23  ;;  %1961 = vst.msk [vmem:[#allocation2 + $0x260] sm:$0xff] %vm1870_vm6, %v1922_v10  ;;  %1962 = vst.msk [vmem:[#allocation2 + $0x288] sm:$0xff] %vm1870_vm6, %v1924_v0  ;;  %v2066_v56 = vsel %vm404_vm4, %v2064_v36, %v2065_v51  ;;  %v2068_v11 = vsel %vm404_vm4, %v2065_v51, %v2067_v41 }
 0x1d4   :  { %2033 = vst.msk [vmem:[#allocation2 + $0x268] sm:$0xff] %vm1870_vm6, %v1994_v46  ;;  %2034 = vst.msk [vmem:[#allocation2 + $0x290] sm:$0xff] %vm1870_vm6, %v1996_v14  ;;  %v1850_v34 = vcombine.low %v1796_v7, %v1797_v26  ;;  %v1742_v12 = vcombine.high %v1688_v42, %v1688_v42  ;;  %2435 = vmatprep.mubr.f32.mxu1 %v2205_v25  ;;  %v1798_v33 = vmax.f32 %v1688_v42, 0.0  ;;  %v2209_v20 = vld [vmem:[#allocation2 + $0x258] sm:$0xff] }
 0x1d5   :  { %2154 = vst.msk [vmem:[#allocation2 + $0x2a0] sm:$0xff] %vm1870_vm6, %v2122_v30  ;;  %2105 = vst.msk [vmem:[#allocation2 + $0x270] sm:$0xff] %vm1870_vm6, %v2066_v56  ;;  %v5809_v13 = vadd.f32 %v1527_v24, %v7111_v54  ;;  %v1532_v52 = vpop.f32.mrb[36].mxu0 }
 0x1d6   :  { %2106 = vst.msk [vmem:[#allocation2 + $0x298] sm:$0xff] %vm1870_vm6, %v2068_v11  ;;  %1883 = vst.msk [vmem:[#allocation2 + $0x2d0] sm:$0xff] %vm1870_vm6, %v1850_v34  ;;  %v1799_v63 = vmax.f32 %v1742_v12, 0.0  ;;  %v1534_v48 = vpop.f32.mrb[37].mxu0  ;;  %v2123_v27 = vcombine.low %v1797_v26, %v1798_v33  ;;  %v5810_v57 = vadd.f32 %v1532_v52, %v7113_v3  ;;  %v1925_v2 = vrot.slane %v1850_v34, 1 }
 0x1d7   :  { %v1693_v55 = vadd.f32 %v5809_v13, %v7096_v21  ;;  %2436 = vmatmul.mubr.f32.gmra.mrb[38].mxu1 %v2204_v38  ;;  %v1997_v16 = vrot.slane %v1850_v34, 2  ;;  %v2069_v18 = vrot.slane %v1850_v34, 3  ;;  %v2214_v31 = vld [vmem:[#allocation2 + $0x280] sm:$0xff] }
 0x1d8   :  { %v1851_v58 = vcombine.low %v1798_v33, %v1799_v63  ;;  %2155 = vst.msk [vmem:[#allocation2 + $0x2f0] sm:$0xff] %vm1870_vm6, %v2123_v27  ;;  %v1698_v43 = vadd.f32 %v5810_v57, %v7102_v28  ;;  %v2305_v57 = vld [vmem:[%s8489_s3 + $0x210] sm:$0xff] }
 0x1d9   :  { %v1743_v62 = vcombine.high %v1693_v55, %v1693_v55  ;;  %v1800_v54 = vmax.f32 %v1693_v55, 0.0  ;;  %v1537_v39 = vpop.f32.mrb[38].mxu0 }
 0x1da   :  { %1884 = vst.msk [vmem:[#allocation2 + $0x2f8] sm:$0xff] %vm1870_vm6, %v1851_v58  ;;  %v1926_v44 = vrot.slane %v1851_v58, 1  ;;  %v1998_v49 = vrot.slane %v1851_v58, 2  ;;  %v2070_v22 = vrot.slane %v1851_v58, 3  ;;  %v5811_v21 = vadd.f32 %v1537_v39, %v7113_v3  ;;  %v1539_v59 = vpop.f32.mrb[39].mxu0  ;;  %v2210_v15 = vld [vmem:[#allocation2 + $0x260] sm:$0xff] }
 0x1db   :  { %v1928_v60 = vrot.slane %v1800_v54, 1  ;;  %v2000_v6 = vrot.slane %v1800_v54, 2  ;;  %v2072_v8 = vrot.slane %v1800_v54, 3  ;;  %v2124_v28 = vcombine.low %v1799_v63, %v1800_v54  ;;  %2440 = vmatprep.mubr.f32.mxu1 %v2210_v15  ;;  %v2215_v45 = vld [vmem:[#allocation2 + $0x288] sm:$0xff] }
 0x1dc   :  { %v1927_v4 = vsel %vm226_vm1, %v1925_v2, %v1926_v44  ;;  %v1999_v29 = vsel %vm315_vm5, %v1997_v16, %v1998_v49  ;;  %v2071_v40 = vsel %vm404_vm4, %v2069_v18, %v2070_v22  ;;  %v1744_v5 = vcombine.high %v1698_v43, %v1698_v43  ;;  %2441 = vmatmul.mubr.f32.gmra.mrb[40].mxu1 %v2209_v20  ;;  %v2306_v2 = vld [vmem:[%s8489_s3 + $0x218] sm:$0xff]  ;;  %v2161_v18 = vld [vmem:[#allocation2 + $0x10] sm:$0xff]  ;;  %v2308_v54 = vld [vmem:[%s8489_s3 + $0x228] sm:$0xff] }
 0x1dd   :  { %1963 = vst.msk [vmem:[#allocation2 + $0x2d8] sm:$0xff] %vm1870_vm6, %v1927_v4  ;;  %2035 = vst.msk [vmem:[#allocation2 + $0x2e0] sm:$0xff] %vm1870_vm6, %v1999_v29  ;;  %v1929_v3 = vsel %vm226_vm1, %v1926_v44, %v1928_v60  ;;  %v2001_v32 = vsel %vm315_vm5, %v1998_v49, %v2000_v6  ;;  %v2073_v61 = vsel %vm404_vm4, %v2070_v22, %v2072_v8  ;;  %v1801_v9 = vmax.f32 %v1743_v62, 0.0  ;;  %v2219_v14 = vld [vmem:[#allocation2 + $0x2d0] sm:$0xff]  ;;  %v2162_v16 = vld [vmem:[#allocation2 + $0x18] sm:$0xff] }
 0x1de   :  { %2107 = vst.msk [vmem:[#allocation2 + $0x2e8] sm:$0xff] %vm1870_vm6, %v2071_v40  ;;  %1964 = vst.msk [vmem:[#allocation2 + $0x300] sm:$0xff] %vm1870_vm6, %v1929_v3  ;;  %v1802_v1 = vmax.f32 %v1698_v43, 0.0  ;;  %v1703_v36 = vadd.f32 %v5811_v21, %v7100_v35  ;;  %2445 = vmatprep.mubr.f32.mxu1 %v2215_v45  ;;  %v1803_v7 = vmax.f32 %v1744_v5, 0.0  ;;  %v5572_v58 = vpack.c.bf16 %v2306_v2, %v2305_v57  ;;  %v2307_v62 = vld [vmem:[%s8489_s3 + $0x220] sm:$0xff]  ;;  %v2166_v44 = vld [vmem:[#allocation2 + $0x38] sm:$0xff] }
 0x1df   :  { %2036 = vst.msk [vmem:[#allocation2 + $0x308] sm:$0xff] %vm1870_vm6, %v2001_v32  ;;  %2108 = vst.msk [vmem:[#allocation2 + $0x310] sm:$0xff] %vm1870_vm6, %v2073_v61  ;;  %v2167_v43 = vld [vmem:[#allocation2 + $0x40] sm:$0xff]  ;;  %v5576_v39 = vpack.c.bf16 %v2308_v54, %v2307_v62  ;;  %v2309_v49 = vld [vmem:[%s8489_s3 + $0x230] sm:$0xff] }
 0x1e0   :  { %2156 = vst.msk [vmem:[#allocation2 + $0x318] sm:$0xff] %vm1870_vm6, %v2124_v28  ;;  %v1852_v42 = vcombine.low %v1801_v9, %v1802_v1  ;;  %v1745_v47 = vcombine.high %v1703_v36, %v1703_v36  ;;  %v1804_v50 = vmax.f32 %v1703_v36, 0.0  ;;  %v2125_v53 = vcombine.low %v1802_v1, %v1803_v7  ;;  %2446 = vmatmul.mubr.f32.gmra.mrb[42].mxu1 %v2214_v31  ;;  %v2310_v22 = vld [vmem:[%s8489_s3 + $0x238] sm:$0xff]  ;;  %v2172_v21 = vld [vmem:[#allocation2 + $0x90] sm:$0xff]  ;;  %v2171_v60 = vld [vmem:[#allocation2 + $0x88] sm:$0xff] }
 0x1e1   :  { %v2224_v63 = vld [vmem:[#allocation2 + $0x2f8] sm:$0xff]  ;;  %v5580_v59 = vpack.c.bf16 %v2310_v22, %v2309_v49  ;;  %v2312_v6 = vld [vmem:[%s8489_s3 + $0x248] sm:$0xff]  ;;  %v2176_v4 = vld [vmem:[#allocation2 + $0xb0] sm:$0xff] }
 0x1e2   :  { %1885 = vst.msk [vmem:[#allocation2 + $0x348] sm:$0xff] %vm1870_vm6, %v1852_v42  ;;  %v1805_v17 = vmax.f32 %v1745_v47, 0.0  ;;  %v1930_v24 = vrot.slane %v1852_v42, 1  ;;  %2157 = vst.msk [vmem:[#allocation2 + $0x368] sm:$0xff] %vm1870_vm6, %v2125_v53  ;;  %v1853_v51 = vcombine.low %v1803_v7, %v1804_v50  ;;  %v2002_v37 = vrot.slane %v1852_v42, 2  ;;  %v2177_v8 = vld [vmem:[#allocation2 + $0xb8] sm:$0xff] }
 0x1e3   :  { %v2074_v25 = vrot.slane %v1852_v42, 3  ;;  %v2313_v29 = vld [vmem:[%s8489_s3 + $0x250] sm:$0xff]  ;;  %v2314_v40 = vld [vmem:[%s8489_s3 + $0x258] sm:$0xff]  ;;  %v2182_v28 = vld [vmem:[#allocation2 + $0x108] sm:$0xff] }
 0x1e4   :  { %v1933_v41 = vrot.slane %v1805_v17, 1  ;;  %v2005_v30 = vrot.slane %v1805_v17, 2  ;;  %v2077_v26 = vrot.slane %v1805_v17, 3  ;;  %v2126_v23 = vcombine.low %v1804_v50, %v1805_v17  ;;  %v2220_v35 = vld [vmem:[#allocation2 + $0x2d8] sm:$0xff]  ;;  %1886 = vst.msk [vmem:[#allocation2 + $0x370] sm:$0xff] %vm1870_vm6, %v1853_v51  ;;  %v2181_v3 = vld [vmem:[#allocation2 + $0x100] sm:$0xff] }
 0x1e5   :  { %v1931_v10 = vrot.slane %v1853_v51, 1  ;;  %v2003_v0 = vrot.slane %v1853_v51, 2  ;;  %v2075_v46 = vrot.slane %v1853_v51, 3  ;;  %2450 = vmatprep.mubr.f32.mxu1 %v2220_v35  ;;  %v2225_v56 = vld [vmem:[#allocation2 + $0x300] sm:$0xff]  ;;  %v5588_v20 = vpack.c.bf16 %v2314_v40, %v2313_v29  ;;  %v2316_v61 = vld [vmem:[%s8489_s3 + $0x268] sm:$0xff]  ;;  %v2187_v5 = vld [vmem:[#allocation2 + $0x130] sm:$0xff] }
 0x1e6   :  { %2158 = vst.msk [vmem:[#allocation2 + $0x390] sm:$0xff] %vm1870_vm6, %v2126_v23  ;;  %2451 = vmatmul.mubr.f32.gmra.mrb[44].mxu1 %v2219_v14  ;;  %v2315_v32 = vld [vmem:[%s8489_s3 + $0x260] sm:$0xff]  ;;  %v2186_v9 = vld [vmem:[#allocation2 + $0x128] sm:$0xff]  ;;  %v2317_v1 = vld [vmem:[%s8489_s3 + $0x270] sm:$0xff] }
 0x1e7   :  { %v1932_v11 = vsel %vm226_vm1, %v1930_v24, %v1931_v10  ;;  %v1934_v34 = vsel %vm226_vm1, %v1931_v10, %v1933_v41  ;;  %v2004_v12 = vsel %vm315_vm5, %v2002_v37, %v2003_v0  ;;  %v2006_v33 = vsel %vm315_vm5, %v2003_v0, %v2005_v30  ;;  %2455 = vmatprep.mubr.f32.mxu1 %v2225_v56  ;;  %v2318_v36 = vld [vmem:[%s8489_s3 + $0x278] sm:$0xff]  ;;  %v2192_v7 = vld [vmem:[#allocation2 + $0x180] sm:$0xff]  ;;  %v2197_v50 = vld [vmem:[#allocation2 + $0x1a8] sm:$0xff] }
 0x1e8   :  { %1965 = vst.msk [vmem:[#allocation2 + $0x350] sm:$0xff] %vm1870_vm6, %v1932_v11  ;;  %1966 = vst.msk [vmem:[#allocation2 + $0x378] sm:$0xff] %vm1870_vm6, %v1934_v34  ;;  %v2076_v13 = vsel %vm404_vm4, %v2074_v25, %v2075_v46  ;;  %v2078_v52 = vsel %vm404_vm4, %v2075_v46, %v2077_v26  ;;  %v5592_v45 = vpack.c.bf16 %v2316_v61, %v2315_v32  ;;  %v2191_v47 = vld [vmem:[#allocation2 + $0x178] sm:$0xff]  ;;  %v2196_v31 = vld [vmem:[#allocation2 + $0x1a0] sm:$0xff] }
 0x1e9   :  { %2037 = vst.msk [vmem:[#allocation2 + $0x358] sm:$0xff] %vm1870_vm6, %v2004_v12  ;;  %2038 = vst.msk [vmem:[#allocation2 + $0x380] sm:$0xff] %vm1870_vm6, %v2006_v33  ;;  %v2229_v48 = vld [vmem:[#allocation2 + $0x348] sm:$0xff]  ;;  %v5596_v42 = vpack.c.bf16 %v2318_v36, %v2317_v1  ;;  %v2202_v53 = vld [vmem:[#allocation2 + $0x1f8] sm:$0xff] }
 0x1ea   :  { %2109 = vst.msk [vmem:[#allocation2 + $0x360] sm:$0xff] %vm1870_vm6, %v2076_v13  ;;  %2110 = vst.msk [vmem:[#allocation2 + $0x388] sm:$0xff] %vm1870_vm6, %v2078_v52  ;;  %2456 = vmatmul.mubr.f32.gmra.mrb[46].mxu1 %v2224_v63  ;;  %v2201_v17 = vld [vmem:[#allocation2 + $0x1f0] sm:$0xff]  ;;  %v2207_v24 = vld [vmem:[#allocation2 + $0x220] sm:$0xff] }
 0x1eb   :  { %v2234_v55 = vld [vmem:[#allocation2 + $0x370] sm:$0xff]  ;;  %v2206_v51 = vld [vmem:[#allocation2 + $0x218] sm:$0xff]  ;;  %v2211_v30 = vld [vmem:[#allocation2 + $0x268] sm:$0xff] }
 0x1ec   :  { %v2212_v41 = vld [vmem:[#allocation2 + $0x270] sm:$0xff]  ;;  %v2217_v26 = vld [vmem:[#allocation2 + $0x298] sm:$0xff]  ;;  %v2222_v35 = vld [vmem:[#allocation2 + $0x2e8] sm:$0xff] }
 0x1ed   :  { %v2216_v23 = vld [vmem:[#allocation2 + $0x290] sm:$0xff]  ;;  %v2221_v37 = vld [vmem:[#allocation2 + $0x2e0] sm:$0xff]  ;;  %v2226_v0 = vld [vmem:[#allocation2 + $0x308] sm:$0xff] }
 0x1ee   :  { %v2227_v10 = vld [vmem:[#allocation2 + $0x310] sm:$0xff]  ;;  %v2163_v11 = vld [vmem:[#allocation2 + $0x20] sm:$0xff]  ;;  %v2168_v34 = vld [vmem:[#allocation2 + $0x48] sm:$0xff] }
 0x1ef   :  { %v2230_v38 = vld [vmem:[#allocation2 + $0x350] sm:$0xff]  ;;  %v2235_v27 = vld [vmem:[#allocation2 + $0x378] sm:$0xff]  ;;  %v2178_v33 = vld [vmem:[#allocation2 + $0xc0] sm:$0xff] }
 0x1f0   :  { %2460 = vmatprep.mubr.f32.mxu1 %v2230_v38  ;;  %v2231_v14 = vld [vmem:[#allocation2 + $0x358] sm:$0xff]  ;;  %v2236_v56 = vld [vmem:[#allocation2 + $0x380] sm:$0xff]  ;;  %v2183_v13 = vld [vmem:[#allocation2 + $0x110] sm:$0xff] }
 0x1f1   :  { %2461 = vmatmul.mubr.f32.gmra.mrb[48].mxu1 %v2229_v48  ;;  %v2232_v46 = vld [vmem:[#allocation2 + $0x360] sm:$0xff]  ;;  %v2237_v25 = vld [vmem:[#allocation2 + $0x388] sm:$0xff]  ;;  %v2173_v12 = vld [vmem:[#allocation2 + $0x98] sm:$0xff] }
 0x1f2   :  { %2465 = vmatprep.mubr.f32.mxu1 %v2235_v27  ;;  %v2188_v52 = vld [vmem:[#allocation2 + $0x138] sm:$0xff]  ;;  %v2193_v63 = vld [vmem:[#allocation2 + $0x188] sm:$0xff]  ;;  %v2198_v38 = vld [vmem:[#allocation2 + $0x1b0] sm:$0xff] }
 0x1f3   :  { %v2203_v48 = vld [vmem:[#allocation2 + $0x200] sm:$0xff]  ;;  %v2208_v27 = vld [vmem:[#allocation2 + $0x228] sm:$0xff]  ;;  %v2223_v2 = vld [vmem:[#allocation2 + $0x2f0] sm:$0xff] }
 0x1f4   :  { %v2218_v57 = vld [vmem:[#allocation2 + $0x2a0] sm:$0xff]  ;;  %v3131_v62 = vld [vmem:[%s8491_s5 + $0x88] sm:$0xff]  ;;  %v2238_v49 = vld [vmem:[#allocation2 + $0x390] sm:$0xff] }
 0x1f5   :  { %2466 = vmatmul.mubr.f32.gmra.mrb[50].mxu1 %v2234_v55  ;;  %v2213_v55 = vld [vmem:[#allocation2 + $0x278] sm:$0xff]  ;;  %v3132_v22 = vld [vmem:[%s8491_s5 + $0x90] sm:$0xff]  ;;  %v3118_v29 = vld [vmem:[%s8491_s5 + $0x20] sm:$0xff] }
 0x1f6   :  { %2535 = vmatprep.mubr.f32.mxu1 %v2162_v16  ;;  %v2228_v16 = vld [vmem:[#allocation2 + $0x318] sm:$0xff]  ;;  %v3119_v40 = vld [vmem:[%s8491_s5 + $0x28] sm:$0xff]  ;;  %v3120_v32 = vld [vmem:[%s8491_s5 + $0x30] sm:$0xff] }
 0x1f7   :  { %v3139_v1 = vld [vmem:[%s8491_s5 + $0xc8] sm:$0xff] }
 0x1f9   :  { %2536 = vmatmul.mubr.f32.vlgmr.msra.gmra.mrb[52].mxu1 %v2161_v18  ;;  %v3130_v18 = vld [vmem:[%s8491_s5 + $0x80] sm:$0xff] }
 0x1fa   :  { %2540 = vmatprep.mubr.f32.mxu1 %v2167_v43  ;;  %5571 = vmatpush3.bf16.msra.mxu1 %v7340_v19  ;;  %v2311_v19 = vld [vmem:[%s8489_s3 + $0x240] sm:$0xff]  ;;  %v5600_v54 = vpack.c.bf16 %v3131_v62, %v3130_v18  ;;  %v3168_v18 = vld [vmem:[%s8491_s5 + $0x1b0] sm:$0xff]  ;;  %v3169_v62 = vld [vmem:[%s8491_s5 + $0x1b8] sm:$0xff] }
 0x1fb   :  { %5573 = vmatprep.subr.bf16.mxu1 %v5572_v58  ;;  %v5584_v15 = vpack.c.bf16 %v2312_v6, %v2311_v19  ;;  %v3114_v43 = vld [vmem:[%s8491_s5] sm:$0xff]  ;;  %v3117_v19 = vld [vmem:[%s8491_s5 + $0x18] sm:$0xff] }
 0x1fc   :  { %5601 = vmatprep.subr.bf16.mxu0 %v5600_v54  ;;  %v3152_v54 = vld [vmem:[%s8491_s5 + $0x130] sm:$0xff] }
 0x1fd   :  { %2541 = vmatmul.mubr.f32.gmra.mrb[54].mxu1 %v2166_v44 }
 0x1fe   :  { %2545 = vmatprep.mubr.f32.mxu1 %v2172_v21  ;;  %5575 = vmatpush3.bf16.msra.mxu1 %v5572_v58  ;;  %v2233_v58 = vld [vmem:[#allocation2 + $0x368] sm:$0xff]  ;;  %v3133_v21 = vld [vmem:[%s8491_s5 + $0x98] sm:$0xff] }
 0x1ff   :  { %5577 = vmatprep.subr.bf16.mxu1 %v5576_v39 }
 0x201   :  { %2546 = vmatmul.mubr.f32.gmra.mrb[56].mxu1 %v2171_v60  ;;  %v5604_v60 = vpack.c.bf16 %v3133_v21, %v3132_v22 }
 0x202   :  { %2550 = vmatprep.mubr.f32.mxu1 %v2177_v8  ;;  %5579 = vmatpush3.bf16.msra.mxu1 %v5576_v39  ;;  %v3115_v39 = vld [vmem:[%s8491_s5 + $0x8] sm:$0xff]  ;;  %v3134_v8 = vld [vmem:[%s8491_s5 + $0xa0] sm:$0xff] }
 0x203   :  { %5581 = vmatprep.subr.bf16.mxu1 %v5580_v59  ;;  %v5602_v44 = vpack.c.bf16 %v3115_v39, %v3114_v43  ;;  %v5644_v43 = vpack.c.bf16 %v3169_v62, %v3168_v18  ;;  %v3153_v39 = vld [vmem:[%s8491_s5 + $0x138] sm:$0xff]  ;;  %v3178_v18 = vld [vmem:[%s8491_s5 + $0x200] sm:$0xff]  ;;  %v3179_v62 = vld [vmem:[%s8491_s5 + $0x208] sm:$0xff] }
 0x205   :  { %2551 = vmatmul.mubr.f32.gmra.mrb[58].mxu1 %v2176_v4  ;;  %5603 = vmatpush3.bf16.msra.mxu0 %v5602_v44 }
 0x206   :  { %2555 = vmatprep.mubr.f32.mxu1 %v2182_v28  ;;  %5583 = vmatpush3.bf16.msra.mxu1 %v5580_v59  ;;  %v3116_v59 = vld [vmem:[%s8491_s5 + $0x10] sm:$0xff]  ;;  %v5610_v28 = vpack.c.bf16 %v3119_v40, %v3118_v29 }
 0x207   :  { %5585 = vmatprep.subr.bf16.mxu1 %v5584_v15  ;;  %v5606_v6 = vpack.c.bf16 %v3117_v19, %v3116_v59  ;;  %5605 = vmatprep.subr.bf16.mxu0 %v5604_v60  ;;  %v3170_v59 = vld [vmem:[%s8491_s5 + $0x1c0] sm:$0xff]  ;;  %v3171_v60 = vld [vmem:[%s8491_s5 + $0x1c8] sm:$0xff]  ;;  %v3172_v40 = vld [vmem:[%s8491_s5 + $0x1d0] sm:$0xff] }
 0x208   :  { %v5648_v19 = vpack.c.bf16 %v3171_v60, %v3170_v59 }
 0x209   :  { %2556 = vmatmul.mubr.f32.gmra.mrb[60].mxu1 %v2181_v3  ;;  %5607 = vmatpush3.bf16.msra.mxu0 %v5606_v6  ;;  %v3137_v3 = vld [vmem:[%s8491_s5 + $0xb8] sm:$0xff]  ;;  %v3154_v6 = vld [vmem:[%s8491_s5 + $0x140] sm:$0xff] }
 0x20a   :  { %2560 = vmatprep.mubr.f32.mxu1 %v2187_v5  ;;  %5587 = vmatpush3.bf16.msra.mxu1 %v5584_v15  ;;  %v3135_v15 = vld [vmem:[%s8491_s5 + $0xa8] sm:$0xff]  ;;  %v3121_v5 = vld [vmem:[%s8491_s5 + $0x38] sm:$0xff] }
 0x20b   :  { %5589 = vmatprep.subr.bf16.mxu1 %v5588_v20  ;;  %v5608_v4 = vpack.c.bf16 %v3135_v15, %v3134_v8  ;;  %v3155_v8 = vld [vmem:[%s8491_s5 + $0x148] sm:$0xff] }
 0x20c   :  { %v5650_v15 = vpack.c.bf16 %v3155_v8, %v3154_v6 }
 0x20d   :  { %2561 = vmatmul.mubr.f32.gmra.mrb[62].mxu1 %v2186_v9  ;;  %5609 = vmatprep.subr.bf16.mxu0 %v5608_v4  ;;  %v3138_v9 = vld [vmem:[%s8491_s5 + $0xc0] sm:$0xff] }
 0x20e   :  { %2565 = vmatprep.mubr.f32.mxu1 %v2192_v7  ;;  %5591 = vmatpush3.bf16.msra.mxu1 %v5588_v20  ;;  %v3136_v20 = vld [vmem:[%s8491_s5 + $0xb0] sm:$0xff]  ;;  %v5616_v36 = vpack.c.bf16 %v3139_v1, %v3138_v9  ;;  %v3122_v7 = vld [vmem:[%s8491_s5 + $0x40] sm:$0xff]  ;;  %v3157_v9 = vld [vmem:[%s8491_s5 + $0x158] sm:$0xff] }
 0x20f   :  { %5593 = vmatprep.subr.bf16.mxu1 %v5592_v45  ;;  %5611 = vmatpush3.bf16.msra.mxu0 %v5610_v28  ;;  %v5612_v61 = vpack.c.bf16 %v3137_v3, %v3136_v20  ;;  %v3173_v28 = vld [vmem:[%s8491_s5 + $0x1d8] sm:$0xff]  ;;  %v3142_v3 = vld [vmem:[%s8491_s5 + $0xe0] sm:$0xff] }
 0x211   :  { %2566 = vmatmul.mubr.f32.gmra.mrb[64].mxu1 %v2191_v47  ;;  %5613 = vmatprep.subr.bf16.mxu0 %v5612_v61  ;;  %v5652_v61 = vpack.c.bf16 %v3173_v28, %v3172_v40 }
 0x212   :  { %2570 = vmatprep.mubr.f32.mxu1 %v2197_v50  ;;  %5595 = vmatpush3.bf16.msra.mxu1 %v5592_v45  ;;  %v5614_v45 = vpack.c.bf16 %v3121_v5, %v3120_v32  ;;  %v3143_v32 = vld [vmem:[%s8491_s5 + $0xe8] sm:$0xff]  ;;  %v3156_v5 = vld [vmem:[%s8491_s5 + $0x150] sm:$0xff] }
 0x213   :  { %5597 = vmatprep.subr.bf16.mxu1 %v5596_v42 }
 0x214   :  { %5615 = vmatpush3.bf16.msra.mxu0 %v5614_v45  ;;  %v5624_v45 = vpack.c.bf16 %v3143_v32, %v3142_v3 }
 0x215   :  { %2571 = vmatmul.mubr.f32.gmra.mrb[66].mxu1 %v2196_v31  ;;  %5617 = vmatprep.subr.bf16.mxu0 %v5616_v36  ;;  %v3126_v36 = vld [vmem:[%s8491_s5 + $0x60] sm:$0xff] }
 0x216   :  { %2575 = vmatprep.mubr.f32.mxu1 %v2202_v53  ;;  %5599 = vmatpush3.bf16.msra.mxu1 %v5596_v42  ;;  %v3123_v42 = vld [vmem:[%s8491_s5 + $0x48] sm:$0xff] }
 0x217   :  { %v5618_v50 = vpack.c.bf16 %v3123_v42, %v3122_v7  ;;  %v3127_v7 = vld [vmem:[%s8491_s5 + $0x68] sm:$0xff]  ;;  %v5654_v42 = vpack.c.bf16 %v3157_v9, %v3156_v5  ;;  %v7697_v9 = vld [vmem:[%s8492_s4] ss:$0 sm:$0xff] }
 0x219   :  { %2576 = vmatmul.mubr.f32.gmra.mrb[68].mxu1 %v2201_v17  ;;  %5619 = vmatpush3.bf16.msra.mxu0 %v5618_v50  ;;  %v3162_v17 = vld [vmem:[%s8491_s5 + $0x180] sm:$0xff]  ;;  %v5626_v50 = vpack.c.bf16 %v3127_v7, %v3126_v36 }
 0x21a   :  { %2580 = vmatprep.mubr.f32.mxu1 %v2207_v24  ;;  %v3163_v24 = vld [vmem:[%s8491_s5 + $0x188] sm:$0xff] }
 0x21d   :  { %2581 = vmatmul.mubr.f32.gmra.mrb[70].mxu1 %v2206_v51  ;;  %v3146_v51 = vld [vmem:[%s8491_s5 + $0x100] sm:$0xff] }
 0x21e   :  { %2585 = vmatprep.mubr.f32.mxu1 %v2212_v41 }
 0x221   :  { %2586 = vmatmul.mubr.f32.gmra.mrb[72].mxu1 %v2211_v30  ;;  %v5632_v30 = vpack.c.bf16 %v3163_v24, %v3162_v17  ;;  %v3175_v17 = vld [vmem:[%s8491_s5 + $0x1e8] sm:$0xff] }
 0x222   :  { %2590 = vmatprep.mubr.f32.mxu1 %v2217_v26  ;;  %v3147_v26 = vld [vmem:[%s8491_s5 + $0x108] sm:$0xff] }
 0x223   :  { %5633 = vmatprep.subr.bf16.mxu1 %v5632_v30  ;;  %v3159_v30 = vld [vmem:[%s8491_s5 + $0x168] sm:$0xff] }
 0x225   :  { %2591 = vmatmul.mubr.f32.gmra.mrb[74].mxu1 %v2216_v23 }
 0x226   :  { %2595 = vmatprep.mubr.f32.mxu1 %v2222_v35  ;;  %v5634_v35 = vpack.c.bf16 %v3147_v26, %v3146_v51 }
 0x229   :  { %2596 = vmatmul.mubr.f32.gmra.mrb[76].mxu1 %v2221_v37 }
 0x22a   :  { %2600 = vmatprep.mubr.f32.mxu1 %v2227_v10  ;;  %v3140_v10 = vld [vmem:[%s8491_s5 + $0xd0] sm:$0xff] }
 0x22d   :  { %2601 = vmatmul.mubr.f32.gmra.mrb[78].mxu1 %v2226_v0  ;;  %v3141_v0 = vld [vmem:[%s8491_s5 + $0xd8] sm:$0xff] }
 0x22e   :  { %2605 = vmatprep.mubr.f32.mxu1 %v2232_v46  ;;  %v3164_v46 = vld [vmem:[%s8491_s5 + $0x190] sm:$0xff] }
 0x231   :  { %2606 = vmatmul.mubr.f32.gmra.mrb[80].mxu1 %v2231_v14  ;;  %v5620_v14 = vpack.c.bf16 %v3141_v0, %v3140_v10 }
 0x232   :  { %2610 = vmatprep.mubr.f32.mxu1 %v2237_v25  ;;  %v3165_v25 = vld [vmem:[%s8491_s5 + $0x198] sm:$0xff] }
 0x233   :  { %5621 = vmatprep.subr.bf16.mxu0 %v5620_v14  ;;  %v3129_v14 = vld [vmem:[%s8491_s5 + $0x78] sm:$0xff] }
 0x235   :  { %2611 = vmatmul.mubr.f32.gmra.mrb[82].mxu1 %v2236_v56  ;;  %v3124_v56 = vld [vmem:[%s8491_s5 + $0x50] sm:$0xff] }
 0x236   :  { %5258 = vmatprep.mubr.f32.mxu1 %v2163_v11  ;;  %v3125_v11 = vld [vmem:[%s8491_s5 + $0x58] sm:$0xff] }
 0x239   :  { %5259 = vmatmul.mubr.f32.vlgmr.msra.gmra.mrb[84].mxu1 %v2168_v34  ;;  %v5636_v34 = vpack.c.bf16 %v3165_v25, %v3164_v46  ;;  %v3128_v46 = vld [vmem:[%s8491_s5 + $0x70] sm:$0xff] }
 0x23a   :  { %5261 = vmatprep.mubr.f32.mxu1 %v2173_v12  ;;  %5635 = vmatpush3.bf16.msra.mxu1 %v5634_v35  ;;  %v5622_v12 = vpack.c.bf16 %v3125_v11, %v3124_v56  ;;  %v3145_v35 = vld [vmem:[%s8491_s5 + $0xf8] sm:$0xff]  ;;  %v3176_v25 = vld [vmem:[%s8491_s5 + $0x1f0] sm:$0xff]  ;;  %v5630_v11 = vpack.c.bf16 %v3129_v14, %v3128_v46 }
 0x23b   :  { %5637 = vmatprep.subr.bf16.mxu1 %v5636_v34  ;;  %v3177_v34 = vld [vmem:[%s8491_s5 + $0x1f8] sm:$0xff] }
 0x23c   :  { %5623 = vmatpush3.bf16.msra.mxu0 %v5622_v12  ;;  %v3160_v12 = vld [vmem:[%s8491_s5 + $0x170] sm:$0xff] }
 0x23d   :  { %5262 = vmatmul.mubr.f32.gmra.mrb[86].mxu1 %v2178_v33  ;;  %v3148_v33 = vld [vmem:[%s8491_s5 + $0x110] sm:$0xff]  ;;  %5625 = vmatprep.subr.bf16.mxu0 %v5624_v45 }
 0x23e   :  { %5264 = vmatprep.mubr.f32.mxu1 %v2183_v13  ;;  %v3149_v13 = vld [vmem:[%s8491_s5 + $0x118] sm:$0xff] }
 0x240   :  { %5627 = vmatpush3.bf16.msra.mxu0 %v5626_v50 }
 0x241   :  { %5265 = vmatmul.mubr.f32.gmra.mrb[88].mxu1 %v2188_v52  ;;  %v5638_v52 = vpack.c.bf16 %v3149_v13, %v3148_v33  ;;  %v3161_v33 = vld [vmem:[%s8491_s5 + $0x178] sm:$0xff] }
 0x242   :  { %5267 = vmatprep.mubr.f32.mxu1 %v2193_v63  ;;  %v3166_v63 = vld [vmem:[%s8491_s5 + $0x1a0] sm:$0xff] }
 0x243   :  { %5639 = vmatpush3.bf16.msra.mxu1 %v5638_v52  ;;  %v5660_v52 = vpack.c.bf16 %v3177_v34, %v3176_v25 }
 0x245   :  { %5268 = vmatmul.mubr.f32.gmra.mrb[90].mxu1 %v2198_v38  ;;  %v3167_v38 = vld [vmem:[%s8491_s5 + $0x1a8] sm:$0xff] }
 0x246   :  { %5270 = vmatprep.mubr.f32.mxu1 %v2203_v48  ;;  %v3150_v48 = vld [vmem:[%s8491_s5 + $0x120] sm:$0xff] }
 0x249   :  { %5271 = vmatmul.mubr.f32.gmra.mrb[92].mxu1 %v2208_v27  ;;  %v5640_v27 = vpack.c.bf16 %v3167_v38, %v3166_v63  ;;  %v5662_v63 = vpack.c.bf16 %v3161_v33, %v3160_v12 }
 0x24a   :  { %5273 = vmatprep.mubr.f32.mxu1 %v2213_v55  ;;  %v3151_v55 = vld [vmem:[%s8491_s5 + $0x128] sm:$0xff] }
 0x24b   :  { %5641 = vmatprep.subr.bf16.mxu1 %v5640_v27 }
 0x24d   :  { %5274 = vmatmul.mubr.f32.gmra.mrb[94].mxu1 %v2218_v57 }
 0x24e   :  { %5276 = vmatprep.mubr.f32.mxu1 %v2223_v2  ;;  %v5642_v2 = vpack.c.bf16 %v3151_v55, %v3150_v48 }
 0x250   :  { %5643 = vmatpush3.bf16.msra.mxu1 %v5642_v2 }
 0x251   :  { %5277 = vmatmul.mubr.f32.gmra.mrb[96].mxu1 %v2228_v16  ;;  %5645 = vmatprep.subr.bf16.mxu1 %v5644_v43  ;;  %v7677_v43 = vpack.c.bf16 %v3179_v62, %v3178_v18 }
 0x252   :  { %5279 = vmatprep.mubr.f32.mxu1 %v2233_v58 }
 0x255   :  { %5280 = vmatmul.mubr.f32.gmra.mrb[98].mxu1 %v2238_v49  ;;  %v5646_v49 = vpack.c.bf16 %v3153_v39, %v3152_v54 }
 0x257   :  { %5647 = vmatpush3.bf16.msra.mxu1 %v5646_v49 }
 0x258   :  { %5649 = vmatprep.subr.bf16.mxu1 %v5648_v19 }
 0x25b   :  { %5651 = vmatpush3.bf16.msra.mxu1 %v5650_v15 }
 0x25c   :  { %5653 = vmatprep.subr.bf16.mxu1 %v5652_v61 }
 0x25f   :  { %5655 = vmatpush3.bf16.msra.mxu1 %v5654_v42 }
 0x27b   :  { %v4704_v47 = vpop.f32.mrb[20].mxu1 }
 0x27c   :  { %v4705_v31 = vpop.f32.mrb[21].mxu1 }
 0x27d   :  { %v7521_v53 = vadd.f32 %v4705_v31, %v4704_v47  ;;  %v3174_v31 = vld [vmem:[%s8491_s5 + $0x1e0] sm:$0xff] }
 0x27e   :  { %v5656_v51 = vpack.c.bf16 %v3175_v17, %v3174_v31 }
 0x27f   :  { %v4707_v41 = vpop.f32.mrb[22].mxu1  ;;  %v2393_v7 = vadd.f32 %v7521_v53, %v7697_v9 }
 0x280   :  { %v4708_v23 = vpop.f32.mrb[23].mxu1  ;;  %5657 = vmatprep.subr.bf16.mxu1 %v5656_v51 }
 0x281   :  { %v7535_v37 = vadd.f32 %v4708_v23, %v4707_v41  ;;  %v3158_v41 = vld [vmem:[%s8491_s5 + $0x160] sm:$0xff]  ;;  %v3144_v23 = vld [vmem:[%s8491_s5 + $0xf0] sm:$0xff] }
 0x282   :  { %v5658_v26 = vpack.c.bf16 %v3159_v30, %v3158_v41  ;;  %v5628_v0 = vpack.c.bf16 %v3145_v35, %v3144_v23 }
 0x283   :  { %v2398_v17 = vadd.f32 %v7535_v37, %v7697_v9 }
 0x284   :  { %5659 = vmatpush3.bf16.msra.mxu1 %v5658_v26  ;;  %5629 = vmatprep.subr.bf16.mxu0 %v5628_v0 }
 0x285   :  { %5631 = vmatpush3.bf16.msra.mxu0 %v5630_v11  ;;  %5661 = vmatprep.subr.bf16.mxu1 %v5660_v52 }
 0x286   :  { %5665 = vmatprep.subr.bf16.mxu0 %v7677_v43 }
 0x288   :  { %v4710_v57 = vpop.f32.mrb[24].mxu1  ;;  %5663 = vmatpush3.bf16.msra.mxu1 %v5662_v63 }
 0x289   :  { %v4711_v16 = vpop.f32.mrb[25].mxu1 }
 0x28a   :  { %v7573_v58 = vadd.f32 %v4711_v16, %v4710_v57 }
 0x28c   :  { %v4713_v44 = vpop.f32.mrb[26].mxu1  ;;  %v2403_v23 = vadd.f32 %v7573_v58, %v7697_v9 }
 0x28d   :  { %v4714_v22 = vpop.f32.mrb[27].mxu1 }
 0x28e   :  { %v7587_v21 = vadd.f32 %v4714_v22, %v4713_v44 }
 0x290   :  { %v2408_v46 = vadd.f32 %v7587_v21, %v7697_v9 }
 0x292   :  { %v4716_v4 = vpop.f32.mrb[28].mxu1 }
 0x293   :  { %v4717_v29 = vpop.f32.mrb[29].mxu1 }
 0x294   :  { %v7607_v20 = vadd.f32 %v4717_v29, %v4716_v4 }
 0x296   :  { %v4719_v1 = vpop.f32.mrb[30].mxu1  ;;  %v2413_v11 = vadd.f32 %v7607_v20, %v7697_v9 }
 0x297   :  { %v4720_v47 = vpop.f32.mrb[31].mxu1 }
 0x298   :  { %v7633_v24 = vadd.f32 %v4720_v47, %v4719_v1 }
 0x29a   :  { %v4722_v10 = vpop.f32.mrb[32].mxu1  ;;  %v2418_v52 = vadd.f32 %v7633_v24, %v7697_v9 }
 0x29b   :  { %v4723_v56 = vpop.f32.mrb[33].mxu1 }
 0x29c   :  { %v7665_v13 = vadd.f32 %v4723_v56, %v4722_v10 }
 0x29e   :  { %v4725_v38 = vpop.f32.mrb[34].mxu1 }
 0x29f   :  { %v4726_v48 = vpop.f32.mrb[35].mxu1 }
 0x2a0   :  { %v7667_v27 = vadd.f32 %v4726_v48, %v4725_v38 }
 0x2a2   :  { %v2428_v62 = vadd.f32 %v7667_v27, %v7697_v9 }
 0x2a6   :  { %v4728_v55 = vpop.f32.mrb[36].mxu1 }
 0x2a7   :  { %v4729_v57 = vpop.f32.mrb[37].mxu1 }
 0x2a8   :  { %v7669_v2 = vadd.f32 %v4729_v57, %v4728_v55  ;;  %v2423_v55 = vadd.f32 %v7665_v13, %v7697_v9 }
 0x2aa   :  { %v4731_v16 = vpop.f32.mrb[38].mxu1 }
 0x2ab   :  { %v4732_v54 = vpop.f32.mrb[39].mxu1 }
 0x2ac   :  { %v7679_v39 = vadd.f32 %v4732_v54, %v4731_v16 }
 0x2af   :  { %v4734_v44 = vpop.f32.mrb[40].mxu1 }
 0x2b0   :  { %v4735_v49 = vpop.f32.mrb[41].mxu1 }
 0x2b1   :  { %v7682_v22 = vadd.f32 %v4735_v49, %v4734_v44 }
 0x2b3   :  { %v4737_v59 = vpop.f32.mrb[42].mxu1 }
 0x2b4   :  { %v4738_v60 = vpop.f32.mrb[43].mxu1 }
 0x2b5   :  { %v7684_v19 = vadd.f32 %v4738_v60, %v4737_v59  ;;  %v2433_v59 = vadd.f32 %v7669_v2, %v7697_v9 }
 0x2b9   :  { %v4740_v6 = vpop.f32.mrb[44].mxu1 }
 0x2ba   :  { %v4741_v8 = vpop.f32.mrb[45].mxu1 }
 0x2bb   :  { %v7686_v15 = vadd.f32 %v4741_v8, %v4740_v6 }
 0x2bd   :  { %v4743_v4 = vpop.f32.mrb[46].mxu1 }
 0x2be   :  { %v4744_v29 = vpop.f32.mrb[47].mxu1 }
 0x2bf   :  { %v7688_v40 = vadd.f32 %v4744_v29, %v4743_v4  ;;  %v2438_v4 = vadd.f32 %v7679_v39, %v7697_v9 }
 0x2c4   :  { %v4746_v28 = vpop.f32.mrb[48].mxu1 }
 0x2c5   :  { %v4747_v3 = vpop.f32.mrb[49].mxu1 }
 0x2c6   :  { %v7690_v32 = vadd.f32 %v4747_v3, %v4746_v28 }
 0x2c8   :  { %v4749_v61 = vpop.f32.mrb[50].mxu1 }
 0x2c9   :  { %v4750_v5 = vpop.f32.mrb[51].mxu1 }
 0x2ca   :  { %v7692_v45 = vadd.f32 %v4750_v5, %v4749_v61  ;;  %v2443_v61 = vadd.f32 %v7682_v22, %v7697_v9 }
 0x2cc   :  { %v4784_v1 = vpop.f32.mrb[52].mxu1 }
 0x2cd   :  { %v4785_v36 = vpop.f32.mrb[53].mxu1 }
 0x2ce   :  { %v4786_v42 = vadd.f32 %v4785_v36, %v4784_v1 }
 0x2d0   :  { %v4787_v47 = vpop.f32.mrb[54].mxu1  ;;  %v7701_v50 = vadd.f32 %v4786_v42, %v2393_v7  ;;  %v2448_v7 = vadd.f32 %v7684_v19, %v7697_v9 }
 0x2d1   :  { %v4788_v31 = vpop.f32.mrb[55].mxu1 }
 0x2d2   :  { %v4789_v51 = vadd.f32 %v4788_v31, %v4787_v47 }
 0x2d4   :  { %v4790_v41 = vpop.f32.mrb[56].mxu1  ;;  %v7705_v30 = vadd.f32 %v4789_v51, %v2398_v17  ;;  %v2453_v17 = vadd.f32 %v7686_v15, %v7697_v9 }
 0x2d5   :  { %v4791_v26 = vpop.f32.mrb[57].mxu1 }
 0x2d6   :  { %v4792_v35 = vadd.f32 %v4791_v26, %v4790_v41 }
 0x2d8   :  { %v4793_v10 = vpop.f32.mrb[58].mxu1  ;;  %v7709_v0 = vadd.f32 %v4792_v35, %v2403_v23  ;;  %v2458_v23 = vadd.f32 %v7688_v40, %v7697_v9 }
 0x2d9   :  { %v4794_v53 = vpop.f32.mrb[59].mxu1 }
 0x2da   :  { %v4795_v14 = vadd.f32 %v4794_v53, %v4793_v10 }
 0x2dc   :  { %v4796_v25 = vpop.f32.mrb[60].mxu1  ;;  %v7713_v56 = vadd.f32 %v4795_v14, %v2408_v46  ;;  %v2463_v46 = vadd.f32 %v7690_v32, %v7697_v9 }
 0x2dd   :  { %v4797_v37 = vpop.f32.mrb[61].mxu1 }
 0x2de   :  { %v4798_v34 = vadd.f32 %v4797_v37, %v4796_v25 }
 0x2e0   :  { %v4799_v12 = vpop.f32.mrb[62].mxu1  ;;  %v7717_v33 = vadd.f32 %v4798_v34, %v2413_v11  ;;  %v2468_v11 = vadd.f32 %v7692_v45, %v7697_v9 }
 0x2e1   :  { %v4800_v58 = vpop.f32.mrb[63].mxu1 }
 0x2e2   :  { %v4801_v63 = vadd.f32 %v4800_v58, %v4799_v12 }
 0x2e4   :  { %v4802_v38 = vpop.f32.mrb[64].mxu1  ;;  %v7721_v48 = vadd.f32 %v4801_v63, %v2418_v52 }
 0x2e5   :  { %v4803_v21 = vpop.f32.mrb[65].mxu1 }
 0x2e6   :  { %v4804_v57 = vadd.f32 %v4803_v21, %v4802_v38 }
 0x2e8   :  { %v4805_v16 = vpop.f32.mrb[66].mxu1  ;;  %v7725_v18 = vadd.f32 %v4804_v57, %v2423_v55 }
 0x2e9   :  { %v4806_v20 = vpop.f32.mrb[67].mxu1 }
 0x2ea   :  { %v4807_v54 = vadd.f32 %v4806_v20, %v4805_v16 }
 0x2ec   :  { %v4808_v44 = vpop.f32.mrb[68].mxu1  ;;  %v7729_v49 = vadd.f32 %v4807_v54, %v2428_v62 }
 0x2ed   :  { %v4809_v24 = vpop.f32.mrb[69].mxu1 }
 0x2ee   :  { %v4810_v60 = vadd.f32 %v4809_v24, %v4808_v44 }
 0x2f0   :  { %v4811_v6 = vpop.f32.mrb[70].mxu1  ;;  %v7733_v8 = vadd.f32 %v4810_v60, %v2433_v59 }
 0x2f1   :  { %v4812_v13 = vpop.f32.mrb[71].mxu1 }
 0x2f2   :  { %v4813_v29 = vadd.f32 %v4812_v13, %v4811_v6 }
 0x2f4   :  { %v4814_v28 = vpop.f32.mrb[72].mxu1  ;;  %v7737_v3 = vadd.f32 %v4813_v29, %v2438_v4 }
 0x2f5   :  { %v4815_v27 = vpop.f32.mrb[73].mxu1 }
 0x2f6   :  { %v4816_v5 = vadd.f32 %v4815_v27, %v4814_v28  ;;  %v3180_v27 = vld [vmem:[%s8491_s5 + $0x210] sm:$0xff] }
 0x2f8   :  { %v4817_v1 = vpop.f32.mrb[74].mxu1  ;;  %v7741_v36 = vadd.f32 %v4816_v5, %v2443_v61  ;;  %v3181_v61 = vld [vmem:[%s8491_s5 + $0x218] sm:$0xff] }
 0x2f9   :  { %v4818_v2 = vpop.f32.mrb[75].mxu1 }
 0x2fa   :  { %v4819_v42 = vadd.f32 %v4818_v2, %v4817_v1 }
 0x2fc   :  { %v4820_v47 = vpop.f32.mrb[76].mxu1  ;;  %v7745_v31 = vadd.f32 %v4819_v42, %v2448_v7 }
 0x2fd   :  { %v4821_v39 = vpop.f32.mrb[77].mxu1 }
 0x2fe   :  { %v4822_v51 = vadd.f32 %v4821_v39, %v4820_v47 }
 0x300   :  { %v4823_v41 = vpop.f32.mrb[78].mxu1  ;;  %v7749_v26 = vadd.f32 %v4822_v51, %v2453_v17 }
 0x301   :  { %v4824_v22 = vpop.f32.mrb[79].mxu1 }
 0x302   :  { %v4825_v35 = vadd.f32 %v4824_v22, %v4823_v41 }
 0x304   :  { %v4826_v10 = vpop.f32.mrb[80].mxu1  ;;  %v7753_v53 = vadd.f32 %v4825_v35, %v2458_v23  ;;  %v7796_v23 = vpack.c.bf16 %v3181_v61, %v3180_v27 }
 0x305   :  { %v4827_v19 = vpop.f32.mrb[81].mxu1 }
 0x306   :  { %v4828_v14 = vadd.f32 %v4827_v19, %v4826_v10 }
 0x308   :  { %v4829_v25 = vpop.f32.mrb[82].mxu1  ;;  %v7757_v37 = vadd.f32 %v4828_v14, %v2463_v46  ;;  %v3182_v14 = vld [vmem:[%s8491_s5 + $0x220] sm:$0xff] }
 0x309   :  { %v4830_v15 = vpop.f32.mrb[83].mxu1 }
 0x30a   :  { %v4831_v34 = vadd.f32 %v4830_v15, %v4829_v25  ;;  %v3183_v25 = vld [vmem:[%s8491_s5 + $0x228] sm:$0xff] }
 0x30c   :  { %v5260_v12 = vpop.f32.mrb[84].mxu1  ;;  %v7761_v58 = vadd.f32 %v4831_v34, %v2468_v11 }
 0x30d   :  { %v2688_v40 = vadd.f32 %v5260_v12, %v7705_v30  ;;  %v2682_v52 = vpop.f32.mrb[85].mxu1  ;;  %v3184_v12 = vld [vmem:[%s8491_s5 + $0x230] sm:$0xff] }
 0x30e   :  { %v2683_v63 = vadd.f32 %v2682_v52, %v7701_v50 }
 0x30f   :  { %v2762_v38 = vmax.f32 %v2688_v40, 0.0  ;;  %v3185_v40 = vld [vmem:[%s8491_s5 + $0x238] sm:$0xff] }
 0x310   :  { %v2761_v32 = vmax.f32 %v2683_v63, 0.0  ;;  %v5263_v21 = vpop.f32.mrb[86].mxu1 }
 0x311   :  { %2779 = vst.msk [vmem:[#allocation2 + $0x28] sm:$0xf] %vm2778_vm7, %v2762_v38  ;;  %v2811_v55 = vrot.slane %v2762_v38, 1  ;;  %v2867_v57 = vrot.slane %v2762_v38, 2  ;;  %v2923_v16 = vrot.slane %v2762_v38, 3  ;;  %v2979_v20 = vrot.slane %v2762_v38, 4 }
 0x312   :  { %v2692_v45 = vpop.f32.mrb[87].mxu1  ;;  %2777 = vst.msk [vmem:[#allocation2] sm:$0xff] %vm1870_vm6, %v2761_v32  ;;  %v2810_v9 = vrot.slane %v2761_v32, 1  ;;  %v2866_v62 = vrot.slane %v2761_v32, 2  ;;  %v2922_v54 = vrot.slane %v2761_v32, 3  ;;  %v2978_v30 = vrot.slane %v2761_v32, 4 }
 0x313   :  { %2851 = vst.msk [vmem:[#allocation2 + $0x30] sm:$0xf] %vm2778_vm7, %v2811_v55  ;;  %2907 = vst.msk [vmem:[#allocation2 + $0x38] sm:$0xf] %vm2778_vm7, %v2867_v57  ;;  %v2698_v50 = vadd.f32 %v5263_v21, %v7713_v56  ;;  %v2693_v44 = vadd.f32 %v2692_v45, %v7709_v0 }
 0x314   :  { %2963 = vst.msk [vmem:[#allocation2 + $0x40] sm:$0xf] %vm2778_vm7, %v2923_v16  ;;  %3019 = vst.msk [vmem:[#allocation2 + $0x48] sm:$0xf] %vm2778_vm7, %v2979_v20  ;;  %v2812_v24 = vsel %vm226_vm1, %v2810_v9, %v2811_v55  ;;  %v2868_v59 = vsel %vm315_vm5, %v2866_v62, %v2867_v57  ;;  %v2924_v60 = vsel %vm404_vm4, %v2922_v54, %v2923_v16  ;;  %v5266_v13 = vpop.f32.mrb[88].mxu1  ;;  %v3186_v57 = vld [vmem:[%s8491_s5 + $0x240] sm:$0xff] }
 0x315   :  { %v2980_v6 = vsel %vm493_vm3, %v2978_v30, %v2979_v20  ;;  %2850 = vst.msk [vmem:[#allocation2 + $0x8] sm:$0xff] %vm1870_vm6, %v2812_v24  ;;  %2906 = vst.msk [vmem:[#allocation2 + $0x10] sm:$0xff] %vm1870_vm6, %v2868_v59  ;;  %v2764_v56 = vmax.f32 %v2698_v50, 0.0  ;;  %v2763_v4 = vmax.f32 %v2693_v44, 0.0  ;;  %v2708_v0 = vadd.f32 %v5266_v13, %v7721_v48  ;;  %v2702_v29 = vpop.f32.mrb[89].mxu1  ;;  %v3187_v50 = vld [vmem:[%s8491_s5 + $0x248] sm:$0xff] }
 0x316   :  { %2962 = vst.msk [vmem:[#allocation2 + $0x18] sm:$0xff] %vm1870_vm6, %v2924_v60  ;;  %3018 = vst.msk [vmem:[#allocation2 + $0x20] sm:$0xff] %vm1870_vm6, %v2980_v6  ;;  %v2703_v28 = vadd.f32 %v2702_v29, %v7717_v33  ;;  %v7831_v30 = vpack.c.bf16 %v3183_v25, %v3182_v14 }
 0x317   :  { %2781 = vst.msk [vmem:[#allocation2 + $0xa0] sm:$0xf] %vm2778_vm7, %v2764_v56  ;;  %v2814_v5 = vrot.slane %v2764_v56, 1  ;;  %v2870_v1 = vrot.slane %v2764_v56, 2  ;;  %v2926_v2 = vrot.slane %v2764_v56, 3  ;;  %v2982_v7 = vrot.slane %v2764_v56, 4 }
 0x318   :  { %2780 = vst.msk [vmem:[#allocation2 + $0x78] sm:$0xff] %vm1870_vm6, %v2763_v4  ;;  %v2813_v48 = vrot.slane %v2763_v4, 1  ;;  %v2869_v42 = vrot.slane %v2763_v4, 2  ;;  %v2925_v47 = vrot.slane %v2763_v4, 3  ;;  %v2981_v33 = vrot.slane %v2763_v4, 4  ;;  %v5269_v39 = vpop.f32.mrb[90].mxu1 }
 0x319   :  { %2853 = vst.msk [vmem:[#allocation2 + $0xa8] sm:$0xf] %vm2778_vm7, %v2814_v5  ;;  %2909 = vst.msk [vmem:[#allocation2 + $0xb0] sm:$0xf] %vm2778_vm7, %v2870_v1  ;;  %v2766_v17 = vmax.f32 %v2708_v0, 0.0  ;;  %v2765_v51 = vmax.f32 %v2703_v28, 0.0  ;;  %v2718_v41 = vadd.f32 %v5269_v39, %v7729_v49 }
 0x31a   :  { %2965 = vst.msk [vmem:[#allocation2 + $0xb8] sm:$0xf] %vm2778_vm7, %v2926_v2  ;;  %3021 = vst.msk [vmem:[#allocation2 + $0xc0] sm:$0xf] %vm2778_vm7, %v2982_v7  ;;  %v2712_v22 = vpop.f32.mrb[91].mxu1  ;;  %v2815_v35 = vsel %vm226_vm1, %v2813_v48, %v2814_v5  ;;  %v2871_v10 = vsel %vm315_vm5, %v2869_v42, %v2870_v1  ;;  %v2927_v19 = vsel %vm404_vm4, %v2925_v47, %v2926_v2 }
 0x31b   :  { %v2983_v46 = vsel %vm493_vm3, %v2981_v33, %v2982_v7  ;;  %2852 = vst.msk [vmem:[#allocation2 + $0x80] sm:$0xff] %vm1870_vm6, %v2815_v35  ;;  %2908 = vst.msk [vmem:[#allocation2 + $0x88] sm:$0xff] %vm1870_vm6, %v2871_v10  ;;  %v2817_v49 = vrot.slane %v2766_v17, 1  ;;  %v2873_v15 = vrot.slane %v2766_v17, 2  ;;  %v2929_v11 = vrot.slane %v2766_v17, 3 }
 0x31c   :  { %2964 = vst.msk [vmem:[#allocation2 + $0x90] sm:$0xff] %vm1870_vm6, %v2927_v19  ;;  %3020 = vst.msk [vmem:[#allocation2 + $0x98] sm:$0xff] %vm1870_vm6, %v2983_v46  ;;  %v2985_v34 = vrot.slane %v2766_v17, 4  ;;  %v2816_v52 = vrot.slane %v2765_v51, 1  ;;  %v2872_v63 = vrot.slane %v2765_v51, 2  ;;  %v2928_v38 = vrot.slane %v2765_v51, 3 }
 0x31d   :  { %2783 = vst.msk [vmem:[#allocation2 + $0x118] sm:$0xf] %vm2778_vm7, %v2766_v17  ;;  %v2984_v32 = vrot.slane %v2765_v51, 4  ;;  %v5272_v21 = vpop.f32.mrb[92].mxu1  ;;  %v3035_v55 = vld [vmem:[#allocation2 + $0x8] sm:$0xff]  ;;  %v7827_v16 = vmax.f32 %v2718_v41, 0.0  ;;  %v2713_v20 = vadd.f32 %v2712_v22, %v7725_v18  ;;  %v7862_v2 = vpack.c.bf16 %v3185_v40, %v3184_v12 }
 0x31e   :  { %2782 = vst.msk [vmem:[#allocation2 + $0xf0] sm:$0xff] %vm1870_vm6, %v2765_v51  ;;  %v2728_v45 = vadd.f32 %v5272_v21, %v7737_v3  ;;  %v2722_v9 = vpop.f32.mrb[93].mxu1  ;;  %3527 = vmatprep.mubr.f32.mxu0 %v3035_v55  ;;  %v3037_v62 = vld [vmem:[#allocation2 + $0x18] sm:$0xff]  ;;  %v3036_v54 = vld [vmem:[#allocation2 + $0x10] sm:$0xff]  ;;  %v2818_v44 = vsel %vm226_vm1, %v2816_v52, %v2817_v49  ;;  %v2874_v24 = vsel %vm315_vm5, %v2872_v63, %v2873_v15  ;;  %v3034_v3 = vld [vmem:[#allocation2] sm:$0xff] }
 0x31f   :  { %2855 = vst.msk [vmem:[#allocation2 + $0x120] sm:$0xf] %vm2778_vm7, %v2817_v49  ;;  %2911 = vst.msk [vmem:[#allocation2 + $0x128] sm:$0xf] %vm2778_vm7, %v2873_v15  ;;  %v2930_v59 = vsel %vm404_vm4, %v2928_v38, %v2929_v11  ;;  %v2986_v18 = vsel %vm493_vm3, %v2984_v32, %v2985_v34  ;;  %3652 = vmatprep.mubr.f32.mxu1 %v3037_v62  ;;  %v7840_v60 = vld [vmem:[#allocation2 + $0x28] sm:$0xf]  ;;  %3528 = vmatmul.mubr.f32.vlgmr.msra.gmra.mrb[40].mxu0 %v3034_v3 }
 0x320   :  { %2967 = vst.msk [vmem:[#allocation2 + $0x130] sm:$0xf] %vm2778_vm7, %v2929_v11  ;;  %3023 = vst.msk [vmem:[#allocation2 + $0x138] sm:$0xf] %vm2778_vm7, %v2985_v34  ;;  %v7842_v6 = vld [vmem:[#allocation2 + $0x78] sm:$0xff]  ;;  %v2820_v13 = vrot.slane %v7827_v16, 1  ;;  %3653 = vmatmul.mubr.f32.vlgmr.msra.gmra.mrb[100].mxu1 %v3036_v54  ;;  %v2723_v61 = vadd.f32 %v2722_v9, %v7733_v8  ;;  %5667 = vmatpush3.bf16.msra.mxu0 %v7677_v43  ;;  %v7874_v42 = vpack.c.bf16 %v3187_v50, %v3186_v57 }
 0x321   :  { %2854 = vst.msk [vmem:[#allocation2 + $0xf8] sm:$0xff] %vm1870_vm6, %v2818_v44  ;;  %2910 = vst.msk [vmem:[#allocation2 + $0x100] sm:$0xff] %vm1870_vm6, %v2874_v24  ;;  %v2876_v56 = vrot.slane %v7827_v16, 2  ;;  %v2932_v4 = vrot.slane %v7827_v16, 3  ;;  %v2988_v0 = vrot.slane %v7827_v16, 4  ;;  %v2767_v28 = vmax.f32 %v2713_v20, 0.0  ;;  %5669 = vmatprep.subr.bf16.mxu0 %v7796_v23 }
 0x322   :  { %2966 = vst.msk [vmem:[#allocation2 + $0x108] sm:$0xff] %vm1870_vm6, %v2930_v59  ;;  %3022 = vst.msk [vmem:[#allocation2 + $0x110] sm:$0xff] %vm1870_vm6, %v2986_v18  ;;  %v7854_v29 = vld [vmem:[#allocation2 + $0xa0] sm:$0xf]  ;;  %v7856_v27 = vmax.f32 %v2728_v45, 0.0  ;;  %v5275_v5 = vpop.f32.mrb[94].mxu1  ;;  %v4603_v8 = vcombine.low %v7840_v60, %v7842_v6 }
 0x323   :  { %2785 = vst.msk [vmem:[#allocation2 + $0x190] sm:$0xf] %vm2778_vm7, %v7827_v16  ;;  %v7860_v1 = vld [vmem:[#allocation2 + $0xa8] sm:$0xf]  ;;  %2857 = vst.msk [vmem:[#allocation2 + $0x198] sm:$0xf] %vm2778_vm7, %v2820_v13  ;;  %v2738_v7 = vadd.f32 %v5275_v5, %v7745_v31 }
 0x324   :  { %2913 = vst.msk [vmem:[#allocation2 + $0x1a0] sm:$0xf] %vm2778_vm7, %v2876_v56  ;;  %2969 = vst.msk [vmem:[#allocation2 + $0x1a8] sm:$0xf] %vm2778_vm7, %v2932_v4  ;;  %v2732_v48 = vpop.f32.mrb[95].mxu1  ;;  %v3292_v43 = vcombine.low %v7854_v29, %v7860_v1  ;;  %v2819_v47 = vrot.slane %v2767_v28, 1  ;;  %5671 = vmatpush3.bf16.msra.mxu0 %v7796_v23 }
 0x325   :  { %3025 = vst.msk [vmem:[#allocation2 + $0x1b0] sm:$0xf] %vm2778_vm7, %v2988_v0  ;;  %v2875_v33 = vrot.slane %v2767_v28, 2  ;;  %v2931_v39 = vrot.slane %v2767_v28, 3  ;;  %v2987_v17 = vrot.slane %v2767_v28, 4  ;;  %v7879_v31 = vld [vmem:[#allocation2 + $0x80] sm:$0xff]  ;;  %v2733_v23 = vadd.f32 %v2732_v48, %v7741_v36  ;;  %5673 = vmatprep.subr.bf16.mxu0 %v7831_v30 }
 0x326   :  { %2784 = vst.msk [vmem:[#allocation2 + $0x168] sm:$0xff] %vm1870_vm6, %v2767_v28  ;;  %v2823_v51 = vrot.slane %v7856_v27, 1  ;;  %v2879_v41 = vrot.slane %v7856_v27, 2  ;;  %v2935_v22 = vrot.slane %v7856_v27, 3  ;;  %v2991_v35 = vrot.slane %v7856_v27, 4  ;;  %v7885_v10 = vld [vmem:[#allocation2 + $0x90] sm:$0xff] }
 0x327   :  { %2787 = vst.msk [vmem:[#allocation2 + $0x208] sm:$0xf] %vm2778_vm7, %v7856_v27  ;;  %v7887_v19 = vld [vmem:[#allocation2 + $0x88] sm:$0xff]  ;;  %v2821_v46 = vsel %vm226_vm1, %v2819_v47, %v2820_v13  ;;  %v2877_v14 = vsel %vm315_vm5, %v2875_v33, %v2876_v56  ;;  %v2933_v25 = vsel %vm404_vm4, %v2931_v39, %v2932_v4  ;;  %v2989_v49 = vsel %vm493_vm3, %v2987_v17, %v2988_v0  ;;  %v3040_v15 = vld [vmem:[#allocation2 + $0x30] sm:$0xf]  ;;  %v5278_v34 = vpop.f32.mrb[96].mxu1 }
 0x328   :  { %v3042_v11 = vld [vmem:[#allocation2 + $0x40] sm:$0xf]  ;;  %2856 = vst.msk [vmem:[#allocation2 + $0x170] sm:$0xff] %vm1870_vm6, %v2821_v46  ;;  %2912 = vst.msk [vmem:[#allocation2 + $0x178] sm:$0xff] %vm1870_vm6, %v2877_v14  ;;  %v2769_v12 = vmax.f32 %v2723_v61, 0.0  ;;  %v7902_v40 = vmax.f32 %v2738_v7, 0.0  ;;  %v4604_v52 = vcombine.low %v3040_v15, %v7879_v31  ;;  %v2748_v21 = vadd.f32 %v5278_v34, %v7753_v53  ;;  %5675 = vmatpush3.bf16.msra.mxu0 %v7831_v30 }
 0x329   :  { %2968 = vst.msk [vmem:[#allocation2 + $0x180] sm:$0xff] %vm1870_vm6, %v2933_v25  ;;  %3024 = vst.msk [vmem:[#allocation2 + $0x188] sm:$0xff] %vm1870_vm6, %v2989_v49  ;;  %v3041_v63 = vld [vmem:[#allocation2 + $0x38] sm:$0xf]  ;;  %v2742_v38 = vpop.f32.mrb[97].mxu1  ;;  %v4606_v32 = vcombine.low %v3042_v11, %v7885_v10  ;;  %v2771_v13 = vmax.f32 %v2733_v23, 0.0  ;;  %v4608_v0 = vcombine.high %v7879_v31, %v3292_v43  ;;  %v3288_v61 = vcombine.high %v7842_v6, %v7879_v31 }
 0x32a   :  { %2859 = vst.msk [vmem:[#allocation2 + $0x210] sm:$0xf] %vm2778_vm7, %v2823_v51  ;;  %2915 = vst.msk [vmem:[#allocation2 + $0x218] sm:$0xf] %vm2778_vm7, %v2879_v41  ;;  %v4605_v55 = vcombine.low %v3041_v63, %v7887_v19  ;;  %v2743_v57 = vadd.f32 %v2742_v38, %v7749_v26  ;;  %v7911_v16 = vld [vmem:[#allocation2 + $0xb0] sm:$0xf]  ;;  %3532 = vmatprep.mubr.f32.mxu0 %v4604_v52  ;;  %v3290_v5 = vcombine.high %v7887_v19, %v7885_v10 }
 0x32b   :  { %2971 = vst.msk [vmem:[#allocation2 + $0x220] sm:$0xf] %vm2778_vm7, %v2935_v22  ;;  %3027 = vst.msk [vmem:[#allocation2 + $0x228] sm:$0xf] %vm2778_vm7, %v2991_v35  ;;  %v2822_v20 = vrot.slane %v2769_v12, 1  ;;  %v2878_v36 = vrot.slane %v2769_v12, 2  ;;  %3657 = vmatprep.mubr.f32.mxu1 %v4606_v32  ;;  %3533 = vmatmul.mubr.f32.gmra.mrb[42].mxu0 %v4603_v8  ;;  %v4607_v19 = vcombine.low %v3288_v61, %v7854_v29 }
 0x32c   :  { %2786 = vst.msk [vmem:[#allocation2 + $0x1e0] sm:$0xff] %vm1870_vm6, %v2769_v12  ;;  %v2934_v45 = vrot.slane %v2769_v12, 3  ;;  %v2990_v9 = vrot.slane %v2769_v12, 4  ;;  %v7916_v62 = vld [vmem:[#allocation2 + $0xb8] sm:$0xf]  ;;  %v2826_v53 = vrot.slane %v7902_v40, 1  ;;  %3658 = vmatmul.mubr.f32.gmra.mrb[102].mxu1 %v4605_v55  ;;  %5677 = vmatprep.subr.bf16.mxu0 %v7862_v2  ;;  %v4609_v46 = vcombine.low %v3290_v5, %v7911_v16 }
 0x32d   :  { %2789 = vst.msk [vmem:[#allocation2 + $0x280] sm:$0xf] %vm2778_vm7, %v7902_v40  ;;  %v2882_v54 = vrot.slane %v7902_v40, 2  ;;  %v2938_v26 = vrot.slane %v7902_v40, 3  ;;  %v2994_v50 = vrot.slane %v7902_v40, 4  ;;  %v5281_v44 = vpop.f32.mrb[98].mxu1  ;;  %v2824_v24 = vsel %vm226_vm1, %v2822_v20, %v2823_v51  ;;  %3537 = vmatprep.mubr.f32.mxu0 %v4608_v0  ;;  %5679 = vmatpush3.bf16.msra.mxu0 %v7862_v2 }
 0x32e   :  { %v2880_v59 = vsel %vm315_vm5, %v2878_v36, %v2879_v41  ;;  %v2936_v18 = vsel %vm404_vm4, %v2934_v45, %v2935_v22  ;;  %v2992_v3 = vsel %vm493_vm3, %v2990_v9, %v2991_v35  ;;  %v7926_v60 = vpop.f32.mrb[99].mxu1  ;;  %2858 = vst.msk [vmem:[#allocation2 + $0x1e8] sm:$0xff] %vm1870_vm6, %v2824_v24  ;;  %v2774_v56 = vmax.f32 %v2748_v21, 0.0  ;;  %2788 = vst.msk [vmem:[#allocation2 + $0x258] sm:$0xff] %vm1870_vm6, %v2771_v13  ;;  %v3055_v14 = vld [vmem:[#allocation2 + $0xf8] sm:$0xff]  ;;  %v3188_v25 = vld [vmem:[%s8491_s5 + $0x250] sm:$0xff] }
 0x32f   :  { %2914 = vst.msk [vmem:[#allocation2 + $0x1f0] sm:$0xff] %vm1870_vm6, %v2880_v59  ;;  %2970 = vst.msk [vmem:[#allocation2 + $0x1f8] sm:$0xff] %vm1870_vm6, %v2936_v18  ;;  %v2773_v4 = vmax.f32 %v2743_v57, 0.0  ;;  %v3293_v28 = vcombine.low %v7911_v16, %v7916_v62  ;;  %v2758_v27 = vadd.f32 %v5281_v44, %v7761_v58  ;;  %v2825_v1 = vrot.slane %v2771_v13, 1  ;;  %5681 = vmatprep.subr.bf16.mxu0 %v7874_v42  ;;  %v3189_v49 = vld [vmem:[%s8491_s5 + $0x258] sm:$0xff]  ;;  %v3057_v29 = vld [vmem:[#allocation2 + $0x108] sm:$0xff] }
 0x330   :  { %3026 = vst.msk [vmem:[#allocation2 + $0x200] sm:$0xff] %vm1870_vm6, %v2992_v3  ;;  %v2881_v7 = vrot.slane %v2771_v13, 2  ;;  %v2937_v48 = vrot.slane %v2771_v13, 3  ;;  %v2993_v8 = vrot.slane %v2771_v13, 4  ;;  %v2829_v58 = vrot.slane %v2774_v56, 1  ;;  %v3190_v23 = vld [vmem:[%s8491_s5 + $0x260] sm:$0xff]  ;;  %3538 = vmatmul.mubr.f32.gmra.mrb[44].mxu0 %v4607_v19 }
 0x331   :  { %2861 = vst.msk [vmem:[#allocation2 + $0x288] sm:$0xf] %vm2778_vm7, %v2826_v53  ;;  %2917 = vst.msk [vmem:[#allocation2 + $0x290] sm:$0xf] %vm2778_vm7, %v2882_v54  ;;  %v2885_v30 = vrot.slane %v2774_v56, 2  ;;  %v2941_v43 = vrot.slane %v2774_v56, 3  ;;  %v2827_v47 = vsel %vm226_vm1, %v2825_v1, %v2826_v53  ;;  %v4610_v22 = vcombine.high %v7885_v10, %v3293_v28  ;;  %3542 = vmatprep.mubr.f32.mxu0 %v3055_v14 }
 0x332   :  { %2973 = vst.msk [vmem:[#allocation2 + $0x298] sm:$0xf] %vm2778_vm7, %v2938_v26  ;;  %3029 = vst.msk [vmem:[#allocation2 + $0x2a0] sm:$0xf] %vm2778_vm7, %v2994_v50  ;;  %v2997_v6 = vrot.slane %v2774_v56, 4  ;;  %v2883_v33 = vsel %vm315_vm5, %v2881_v7, %v2882_v54  ;;  %v2939_v39 = vsel %vm404_vm4, %v2937_v48, %v2938_v26  ;;  %v2995_v17 = vsel %vm493_vm3, %v2993_v8, %v2994_v50  ;;  %v3191_v52 = vld [vmem:[%s8491_s5 + $0x268] sm:$0xff] }
 0x333   :  { %2791 = vst.msk [vmem:[#allocation2 + $0x2f8] sm:$0xf] %vm2778_vm7, %v2774_v56  ;;  %2863 = vst.msk [vmem:[#allocation2 + $0x300] sm:$0xf] %vm2778_vm7, %v2829_v58  ;;  %v2828_v31 = vrot.slane %v2773_v4, 1  ;;  %v2884_v51 = vrot.slane %v2773_v4, 2  ;;  %3662 = vmatprep.mubr.f32.mxu1 %v4610_v22  ;;  %v2753_v16 = vadd.f32 %v7926_v60, %v7757_v37  ;;  %5683 = vmatpush3.bf16.msra.mxu0 %v7874_v42 }
 0x334   :  { %2790 = vst.msk [vmem:[#allocation2 + $0x2d0] sm:$0xff] %vm1870_vm6, %v2773_v4  ;;  %2860 = vst.msk [vmem:[#allocation2 + $0x260] sm:$0xff] %vm1870_vm6, %v2827_v47  ;;  %v2940_v41 = vrot.slane %v2773_v4, 3  ;;  %v2996_v2 = vrot.slane %v2773_v4, 4  ;;  %v7967_v35 = vmax.f32 %v2758_v27, 0.0  ;;  %v3065_v55 = vld [vmem:[#allocation2 + $0x170] sm:$0xff]  ;;  %3663 = vmatmul.mubr.f32.gmra.mrb[104].mxu1 %v4609_v46  ;;  %v5684_v24 = vpack.c.bf16 %v3189_v49, %v3188_v25 }
 0x335   :  { %2916 = vst.msk [vmem:[#allocation2 + $0x268] sm:$0xff] %vm1870_vm6, %v2883_v33  ;;  %2972 = vst.msk [vmem:[#allocation2 + $0x270] sm:$0xff] %vm1870_vm6, %v2939_v39  ;;  %v2830_v15 = vsel %vm226_vm1, %v2828_v31, %v2829_v58  ;;  %v2886_v11 = vsel %vm315_vm5, %v2884_v51, %v2885_v30  ;;  %v7981_v12 = vld [vmem:[#allocation2 + $0x190] sm:$0xf]  ;;  %v3070_v40 = vld [vmem:[#allocation2 + $0x198] sm:$0xf]  ;;  %3667 = vmatprep.mubr.f32.mxu1 %v3057_v29  ;;  %v5688_v13 = vpack.c.bf16 %v3191_v52, %v3190_v23 }
 0x336   :  { %3028 = vst.msk [vmem:[#allocation2 + $0x278] sm:$0xff] %vm1870_vm6, %v2995_v17  ;;  %v2942_v10 = vsel %vm404_vm4, %v2940_v41, %v2941_v43  ;;  %v2998_v34 = vsel %vm493_vm3, %v2996_v2, %v2997_v6  ;;  %2862 = vst.msk [vmem:[#allocation2 + $0x2d8] sm:$0xff] %vm1870_vm6, %v2830_v15  ;;  %v2832_v63 = vrot.slane %v7967_v35, 1  ;;  %v2888_v38 = vrot.slane %v7967_v35, 2  ;;  %v3064_v57 = vld [vmem:[#allocation2 + $0x168] sm:$0xff]  ;;  %v3067_v20 = vld [vmem:[#allocation2 + $0x180] sm:$0xff]  ;;  %5685 = vmatprep.subr.bf16.mxu0 %v5684_v24 }
 0x337   :  { %2919 = vst.msk [vmem:[#allocation2 + $0x308] sm:$0xf] %vm2778_vm7, %v2885_v30  ;;  %2975 = vst.msk [vmem:[#allocation2 + $0x310] sm:$0xf] %vm2778_vm7, %v2941_v43  ;;  %v2944_v32 = vrot.slane %v7967_v35, 3  ;;  %v3000_v21 = vrot.slane %v7967_v35, 4  ;;  %v3306_v53 = vcombine.low %v7981_v12, %v3070_v40  ;;  %v3302_v42 = vcombine.high %v3064_v57, %v3065_v55  ;;  %5687 = vmatpush3.bf16.msra.mxu0 %v5684_v24 }
 0x338   :  { %3031 = vst.msk [vmem:[#allocation2 + $0x318] sm:$0xf] %vm2778_vm7, %v2997_v6  ;;  %2793 = vst.msk [vmem:[#allocation2 + $0x370] sm:$0xf] %vm2778_vm7, %v7967_v35  ;;  %v3071_v36 = vld [vmem:[#allocation2 + $0x1a0] sm:$0xf]  ;;  %5689 = vmatprep.subr.bf16.mxu0 %v5688_v13 }
 0x339   :  { %2918 = vst.msk [vmem:[#allocation2 + $0x2e0] sm:$0xff] %vm1870_vm6, %v2886_v11  ;;  %2974 = vst.msk [vmem:[#allocation2 + $0x2e8] sm:$0xff] %vm1870_vm6, %v2942_v10  ;;  %v3072_v45 = vld [vmem:[#allocation2 + $0x1a8] sm:$0xf]  ;;  %v3054_v9 = vld [vmem:[#allocation2 + $0xf0] sm:$0xff]  ;;  %v2775_v54 = vmax.f32 %v2753_v16, 0.0  ;;  %v4616_v5 = vcombine.high %v3065_v55, %v3306_v53  ;;  %v4615_v47 = vcombine.low %v3302_v42, %v7981_v12 }
 0x33a   :  { %3030 = vst.msk [vmem:[#allocation2 + $0x2f0] sm:$0xff] %vm1870_vm6, %v2998_v34  ;;  %v3060_v62 = vld [vmem:[#allocation2 + $0x120] sm:$0xf]  ;;  %v3062_v37 = vld [vmem:[#allocation2 + $0x130] sm:$0xf]  ;;  %v3066_v44 = vld [vmem:[#allocation2 + $0x178] sm:$0xff]  ;;  %3543 = vmatmul.mubr.f32.gmra.mrb[46].mxu0 %v3054_v9  ;;  %v3307_v60 = vcombine.low %v3071_v36, %v3072_v45 }
 0x33b   :  { %2865 = vst.msk [vmem:[#allocation2 + $0x378] sm:$0xf] %vm2778_vm7, %v2832_v63  ;;  %2921 = vst.msk [vmem:[#allocation2 + $0x380] sm:$0xf] %vm2778_vm7, %v2888_v38  ;;  %v4612_v26 = vcombine.low %v3060_v62, %v3065_v55  ;;  %v3059_v50 = vld [vmem:[#allocation2 + $0x118] sm:$0xf]  ;;  %v4614_v18 = vcombine.low %v3062_v37, %v3067_v20  ;;  %v3304_v1 = vcombine.high %v3066_v44, %v3067_v20  ;;  %5691 = vmatpush3.bf16.msra.mxu0 %v5688_v13 }
 0x33c   :  { %2977 = vst.msk [vmem:[#allocation2 + $0x388] sm:$0xf] %vm2778_vm7, %v2944_v32  ;;  %3033 = vst.msk [vmem:[#allocation2 + $0x390] sm:$0xf] %vm2778_vm7, %v3000_v21  ;;  %v3056_v59 = vld [vmem:[#allocation2 + $0x100] sm:$0xff]  ;;  %v4611_v3 = vcombine.low %v3059_v50, %v3064_v57  ;;  %v2831_v56 = vrot.slane %v2775_v54, 1  ;;  %v4618_v30 = vcombine.high %v3067_v20, %v3307_v60 }
 0x33d   :  { %2792 = vst.msk [vmem:[#allocation2 + $0x348] sm:$0xff] %vm1870_vm6, %v2775_v54  ;;  %v2887_v4 = vrot.slane %v2775_v54, 2  ;;  %v2943_v0 = vrot.slane %v2775_v54, 3  ;;  %v2999_v28 = vrot.slane %v2775_v54, 4  ;;  %3668 = vmatmul.mubr.f32.gmra.mrb[106].mxu1 %v3056_v59  ;;  %3547 = vmatprep.mubr.f32.mxu0 %v4612_v26  ;;  %v3061_v27 = vld [vmem:[#allocation2 + $0x128] sm:$0xf]  ;;  %v4617_v33 = vcombine.low %v3304_v1, %v3071_v36 }
 0x33e   :  { %3672 = vmatprep.mubr.f32.mxu1 %v4614_v18  ;;  %v4613_v61 = vcombine.low %v3061_v27, %v3066_v44  ;;  %v2833_v7 = vsel %vm226_vm1, %v2831_v56, %v2832_v63  ;;  %3548 = vmatmul.mubr.f32.gmra.mrb[48].mxu0 %v4611_v3  ;;  %v3192_v43 = vld [vmem:[%s8491_s5 + $0x270] sm:$0xff]  ;;  %v3193_v6 = vld [vmem:[%s8491_s5 + $0x278] sm:$0xff]  ;;  %v3075_v39 = vld [vmem:[#allocation2 + $0x1e8] sm:$0xff] }
 0x33f   :  { %v2889_v48 = vsel %vm315_vm5, %v2887_v4, %v2888_v38  ;;  %v2945_v8 = vsel %vm404_vm4, %v2943_v0, %v2944_v32  ;;  %v3001_v58 = vsel %vm493_vm3, %v2999_v28, %v3000_v21  ;;  %2864 = vst.msk [vmem:[#allocation2 + $0x350] sm:$0xff] %vm1870_vm6, %v2833_v7  ;;  %3552 = vmatprep.mubr.f32.mxu0 %v4616_v5  ;;  %v3077_v31 = vld [vmem:[#allocation2 + $0x1f8] sm:$0xff]  ;;  %v3085_v51 = vld [vmem:[#allocation2 + $0x260] sm:$0xff]  ;;  %v3090_v41 = vld [vmem:[#allocation2 + $0x288] sm:$0xf] }
 0x340   :  { %2920 = vst.msk [vmem:[#allocation2 + $0x358] sm:$0xff] %vm1870_vm6, %v2889_v48  ;;  %2976 = vst.msk [vmem:[#allocation2 + $0x360] sm:$0xff] %vm1870_vm6, %v2945_v8  ;;  %v5692_v17 = vpack.c.bf16 %v3193_v6, %v3192_v43  ;;  %v3087_v2 = vld [vmem:[#allocation2 + $0x270] sm:$0xff]  ;;  %v3092_v35 = vld [vmem:[#allocation2 + $0x298] sm:$0xf] }
 0x341   :  { %3032 = vst.msk [vmem:[#allocation2 + $0x368] sm:$0xff] %vm1870_vm6, %v3001_v58  ;;  %3673 = vmatmul.mubr.f32.gmra.mrb[108].mxu1 %v4613_v61  ;;  %v3091_v22 = vld [vmem:[#allocation2 + $0x290] sm:$0xf]  ;;  %v3089_v46 = vld [vmem:[#allocation2 + $0x280] sm:$0xf]  ;;  %v3084_v15 = vld [vmem:[#allocation2 + $0x258] sm:$0xff] }
 0x342   :  { %3677 = vmatprep.mubr.f32.mxu1 %v4618_v30  ;;  %3553 = vmatmul.mubr.f32.gmra.mrb[50].mxu0 %v4615_v47  ;;  %v3080_v19 = vld [vmem:[#allocation2 + $0x210] sm:$0xf]  ;;  %v3074_v14 = vld [vmem:[#allocation2 + $0x1e0] sm:$0xff]  ;;  %v3320_v11 = vcombine.low %v3089_v46, %v3090_v41  ;;  %v3086_v29 = vld [vmem:[#allocation2 + $0x268] sm:$0xff]  ;;  %v3321_v12 = vcombine.low %v3091_v22, %v3092_v35  ;;  %v3316_v63 = vcombine.high %v3084_v15, %v3085_v51 }
 0x343   :  { %3557 = vmatprep.mubr.f32.mxu0 %v3075_v39  ;;  %v4620_v25 = vcombine.low %v3080_v19, %v3085_v51  ;;  %v3082_v49 = vld [vmem:[#allocation2 + $0x220] sm:$0xf]  ;;  %5693 = vmatprep.subr.bf16.mxu0 %v5692_v17  ;;  %v3076_v10 = vld [vmem:[#allocation2 + $0x1f0] sm:$0xff]  ;;  %v3079_v40 = vld [vmem:[#allocation2 + $0x208] sm:$0xf]  ;;  %v3318_v21 = vcombine.high %v3086_v29, %v3087_v2 }
 0x344   :  { %v4622_v34 = vcombine.low %v3082_v49, %v3087_v2  ;;  %v4619_v23 = vcombine.low %v3079_v40, %v3084_v15  ;;  %v3081_v52 = vld [vmem:[#allocation2 + $0x218] sm:$0xf]  ;;  %5695 = vmatpush3.bf16.msra.mxu0 %v5692_v17  ;;  %v4624_v32 = vcombine.high %v3085_v51, %v3320_v11  ;;  %v4626_v55 = vcombine.high %v3087_v2, %v3321_v12  ;;  %v3097_v36 = vld [vmem:[#allocation2 + $0x2e8] sm:$0xff]  ;;  %v3111_v53 = vld [vmem:[#allocation2 + $0x380] sm:$0xf] }
 0x345   :  { %3678 = vmatmul.mubr.f32.gmra.mrb[110].mxu1 %v4617_v33  ;;  %v4621_v38 = vcombine.low %v3081_v52, %v3086_v29  ;;  %v4623_v57 = vcombine.low %v3316_v63, %v3089_v46  ;;  %v4625_v16 = vcombine.low %v3318_v21, %v3091_v22  ;;  %v3095_v20 = vld [vmem:[#allocation2 + $0x2d8] sm:$0xff]  ;;  %v3112_v54 = vld [vmem:[#allocation2 + $0x388] sm:$0xf]  ;;  %v3100_v26 = vld [vmem:[#allocation2 + $0x300] sm:$0xf] }
 0x346   :  { %3682 = vmatprep.mubr.f32.mxu1 %v3077_v31  ;;  %3558 = vmatmul.mubr.f32.gmra.mrb[52].mxu0 %v3074_v14  ;;  %v3105_v45 = vld [vmem:[#allocation2 + $0x350] sm:$0xff]  ;;  %v3110_v9 = vld [vmem:[#allocation2 + $0x378] sm:$0xf]  ;;  %v3104_v59 = vld [vmem:[#allocation2 + $0x348] sm:$0xff]  ;;  %v3335_v56 = vcombine.low %v3111_v53, %v3112_v54 }
 0x347   :  { %3562 = vmatprep.mubr.f32.mxu0 %v4620_v25  ;;  %v3107_v62 = vld [vmem:[#allocation2 + $0x360] sm:$0xff]  ;;  %v3109_v37 = vld [vmem:[#allocation2 + $0x370] sm:$0xf]  ;;  %v4628_v44 = vcombine.low %v3100_v26, %v3105_v45  ;;  %v3106_v13 = vld [vmem:[#allocation2 + $0x358] sm:$0xff]  ;;  %v3330_v61 = vcombine.high %v3104_v59, %v3105_v45 }
 0x348   :  { %v3094_v50 = vld [vmem:[#allocation2 + $0x2d0] sm:$0xff]  ;;  %v3334_v18 = vcombine.low %v3109_v37, %v3110_v9  ;;  %v3096_v3 = vld [vmem:[#allocation2 + $0x2e0] sm:$0xff]  ;;  %v3099_v0 = vld [vmem:[#allocation2 + $0x2f8] sm:$0xf]  ;;  %v3332_v1 = vcombine.high %v3106_v13, %v3107_v62  ;;  %v4634_v48 = vcombine.high %v3107_v62, %v3335_v56 }
 0x349   :  { %3683 = vmatmul.mubr.f32.gmra.mrb[112].mxu1 %v3076_v10  ;;  %v3102_v24 = vld [vmem:[#allocation2 + $0x310] sm:$0xf]  ;;  %v3038_v4 = vld [vmem:[#allocation2 + $0x20] sm:$0xff]  ;;  %v4627_v28 = vcombine.low %v3099_v0, %v3104_v59  ;;  %v3101_v27 = vld [vmem:[#allocation2 + $0x308] sm:$0xf]  ;;  %v4631_v58 = vcombine.low %v3330_v61, %v3109_v37 }
 0x34a   :  { %3687 = vmatprep.mubr.f32.mxu1 %v4622_v34  ;;  %3563 = vmatmul.mubr.f32.gmra.mrb[54].mxu0 %v4619_v23  ;;  %v4630_v60 = vcombine.low %v3102_v24, %v3107_v62  ;;  %v4629_v5 = vcombine.low %v3101_v27, %v3106_v13  ;;  %v4632_v42 = vcombine.high %v3105_v45, %v3334_v18  ;;  %v3048_v8 = vld [vmem:[#allocation2 + $0x98] sm:$0xff]  ;;  %v3058_v47 = vld [vmem:[#allocation2 + $0x110] sm:$0xff]  ;;  %v3043_v33 = vld [vmem:[#allocation2 + $0x48] sm:$0xf] }
 0x34b   :  { %3567 = vmatprep.mubr.f32.mxu0 %v4624_v32  ;;  %v3284_v7 = vcombine.high %v3038_v4, %v3038_v4  ;;  %v4633_v30 = vcombine.low %v3332_v1, %v3111_v53  ;;  %v3291_v6 = vcombine.high %v3048_v8, %v3048_v8  ;;  %v3346_v39 = vcombine.low %v3043_v33, %v3048_v8  ;;  %v3053_v17 = vld [vmem:[#allocation2 + $0xc0] sm:$0xf]  ;;  %v3068_v41 = vld [vmem:[#allocation2 + $0x188] sm:$0xff]  ;;  %v3063_v35 = vld [vmem:[#allocation2 + $0x138] sm:$0xf] }
 0x34c   :  { %v3298_v31 = vcombine.high %v3058_v47, %v3058_v47  ;;  %v3078_v2 = vld [vmem:[#allocation2 + $0x200] sm:$0xff]  ;;  %v3305_v19 = vcombine.high %v3068_v41, %v3068_v41  ;;  %v3361_v46 = vcombine.low %v3063_v35, %v3068_v41  ;;  %v3088_v25 = vld [vmem:[#allocation2 + $0x278] sm:$0xff]  ;;  %v3073_v49 = vld [vmem:[#allocation2 + $0x1b0] sm:$0xf] }
 0x34d   :  { %3688 = vmatmul.mubr.f32.gmra.mrb[114].mxu1 %v4621_v38  ;;  %v3341_v43 = vcombine.low %v3038_v4, %v3284_v7  ;;  %v3351_v51 = vcombine.low %v3291_v6, %v3053_v17  ;;  %v3312_v14 = vcombine.high %v3078_v2, %v3078_v2  ;;  %v3319_v10 = vcombine.high %v3088_v25, %v3088_v25  ;;  %v3098_v34 = vld [vmem:[#allocation2 + $0x2f0] sm:$0xff]  ;;  %v3083_v29 = vld [vmem:[#allocation2 + $0x228] sm:$0xf]  ;;  %v3093_v40 = vld [vmem:[#allocation2 + $0x2a0] sm:$0xf] }
 0x34e   :  { %3692 = vmatprep.mubr.f32.mxu1 %v4626_v55  ;;  %3568 = vmatmul.mubr.f32.gmra.mrb[56].mxu0 %v4623_v57  ;;  %v3356_v22 = vcombine.low %v3058_v47, %v3298_v31  ;;  %v3366_v15 = vcombine.low %v3305_v19, %v3073_v49  ;;  %v3376_v12 = vcombine.low %v3083_v29, %v3088_v25  ;;  %v3108_v63 = vld [vmem:[#allocation2 + $0x368] sm:$0xff]  ;;  %v3103_v32 = vld [vmem:[#allocation2 + $0x318] sm:$0xf]  ;;  %v3113_v57 = vld [vmem:[#allocation2 + $0x390] sm:$0xf] }
 0x34f   :  { %3572 = vmatprep.mubr.f32.mxu0 %v3095_v20  ;;  %v3371_v11 = vcombine.low %v3078_v2, %v3312_v14  ;;  %v3326_v23 = vcombine.high %v3098_v34, %v3098_v34  ;;  %v3381_v52 = vcombine.low %v3319_v10, %v3093_v40  ;;  %v3333_v21 = vcombine.high %v3108_v63, %v3108_v63  ;;  %v4146_v20 = vld [vmem:[%s8493_s7 + $0x80] sm:$0xff]  ;;  %v4131_v62 = vld [vmem:[%s8493_s7 + $0x8] sm:$0xff]  ;;  %v4148_v54 = vld [vmem:[%s8493_s7 + $0x90] sm:$0xff] }
 0x350   :  { %v3391_v55 = vcombine.low %v3103_v32, %v3108_v63  ;;  %v4130_v45 = vld [vmem:[%s8493_s7] sm:$0xff]  ;;  %v4149_v26 = vld [vmem:[%s8493_s7 + $0x98] sm:$0xff]  ;;  %v4151_v18 = vld [vmem:[%s8493_s7 + $0xa8] sm:$0xff] }
 0x351   :  { %3693 = vmatmul.mubr.f32.gmra.mrb[116].mxu1 %v4625_v16  ;;  %v3386_v38 = vcombine.low %v3098_v34, %v3326_v23  ;;  %v3396_v16 = vcombine.low %v3333_v21, %v3113_v57  ;;  %v5698_v53 = vpack.c.bf16 %v4131_v62, %v4130_v45  ;;  %v5700_v37 = vpack.c.bf16 %v4149_v26, %v4148_v54  ;;  %v4150_v59 = vld [vmem:[%s8493_s7 + $0xa0] sm:$0xff]  ;;  %v4135_v13 = vld [vmem:[%s8493_s7 + $0x28] sm:$0xff]  ;;  %v4137_v8 = vld [vmem:[%s8493_s7 + $0x38] sm:$0xff] }
 0x352   :  { %3697 = vmatprep.mubr.f32.mxu1 %v3097_v36  ;;  %3573 = vmatmul.mubr.f32.gmra.mrb[58].mxu0 %v3094_v50  ;;  %v4147_v36 = vld [vmem:[%s8493_s7 + $0x88] sm:$0xff]  ;;  %v4132_v50 = vld [vmem:[%s8493_s7 + $0x10] sm:$0xff]  ;;  %v4178_v4 = vld [vmem:[%s8493_s7 + $0x180] sm:$0xff] }
 0x353   :  { %3577 = vmatprep.mubr.f32.mxu0 %v4628_v44  ;;  %v5696_v9 = vpack.c.bf16 %v4147_v36, %v4146_v20  ;;  %v4133_v44 = vld [vmem:[%s8493_s7 + $0x18] sm:$0xff]  ;;  %v4179_v0 = vld [vmem:[%s8493_s7 + $0x188] sm:$0xff]  ;;  %v4164_v6 = vld [vmem:[%s8493_s7 + $0x110] sm:$0xff] }
 0x354   :  { %v5702_v24 = vpack.c.bf16 %v4133_v44, %v4132_v50  ;;  %v5728_v27 = vpack.c.bf16 %v4179_v0, %v4178_v4  ;;  %v4163_v61 = vld [vmem:[%s8493_s7 + $0x108] sm:$0xff]  ;;  %v4165_v47 = vld [vmem:[%s8493_s7 + $0x118] sm:$0xff]  ;;  %v4154_v17 = vld [vmem:[%s8493_s7 + $0xc0] sm:$0xff] }
 0x355   :  { %3698 = vmatmul.mubr.f32.gmra.mrb[118].mxu1 %v3096_v3  ;;  %5697 = vmatprep.subr.bf16.mxu1 %v5696_v9  ;;  %v4134_v3 = vld [vmem:[%s8493_s7 + $0x20] sm:$0xff]  ;;  %v4155_v31 = vld [vmem:[%s8493_s7 + $0xc8] sm:$0xff]  ;;  %v4168_v10 = vld [vmem:[%s8493_s7 + $0x130] sm:$0xff] }
 0x356   :  { %3702 = vmatprep.mubr.f32.mxu1 %v4630_v60  ;;  %3578 = vmatmul.mubr.f32.gmra.mrb[60].mxu0 %v4627_v28  ;;  %v5704_v60 = vpack.c.bf16 %v4151_v18, %v4150_v59  ;;  %v5706_v56 = vpack.c.bf16 %v4135_v13, %v4134_v3  ;;  %v4162_v28 = vld [vmem:[%s8493_s7 + $0x100] sm:$0xff]  ;;  %v5712_v41 = vpack.c.bf16 %v4155_v31, %v4154_v17  ;;  %v4183_v2 = vld [vmem:[%s8493_s7 + $0x1a8] sm:$0xff]  ;;  %v4169_v29 = vld [vmem:[%s8493_s7 + $0x138] sm:$0xff] }
 0x357   :  { %3582 = vmatprep.mubr.f32.mxu0 %v4632_v42  ;;  %5699 = vmatpush3.bf16.msra.mxu1 %v5698_v53  ;;  %v4153_v42 = vld [vmem:[%s8493_s7 + $0xb8] sm:$0xff]  ;;  %v5730_v1 = vpack.c.bf16 %v4163_v61, %v4162_v28  ;;  %v4139_v35 = vld [vmem:[%s8493_s7 + $0x48] sm:$0xff]  ;;  %v4166_v14 = vld [vmem:[%s8493_s7 + $0x120] sm:$0xff]  ;;  %v5742_v23 = vpack.c.bf16 %v4169_v29, %v4168_v10 }
 0x358   :  { %5701 = vmatprep.subr.bf16.mxu1 %v5700_v37  ;;  %5729 = vmatprep.subr.bf16.mxu0 %v5728_v27  ;;  %v4167_v25 = vld [vmem:[%s8493_s7 + $0x128] sm:$0xff]  ;;  %v4157_v40 = vld [vmem:[%s8493_s7 + $0xd8] sm:$0xff]  ;;  %v4140_v63 = vld [vmem:[%s8493_s7 + $0x50] sm:$0xff] }
 0x359   :  { %3703 = vmatmul.mubr.f32.gmra.mrb[120].mxu1 %v4629_v5  ;;  %v4152_v5 = vld [vmem:[%s8493_s7 + $0xb0] sm:$0xff]  ;;  %v5738_v49 = vpack.c.bf16 %v4167_v25, %v4166_v14  ;;  %v4186_v32 = vld [vmem:[%s8493_s7 + $0x1c0] sm:$0xff]  ;;  %v4189_v9 = vld [vmem:[%s8493_s7 + $0x1d8] sm:$0xff] }
 0x35a   :  { %3707 = vmatprep.mubr.f32.mxu1 %v4634_v48  ;;  %3583 = vmatmul.mubr.f32.gmra.mrb[62].mxu0 %v4631_v58  ;;  %v5708_v7 = vpack.c.bf16 %v4153_v42, %v4152_v5  ;;  %v4136_v48 = vld [vmem:[%s8493_s7 + $0x30] sm:$0xff]  ;;  %v4170_v57 = vld [vmem:[%s8493_s7 + $0x140] sm:$0xff]  ;;  %v4173_v54 = vld [vmem:[%s8493_s7 + $0x158] sm:$0xff] }
 0x35b   :  { %5314 = vmatprep.mubr.f32.mxu0 %v3341_v43  ;;  %5703 = vmatpush3.bf16.msra.mxu1 %v5702_v24  ;;  %v4180_v58 = vld [vmem:[%s8493_s7 + $0x190] sm:$0xff]  ;;  %v4181_v43 = vld [vmem:[%s8493_s7 + $0x198] sm:$0xff]  ;;  %v4158_v37 = vld [vmem:[%s8493_s7 + $0xe0] sm:$0xff] }
 0x35c   :  { %5705 = vmatprep.subr.bf16.mxu1 %v5704_v60  ;;  %v5732_v33 = vpack.c.bf16 %v4181_v43, %v4180_v58  ;;  %v4188_v45 = vld [vmem:[%s8493_s7 + $0x1d0] sm:$0xff]  ;;  %v4159_v50 = vld [vmem:[%s8493_s7 + $0xe8] sm:$0xff]  ;;  %v4142_v44 = vld [vmem:[%s8493_s7 + $0x60] sm:$0xff] }
 0x35d   :  { %3708 = vmatmul.mubr.f32.gmra.mrb[122].mxu1 %v4633_v30  ;;  %v5710_v30 = vpack.c.bf16 %v4137_v8, %v4136_v48  ;;  %v5748_v62 = vpack.c.bf16 %v4189_v9, %v4188_v45  ;;  %v4172_v53 = vld [vmem:[%s8493_s7 + $0x150] sm:$0xff]  ;;  %v5720_v24 = vpack.c.bf16 %v4159_v50, %v4158_v37  ;;  %v4143_v59 = vld [vmem:[%s8493_s7 + $0x68] sm:$0xff]  ;;  %v4190_v18 = vld [vmem:[%s8493_s7 + $0x1e0] sm:$0xff] }
 0x35e   :  { %5315 = vmatmul.mubr.f32.vlgmr.msra.gmra.mrb[64].mxu0 %v3346_v39  ;;  %v5734_v39 = vpack.c.bf16 %v4165_v47, %v4164_v6  ;;  %v5750_v26 = vpack.c.bf16 %v4173_v54, %v4172_v53  ;;  %v4191_v3 = vld [vmem:[%s8493_s7 + $0x1e8] sm:$0xff]  ;;  %v5722_v60 = vpack.c.bf16 %v4143_v59, %v4142_v44  ;;  %v4160_v28 = vld [vmem:[%s8493_s7 + $0xf0] sm:$0xff]  ;;  %v4161_v27 = vld [vmem:[%s8493_s7 + $0xf8] sm:$0xff] }
 0x35f   :  { %5317 = vmatprep.mubr.f32.mxu0 %v3351_v51  ;;  %5707 = vmatpush3.bf16.msra.mxu1 %v5706_v56  ;;  %v4182_v51 = vld [vmem:[%s8493_s7 + $0x1a0] sm:$0xff]  ;;  %v5752_v13 = vpack.c.bf16 %v4191_v3, %v4190_v18  ;;  %v4175_v4 = vld [vmem:[%s8493_s7 + $0x168] sm:$0xff]  ;;  %v5724_v61 = vpack.c.bf16 %v4161_v27, %v4160_v28  ;;  %v4192_v5 = vld [vmem:[%s8493_s7 + $0x1f0] sm:$0xff] }
 0x360   :  { %5731 = vmatpush3.bf16.msra.mxu0 %v5730_v1  ;;  %5709 = vmatprep.subr.bf16.mxu1 %v5708_v7  ;;  %v5736_v19 = vpack.c.bf16 %v4183_v2, %v4182_v51  ;;  %v4174_v56 = vld [vmem:[%s8493_s7 + $0x160] sm:$0xff]  ;;  %v4193_v42 = vld [vmem:[%s8493_s7 + $0x1f8] sm:$0xff]  ;;  %v4144_v1 = vld [vmem:[%s8493_s7 + $0x70] sm:$0xff] }
 0x361   :  { %5733 = vmatprep.subr.bf16.mxu0 %v5732_v33  ;;  %v5754_v0 = vpack.c.bf16 %v4175_v4, %v4174_v56  ;;  %v4145_v7 = vld [vmem:[%s8493_s7 + $0x78] sm:$0xff]  ;;  %v5756_v48 = vpack.c.bf16 %v4193_v42, %v4192_v5  ;;  %v4176_v8 = vld [vmem:[%s8493_s7 + $0x170] sm:$0xff]  ;;  %v4194_v6 = vld [vmem:[%s8493_s7 + $0x200] sm:$0xff] }
 0x362   :  { %5318 = vmatmul.mubr.f32.gmra.mrb[66].mxu0 %v3356_v22  ;;  %v4138_v22 = vld [vmem:[%s8493_s7 + $0x40] sm:$0xff]  ;;  %v5726_v58 = vpack.c.bf16 %v4145_v7, %v4144_v1  ;;  %v4195_v47 = vld [vmem:[%s8493_s7 + $0x208] sm:$0xff] }
 0x363   :  { %5320 = vmatprep.mubr.f32.mxu0 %v3361_v46  ;;  %5711 = vmatpush3.bf16.msra.mxu1 %v5710_v30  ;;  %v5714_v46 = vpack.c.bf16 %v4139_v35, %v4138_v22  ;;  %v4177_v30 = vld [vmem:[%s8493_s7 + $0x178] sm:$0xff]  ;;  %v8221_v33 = vpack.c.bf16 %v4195_v47, %v4194_v6 }
 0x364   :  { %5735 = vmatpush3.bf16.msra.mxu0 %v5734_v39  ;;  %5713 = vmatprep.subr.bf16.mxu1 %v5712_v41  ;;  %v5758_v43 = vpack.c.bf16 %v4177_v30, %v4176_v8  ;;  %v4602_v39 = vld [vmem:[%s8494_s6] ss:$0 sm:$0xff] }
 0x365   :  { %5737 = vmatprep.subr.bf16.mxu0 %v5736_v19  ;;  %v3336_v17 = vcombine.high %v4602_v39, %v4602_v39 }
 0x366   :  { %5321 = vmatmul.mubr.f32.gmra.mrb[68].mxu0 %v3366_v15  ;;  %v4184_v15 = vld [vmem:[%s8493_s7 + $0x1b0] sm:$0xff] }
 0x367   :  { %5323 = vmatprep.mubr.f32.mxu0 %v3371_v11  ;;  %5715 = vmatpush3.bf16.msra.mxu1 %v5714_v46  ;;  %v4185_v11 = vld [vmem:[%s8493_s7 + $0x1b8] sm:$0xff]  ;;  %v8227_v41 = vcombine.low %v4602_v39, %v3336_v17 }
 0x368   :  { %5739 = vmatpush3.bf16.msra.mxu0 %v5738_v49  ;;  %v5740_v34 = vpack.c.bf16 %v4185_v11, %v4184_v15  ;;  %v8232_v49 = vcombine.low %v4602_v39, %v4602_v39 }
 0x36a   :  { %5324 = vmatmul.mubr.f32.gmra.mrb[70].mxu0 %v3376_v12  ;;  %v4156_v12 = vld [vmem:[%s8493_s7 + $0xd0] sm:$0xff]  ;;  %5741 = vmatprep.subr.bf16.mxu0 %v5740_v34 }
 0x36b   :  { %5326 = vmatprep.mubr.f32.mxu0 %v3381_v52  ;;  %v5716_v52 = vpack.c.bf16 %v4157_v40, %v4156_v12 }
 0x36c   :  { %5743 = vmatpush3.bf16.msra.mxu0 %v5742_v23 }
 0x36d   :  { %5717 = vmatprep.subr.bf16.mxu1 %v5716_v52  ;;  %v8237_v52 = vcombine.low %v3336_v17, %v4602_v39 }
 0x36e   :  { %5327 = vmatmul.mubr.f32.gmra.mrb[72].mxu0 %v3386_v38  ;;  %v4141_v38 = vld [vmem:[%s8493_s7 + $0x58] sm:$0xff] }
 0x36f   :  { %5329 = vmatprep.mubr.f32.mxu0 %v3391_v55  ;;  %v5718_v21 = vpack.c.bf16 %v4141_v38, %v4140_v63  ;;  %v4187_v55 = vld [vmem:[%s8493_s7 + $0x1c8] sm:$0xff] }
 0x370   :  { %v5744_v20 = vpack.c.bf16 %v4187_v55, %v4186_v32 }
 0x371   :  { %5719 = vmatpush3.bf16.msra.mxu1 %v5718_v21 }
 0x372   :  { %5330 = vmatmul.mubr.f32.gmra.mrb[74].mxu0 %v3396_v16  ;;  %v4171_v16 = vld [vmem:[%s8493_s7 + $0x148] sm:$0xff]  ;;  %5745 = vmatprep.subr.bf16.mxu0 %v5744_v20 }
 0x373   :  { %v5746_v36 = vpack.c.bf16 %v4171_v16, %v4170_v57  ;;  %5721 = vmatprep.subr.bf16.mxu1 %v5720_v24 }
 0x375   :  { %5747 = vmatpush3.bf16.msra.mxu0 %v5746_v36  ;;  %5723 = vmatpush3.bf16.msra.mxu1 %v5722_v60 }
 0x376   :  { %5749 = vmatprep.subr.bf16.mxu0 %v5748_v62  ;;  %5725 = vmatprep.subr.bf16.mxu1 %v5724_v61 }
 0x379   :  { %5751 = vmatpush3.bf16.msra.mxu0 %v5750_v26  ;;  %5727 = vmatpush3.bf16.msra.mxu1 %v5726_v58 }
 0x37a   :  { %5753 = vmatprep.subr.bf16.mxu0 %v5752_v13  ;;  %5761 = vmatprep.subr.bf16.mxu1 %v8221_v33 }
 0x37d   :  { %5755 = vmatpush3.bf16.msra.mxu0 %v5754_v0 }
 0x37e   :  { %5757 = vmatprep.subr.bf16.mxu0 %v5756_v48 }
 0x381   :  { %5759 = vmatpush3.bf16.msra.mxu0 %v5758_v43 }
 0x3f2   :  { %v4896_v31 = vpop.f32.mrb[40].mxu0 }
 0x3f3   :  { %v4964_v51 = vpop.f32.mrb[100].mxu1  ;;  %v4897_v2 = vpop.f32.mrb[41].mxu0 }
 0x3f4   :  { %v4965_v22 = vpop.f32.mrb[101].mxu1  ;;  %v4898_v35 = vadd.f32 %v4897_v2, %v4896_v31 }
 0x3f5   :  { %v4966_v19 = vadd.f32 %v4965_v22, %v4964_v51 }
 0x3f6   :  { %v3530_v46 = vadd.f32 %v4898_v35, %v8227_v41 }
 0x3f8   :  { %v8230_v14 = vadd.f32 %v4966_v19, %v3530_v46 }
 0x3fe   :  { %v4899_v25 = vpop.f32.mrb[42].mxu0 }
 0x3ff   :  { %v4967_v15 = vpop.f32.mrb[102].mxu1  ;;  %v4900_v11 = vpop.f32.mrb[43].mxu0 }
 0x400   :  { %v4901_v10 = vadd.f32 %v4900_v11, %v4899_v25  ;;  %v4968_v34 = vpop.f32.mrb[103].mxu1 }
 0x401   :  { %v4969_v29 = vadd.f32 %v4968_v34, %v4967_v15 }
 0x402   :  { %v3535_v12 = vadd.f32 %v4901_v10, %v8232_v49 }
 0x403   :  { %v4902_v23 = vpop.f32.mrb[44].mxu0 }
 0x404   :  { %v8235_v40 = vadd.f32 %v4969_v29, %v3535_v12  ;;  %v4903_v38 = vpop.f32.mrb[45].mxu0 }
 0x405   :  { %v4904_v32 = vadd.f32 %v4903_v38, %v4902_v23 }
 0x407   :  { %v4970_v63 = vpop.f32.mrb[104].mxu1  ;;  %v3540_v57 = vadd.f32 %v4904_v32, %v8237_v52 }
 0x408   :  { %v4971_v21 = vpop.f32.mrb[105].mxu1 }
 0x409   :  { %v4972_v55 = vadd.f32 %v4971_v21, %v4970_v63 }
 0x40b   :  { %v8240_v62 = vadd.f32 %v4972_v55, %v3540_v57 }
 0x40d   :  { %v4905_v16 = vpop.f32.mrb[46].mxu0 }
 0x40e   :  { %v4906_v36 = vpop.f32.mrb[47].mxu0 }
 0x40f   :  { %v4907_v45 = vadd.f32 %v4906_v36, %v4905_v16 }
 0x410   :  { %v4973_v20 = vpop.f32.mrb[106].mxu1 }
 0x411   :  { %v4974_v9 = vpop.f32.mrb[107].mxu1  ;;  %v3545_v54 = vadd.f32 %v4907_v45, %v8227_v41  ;;  %v4908_v26 = vpop.f32.mrb[48].mxu0 }
 0x412   :  { %v4975_v53 = vadd.f32 %v4974_v9, %v4973_v20  ;;  %v4909_v50 = vpop.f32.mrb[49].mxu0 }
 0x413   :  { %v4910_v44 = vadd.f32 %v4909_v50, %v4908_v26 }
 0x414   :  { %v4976_v37 = vpop.f32.mrb[108].mxu1  ;;  %v8243_v59 = vadd.f32 %v4975_v53, %v3545_v54 }
 0x415   :  { %v4977_v24 = vpop.f32.mrb[109].mxu1  ;;  %v3550_v3 = vadd.f32 %v4910_v44, %v8232_v49  ;;  %v4911_v60 = vpop.f32.mrb[50].mxu0 }
 0x416   :  { %v4978_v18 = vadd.f32 %v4977_v24, %v4976_v37  ;;  %v4912_v56 = vpop.f32.mrb[51].mxu0 }
 0x417   :  { %v4913_v4 = vadd.f32 %v4912_v56, %v4911_v60 }
 0x418   :  { %v4979_v13 = vpop.f32.mrb[110].mxu1  ;;  %v8246_v28 = vadd.f32 %v4978_v18, %v3550_v3 }
 0x419   :  { %v4980_v0 = vpop.f32.mrb[111].mxu1  ;;  %v3555_v61 = vadd.f32 %v4913_v4, %v8237_v52  ;;  %v4914_v5 = vpop.f32.mrb[52].mxu0 }
 0x41a   :  { %v4981_v27 = vadd.f32 %v4980_v0, %v4979_v13  ;;  %v4915_v1 = vpop.f32.mrb[53].mxu0 }
 0x41b   :  { %v4916_v7 = vadd.f32 %v4915_v1, %v4914_v5 }
 0x41c   :  { %v4982_v42 = vpop.f32.mrb[112].mxu1  ;;  %v8249_v8 = vadd.f32 %v4981_v27, %v3555_v61 }
 0x41d   :  { %v4983_v48 = vpop.f32.mrb[113].mxu1  ;;  %v3560_v30 = vadd.f32 %v4916_v7, %v8227_v41  ;;  %v4917_v43 = vpop.f32.mrb[54].mxu0 }
 0x41e   :  { %v4984_v58 = vadd.f32 %v4983_v48, %v4982_v42  ;;  %v4918_v47 = vpop.f32.mrb[55].mxu0 }
 0x41f   :  { %v4919_v39 = vadd.f32 %v4918_v47, %v4917_v43 }
 0x420   :  { %v4985_v6 = vpop.f32.mrb[114].mxu1  ;;  %v8252_v31 = vadd.f32 %v4984_v58, %v3560_v30 }
 0x421   :  { %v4986_v17 = vpop.f32.mrb[115].mxu1  ;;  %v3565_v2 = vadd.f32 %v4919_v39, %v8232_v49  ;;  %v4920_v22 = vpop.f32.mrb[56].mxu0 }
 0x422   :  { %v4987_v51 = vadd.f32 %v4986_v17, %v4985_v6  ;;  %v4921_v19 = vpop.f32.mrb[57].mxu0 }
 0x423   :  { %v4922_v46 = vadd.f32 %v4921_v19, %v4920_v22 }
 0x424   :  { %v4988_v35 = vpop.f32.mrb[116].mxu1  ;;  %v8255_v15 = vadd.f32 %v4987_v51, %v3565_v2 }
 0x425   :  { %v4989_v25 = vpop.f32.mrb[117].mxu1  ;;  %v3570_v10 = vadd.f32 %v4922_v46, %v8237_v52  ;;  %v4923_v34 = vpop.f32.mrb[58].mxu0  ;;  %v4196_v46 = vld [vmem:[%s8493_s7 + $0x210] sm:$0xff] }
 0x426   :  { %v4990_v11 = vadd.f32 %v4989_v25, %v4988_v35  ;;  %v4924_v12 = vpop.f32.mrb[59].mxu0 }
 0x427   :  { %v4925_v23 = vadd.f32 %v4924_v12, %v4923_v34  ;;  %v4198_v34 = vld [vmem:[%s8493_s7 + $0x220] sm:$0xff] }
 0x428   :  { %v4991_v29 = vpop.f32.mrb[118].mxu1  ;;  %v8258_v38 = vadd.f32 %v4990_v11, %v3570_v10  ;;  %v4197_v10 = vld [vmem:[%s8493_s7 + $0x218] sm:$0xff] }
 0x429   :  { %v4992_v63 = vpop.f32.mrb[119].mxu1  ;;  %v3575_v21 = vadd.f32 %v4925_v23, %v8227_v41  ;;  %v4926_v55 = vpop.f32.mrb[60].mxu0 }
 0x42a   :  { %v4993_v32 = vadd.f32 %v4992_v63, %v4991_v29  ;;  %v4927_v16 = vpop.f32.mrb[61].mxu0  ;;  %v4199_v29 = vld [vmem:[%s8493_s7 + $0x228] sm:$0xff] }
 0x42b   :  { %v4928_v20 = vadd.f32 %v4927_v16, %v4926_v55 }
 0x42c   :  { %v4994_v57 = vpop.f32.mrb[120].mxu1  ;;  %v8261_v45 = vadd.f32 %v4993_v32, %v3575_v21 }
 0x42d   :  { %v4995_v36 = vpop.f32.mrb[121].mxu1  ;;  %v3580_v53 = vadd.f32 %v4928_v20, %v8232_v49  ;;  %v4929_v54 = vpop.f32.mrb[62].mxu0 }
 0x42e   :  { %v4996_v9 = vadd.f32 %v4995_v36, %v4994_v57  ;;  %v4930_v37 = vpop.f32.mrb[63].mxu0 }
 0x42f   :  { %v4931_v50 = vadd.f32 %v4930_v37, %v4929_v54  ;;  %v8307_v54 = vpack.c.bf16 %v4197_v10, %v4196_v46 }
 0x430   :  { %v4997_v26 = vpop.f32.mrb[122].mxu1  ;;  %v8264_v24 = vadd.f32 %v4996_v9, %v3580_v53 }
 0x431   :  { %v4998_v44 = vpop.f32.mrb[123].mxu1  ;;  %v3585_v41 = vadd.f32 %v4931_v50, %v8237_v52  ;;  %v5316_v3 = vpop.f32.mrb[64].mxu0 }
 0x432   :  { %v4999_v18 = vadd.f32 %v4998_v44, %v4997_v26  ;;  %v3785_v60 = vadd.f32 %v5316_v3, %v8235_v40  ;;  %v3779_v13 = vpop.f32.mrb[65].mxu0  ;;  %v8309_v26 = vpack.c.bf16 %v4199_v29, %v4198_v34 }
 0x433   :  { %v3780_v56 = vadd.f32 %v3779_v13, %v8230_v14 }
 0x434   :  { %v8269_v4 = vadd.f32 %v4999_v18, %v3585_v41  ;;  %v3851_v0 = vcombine.high %v3785_v60, %v3785_v60  ;;  %v3876_v49 = vmax.f32 %v3785_v60, 0.0 }
 0x435   :  { %v3850_v27 = vcombine.high %v3780_v56, %v3780_v56  ;;  %v5319_v61 = vpop.f32.mrb[66].mxu0  ;;  %v3874_v42 = vmax.f32 %v3780_v56, 0.0 }
 0x436   :  { %v3789_v5 = vpop.f32.mrb[67].mxu0  ;;  %v3795_v7 = vadd.f32 %v5319_v61, %v8243_v59  ;;  %v3877_v52 = vmax.f32 %v3851_v0, 0.0  ;;  %v3947_v58 = vrot.slane %v3876_v49, 1  ;;  %v3987_v30 = vrot.slane %v3876_v49, 2 }
 0x437   :  { %v3875_v1 = vmax.f32 %v3850_v27, 0.0  ;;  %v3790_v48 = vadd.f32 %v3789_v5, %v8240_v62  ;;  %v4027_v40 = vrot.slane %v3876_v49, 3 }
 0x438   :  { %v3853_v14 = vcombine.high %v3795_v7, %v3795_v7  ;;  %v3880_v39 = vmax.f32 %v3795_v7, 0.0 }
 0x439   :  { %v3914_v43 = vcombine.low %v3874_v42, %v3875_v1  ;;  %v4066_v6 = vcombine.low %v3875_v1, %v3876_v49  ;;  %v5322_v47 = vpop.f32.mrb[68].mxu0  ;;  %v3852_v17 = vcombine.high %v3790_v48, %v3790_v48  ;;  %v3878_v51 = vmax.f32 %v3790_v48, 0.0 }
 0x43a   :  { %v8274_v2 = vadd.f32 %v5322_v47, %v8249_v8  ;;  %v3799_v22 = vpop.f32.mrb[69].mxu0  ;;  %v8278_v19 = vmax.f32 %v3853_v14, 0.0 }
 0x43b   :  { %3930 = vst.msk [vmem:[#allocation2] sm:$0xff] %vm1870_vm6, %v3914_v43  ;;  %v3946_v59 = vrot.slane %v3914_v43, 1  ;;  %v3986_v35 = vrot.slane %v3914_v43, 2  ;;  %v4026_v62 = vrot.slane %v3914_v43, 3  ;;  %4082 = vst.msk [vmem:[#allocation2 + $0x20] sm:$0xff] %vm1870_vm6, %v4066_v6  ;;  %v3879_v25 = vmax.f32 %v3852_v17, 0.0 }
 0x43c   :  { %v3915_v11 = vcombine.low %v3877_v52, %v3878_v51  ;;  %v3855_v8 = vcombine.high %v8274_v2, %v8274_v2  ;;  %v8298_v32 = vcombine.low %v3880_v39, %v8278_v19  ;;  %v3884_v53 = vmax.f32 %v8274_v2, 0.0 }
 0x43d   :  { %v3948_v12 = vsel %vm226_vm1, %v3946_v59, %v3947_v58  ;;  %v3988_v23 = vsel %vm315_vm5, %v3986_v35, %v3987_v30  ;;  %v4028_v63 = vsel %vm404_vm4, %v4026_v62, %v4027_v40  ;;  %v5325_v21 = vpop.f32.mrb[70].mxu0  ;;  %v3950_v57 = vrot.slane %v3879_v25, 1 }
 0x43e   :  { %3978 = vst.msk [vmem:[#allocation2 + $0x8] sm:$0xff] %vm1870_vm6, %v3948_v12  ;;  %4018 = vst.msk [vmem:[#allocation2 + $0x10] sm:$0xff] %vm1870_vm6, %v3988_v23  ;;  %v3949_v55 = vrot.slane %v3915_v11, 1  ;;  %v3989_v16 = vrot.slane %v3915_v11, 2  ;;  %v3990_v20 = vrot.slane %v3879_v25, 2  ;;  %v3809_v36 = vpop.f32.mrb[71].mxu0  ;;  %v4067_v18 = vcombine.low %v3878_v51, %v3879_v25 }
 0x43f   :  { %4058 = vst.msk [vmem:[#allocation2 + $0x18] sm:$0xff] %vm1870_vm6, %v4028_v63  ;;  %3931 = vst.msk [vmem:[#allocation2 + $0x78] sm:$0xff] %vm1870_vm6, %v3915_v11  ;;  %v4029_v9 = vrot.slane %v3915_v11, 3  ;;  %v4030_v44 = vrot.slane %v3879_v25, 3  ;;  %v8315_v41 = vmax.f32 %v3855_v8, 0.0  ;;  %v3800_v3 = vadd.f32 %v3799_v22, %v8246_v28 }
 0x440   :  { %3932 = vst.msk [vmem:[#allocation2 + $0xf0] sm:$0xff] %vm1870_vm6, %v8298_v32  ;;  %v3951_v37 = vsel %vm226_vm1, %v3949_v55, %v3950_v57  ;;  %v3991_v50 = vsel %vm315_vm5, %v3989_v16, %v3990_v20  ;;  %v3815_v60 = vadd.f32 %v5325_v21, %v8255_v15  ;;  %v8320_v13 = vadd.f32 %v3809_v36, %v8252_v31  ;;  %v4200_v16 = vld [vmem:[%s8493_s7 + $0x230] sm:$0xff] }
 0x441   :  { %3979 = vst.msk [vmem:[#allocation2 + $0x80] sm:$0xff] %vm1870_vm6, %v3951_v37  ;;  %4019 = vst.msk [vmem:[#allocation2 + $0x88] sm:$0xff] %vm1870_vm6, %v3991_v50  ;;  %v5328_v56 = vpop.f32.mrb[72].mxu0  ;;  %v3952_v0 = vrot.slane %v8298_v32, 1  ;;  %v3992_v49 = vrot.slane %v8298_v32, 2  ;;  %v4031_v27 = vsel %vm404_vm4, %v4029_v9, %v4030_v44  ;;  %v4032_v42 = vrot.slane %v8298_v32, 3 }
 0x442   :  { %4083 = vst.msk [vmem:[#allocation2 + $0x98] sm:$0xff] %vm1870_vm6, %v4067_v18  ;;  %v3825_v61 = vadd.f32 %v5328_v56, %v8261_v45  ;;  %v3819_v5 = vpop.f32.mrb[73].mxu0  ;;  %4059 = vst.msk [vmem:[#allocation2 + $0x90] sm:$0xff] %vm1870_vm6, %v4031_v27  ;;  %v3956_v28 = vrot.slane %v8315_v41, 1  ;;  %v3996_v31 = vrot.slane %v8315_v41, 2  ;;  %v4069_v15 = vcombine.low %v3884_v53, %v8315_v41  ;;  %v4090_v59 = vld [vmem:[#allocation2] sm:$0xff] }
 0x443   :  { %v3854_v1 = vcombine.high %v3800_v3, %v3800_v3  ;;  %v3882_v7 = vmax.f32 %v3800_v3, 0.0  ;;  %v3857_v48 = vcombine.high %v3815_v60, %v3815_v60  ;;  %v8332_v52 = vmax.f32 %v3815_v60, 0.0 }
 0x444   :  { %v4036_v58 = vrot.slane %v8315_v41, 3  ;;  %4085 = vst.msk [vmem:[#allocation2 + $0x188] sm:$0xff] %vm1870_vm6, %v4069_v15  ;;  %v3856_v45 = vcombine.high %v8320_v13, %v8320_v13  ;;  %v3886_v30 = vmax.f32 %v8320_v13, 0.0  ;;  %v3859_v40 = vcombine.high %v3825_v61, %v3825_v61 }
 0x445   :  { %v5331_v43 = vpop.f32.mrb[74].mxu0  ;;  %v4091_v6 = vld [vmem:[#allocation2 + $0x8] sm:$0xff]  ;;  %v4092_v47 = vld [vmem:[#allocation2 + $0x10] sm:$0xff]  ;;  %v3883_v39 = vmax.f32 %v3854_v1, 0.0  ;;  %v3953_v17 = vrot.slane %v3882_v7, 1  ;;  %v3993_v51 = vrot.slane %v3882_v7, 2  ;;  %v4068_v35 = vcombine.low %v8278_v19, %v3882_v7 }
 0x446   :  { %v4093_v14 = vld [vmem:[#allocation2 + $0x18] sm:$0xff]  ;;  %v4033_v2 = vrot.slane %v3882_v7, 3  ;;  %v8339_v22 = vpop.f32.mrb[75].mxu0  ;;  %4281 = vmatprep.mubr.f32.mxu1 %v4091_v6  ;;  %v3889_v62 = vmax.f32 %v3857_v48, 0.0  ;;  %v3959_v46 = vrot.slane %v8332_v52, 1  ;;  %v3892_v25 = vmax.f32 %v3825_v61, 0.0 }
 0x447   :  { %4386 = vmatprep.mubr.f32.mxu0 %v4093_v14  ;;  %4282 = vmatmul.mubr.f32.vlgmr.msra.gmra.mrb[124].mxu1 %v4090_v59  ;;  %v3917_v11 = vcombine.low %v3883_v39, %v3884_v53  ;;  %v3954_v8 = vsel %vm226_vm1, %v3952_v0, %v3953_v17  ;;  %v3994_v10 = vsel %vm315_vm5, %v3992_v49, %v3993_v51  ;;  %v3999_v19 = vrot.slane %v8332_v52, 2  ;;  %v4095_v53 = vld [vmem:[#allocation2 + $0x78] sm:$0xff]  ;;  %v4203_v14 = vld [vmem:[%s8493_s7 + $0x248] sm:$0xff] }
 0x448   :  { %4387 = vmatmul.mubr.f32.vlgmr.msra.gmra.mrb[76].mxu0 %v4092_v47  ;;  %v4034_v34 = vsel %vm404_vm4, %v4032_v42, %v4033_v2  ;;  %v4096_v29 = vld [vmem:[#allocation2 + $0x80] sm:$0xff]  ;;  %5763 = vmatpush3.bf16.msra.mxu1 %v8221_v33  ;;  %3980 = vst.msk [vmem:[#allocation2 + $0xf8] sm:$0xff] %vm1870_vm6, %v3954_v8  ;;  %4020 = vst.msk [vmem:[#allocation2 + $0x100] sm:$0xff] %vm1870_vm6, %v3994_v10  ;;  %v3887_v12 = vmax.f32 %v3856_v45, 0.0  ;;  %v8352_v23 = vmax.f32 %v3859_v40, 0.0  ;;  %v4097_v37 = vld [vmem:[#allocation2 + $0x88] sm:$0xff] }
 0x449   :  { %4060 = vst.msk [vmem:[#allocation2 + $0x108] sm:$0xff] %vm1870_vm6, %v4034_v34  ;;  %4084 = vst.msk [vmem:[#allocation2 + $0x110] sm:$0xff] %vm1870_vm6, %v4068_v35  ;;  %v3820_v63 = vadd.f32 %v3819_v5, %v8258_v38  ;;  %4286 = vmatprep.mubr.f32.mxu1 %v4096_v29  ;;  %5765 = vmatprep.subr.bf16.mxu1 %v8307_v54  ;;  %v3955_v33 = vrot.slane %v3917_v11, 1  ;;  %v3995_v32 = vrot.slane %v3917_v11, 2  ;;  %v4035_v21 = vrot.slane %v3917_v11, 3  ;;  %v4098_v57 = vld [vmem:[#allocation2 + $0x90] sm:$0xff] }
 0x44a   :  { %3933 = vst.msk [vmem:[#allocation2 + $0x168] sm:$0xff] %vm1870_vm6, %v3917_v11  ;;  %v8358_v55 = vadd.f32 %v5331_v43, %v8269_v4  ;;  %v3918_v20 = vcombine.low %v3886_v30, %v3887_v12  ;;  %v4070_v36 = vcombine.low %v3887_v12, %v8332_v52  ;;  %v8365_v38 = vcombine.low %v3892_v25, %v8352_v23  ;;  %v4201_v4 = vld [vmem:[%s8493_s7 + $0x238] sm:$0xff]  ;;  %v4100_v43 = vld [vmem:[#allocation2 + $0xf0] sm:$0xff] }
 0x44b   :  { %v3858_v9 = vcombine.high %v3820_v63, %v3820_v63  ;;  %4391 = vmatprep.mubr.f32.mxu0 %v4098_v57  ;;  %v3957_v50 = vsel %vm226_vm1, %v3955_v33, %v3956_v28  ;;  %v3997_v44 = vsel %vm315_vm5, %v3995_v32, %v3996_v31  ;;  %v4037_v18 = vsel %vm404_vm4, %v4035_v21, %v4036_v58  ;;  %v4202_v31 = vld [vmem:[%s8493_s7 + $0x240] sm:$0xff]  ;;  %v4205_v29 = vld [vmem:[%s8493_s7 + $0x258] sm:$0xff] }
 0x44c   :  { %v3890_v41 = vmax.f32 %v3820_v63, 0.0  ;;  %4287 = vmatmul.mubr.f32.gmra.mrb[126].mxu1 %v4095_v53  ;;  %4392 = vmatmul.mubr.f32.gmra.mrb[78].mxu0 %v4097_v37  ;;  %3981 = vst.msk [vmem:[#allocation2 + $0x170] sm:$0xff] %vm1870_vm6, %v3957_v50  ;;  %4021 = vst.msk [vmem:[#allocation2 + $0x178] sm:$0xff] %vm1870_vm6, %v3997_v44  ;;  %v4039_v3 = vrot.slane %v8332_v52, 3  ;;  %v3958_v60 = vrot.slane %v3918_v20, 1  ;;  %v3998_v13 = vrot.slane %v3918_v20, 2 }
 0x44d   :  { %4061 = vst.msk [vmem:[#allocation2 + $0x180] sm:$0xff] %vm1870_vm6, %v4037_v18  ;;  %3934 = vst.msk [vmem:[#allocation2 + $0x1e0] sm:$0xff] %vm1870_vm6, %v3918_v20  ;;  %v4038_v56 = vrot.slane %v3918_v20, 3  ;;  %5767 = vmatpush3.bf16.msra.mxu1 %v8307_v54  ;;  %v3891_v0 = vmax.f32 %v3858_v9, 0.0  ;;  %v5772_v27 = vpack.c.bf16 %v4201_v4, %v4200_v16  ;;  %v3861_v28 = vcombine.high %v8358_v55, %v8358_v55  ;;  %v4206_v16 = vld [vmem:[%s8493_s7 + $0x260] sm:$0xff] }
 0x44e   :  { %4086 = vst.msk [vmem:[#allocation2 + $0x200] sm:$0xff] %vm1870_vm6, %v4070_v36  ;;  %3936 = vst.msk [vmem:[#allocation2 + $0x2d0] sm:$0xff] %vm1870_vm6, %v8365_v38  ;;  %v3919_v49 = vcombine.low %v3889_v62, %v3890_v41  ;;  %5769 = vmatprep.subr.bf16.mxu1 %v8309_v26  ;;  %v3960_v61 = vsel %vm226_vm1, %v3958_v60, %v3959_v46  ;;  %v4000_v5 = vsel %vm315_vm5, %v3998_v13, %v3999_v19  ;;  %v4204_v46 = vld [vmem:[%s8493_s7 + $0x250] sm:$0xff] }
 0x44f   :  { %v4040_v42 = vsel %vm404_vm4, %v4038_v56, %v4039_v3  ;;  %3982 = vst.msk [vmem:[#allocation2 + $0x1e8] sm:$0xff] %vm1870_vm6, %v3960_v61  ;;  %4022 = vst.msk [vmem:[#allocation2 + $0x1f0] sm:$0xff] %vm1870_vm6, %v4000_v5  ;;  %v3962_v15 = vrot.slane %v3891_v0, 1  ;;  %v4002_v7 = vrot.slane %v3891_v0, 2  ;;  %v4101_v48 = vld [vmem:[#allocation2 + $0xf8] sm:$0xff]  ;;  %v4042_v45 = vrot.slane %v3891_v0, 3 }
 0x450   :  { %4062 = vst.msk [vmem:[#allocation2 + $0x1f8] sm:$0xff] %vm1870_vm6, %v4040_v42  ;;  %3935 = vst.msk [vmem:[#allocation2 + $0x258] sm:$0xff] %vm1870_vm6, %v3919_v49  ;;  %v3961_v54 = vrot.slane %v3919_v49, 1  ;;  %v4001_v1 = vrot.slane %v3919_v49, 2  ;;  %v4103_v52 = vld [vmem:[#allocation2 + $0x108] sm:$0xff]  ;;  %v4041_v58 = vrot.slane %v3919_v49, 3  ;;  %v4071_v30 = vcombine.low %v3890_v41, %v3891_v0  ;;  %4291 = vmatprep.mubr.f32.mxu1 %v4101_v48 }
 0x451   :  { %v3896_v40 = vmax.f32 %v8358_v55, 0.0  ;;  %4396 = vmatprep.mubr.f32.mxu0 %v4103_v52  ;;  %v4102_v6 = vld [vmem:[#allocation2 + $0x100] sm:$0xff]  ;;  %v8401_v17 = vmax.f32 %v3861_v28, 0.0  ;;  %v3830_v51 = vadd.f32 %v8339_v22, %v8264_v24  ;;  %4292 = vmatmul.mubr.f32.gmra.mrb[128].mxu1 %v4100_v43  ;;  %v3964_v59 = vrot.slane %v8365_v38, 1  ;;  %v4105_v10 = vld [vmem:[#allocation2 + $0x168] sm:$0xff]  ;;  %v4208_v42 = vld [vmem:[%s8493_s7 + $0x270] sm:$0xff] }
 0x452   :  { %v3963_v47 = vsel %vm226_vm1, %v3961_v54, %v3962_v15  ;;  %v4003_v39 = vsel %vm315_vm5, %v4001_v1, %v4002_v7  ;;  %4397 = vmatmul.mubr.f32.gmra.mrb[80].mxu0 %v4102_v6  ;;  %v4043_v2 = vsel %vm404_vm4, %v4041_v58, %v4042_v45  ;;  %4087 = vst.msk [vmem:[#allocation2 + $0x278] sm:$0xff] %vm1870_vm6, %v4071_v30  ;;  %v4004_v25 = vrot.slane %v8365_v38, 2  ;;  %v4209_v28 = vld [vmem:[%s8493_s7 + $0x278] sm:$0xff]  ;;  %v4094_v30 = vld [vmem:[#allocation2 + $0x20] sm:$0xff]  ;;  %v4104_v43 = vld [vmem:[#allocation2 + $0x110] sm:$0xff] }
 0x453   :  { %3983 = vst.msk [vmem:[#allocation2 + $0x260] sm:$0xff] %vm1870_vm6, %v3963_v47  ;;  %4023 = vst.msk [vmem:[#allocation2 + $0x268] sm:$0xff] %vm1870_vm6, %v4003_v39  ;;  %5771 = vmatpush3.bf16.msra.mxu1 %v8309_v26  ;;  %v4073_v35 = vcombine.low %v3896_v40, %v8401_v17  ;;  %v4106_v62 = vld [vmem:[#allocation2 + $0x170] sm:$0xff]  ;;  %v5776_v22 = vpack.c.bf16 %v4203_v14, %v4202_v31  ;;  %v4044_v11 = vrot.slane %v8365_v38, 3  ;;  %v3894_v26 = vmax.f32 %v3830_v51, 0.0  ;;  %v4107_v34 = vld [vmem:[#allocation2 + $0x178] sm:$0xff] }
 0x454   :  { %4063 = vst.msk [vmem:[#allocation2 + $0x270] sm:$0xff] %vm1870_vm6, %v4043_v2  ;;  %v4108_v24 = vld [vmem:[#allocation2 + $0x180] sm:$0xff]  ;;  %5773 = vmatprep.subr.bf16.mxu1 %v5772_v27  ;;  %v3860_v8 = vcombine.high %v3830_v51, %v3830_v51  ;;  %4296 = vmatprep.mubr.f32.mxu1 %v4106_v62  ;;  %v5780_v57 = vpack.c.bf16 %v4205_v29, %v4204_v46  ;;  %v3968_v4 = vrot.slane %v8401_v17, 1  ;;  %v4008_v50 = vrot.slane %v8401_v17, 2  ;;  %v4109_v6 = vld [vmem:[#allocation2 + $0x188] sm:$0xff] }
 0x455   :  { %4401 = vmatprep.mubr.f32.mxu0 %v4108_v24  ;;  %4089 = vst.msk [vmem:[#allocation2 + $0x368] sm:$0xff] %vm1870_vm6, %v4073_v35  ;;  %4297 = vmatmul.mubr.f32.gmra.mrb[130].mxu1 %v4105_v10  ;;  %v3965_v12 = vrot.slane %v3894_v26, 1  ;;  %v4005_v63 = vrot.slane %v3894_v26, 2  ;;  %v4045_v33 = vrot.slane %v3894_v26, 3  ;;  %v4072_v55 = vcombine.low %v8352_v23, %v3894_v26  ;;  %v4110_v53 = vld [vmem:[#allocation2 + $0x1e0] sm:$0xff]  ;;  %v4207_v23 = vld [vmem:[%s8493_s7 + $0x268] sm:$0xff] }
 0x456   :  { %4402 = vmatmul.mubr.f32.gmra.mrb[82].mxu0 %v4107_v34  ;;  %v3895_v19 = vmax.f32 %v3860_v8, 0.0  ;;  %v4111_v32 = vld [vmem:[#allocation2 + $0x1e8] sm:$0xff]  ;;  %v4112_v37 = vld [vmem:[#allocation2 + $0x1f0] sm:$0xff]  ;;  %v4048_v18 = vrot.slane %v8401_v17, 3  ;;  %v5784_v56 = vpack.c.bf16 %v4207_v23, %v4206_v16  ;;  %v5788_v15 = vpack.c.bf16 %v4209_v28, %v4208_v42  ;;  %v4114_v14 = vld [vmem:[#allocation2 + $0x200] sm:$0xff] }
 0x457   :  { %v4113_v21 = vld [vmem:[#allocation2 + $0x1f8] sm:$0xff]  ;;  %5775 = vmatpush3.bf16.msra.mxu1 %v5772_v27  ;;  %4301 = vmatprep.mubr.f32.mxu1 %v4111_v32  ;;  %v3966_v36 = vsel %vm226_vm1, %v3964_v59, %v3965_v12  ;;  %v4006_v38 = vsel %vm315_vm5, %v4004_v25, %v4005_v63  ;;  %v4046_v9 = vsel %vm404_vm4, %v4044_v11, %v4045_v33  ;;  %v4120_v1 = vld [vmem:[#allocation2 + $0x2d0] sm:$0xff]  ;;  %v4635_v59 = vld [vmem:[%s8495_s8] ss:$0 sm:$0xff] }
 0x458   :  { %4406 = vmatprep.mubr.f32.mxu0 %v4113_v21  ;;  %v3921_v20 = vcombine.low %v3895_v19, %v3896_v40  ;;  %5777 = vmatprep.subr.bf16.mxu1 %v5776_v22  ;;  %3984 = vst.msk [vmem:[#allocation2 + $0x2d8] sm:$0xff] %vm1870_vm6, %v3966_v36  ;;  %4024 = vst.msk [vmem:[#allocation2 + $0x2e0] sm:$0xff] %vm1870_vm6, %v4006_v38  ;;  %v4115_v61 = vld [vmem:[#allocation2 + $0x258] sm:$0xff] }
 0x459   :  { %4064 = vst.msk [vmem:[#allocation2 + $0x2e8] sm:$0xff] %vm1870_vm6, %v4046_v9  ;;  %4088 = vst.msk [vmem:[#allocation2 + $0x2f0] sm:$0xff] %vm1870_vm6, %v4072_v55  ;;  %4302 = vmatmul.mubr.f32.gmra.mrb[132].mxu1 %v4110_v53  ;;  %v4099_v40 = vld [vmem:[#allocation2 + $0x98] sm:$0xff] }
 0x45a   :  { %4407 = vmatmul.mubr.f32.gmra.mrb[84].mxu0 %v4112_v37  ;;  %v4116_v44 = vld [vmem:[#allocation2 + $0x260] sm:$0xff]  ;;  %3937 = vst.msk [vmem:[#allocation2 + $0x348] sm:$0xff] %vm1870_vm6, %v3921_v20  ;;  %v3967_v41 = vrot.slane %v3921_v20, 1  ;;  %v4007_v3 = vrot.slane %v3921_v20, 2  ;;  %v4047_v60 = vrot.slane %v3921_v20, 3  ;;  %v4117_v5 = vld [vmem:[#allocation2 + $0x268] sm:$0xff] }
 0x45b   :  { %4306 = vmatprep.mubr.f32.mxu1 %v4116_v44  ;;  %v4118_v13 = vld [vmem:[#allocation2 + $0x270] sm:$0xff]  ;;  %5779 = vmatpush3.bf16.msra.mxu1 %v5776_v22  ;;  %v4119_v47 = vld [vmem:[#allocation2 + $0x278] sm:$0xff] }
 0x45c   :  { %4411 = vmatprep.mubr.f32.mxu0 %v4118_v13  ;;  %5781 = vmatprep.subr.bf16.mxu1 %v5780_v57  ;;  %v3969_v0 = vsel %vm226_vm1, %v3967_v41, %v3968_v4  ;;  %v4009_v49 = vsel %vm315_vm5, %v4007_v3, %v4008_v50  ;;  %v4049_v27 = vsel %vm404_vm4, %v4047_v60, %v4048_v18  ;;  %v4129_v17 = vld [vmem:[#allocation2 + $0x368] sm:$0xff] }
 0x45d   :  { %3985 = vst.msk [vmem:[#allocation2 + $0x350] sm:$0xff] %vm1870_vm6, %v3969_v0  ;;  %4025 = vst.msk [vmem:[#allocation2 + $0x358] sm:$0xff] %vm1870_vm6, %v4009_v49  ;;  %4307 = vmatmul.mubr.f32.gmra.mrb[134].mxu1 %v4115_v61 }
 0x45e   :  { %4065 = vst.msk [vmem:[#allocation2 + $0x360] sm:$0xff] %vm1870_vm6, %v4049_v27  ;;  %4412 = vmatmul.mubr.f32.gmra.mrb[86].mxu0 %v4117_v5 }
 0x45f   :  { %5783 = vmatpush3.bf16.msra.mxu1 %v5780_v57  ;;  %v4121_v31 = vld [vmem:[#allocation2 + $0x2d8] sm:$0xff]  ;;  %v4122_v7 = vld [vmem:[#allocation2 + $0x2e0] sm:$0xff] }
 0x460   :  { %5785 = vmatprep.subr.bf16.mxu1 %v5784_v56  ;;  %v4123_v54 = vld [vmem:[#allocation2 + $0x2e8] sm:$0xff]  ;;  %4311 = vmatprep.mubr.f32.mxu1 %v4121_v31  ;;  %v4124_v39 = vld [vmem:[#allocation2 + $0x2f0] sm:$0xff] }
 0x461   :  { %4416 = vmatprep.mubr.f32.mxu0 %v4123_v54  ;;  %4312 = vmatmul.mubr.f32.gmra.mrb[136].mxu1 %v4120_v1  ;;  %v4125_v58 = vld [vmem:[#allocation2 + $0x348] sm:$0xff] }
 0x462   :  { %4417 = vmatmul.mubr.f32.gmra.mrb[88].mxu0 %v4122_v7 }
 0x463   :  { %5787 = vmatpush3.bf16.msra.mxu1 %v5784_v56 }
 0x464   :  { %v4126_v48 = vld [vmem:[#allocation2 + $0x350] sm:$0xff]  ;;  %5789 = vmatprep.subr.bf16.mxu1 %v5788_v15  ;;  %v4127_v45 = vld [vmem:[#allocation2 + $0x358] sm:$0xff] }
 0x465   :  { %v4128_v52 = vld [vmem:[#allocation2 + $0x360] sm:$0xff]  ;;  %4316 = vmatprep.mubr.f32.mxu1 %v4126_v48 }
 0x466   :  { %4421 = vmatprep.mubr.f32.mxu0 %v4128_v52  ;;  %4317 = vmatmul.mubr.f32.gmra.mrb[138].mxu1 %v4125_v58 }
 0x467   :  { %4422 = vmatmul.mubr.f32.gmra.mrb[90].mxu0 %v4127_v45  ;;  %5791 = vmatpush3.bf16.msra.mxu1 %v5788_v15 }
 0x468   :  { %5364 = vmatprep.mubr.f32.mxu1 %v4094_v30 }
 0x46a   :  { %5365 = vmatmul.mubr.f32.vlgmr.msra.gmra.mrb[140].mxu1 %v4099_v40 }
 0x46b   :  { %5367 = vmatprep.mubr.f32.mxu1 %v4104_v43 }
 0x46e   :  { %5368 = vmatmul.mubr.f32.gmra.mrb[142].mxu1 %v4109_v6 }
 0x46f   :  { %5370 = vmatprep.mubr.f32.mxu1 %v4114_v14 }
 0x472   :  { %5371 = vmatmul.mubr.f32.gmra.mrb[144].mxu1 %v4119_v47 }
 0x473   :  { %5373 = vmatprep.mubr.f32.mxu1 %v4124_v39 }
 0x476   :  { %5374 = vmatmul.mubr.f32.gmra.mrb[146].mxu1 %v4129_v17 }
 0x51a   :  { %v5060_v51 = vpop.f32.mrb[124].mxu1 }
 0x51b   :  { %v5116_v2 = vpop.f32.mrb[76].mxu0  ;;  %v5061_v35 = vpop.f32.mrb[125].mxu1 }
 0x51c   :  { %v5117_v62 = vpop.f32.mrb[77].mxu0  ;;  %v5062_v24 = vadd.f32 %v5061_v35, %v5060_v51 }
 0x51d   :  { %v5118_v22 = vadd.f32 %v5117_v62, %v5116_v2 }
 0x51e   :  { %v4284_v46 = vadd.f32 %v5062_v24, %v4635_v59 }
 0x51f   :  { %v5063_v25 = vpop.f32.mrb[126].mxu1  ;;  %v5119_v11 = vpop.f32.mrb[78].mxu0 }
 0x520   :  { %v5064_v8 = vpop.f32.mrb[127].mxu1  ;;  %v5120_v26 = vpop.f32.mrb[79].mxu0  ;;  %v4389_v10 = vadd.f32 %v5118_v22, %v4284_v46 }
 0x521   :  { %v5065_v34 = vadd.f32 %v5064_v8, %v5063_v25  ;;  %v5121_v29 = vadd.f32 %v5120_v26, %v5119_v11 }
 0x523   :  { %v4289_v19 = vadd.f32 %v5065_v34, %v4635_v59 }
 0x524   :  { %v5066_v12 = vpop.f32.mrb[128].mxu1 }
 0x525   :  { %v5122_v63 = vpop.f32.mrb[80].mxu0  ;;  %v4394_v33 = vadd.f32 %v5121_v29, %v4289_v19  ;;  %v5067_v32 = vpop.f32.mrb[129].mxu1 }
 0x526   :  { %v5123_v21 = vpop.f32.mrb[81].mxu0  ;;  %v5068_v55 = vadd.f32 %v5067_v32, %v5066_v12 }
 0x527   :  { %v5124_v57 = vadd.f32 %v5123_v21, %v5122_v63 }
 0x528   :  { %v4294_v16 = vadd.f32 %v5068_v55, %v4635_v59  ;;  %v5069_v20 = vpop.f32.mrb[130].mxu1 }
 0x529   :  { %v5125_v36 = vpop.f32.mrb[82].mxu0  ;;  %v5070_v38 = vpop.f32.mrb[131].mxu1 }
 0x52a   :  { %v5126_v9 = vpop.f32.mrb[83].mxu0  ;;  %v5071_v53 = vadd.f32 %v5070_v38, %v5069_v20  ;;  %v4399_v23 = vadd.f32 %v5124_v57, %v4294_v16 }
 0x52b   :  { %v5127_v37 = vadd.f32 %v5126_v9, %v5125_v36 }
 0x52c   :  { %v4299_v4 = vadd.f32 %v5071_v53, %v4635_v59  ;;  %v5072_v50 = vpop.f32.mrb[132].mxu1 }
 0x52d   :  { %v5128_v44 = vpop.f32.mrb[84].mxu0  ;;  %v5073_v18 = vpop.f32.mrb[133].mxu1 }
 0x52e   :  { %v5129_v41 = vpop.f32.mrb[85].mxu0  ;;  %v5074_v3 = vadd.f32 %v5073_v18, %v5072_v50  ;;  %v4404_v13 = vadd.f32 %v5127_v37, %v4299_v4 }
 0x52f   :  { %v5130_v60 = vadd.f32 %v5129_v41, %v5128_v44 }
 0x530   :  { %v4304_v56 = vadd.f32 %v5074_v3, %v4635_v59  ;;  %v5075_v0 = vpop.f32.mrb[134].mxu1 }
 0x531   :  { %v5131_v49 = vpop.f32.mrb[86].mxu0  ;;  %v5076_v27 = vpop.f32.mrb[135].mxu1 }
 0x532   :  { %v5132_v61 = vpop.f32.mrb[87].mxu0  ;;  %v5077_v5 = vadd.f32 %v5076_v27, %v5075_v0  ;;  %v4409_v28 = vadd.f32 %v5130_v60, %v4304_v56 }
 0x533   :  { %v5133_v42 = vadd.f32 %v5132_v61, %v5131_v49 }
 0x534   :  { %v4309_v31 = vadd.f32 %v5077_v5, %v4635_v59  ;;  %v5078_v54 = vpop.f32.mrb[136].mxu1 }
 0x535   :  { %v5134_v15 = vpop.f32.mrb[88].mxu0  ;;  %v5079_v1 = vpop.f32.mrb[137].mxu1 }
 0x536   :  { %v5135_v7 = vpop.f32.mrb[89].mxu0  ;;  %v4414_v48 = vadd.f32 %v5133_v42, %v4309_v31  ;;  %v5080_v52 = vadd.f32 %v5079_v1, %v5078_v54 }
 0x537   :  { %v5136_v58 = vadd.f32 %v5135_v7, %v5134_v15 }
 0x538   :  { %v4314_v45 = vadd.f32 %v5080_v52, %v4635_v59 }
 0x539   :  { %v5081_v30 = vpop.f32.mrb[138].mxu1 }
 0x53a   :  { %v5137_v40 = vpop.f32.mrb[90].mxu0  ;;  %v5082_v43 = vpop.f32.mrb[139].mxu1  ;;  %v4419_v39 = vadd.f32 %v5136_v58, %v4314_v45 }
 0x53b   :  { %v5138_v6 = vpop.f32.mrb[91].mxu0  ;;  %v5083_v14 = vadd.f32 %v5082_v43, %v5081_v30 }
 0x53c   :  { %v5139_v47 = vadd.f32 %v5138_v6, %v5137_v40 }
 0x53d   :  { %v4319_v17 = vadd.f32 %v5083_v14, %v4635_v59  ;;  %v5366_v51 = vpop.f32.mrb[140].mxu1 }
 0x53e   :  { %v4499_v2 = vadd.f32 %v5366_v51, %v4394_v33  ;;  %v4493_v35 = vpop.f32.mrb[141].mxu1 }
 0x53f   :  { %v4494_v62 = vadd.f32 %v4493_v35, %v4389_v10  ;;  %v4424_v24 = vadd.f32 %v5139_v47, %v4319_v17 }
 0x540   :  { %v4533_v22 = vmax.f32 %v4499_v2, 0.0 }
 0x541   :  { %v4532_v46 = vmax.f32 %v4494_v62, 0.0  ;;  %v5369_v25 = vpop.f32.mrb[142].mxu1 }
 0x542   :  { %4541 = vst.msk [vmem:[%s8496_s9 + $0x8] sm:$0xff] %vm1870_vm6, %v4533_v22  ;;  %v4509_v11 = vadd.f32 %v5369_v25, %v4404_v13  ;;  %v4503_v8 = vpop.f32.mrb[143].mxu1 }
 0x543   :  { %4540 = vst.msk [vmem:[%s8496_s9] sm:$0xff] %vm1870_vm6, %v4532_v46  ;;  %v4504_v59 = vadd.f32 %v4503_v8, %v4399_v23 }
 0x544   :  { %v4535_v26 = vmax.f32 %v4509_v11, 0.0 }
 0x545   :  { %v4534_v34 = vmax.f32 %v4504_v59, 0.0  ;;  %v5372_v10 = vpop.f32.mrb[144].mxu1 }
 0x546   :  { %4543 = vst.msk [vmem:[%s8496_s9 + $0x18] sm:$0xff] %vm1870_vm6, %v4535_v26  ;;  %v4519_v29 = vadd.f32 %v5372_v10, %v4414_v48  ;;  %v4513_v19 = vpop.f32.mrb[145].mxu1 }
 0x547   :  { %4542 = vst.msk [vmem:[%s8496_s9 + $0x10] sm:$0xff] %vm1870_vm6, %v4534_v34  ;;  %v4514_v12 = vadd.f32 %v4513_v19, %v4409_v28 }
 0x548   :  { %v4537_v63 = vmax.f32 %v4519_v29, 0.0 }
 0x549   :  { %v4536_v33 = vmax.f32 %v4514_v12, 0.0  ;;  %v5375_v32 = vpop.f32.mrb[146].mxu1 }
 0x54a   :  { %4545 = vst.msk [vmem:[%s8496_s9 + $0x28] sm:$0xff] %vm1870_vm6, %v4537_v63  ;;  %v4529_v21 = vadd.f32 %v5375_v32, %v4424_v24  ;;  %v4523_v55 = vpop.f32.mrb[147].mxu1 }
 0x54b   :  { %4544 = vst.msk [vmem:[%s8496_s9 + $0x20] sm:$0xff] %vm1870_vm6, %v4536_v33  ;;  %v4524_v57 = vadd.f32 %v4523_v55, %v4419_v39 }
 0x54c   :  { %v4539_v16 = vmax.f32 %v4529_v21, 0.0 }
 0x54d   :  { %v4538_v20 = vmax.f32 %v4524_v57, 0.0 }
 0x54e   :  { %4547 = vst.msk [vmem:[%s8496_s9 + $0x38] sm:$0xff] %vm1870_vm6, %v4539_v16 }
 0x54f   :  { %4546 = vst.msk [vmem:[%s8496_s9 + $0x30] sm:$0xff] %vm1870_vm6, %v4538_v20 }

</bundles_post_ra>
